<compile_context>
chip_gen: v7x
topology: tpu7x:2x2x1
jax: 0.10.0
libtpu: 0.0.40
codegen_flags: <defaults>
</compile_context>

<pallas_src>
import functools

import jax
import jax.numpy as jnp
from jax import lax
from jax.experimental import pallas as pl
from jax.experimental.pallas import tpu as pltpu

KH = KW = 3       # 3x3 conv
CO_TILE = 128     # conv1 output-channel tile (one lane-width)


def decoder_kernel(xs_ref, w1_ref, shift_ref, w2_ref, b2_ref, o_ref, y_ref, *, W):
    # xs_ref:    (3, (H+2)*W, C) bf16  dx-shifted, row-flattened padded input
    # w1_ref:    (3, 3, C, C)    bf16  conv1 weights (HWIO), BN scale folded in
    # shift_ref: (1, C)          f32   folded BN shift
    # w2_ref:    (C, NCP)        bf16  1x1-conv weights, out-channels padded to 128
    # b2_ref:    (1, NCP)        f32   1x1-conv bias, padded
    # o_ref:     (H*W, NCP)      f32   lane-dense output tile
    # y_ref:     (H*W, C)        bf16  VMEM scratch: ReLU(BN(conv1)) activation
    HW, _ = o_ref.shape
    C = w2_ref.shape[0]

    # --- 3x3 conv + folded BN + ReLU, in 128-lane output-channel tiles -------
    # (keeps the live accumulator at 32 vregs; LHS taps are zero-copy views)
    for co in range(C // CO_TILE):
        c0, c1 = co * CO_TILE, (co + 1) * CO_TILE
        acc = None
        for dy in range(KH):
            r0 = dy * W                      # static offset, multiple of 8/16
            for dx in range(KW):
                patch = xs_ref[dx, r0:r0 + HW, :]          # aligned, no copy
                tap = jnp.dot(patch, w1_ref[dy, dx, :, c0:c1],
                              preferred_element_type=jnp.float32)
                acc = tap if acc is None else acc + tap
        y = jnp.maximum(acc + shift_ref[:, c0:c1], 0.0)     # BN shift + ReLU
        y_ref[:, c0:c1] = y.astype(y_ref.dtype)

    # --- 1x1 conv (pointwise) + bias, lane-dense output ----------------------
    out = jnp.dot(y_ref[...], w2_ref[...], preferred_element_type=jnp.float32)
    o_ref[...] = (out + b2_ref[...]).astype(o_ref.dtype)


def decoder_forward(x_nchw, params):
    """x_nchw: (N, 256, H, W) float32.  Returns (N, num_classes, H, W) float32."""
    w1, scale, shift, w2, b2 = params
    N, C, H, W = x_nchw.shape
    NC = w2.shape[-1]
    NCP = ((NC + 127) // 128) * 128          # pad 1x1-conv out channels to lanes
    HW, RP = H * W, (H + 2) * W

    # ---- wrapper-side prep (plain XLA, fused/overlapped with the kernel) ----
    x = jnp.transpose(x_nchw, (0, 2, 3, 1))                    # NHWC
    xp = jnp.pad(x, ((0, 0), (1, 1), (1, 1), (0, 0)))          # "same" padding
    # Three dx-shifted copies so the kernel only ever slices leading dims or
    # 8/16-aligned sublane windows (no in-kernel relayout copies).
    xs = jnp.stack([xp[:, :, dx:dx + W, :] for dx in range(KW)], axis=1)
    xs = xs.reshape(N, KW, RP, C).astype(jnp.bfloat16)         # (N,3,(H+2)*W,C)

    # Fold eval-mode BN scale into the conv1 weights (per output channel).
    w1f = (w1 * scale[None, None, None, :]).astype(jnp.bfloat16)
    shift2d = shift.reshape(1, C).astype(jnp.float32)
    w2p = jnp.zeros((C, NCP), jnp.float32).at[:, :NC].set(w2).astype(jnp.bfloat16)
    b2p = jnp.zeros((1, NCP), jnp.float32).at[:, :NC].set(b2.reshape(1, NC))

    cost = pl.CostEstimate(
        flops=2 * N * HW * C * (KH * KW * C + NCP),
        transcendentals=0,
        bytes_accessed=(xs.size * 2 + w1f.size * 2 + w2p.size * 2
                        + shift2d.size * 4 + b2p.size * 4 + N * HW * NCP * 4),
    )

    out_flat = pl.pallas_call(
        functools.partial(decoder_kernel, W=W),
        out_shape=jax.ShapeDtypeStruct((N, HW, NCP), jnp.float32),
        grid_spec=pltpu.PrefetchScalarGridSpec(
            num_scalar_prefetch=0,
            grid=(N,),
            in_specs=[
                pl.BlockSpec((pl.Squeezed(), KW, RP, C), lambda n: (n, 0, 0, 0)),
                pl.BlockSpec((KH, KW, C, C), lambda n: (0, 0, 0, 0)),
                pl.BlockSpec((1, C), lambda n: (0, 0)),
                pl.BlockSpec((C, NCP), lambda n: (0, 0)),
                pl.BlockSpec((1, NCP), lambda n: (0, 0)),
            ],
            out_specs=pl.BlockSpec((pl.Squeezed(), HW, NCP), lambda n: (n, 0, 0)),
            scratch_shapes=[pltpu.VMEM((HW, C), jnp.bfloat16)],
        ),
        compiler_params=pltpu.CompilerParams(
            dimension_semantics=("parallel",)),
        cost_estimate=cost,
    )(xs, w1f, shift2d, w2p, b2p)

    out = out_flat[:, :, :NC].reshape(N, H, W, NC)
    return jnp.transpose(out, (0, 3, 1, 2))                    # back to NCHW


def make_params(key, c_in=256, c_mid=256, num_classes=4):
    """Deterministic synthetic parameters (shapes match the torch module)."""
    k1, k2, k3, k4, k5, k6, k7 = jax.random.split(key, 7)
    # Conv2d(256, 256, 3, bias=False): torch (O, I, kh, kw) -> HWIO here.
    w1 = jax.random.normal(k1, (KH, KW, c_in, c_mid), jnp.float32) * 0.05
    # BatchNorm2d(256) parameters / running stats (eval-mode fold).
    gamma = 0.5 + jax.random.uniform(k2, (c_mid,), jnp.float32)
    beta = jax.random.normal(k3, (c_mid,), jnp.float32) * 0.1
    r_mean = jax.random.normal(k4, (c_mid,), jnp.float32) * 0.1
    r_var = 0.5 + jax.random.uniform(k5, (c_mid,), jnp.float32)
    eps = 1e-5
    scale = gamma / jnp.sqrt(r_var + eps)
    shift = beta - r_mean * scale
    # Conv2d(256, num_classes, 1): torch (NC, 256, 1, 1) -> (256, NC) here.
    w2 = jax.random.normal(k6, (c_mid, num_classes), jnp.float32) * 0.05
    b2 = jax.random.normal(k7, (num_classes,), jnp.float32) * 0.1
    return (w1, scale, shift, w2, b2)


def reference_forward(x_nchw, params):
    """Plain-JAX f32 reference (NHWC conv) for correctness check."""
    w1, scale, shift, w2, b2 = params
    x = jnp.transpose(x_nchw, (0, 2, 3, 1))
    y = lax.conv_general_dilated(
        x, w1, window_strides=(1, 1), padding="SAME",
        dimension_numbers=("NHWC", "HWIO", "NHWC"))
    y = jnp.maximum(y * scale + shift, 0.0)
    out = jnp.einsum("nhwc,ck->nhwk", y, w2) + b2
    return jnp.transpose(out, (0, 3, 1, 2))


if __name__ == "__main__":
    key = jax.random.PRNGKey(0)
    kx, kp = jax.random.split(key)

    N, C, H, W = 2, 256, 16, 16   # C fixed at 256 by the module definition
    num_classes = 4

    x = jax.random.normal(kx, (N, C, H, W), jnp.float32)
    params = make_params(kp, c_in=C, c_mid=C, num_classes=num_classes)

    fwd = jax.jit(decoder_forward)
    out = jax.block_until_ready(fwd(x, params))

    ref = jax.block_until_ready(reference_forward(x, params))
    assert out.shape == (N, num_classes, H, W), out.shape
    max_err = float(jnp.max(jnp.abs(out - ref)))
    # bf16 matmul operands vs f32 reference -> allow a slightly looser tolerance.
    assert jnp.allclose(out, ref, atol=5e-2, rtol=5e-2), max_err

    print("KERNEL_OK")
</pallas_src>

<mosaic_0001>
module attributes {stable_mosaic.version = 11 : i64} {
  func.func @decoder_kernel(%arg0: i32, %arg1: memref<1x3x288x256xbf16, #tpu.memory_space<vmem>>, %arg2: memref<3x3x256x256xbf16, #tpu.memory_space<vmem>>, %arg3: memref<1x256xf32, #tpu.memory_space<vmem>>, %arg4: memref<256x128xbf16, #tpu.memory_space<vmem>>, %arg5: memref<1x128xf32, #tpu.memory_space<vmem>>, %arg6: memref<1x256x128xf32, #tpu.memory_space<vmem>>, %arg7: memref<256x256xbf16, #tpu.memory_space<vmem>>) attributes {dimension_semantics = [#tpu.dimension_semantics<parallel>], iteration_bounds = array<i64: 2>, scalar_prefetch = 0 : i64, scratch_operands = 1 : i64, tpu.core_type = #tpu.core_type<tc>, window_params = [{transform_indices = @transform_0, window_bounds = array<i64: 1, 3, 288, 256>}, {pipeline_mode = #tpu.pipeline_mode<synchronous>, transform_indices = @transform_1, window_bounds = array<i64: 3, 3, 256, 256>}, {pipeline_mode = #tpu.pipeline_mode<synchronous>, transform_indices = @transform_2, window_bounds = array<i64: 1, 256>}, {pipeline_mode = #tpu.pipeline_mode<synchronous>, transform_indices = @transform_3, window_bounds = array<i64: 256, 128>}, {pipeline_mode = #tpu.pipeline_mode<synchronous>, transform_indices = @transform_4, window_bounds = array<i64: 1, 128>}, {transform_indices = @transform_5, window_bounds = array<i64: 1, 256, 128>}]} {
    %c0 = arith.constant 0 : index
    %c0_0 = arith.constant 0 : index
    %c0_1 = arith.constant 0 : index
    %c0_2 = arith.constant 0 : index
    %0 = vector.load %arg1[%c0, %c0_0, %c0_1, %c0_2] : memref<1x3x288x256xbf16, #tpu.memory_space<vmem>>, vector<1x1x256x256xbf16>
    %1 = vector.shape_cast %0 : vector<1x1x256x256xbf16> to vector<256x256xbf16>
    %c0_3 = arith.constant 0 : index
    %c0_4 = arith.constant 0 : index
    %c0_5 = arith.constant 0 : index
    %c0_6 = arith.constant 0 : index
    %2 = vector.load %arg2[%c0_3, %c0_4, %c0_5, %c0_6] : memref<3x3x256x256xbf16, #tpu.memory_space<vmem>>, vector<1x1x256x128xbf16>
    %3 = vector.shape_cast %2 : vector<1x1x256x128xbf16> to vector<256x128xbf16>
    %cst = arith.constant dense<0.000000e+00> : vector<256x128xf32>
    %4 = tpu.matmul %1, %3, %cst {dimension_numbers = #tpu.dot_dimension_numbers<[1], [0], [0], [1], [0, 0, 1, 1], [], []>} : vector<256x256xbf16>, vector<256x128xbf16>, vector<256x128xf32> -> vector<256x128xf32>
    %c0_7 = arith.constant 0 : index
    %c1 = arith.constant 1 : index
    %c0_8 = arith.constant 0 : index
    %c0_9 = arith.constant 0 : index
    %5 = vector.load %arg1[%c0_7, %c1, %c0_8, %c0_9] : memref<1x3x288x256xbf16, #tpu.memory_space<vmem>>, vector<1x1x256x256xbf16>
    %6 = vector.shape_cast %5 : vector<1x1x256x256xbf16> to vector<256x256xbf16>
    %c0_10 = arith.constant 0 : index
    %c1_11 = arith.constant 1 : index
    %c0_12 = arith.constant 0 : index
    %c0_13 = arith.constant 0 : index
    %7 = vector.load %arg2[%c0_10, %c1_11, %c0_12, %c0_13] : memref<3x3x256x256xbf16, #tpu.memory_space<vmem>>, vector<1x1x256x128xbf16>
    %8 = vector.shape_cast %7 : vector<1x1x256x128xbf16> to vector<256x128xbf16>
    %cst_14 = arith.constant dense<0.000000e+00> : vector<256x128xf32>
    %9 = tpu.matmul %6, %8, %cst_14 {dimension_numbers = #tpu.dot_dimension_numbers<[1], [0], [0], [1], [0, 0, 1, 1], [], []>} : vector<256x256xbf16>, vector<256x128xbf16>, vector<256x128xf32> -> vector<256x128xf32>
    %10 = arith.addf %4, %9 : vector<256x128xf32>
    %c0_15 = arith.constant 0 : index
    %c2 = arith.constant 2 : index
    %c0_16 = arith.constant 0 : index
    %c0_17 = arith.constant 0 : index
    %11 = vector.load %arg1[%c0_15, %c2, %c0_16, %c0_17] : memref<1x3x288x256xbf16, #tpu.memory_space<vmem>>, vector<1x1x256x256xbf16>
    %12 = vector.shape_cast %11 : vector<1x1x256x256xbf16> to vector<256x256xbf16>
    %c0_18 = arith.constant 0 : index
    %c2_19 = arith.constant 2 : index
    %c0_20 = arith.constant 0 : index
    %c0_21 = arith.constant 0 : index
    %13 = vector.load %arg2[%c0_18, %c2_19, %c0_20, %c0_21] : memref<3x3x256x256xbf16, #tpu.memory_space<vmem>>, vector<1x1x256x128xbf16>
    %14 = vector.shape_cast %13 : vector<1x1x256x128xbf16> to vector<256x128xbf16>
    %cst_22 = arith.constant dense<0.000000e+00> : vector<256x128xf32>
    %15 = tpu.matmul %12, %14, %cst_22 {dimension_numbers = #tpu.dot_dimension_numbers<[1], [0], [0], [1], [0, 0, 1, 1], [], []>} : vector<256x256xbf16>, vector<256x128xbf16>, vector<256x128xf32> -> vector<256x128xf32>
    %16 = arith.addf %10, %15 : vector<256x128xf32>
    %c0_23 = arith.constant 0 : index
    %c0_24 = arith.constant 0 : index
    %c16 = arith.constant 16 : index
    %c0_25 = arith.constant 0 : index
    %17 = vector.load %arg1[%c0_23, %c0_24, %c16, %c0_25] : memref<1x3x288x256xbf16, #tpu.memory_space<vmem>>, vector<1x1x256x256xbf16>
    %18 = vector.shape_cast %17 : vector<1x1x256x256xbf16> to vector<256x256xbf16>
    %c1_26 = arith.constant 1 : index
    %c0_27 = arith.constant 0 : index
    %c0_28 = arith.constant 0 : index
    %c0_29 = arith.constant 0 : index
    %19 = vector.load %arg2[%c1_26, %c0_27, %c0_28, %c0_29] : memref<3x3x256x256xbf16, #tpu.memory_space<vmem>>, vector<1x1x256x128xbf16>
    %20 = vector.shape_cast %19 : vector<1x1x256x128xbf16> to vector<256x128xbf16>
    %cst_30 = arith.constant dense<0.000000e+00> : vector<256x128xf32>
    %21 = tpu.matmul %18, %20, %cst_30 {dimension_numbers = #tpu.dot_dimension_numbers<[1], [0], [0], [1], [0, 0, 1, 1], [], []>} : vector<256x256xbf16>, vector<256x128xbf16>, vector<256x128xf32> -> vector<256x128xf32>
    %22 = arith.addf %16, %21 : vector<256x128xf32>
    %c0_31 = arith.constant 0 : index
    %c1_32 = arith.constant 1 : index
    %c16_33 = arith.constant 16 : index
    %c0_34 = arith.constant 0 : index
    %23 = vector.load %arg1[%c0_31, %c1_32, %c16_33, %c0_34] : memref<1x3x288x256xbf16, #tpu.memory_space<vmem>>, vector<1x1x256x256xbf16>
    %24 = vector.shape_cast %23 : vector<1x1x256x256xbf16> to vector<256x256xbf16>
    %c1_35 = arith.constant 1 : index
    %c1_36 = arith.constant 1 : index
    %c0_37 = arith.constant 0 : index
    %c0_38 = arith.constant 0 : index
    %25 = vector.load %arg2[%c1_35, %c1_36, %c0_37, %c0_38] : memref<3x3x256x256xbf16, #tpu.memory_space<vmem>>, vector<1x1x256x128xbf16>
    %26 = vector.shape_cast %25 : vector<1x1x256x128xbf16> to vector<256x128xbf16>
    %cst_39 = arith.constant dense<0.000000e+00> : vector<256x128xf32>
    %27 = tpu.matmul %24, %26, %cst_39 {dimension_numbers = #tpu.dot_dimension_numbers<[1], [0], [0], [1], [0, 0, 1, 1], [], []>} : vector<256x256xbf16>, vector<256x128xbf16>, vector<256x128xf32> -> vector<256x128xf32>
    %28 = arith.addf %22, %27 : vector<256x128xf32>
    %c0_40 = arith.constant 0 : index
    %c2_41 = arith.constant 2 : index
    %c16_42 = arith.constant 16 : index
    %c0_43 = arith.constant 0 : index
    %29 = vector.load %arg1[%c0_40, %c2_41, %c16_42, %c0_43] : memref<1x3x288x256xbf16, #tpu.memory_space<vmem>>, vector<1x1x256x256xbf16>
    %30 = vector.shape_cast %29 : vector<1x1x256x256xbf16> to vector<256x256xbf16>
    %c1_44 = arith.constant 1 : index
    %c2_45 = arith.constant 2 : index
    %c0_46 = arith.constant 0 : index
    %c0_47 = arith.constant 0 : index
    %31 = vector.load %arg2[%c1_44, %c2_45, %c0_46, %c0_47] : memref<3x3x256x256xbf16, #tpu.memory_space<vmem>>, vector<1x1x256x128xbf16>
    %32 = vector.shape_cast %31 : vector<1x1x256x128xbf16> to vector<256x128xbf16>
    %cst_48 = arith.constant dense<0.000000e+00> : vector<256x128xf32>
    %33 = tpu.matmul %30, %32, %cst_48 {dimension_numbers = #tpu.dot_dimension_numbers<[1], [0], [0], [1], [0, 0, 1, 1], [], []>} : vector<256x256xbf16>, vector<256x128xbf16>, vector<256x128xf32> -> vector<256x128xf32>
    %34 = arith.addf %28, %33 : vector<256x128xf32>
    %c0_49 = arith.constant 0 : index
    %c0_50 = arith.constant 0 : index
    %c32 = arith.constant 32 : index
    %c0_51 = arith.constant 0 : index
    %35 = vector.load %arg1[%c0_49, %c0_50, %c32, %c0_51] : memref<1x3x288x256xbf16, #tpu.memory_space<vmem>>, vector<1x1x256x256xbf16>
    %36 = vector.shape_cast %35 : vector<1x1x256x256xbf16> to vector<256x256xbf16>
    %c2_52 = arith.constant 2 : index
    %c0_53 = arith.constant 0 : index
    %c0_54 = arith.constant 0 : index
    %c0_55 = arith.constant 0 : index
    %37 = vector.load %arg2[%c2_52, %c0_53, %c0_54, %c0_55] : memref<3x3x256x256xbf16, #tpu.memory_space<vmem>>, vector<1x1x256x128xbf16>
    %38 = vector.shape_cast %37 : vector<1x1x256x128xbf16> to vector<256x128xbf16>
    %cst_56 = arith.constant dense<0.000000e+00> : vector<256x128xf32>
    %39 = tpu.matmul %36, %38, %cst_56 {dimension_numbers = #tpu.dot_dimension_numbers<[1], [0], [0], [1], [0, 0, 1, 1], [], []>} : vector<256x256xbf16>, vector<256x128xbf16>, vector<256x128xf32> -> vector<256x128xf32>
    %40 = arith.addf %34, %39 : vector<256x128xf32>
    %c0_57 = arith.constant 0 : index
    %c1_58 = arith.constant 1 : index
    %c32_59 = arith.constant 32 : index
    %c0_60 = arith.constant 0 : index
    %41 = vector.load %arg1[%c0_57, %c1_58, %c32_59, %c0_60] : memref<1x3x288x256xbf16, #tpu.memory_space<vmem>>, vector<1x1x256x256xbf16>
    %42 = vector.shape_cast %41 : vector<1x1x256x256xbf16> to vector<256x256xbf16>
    %c2_61 = arith.constant 2 : index
    %c1_62 = arith.constant 1 : index
    %c0_63 = arith.constant 0 : index
    %c0_64 = arith.constant 0 : index
    %43 = vector.load %arg2[%c2_61, %c1_62, %c0_63, %c0_64] : memref<3x3x256x256xbf16, #tpu.memory_space<vmem>>, vector<1x1x256x128xbf16>
    %44 = vector.shape_cast %43 : vector<1x1x256x128xbf16> to vector<256x128xbf16>
    %cst_65 = arith.constant dense<0.000000e+00> : vector<256x128xf32>
    %45 = tpu.matmul %42, %44, %cst_65 {dimension_numbers = #tpu.dot_dimension_numbers<[1], [0], [0], [1], [0, 0, 1, 1], [], []>} : vector<256x256xbf16>, vector<256x128xbf16>, vector<256x128xf32> -> vector<256x128xf32>
    %46 = arith.addf %40, %45 : vector<256x128xf32>
    %c0_66 = arith.constant 0 : index
    %c2_67 = arith.constant 2 : index
    %c32_68 = arith.constant 32 : index
    %c0_69 = arith.constant 0 : index
    %47 = vector.load %arg1[%c0_66, %c2_67, %c32_68, %c0_69] : memref<1x3x288x256xbf16, #tpu.memory_space<vmem>>, vector<1x1x256x256xbf16>
    %48 = vector.shape_cast %47 : vector<1x1x256x256xbf16> to vector<256x256xbf16>
    %c2_70 = arith.constant 2 : index
    %c2_71 = arith.constant 2 : index
    %c0_72 = arith.constant 0 : index
    %c0_73 = arith.constant 0 : index
    %49 = vector.load %arg2[%c2_70, %c2_71, %c0_72, %c0_73] : memref<3x3x256x256xbf16, #tpu.memory_space<vmem>>, vector<1x1x256x128xbf16>
    %50 = vector.shape_cast %49 : vector<1x1x256x128xbf16> to vector<256x128xbf16>
    %cst_74 = arith.constant dense<0.000000e+00> : vector<256x128xf32>
    %51 = tpu.matmul %48, %50, %cst_74 {dimension_numbers = #tpu.dot_dimension_numbers<[1], [0], [0], [1], [0, 0, 1, 1], [], []>} : vector<256x256xbf16>, vector<256x128xbf16>, vector<256x128xf32> -> vector<256x128xf32>
    %52 = arith.addf %46, %51 : vector<256x128xf32>
    %c0_75 = arith.constant 0 : index
    %c0_76 = arith.constant 0 : index
    %53 = vector.load %arg3[%c0_75, %c0_76] : memref<1x256xf32, #tpu.memory_space<vmem>>, vector<1x128xf32>
    %54 = vector.broadcast %53 : vector<1x128xf32> to vector<256x128xf32>
    %55 = arith.addf %52, %54 : vector<256x128xf32>
    %cst_77 = arith.constant 0.000000e+00 : f32
    %56 = vector.broadcast %cst_77 : f32 to vector<256x128xf32>
    %57 = arith.maximumf %55, %56 : vector<256x128xf32>
    %58 = arith.truncf %57 : vector<256x128xf32> to vector<256x128xbf16>
    %c0_78 = arith.constant 0 : index
    %c0_79 = arith.constant 0 : index
    %59 = vector.load %arg7[%c0_78, %c0_79] : memref<256x256xbf16, #tpu.memory_space<vmem>>, vector<256x128xbf16>
    tpu.vector_store %arg7[%c0_78, %c0_79], %58 {strides = array<i32>} : memref<256x256xbf16, #tpu.memory_space<vmem>>, vector<256x128xbf16>,
    %c0_80 = arith.constant 0 : index
    %c0_81 = arith.constant 0 : index
    %c0_82 = arith.constant 0 : index
    %c0_83 = arith.constant 0 : index
    %60 = vector.load %arg1[%c0_80, %c0_81, %c0_82, %c0_83] : memref<1x3x288x256xbf16, #tpu.memory_space<vmem>>, vector<1x1x256x256xbf16>
    %61 = vector.shape_cast %60 : vector<1x1x256x256xbf16> to vector<256x256xbf16>
    %c0_84 = arith.constant 0 : index
    %c0_85 = arith.constant 0 : index
    %c0_86 = arith.constant 0 : index
    %c128 = arith.constant 128 : index
    %62 = vector.load %arg2[%c0_84, %c0_85, %c0_86, %c128] : memref<3x3x256x256xbf16, #tpu.memory_space<vmem>>, vector<1x1x256x128xbf16>
    %63 = vector.shape_cast %62 : vector<1x1x256x128xbf16> to vector<256x128xbf16>
    %cst_87 = arith.constant dense<0.000000e+00> : vector<256x128xf32>
    %64 = tpu.matmul %61, %63, %cst_87 {dimension_numbers = #tpu.dot_dimension_numbers<[1], [0], [0], [1], [0, 0, 1, 1], [], []>} : vector<256x256xbf16>, vector<256x128xbf16>, vector<256x128xf32> -> vector<256x128xf32>
    %c0_88 = arith.constant 0 : index
    %c1_89 = arith.constant 1 : index
    %c0_90 = arith.constant 0 : index
    %c0_91 = arith.constant 0 : index
    %65 = vector.load %arg1[%c0_88, %c1_89, %c0_90, %c0_91] : memref<1x3x288x256xbf16, #tpu.memory_space<vmem>>, vector<1x1x256x256xbf16>
    %66 = vector.shape_cast %65 : vector<1x1x256x256xbf16> to vector<256x256xbf16>
    %c0_92 = arith.constant 0 : index
    %c1_93 = arith.constant 1 : index
    %c0_94 = arith.constant 0 : index
    %c128_95 = arith.constant 128 : index
    %67 = vector.load %arg2[%c0_92, %c1_93, %c0_94, %c128_95] : memref<3x3x256x256xbf16, #tpu.memory_space<vmem>>, vector<1x1x256x128xbf16>
    %68 = vector.shape_cast %67 : vector<1x1x256x128xbf16> to vector<256x128xbf16>
    %cst_96 = arith.constant dense<0.000000e+00> : vector<256x128xf32>
    %69 = tpu.matmul %66, %68, %cst_96 {dimension_numbers = #tpu.dot_dimension_numbers<[1], [0], [0], [1], [0, 0, 1, 1], [], []>} : vector<256x256xbf16>, vector<256x128xbf16>, vector<256x128xf32> -> vector<256x128xf32>
    %70 = arith.addf %64, %69 : vector<256x128xf32>
    %c0_97 = arith.constant 0 : index
    %c2_98 = arith.constant 2 : index
    %c0_99 = arith.constant 0 : index
    %c0_100 = arith.constant 0 : index
    %71 = vector.load %arg1[%c0_97, %c2_98, %c0_99, %c0_100] : memref<1x3x288x256xbf16, #tpu.memory_space<vmem>>, vector<1x1x256x256xbf16>
    %72 = vector.shape_cast %71 : vector<1x1x256x256xbf16> to vector<256x256xbf16>
    %c0_101 = arith.constant 0 : index
    %c2_102 = arith.constant 2 : index
    %c0_103 = arith.constant 0 : index
    %c128_104 = arith.constant 128 : index
    %73 = vector.load %arg2[%c0_101, %c2_102, %c0_103, %c128_104] : memref<3x3x256x256xbf16, #tpu.memory_space<vmem>>, vector<1x1x256x128xbf16>
    %74 = vector.shape_cast %73 : vector<1x1x256x128xbf16> to vector<256x128xbf16>
    %cst_105 = arith.constant dense<0.000000e+00> : vector<256x128xf32>
    %75 = tpu.matmul %72, %74, %cst_105 {dimension_numbers = #tpu.dot_dimension_numbers<[1], [0], [0], [1], [0, 0, 1, 1], [], []>} : vector<256x256xbf16>, vector<256x128xbf16>, vector<256x128xf32> -> vector<256x128xf32>
    %76 = arith.addf %70, %75 : vector<256x128xf32>
    %c0_106 = arith.constant 0 : index
    %c0_107 = arith.constant 0 : index
    %c16_108 = arith.constant 16 : index
    %c0_109 = arith.constant 0 : index
    %77 = vector.load %arg1[%c0_106, %c0_107, %c16_108, %c0_109] : memref<1x3x288x256xbf16, #tpu.memory_space<vmem>>, vector<1x1x256x256xbf16>
    %78 = vector.shape_cast %77 : vector<1x1x256x256xbf16> to vector<256x256xbf16>
    %c1_110 = arith.constant 1 : index
    %c0_111 = arith.constant 0 : index
    %c0_112 = arith.constant 0 : index
    %c128_113 = arith.constant 128 : index
    %79 = vector.load %arg2[%c1_110, %c0_111, %c0_112, %c128_113] : memref<3x3x256x256xbf16, #tpu.memory_space<vmem>>, vector<1x1x256x128xbf16>
    %80 = vector.shape_cast %79 : vector<1x1x256x128xbf16> to vector<256x128xbf16>
    %cst_114 = arith.constant dense<0.000000e+00> : vector<256x128xf32>
    %81 = tpu.matmul %78, %80, %cst_114 {dimension_numbers = #tpu.dot_dimension_numbers<[1], [0], [0], [1], [0, 0, 1, 1], [], []>} : vector<256x256xbf16>, vector<256x128xbf16>, vector<256x128xf32> -> vector<256x128xf32>
    %82 = arith.addf %76, %81 : vector<256x128xf32>
    %c0_115 = arith.constant 0 : index
    %c1_116 = arith.constant 1 : index
    %c16_117 = arith.constant 16 : index
    %c0_118 = arith.constant 0 : index
    %83 = vector.load %arg1[%c0_115, %c1_116, %c16_117, %c0_118] : memref<1x3x288x256xbf16, #tpu.memory_space<vmem>>, vector<1x1x256x256xbf16>
    %84 = vector.shape_cast %83 : vector<1x1x256x256xbf16> to vector<256x256xbf16>
    %c1_119 = arith.constant 1 : index
    %c1_120 = arith.constant 1 : index
    %c0_121 = arith.constant 0 : index
    %c128_122 = arith.constant 128 : index
    %85 = vector.load %arg2[%c1_119, %c1_120, %c0_121, %c128_122] : memref<3x3x256x256xbf16, #tpu.memory_space<vmem>>, vector<1x1x256x128xbf16>
    %86 = vector.shape_cast %85 : vector<1x1x256x128xbf16> to vector<256x128xbf16>
    %cst_123 = arith.constant dense<0.000000e+00> : vector<256x128xf32>
    %87 = tpu.matmul %84, %86, %cst_123 {dimension_numbers = #tpu.dot_dimension_numbers<[1], [0], [0], [1], [0, 0, 1, 1], [], []>} : vector<256x256xbf16>, vector<256x128xbf16>, vector<256x128xf32> -> vector<256x128xf32>
    %88 = arith.addf %82, %87 : vector<256x128xf32>
    %c0_124 = arith.constant 0 : index
    %c2_125 = arith.constant 2 : index
    %c16_126 = arith.constant 16 : index
    %c0_127 = arith.constant 0 : index
    %89 = vector.load %arg1[%c0_124, %c2_125, %c16_126, %c0_127] : memref<1x3x288x256xbf16, #tpu.memory_space<vmem>>, vector<1x1x256x256xbf16>
    %90 = vector.shape_cast %89 : vector<1x1x256x256xbf16> to vector<256x256xbf16>
    %c1_128 = arith.constant 1 : index
    %c2_129 = arith.constant 2 : index
    %c0_130 = arith.constant 0 : index
    %c128_131 = arith.constant 128 : index
    %91 = vector.load %arg2[%c1_128, %c2_129, %c0_130, %c128_131] : memref<3x3x256x256xbf16, #tpu.memory_space<vmem>>, vector<1x1x256x128xbf16>
    %92 = vector.shape_cast %91 : vector<1x1x256x128xbf16> to vector<256x128xbf16>
    %cst_132 = arith.constant dense<0.000000e+00> : vector<256x128xf32>
    %93 = tpu.matmul %90, %92, %cst_132 {dimension_numbers = #tpu.dot_dimension_numbers<[1], [0], [0], [1], [0, 0, 1, 1], [], []>} : vector<256x256xbf16>, vector<256x128xbf16>, vector<256x128xf32> -> vector<256x128xf32>
    %94 = arith.addf %88, %93 : vector<256x128xf32>
    %c0_133 = arith.constant 0 : index
    %c0_134 = arith.constant 0 : index
    %c32_135 = arith.constant 32 : index
    %c0_136 = arith.constant 0 : index
    %95 = vector.load %arg1[%c0_133, %c0_134, %c32_135, %c0_136] : memref<1x3x288x256xbf16, #tpu.memory_space<vmem>>, vector<1x1x256x256xbf16>
    %96 = vector.shape_cast %95 : vector<1x1x256x256xbf16> to vector<256x256xbf16>
    %c2_137 = arith.constant 2 : index
    %c0_138 = arith.constant 0 : index
    %c0_139 = arith.constant 0 : index
    %c128_140 = arith.constant 128 : index
    %97 = vector.load %arg2[%c2_137, %c0_138, %c0_139, %c128_140] : memref<3x3x256x256xbf16, #tpu.memory_space<vmem>>, vector<1x1x256x128xbf16>
    %98 = vector.shape_cast %97 : vector<1x1x256x128xbf16> to vector<256x128xbf16>
    %cst_141 = arith.constant dense<0.000000e+00> : vector<256x128xf32>
    %99 = tpu.matmul %96, %98, %cst_141 {dimension_numbers = #tpu.dot_dimension_numbers<[1], [0], [0], [1], [0, 0, 1, 1], [], []>} : vector<256x256xbf16>, vector<256x128xbf16>, vector<256x128xf32> -> vector<256x128xf32>
    %100 = arith.addf %94, %99 : vector<256x128xf32>
    %c0_142 = arith.constant 0 : index
    %c1_143 = arith.constant 1 : index
    %c32_144 = arith.constant 32 : index
    %c0_145 = arith.constant 0 : index
    %101 = vector.load %arg1[%c0_142, %c1_143, %c32_144, %c0_145] : memref<1x3x288x256xbf16, #tpu.memory_space<vmem>>, vector<1x1x256x256xbf16>
    %102 = vector.shape_cast %101 : vector<1x1x256x256xbf16> to vector<256x256xbf16>
    %c2_146 = arith.constant 2 : index
    %c1_147 = arith.constant 1 : index
    %c0_148 = arith.constant 0 : index
    %c128_149 = arith.constant 128 : index
    %103 = vector.load %arg2[%c2_146, %c1_147, %c0_148, %c128_149] : memref<3x3x256x256xbf16, #tpu.memory_space<vmem>>, vector<1x1x256x128xbf16>
    %104 = vector.shape_cast %103 : vector<1x1x256x128xbf16> to vector<256x128xbf16>
    %cst_150 = arith.constant dense<0.000000e+00> : vector<256x128xf32>
    %105 = tpu.matmul %102, %104, %cst_150 {dimension_numbers = #tpu.dot_dimension_numbers<[1], [0], [0], [1], [0, 0, 1, 1], [], []>} : vector<256x256xbf16>, vector<256x128xbf16>, vector<256x128xf32> -> vector<256x128xf32>
    %106 = arith.addf %100, %105 : vector<256x128xf32>
    %c0_151 = arith.constant 0 : index
    %c2_152 = arith.constant 2 : index
    %c32_153 = arith.constant 32 : index
    %c0_154 = arith.constant 0 : index
    %107 = vector.load %arg1[%c0_151, %c2_152, %c32_153, %c0_154] : memref<1x3x288x256xbf16, #tpu.memory_space<vmem>>, vector<1x1x256x256xbf16>
    %108 = vector.shape_cast %107 : vector<1x1x256x256xbf16> to vector<256x256xbf16>
    %c2_155 = arith.constant 2 : index
    %c2_156 = arith.constant 2 : index
    %c0_157 = arith.constant 0 : index
    %c128_158 = arith.constant 128 : index
    %109 = vector.load %arg2[%c2_155, %c2_156, %c0_157, %c128_158] : memref<3x3x256x256xbf16, #tpu.memory_space<vmem>>, vector<1x1x256x128xbf16>
    %110 = vector.shape_cast %109 : vector<1x1x256x128xbf16> to vector<256x128xbf16>
    %cst_159 = arith.constant dense<0.000000e+00> : vector<256x128xf32>
    %111 = tpu.matmul %108, %110, %cst_159 {dimension_numbers = #tpu.dot_dimension_numbers<[1], [0], [0], [1], [0, 0, 1, 1], [], []>} : vector<256x256xbf16>, vector<256x128xbf16>, vector<256x128xf32> -> vector<256x128xf32>
    %112 = arith.addf %106, %111 : vector<256x128xf32>
    %c0_160 = arith.constant 0 : index
    %c128_161 = arith.constant 128 : index
    %113 = vector.load %arg3[%c0_160, %c128_161] : memref<1x256xf32, #tpu.memory_space<vmem>>, vector<1x128xf32>
    %114 = vector.broadcast %113 : vector<1x128xf32> to vector<256x128xf32>
    %115 = arith.addf %112, %114 : vector<256x128xf32>
    %cst_162 = arith.constant 0.000000e+00 : f32
    %116 = vector.broadcast %cst_162 : f32 to vector<256x128xf32>
    %117 = arith.maximumf %115, %116 : vector<256x128xf32>
    %118 = arith.truncf %117 : vector<256x128xf32> to vector<256x128xbf16>
    %c0_163 = arith.constant 0 : index
    %c128_164 = arith.constant 128 : index
    %119 = vector.load %arg7[%c0_163, %c128_164] : memref<256x256xbf16, #tpu.memory_space<vmem>>, vector<256x128xbf16>
    tpu.vector_store %arg7[%c0_163, %c128_164], %118 {strides = array<i32>} : memref<256x256xbf16, #tpu.memory_space<vmem>>, vector<256x128xbf16>,
    %c0_165 = arith.constant 0 : index
    %c0_166 = arith.constant 0 : index
    %120 = vector.load %arg7[%c0_165, %c0_166] : memref<256x256xbf16, #tpu.memory_space<vmem>>, vector<256x256xbf16>
    %c0_167 = arith.constant 0 : index
    %c0_168 = arith.constant 0 : index
    %121 = vector.load %arg4[%c0_167, %c0_168] : memref<256x128xbf16, #tpu.memory_space<vmem>>, vector<256x128xbf16>
    %cst_169 = arith.constant dense<0.000000e+00> : vector<256x128xf32>
    %122 = tpu.matmul %120, %121, %cst_169 {dimension_numbers = #tpu.dot_dimension_numbers<[1], [0], [0], [1], [0, 0, 1, 1], [], []>} : vector<256x256xbf16>, vector<256x128xbf16>, vector<256x128xf32> -> vector<256x128xf32>
    %c0_170 = arith.constant 0 : index
    %c0_171 = arith.constant 0 : index
    %123 = vector.load %arg5[%c0_170, %c0_171] : memref<1x128xf32, #tpu.memory_space<vmem>>, vector<1x128xf32>
    %124 = vector.broadcast %123 : vector<1x128xf32> to vector<256x128xf32>
    %125 = arith.addf %122, %124 : vector<256x128xf32>
    %c0_172 = arith.constant 0 : index
    %c0_173 = arith.constant 0 : index
    %c0_174 = arith.constant 0 : index
    %126 = vector.load %arg6[%c0_172, %c0_173, %c0_174] : memref<1x256x128xf32, #tpu.memory_space<vmem>>, vector<1x256x128xf32>
    %127 = vector.shape_cast %126 : vector<1x256x128xf32> to vector<256x128xf32>
    %128 = vector.shape_cast %125 : vector<256x128xf32> to vector<1x256x128xf32>
    tpu.vector_store %arg6[%c0_172, %c0_173, %c0_174], %128 {strides = array<i32>} : memref<1x256x128xf32, #tpu.memory_space<vmem>>, vector<1x256x128xf32>,
    return
  }
  func.func @transform_0(%arg0: i32) -> (i32, i32, i32, i32) {
    %c0_i32 = arith.constant 0 : i32
    %c0_i32_0 = arith.constant 0 : i32
    %c0_i32_1 = arith.constant 0 : i32
    %c0_i32_2 = arith.constant 0 : i32
    return %arg0, %c0_i32, %c0_i32_0, %c0_i32_1 : i32, i32, i32, i32
  }
  func.func @transform_1(%arg0: i32) -> (i32, i32, i32, i32) {
    %c0_i32 = arith.constant 0 : i32
    %c0_i32_0 = arith.constant 0 : i32
    %c0_i32_1 = arith.constant 0 : i32
    %c0_i32_2 = arith.constant 0 : i32
    %c0_i32_3 = arith.constant 0 : i32
    return %c0_i32, %c0_i32_0, %c0_i32_1, %c0_i32_2 : i32, i32, i32, i32
  }
  func.func @transform_2(%arg0: i32) -> (i32, i32) {
    %c0_i32 = arith.constant 0 : i32
    %c0_i32_0 = arith.constant 0 : i32
    %c0_i32_1 = arith.constant 0 : i32
    return %c0_i32, %c0_i32_0 : i32, i32
  }
  func.func @transform_3(%arg0: i32) -> (i32, i32) {
    %c0_i32 = arith.constant 0 : i32
    %c0_i32_0 = arith.constant 0 : i32
    %c0_i32_1 = arith.constant 0 : i32
    return %c0_i32, %c0_i32_0 : i32, i32
  }
  func.func @transform_4(%arg0: i32) -> (i32, i32) {
    %c0_i32 = arith.constant 0 : i32
    %c0_i32_0 = arith.constant 0 : i32
    %c0_i32_1 = arith.constant 0 : i32
    return %c0_i32, %c0_i32_0 : i32, i32
  }
  func.func @transform_5(%arg0: i32) -> (i32, i32, i32) {
    %c0_i32 = arith.constant 0 : i32
    %c0_i32_0 = arith.constant 0 : i32
    %c0_i32_1 = arith.constant 0 : i32
    return %arg0, %c0_i32, %c0_i32_0 : i32, i32, i32
  }
}

</mosaic_0001>

<bundles_post_ra>
// kernel: decoder_forward.1
= control target key start
LH: loop header
LB: loop body
LE: loop exit
PB: predicated region body
PF: predicated region fallthrough
CT: control target
= control target key end

     0   :  { %s15057_s18 = smov 0   ;;  %s17628_s0 = inlined_call_operand.vmem [shape: bf16[2,3,288,256], index: 0, kind: input, shape index: {}]   ;;  %s17629_s1 = inlined_call_operand.vmem [shape: bf16[3,3,256,256], index: 1, kind: input, shape index: {}]   ;;  %s17630_s2 = inlined_call_operand.vmem [shape: f32[1,256], index: 2, kind: input, shape index: {}]   ;;  %s17631_s3 = inlined_call_operand.vmem [shape: bf16[256,128], index: 3, kind: input, shape index: {}]   ;;  %s17632_s4 = inlined_call_operand.vmem [shape: f32[1,128], index: 4, kind: input, shape index: {}]   ;;  %s17633_s5 = inlined_call_operand.vmem [shape: f32[2,256,128], index: 5, kind: output, shape index: {}]  }
   0x1 LB: > { %s9963_s19 = sadd.s32 4294967295, %s15025_s18   ;;  %p9967_p0 = scmp.ge.s32.totalorder %s15025_s18, 1  ;;  %s15025_s18 = sphi %s15057_s18, %s15_s18  }
   0x2   : > { %p187_p1 = scmp.lt.s32.totalorder %s15025_s18, 3 }
   0x4   : > { %p188_p2 = pnand %p9967_p0, %p187_p1 }
   0x6   : > { %191 = sbr.rel (%p188_p2) target bundleno = 1700 (0x6a4), region = 40 }
   0xd   : > { %v13906_v0 = vld [vmem:[%s17629_s1 + $0x180] ss:$8 sps:$4 sm:$0xff]   ;;  %v13908_v2 = vld [vmem:[%s17629_s1 + $0x190] ss:$8 sps:$4 sm:$0xff]   ;;  %p215_p3 = scmp.lt.s32.totalorder %s9963_s19, 1 }
   0xe   : > { %v13907_v1 = vld [vmem:[%s17629_s1 + $0x100] ss:$8 sps:$4 sm:$0xff]   ;;  %11753 = vmatprep.subr.bf16.mxu0 %v13906_v0  ;;  %13881 = vmatprep.subr.bf16.mxu1 %v13906_v0  ;;  %v13909_v3 = vld [vmem:[%s17629_s1 + $0x110] ss:$8 sps:$4 sm:$0xff]  }
   0xf   : > { %11754 = vmatpush3.bf16.msra.mxu0 %v13907_v1  ;;  %13889 = vmatpush3.bf16.msra.mxu1 %v13907_v1  ;;  %v13910_v4 = vld [vmem:[%s17629_s1 + $0x1a0] ss:$8 sps:$4 sm:$0xff]   ;;  %v13912_v6 = vld [vmem:[%s17629_s1 + $0x1b0] ss:$8 sps:$4 sm:$0xff]   ;;  %s17657_s19 = smov (!%p215_p3, %s9963_s19), 1 }
  0x10   : > { %11755 = vmatprep.subr.bf16.mxu0 %v13908_v2  ;;  %13882 = vmatprep.subr.bf16.mxu1 %v13908_v2  ;;  %v13911_v5 = vld [vmem:[%s17629_s1 + $0x120] ss:$8 sps:$4 sm:$0xff]   ;;  %v13913_v7 = vld [vmem:[%s17629_s1 + $0x130] ss:$8 sps:$4 sm:$0xff]   ;;  %s13897_s23 = smul.u32 864, %s17657_s19  ;;  %s11752_s17 = sshll.u32 %s17657_s19, 8 }
  0x11   : > { %v13914_v8 = vld [vmem:[%s17629_s1 + $0x1c0] ss:$8 sps:$4 sm:$0xff]   ;;  %v13916_v10 = vld [vmem:[%s17629_s1 + $0x1d0] ss:$8 sps:$4 sm:$0xff]   ;;  %s17559_s24 = scalar_lea.vmem %s17633_s5, %s11752_s17 }
  0x12   : > { %v13915_v9 = vld [vmem:[%s17629_s1 + $0x140] ss:$8 sps:$4 sm:$0xff]   ;;  %v13917_v11 = vld [vmem:[%s17629_s1 + $0x150] ss:$8 sps:$4 sm:$0xff]   ;;  %s15117_s28 = scalar_lea.vmem %s17628_s0, %s13897_s23 }
  0x13   : > { %11756 = vmatpush3.bf16.msra.mxu0 %v13909_v3  ;;  %13890 = vmatpush3.bf16.msra.mxu1 %v13909_v3  ;;  %v13918_v12 = vld [vmem:[%s17629_s1 + $0x1e0] ss:$8 sps:$4 sm:$0xff]   ;;  %v13920_v14 = vld [vmem:[%s17629_s1 + $0x1f0] ss:$8 sps:$4 sm:$0xff]   ;;  %v13924_v15 = vld [vmem:[%s15117_s28 + $0x124] ss:$8 sps:$4 sm:$0xff]  }
  0x14   : > { %11757 = vmatprep.subr.bf16.mxu0 %v13910_v4  ;;  %13883 = vmatprep.subr.bf16.mxu1 %v13910_v4  ;;  %v13919_v13 = vld [vmem:[%s17629_s1 + $0x160] ss:$8 sps:$4 sm:$0xff]   ;;  %v13927_v16 = vld [vmem:[%s15117_s28 + $0x1a4] ss:$8 sps:$4 sm:$0xff]   ;;  %v13921_v17 = vld [vmem:[%s17629_s1 + $0x170] ss:$8 sps:$4 sm:$0xff]  }
  0x15   : > { %644 = vmatprep.mubr.bf16.mxu0 %v13924_v15  ;;  %v13928_v18 = vld [vmem:[%s17629_s1 + $0x80] ss:$8 sps:$4 sm:$0xff]   ;;  %708 = vmatprep.mubr.bf16.mxu1 %v13927_v16  ;;  %v13936_v22 = vld [vmem:[%s17629_s1 + $0x90] ss:$8 sps:$4 sm:$0xff]   ;;  %v13930_v23 = vld [vmem:[%s15117_s28 + $0x134] ss:$8 sps:$4 sm:$0xff]  }
  0x16   : > { %v13929_v19 = vld [vmem:[%s17629_s1] ss:$8 sps:$4 sm:$0xff]   ;;  %v13932_v24 = vld [vmem:[%s15117_s28 + $0x1b4] ss:$8 sps:$4 sm:$0xff]   ;;  %v13937_v25 = vld [vmem:[%s17629_s1 + $0x10] ss:$8 sps:$4 sm:$0xff]  }
  0x17   : > { %11758 = vmatpush3.bf16.msra.mxu0 %v13911_v5  ;;  %13891 = vmatpush3.bf16.msra.mxu1 %v13911_v5  ;;  %v13922_v20 = vld [vmem:[%s15117_s28 + $0x120] ss:$8 sps:$4 sm:$0xff]   ;;  %v13934_v27 = vld [vmem:[%s15117_s28 + $0x130] ss:$8 sps:$4 sm:$0xff]   ;;  %v13938_v29 = vld [vmem:[%s15117_s28 + $0x144] ss:$8 sps:$4 sm:$0xff]  }
  0x18   : > { %11759 = vmatprep.subr.bf16.mxu0 %v13912_v6  ;;  %13884 = vmatprep.subr.bf16.mxu1 %v13912_v6  ;;  %v13925_v21 = vld [vmem:[%s15117_s28 + $0x1a0] ss:$8 sps:$4 sm:$0xff]   ;;  %v13935_v28 = vld [vmem:[%s15117_s28 + $0x1b0] ss:$8 sps:$4 sm:$0xff]   ;;  %v13940_v31 = vld [vmem:[%s15117_s28 + $0x1c4] ss:$8 sps:$4 sm:$0xff]  }
  0x19   : > { %v13944_v26 = vld [vmem:[%s17629_s1 + $0xa0] ss:$8 sps:$4 sm:$0xff]   ;;  %v13952_v33 = vld [vmem:[%s17629_s1 + $0xb0] ss:$8 sps:$4 sm:$0xff]   ;;  %v13946_v41 = vld [vmem:[%s15117_s28 + $0x154] ss:$8 sps:$4 sm:$0xff]  }
  0x1a   : > { %v13945_v30 = vld [vmem:[%s17629_s1 + $0x20] ss:$8 sps:$4 sm:$0xff]   ;;  %v13953_v34 = vld [vmem:[%s17629_s1 + $0x30] ss:$8 sps:$4 sm:$0xff]   ;;  %v13948_v42 = vld [vmem:[%s15117_s28 + $0x1d4] ss:$8 sps:$4 sm:$0xff]  }
  0x1b   : > { %11760 = vmatpush3.bf16.msra.mxu0 %v13913_v7  ;;  %13892 = vmatpush3.bf16.msra.mxu1 %v13913_v7  ;;  %v13961_v32 = vld [vmem:[%s17629_s1 + $0x280] ss:$8 sps:$4 sm:$0xff]   ;;  %v13964_v36 = vld [vmem:[%s17629_s1 + $0x290] ss:$8 sps:$4 sm:$0xff]   ;;  %v13954_v52 = vld [vmem:[%s15117_s28 + $0x164] ss:$8 sps:$4 sm:$0xff]  }
  0x1c   : > { %11761 = vmatprep.subr.bf16.mxu0 %v13914_v8  ;;  %13885 = vmatprep.subr.bf16.mxu1 %v13914_v8  ;;  %v13963_v35 = vld [vmem:[%s17629_s1 + $0x200] ss:$8 sps:$4 sm:$0xff]   ;;  %v13965_v39 = vld [vmem:[%s17629_s1 + $0x210] ss:$8 sps:$4 sm:$0xff]   ;;  %v13956_v53 = vld [vmem:[%s15117_s28 + $0x1e4] ss:$8 sps:$4 sm:$0xff]  }
  0x1d   : > { %v13942_v37 = vld [vmem:[%s15117_s28 + $0x140] ss:$8 sps:$4 sm:$0xff]   ;;  %v13972_v45 = vld [vmem:[%s17629_s1 + $0xd0] ss:$8 sps:$4 sm:$0xff]   ;;  %v13966_v62 = vld [vmem:[%s15117_s28 + $0x174] ss:$8 sps:$4 sm:$0xff]  }
  0x1e   : > { %v13960_v38 = vld [vmem:[%s17629_s1 + $0xc0] ss:$8 sps:$4 sm:$0xff]   ;;  %v13976_v47 = vld [vmem:[%s17629_s1 + $0x2b0] ss:$8 sps:$4 sm:$0xff]   ;;  %v13968_v63 = vld [vmem:[%s15117_s28 + $0x1f4] ss:$8 sps:$4 sm:$0xff]  }
  0x1f   : > { %11762 = vmatpush3.bf16.msra.mxu0 %v13915_v9  ;;  %13893 = vmatpush3.bf16.msra.mxu1 %v13915_v9  ;;  %v13943_v40 = vld [vmem:[%s15117_s28 + $0x1c0] ss:$8 sps:$4 sm:$0xff]   ;;  %v13950_v48 = vld [vmem:[%s15117_s28 + $0x150] ss:$8 sps:$4 sm:$0xff]   ;;  %v13978_v7 = vld [vmem:[%s15117_s28 + $0x184] ss:$8 sps:$4 sm:$0xff]  }
  0x20   : > { %11763 = vmatprep.subr.bf16.mxu0 %v13916_v10  ;;  %13886 = vmatprep.subr.bf16.mxu1 %v13916_v10  ;;  %v13962_v43 = vld [vmem:[%s17629_s1 + $0x40] ss:$8 sps:$4 sm:$0xff]   ;;  %v13974_v49 = vld [vmem:[%s17629_s1 + $0x50] ss:$8 sps:$4 sm:$0xff]   ;;  %v13980_v8 = vld [vmem:[%s15117_s28 + $0x204] ss:$8 sps:$4 sm:$0xff]  }
  0x21   : > { %v13973_v44 = vld [vmem:[%s17629_s1 + $0x2a0] ss:$8 sps:$4 sm:$0xff]   ;;  %v13977_v50 = vld [vmem:[%s17629_s1 + $0x230] ss:$8 sps:$4 sm:$0xff]  }
  0x22   : > { %v13975_v46 = vld [vmem:[%s17629_s1 + $0x220] ss:$8 sps:$4 sm:$0xff]   ;;  %v13951_v51 = vld [vmem:[%s15117_s28 + $0x1d0] ss:$8 sps:$4 sm:$0xff]  }
  0x23   : > { %11764 = vmatpush3.bf16.msra.mxu0 %v13917_v11  ;;  %13894 = vmatpush3.bf16.msra.mxu1 %v13917_v11  ;;  %v13984_v54 = vld [vmem:[%s17629_s1 + $0xe0] ss:$8 sps:$4 sm:$0xff]   ;;  %v13988_v59 = vld [vmem:[%s17629_s1 + $0x2d0] ss:$8 sps:$4 sm:$0xff]  }
  0x24   : > { %11765 = vmatprep.subr.bf16.mxu0 %v13918_v12  ;;  %13887 = vmatprep.subr.bf16.mxu1 %v13918_v12  ;;  %v13985_v55 = vld [vmem:[%s17629_s1 + $0x2c0] ss:$8 sps:$4 sm:$0xff]   ;;  %v13989_v60 = vld [vmem:[%s17629_s1 + $0x250] ss:$8 sps:$4 sm:$0xff]  }
  0x25   : > { %v13986_v56 = vld [vmem:[%s17629_s1 + $0x60] ss:$8 sps:$4 sm:$0xff]   ;;  %v13996_v0 = vld [vmem:[%s17629_s1 + $0xf0] ss:$8 sps:$4 sm:$0xff]  }
  0x26   : > { %v13987_v57 = vld [vmem:[%s17629_s1 + $0x240] ss:$8 sps:$4 sm:$0xff]   ;;  %v13998_v2 = vld [vmem:[%s17629_s1 + $0x70] ss:$8 sps:$4 sm:$0xff]  }
  0x27   : > { %11766 = vmatpush3.bf16.msra.mxu0 %v13919_v13  ;;  %13895 = vmatpush3.bf16.msra.mxu1 %v13919_v13  ;;  %v13958_v58 = vld [vmem:[%s15117_s28 + $0x160] ss:$8 sps:$4 sm:$0xff]   ;;  %v13970_v3 = vld [vmem:[%s15117_s28 + $0x170] ss:$8 sps:$4 sm:$0xff]   ;;  %v13990_v13 = vld [vmem:[%s15117_s28 + $0x194] ss:$8 sps:$4 sm:$0xff]  }
  0x28   : > { %11767 = vmatprep.subr.bf16.mxu0 %v13920_v14  ;;  %13888 = vmatprep.subr.bf16.mxu1 %v13920_v14  ;;  %v13959_v61 = vld [vmem:[%s15117_s28 + $0x1e0] ss:$8 sps:$4 sm:$0xff]   ;;  %v14000_v5 = vld [vmem:[%s17629_s1 + $0x2f0] ss:$8 sps:$4 sm:$0xff]   ;;  %v13992_v14 = vld [vmem:[%s15117_s28 + $0x214] ss:$8 sps:$4 sm:$0xff]  }
  0x29   : > { %v13997_v1 = vld [vmem:[%s17629_s1 + $0x2e0] ss:$8 sps:$4 sm:$0xff]   ;;  %v13971_v6 = vld [vmem:[%s15117_s28 + $0x1f0] ss:$8 sps:$4 sm:$0xff]  }
  0x2a   : > { %v13999_v4 = vld [vmem:[%s17629_s1 + $0x260] ss:$8 sps:$4 sm:$0xff]   ;;  %v14001_v9 = vld [vmem:[%s17629_s1 + $0x270] ss:$8 sps:$4 sm:$0xff]  }
  0x2b   : > { %11768 = vmatpush3.bf16.msra.mxu0 %v13921_v17  ;;  %13896 = vmatpush3.bf16.msra.mxu1 %v13921_v17  ;;  %v14008_v10 = vld [vmem:[%s17629_s1 + $0x380] ss:$8 sps:$4 sm:$0xff]   ;;  %v13994_v15 = vld [vmem:[%s15117_s28 + $0x190] ss:$8 sps:$4 sm:$0xff]   ;;  %v14004_v17 = vld [vmem:[%s15117_s28 + $0x4] ss:$8 sps:$4 sm:$0xff]  }
  0x2c   : > { %11865 = vmatprep.subr.bf16.mxu1 %v13928_v18  ;;  %11977 = vmatprep.subr.bf16.mxu0 %v13961_v32  ;;  %v13982_v11 = vld [vmem:[%s15117_s28 + $0x180] ss:$8 sps:$4 sm:$0xff]   ;;  %v13995_v16 = vld [vmem:[%s15117_s28 + $0x210] ss:$8 sps:$4 sm:$0xff]   ;;  %v14007_v18 = vld [vmem:[%s15117_s28 + $0x244] ss:$8 sps:$4 sm:$0xff]  }
  0x2d   : > { %v13983_v12 = vld [vmem:[%s15117_s28 + $0x200] ss:$8 sps:$4 sm:$0xff]   ;;  %v14050_v32 = vld [vmem:[%s17629_s1 + $0x3b0] ss:$8 sps:$4 sm:$0xff]  }
  0x2e   : > { %645 = vmatmul.mubr.bf16.vlgmr.msra.gmra.mrb[0].mxu0 %v13922_v20  ;;  %709 = vmatmul.mubr.bf16.vlgmr.msra.gmra.mrb[0].mxu1 %v13925_v21  ;;  %v14005_v20 = vld [vmem:[%s15117_s28 + $0x240] ss:$8 sps:$4 sm:$0xff]  }
  0x2f   : > { %11866 = vmatpush3.bf16.msra.mxu1 %v13929_v19  ;;  %652 = vmatprep.mubr.bf16.mxu0 %v13930_v23  ;;  %v14002_v19 = vld [vmem:[%s15117_s28] ss:$8 sps:$4 sm:$0xff]   ;;  %v14012_v23 = vld [vmem:[%s15117_s28 + $0x254] ss:$8 sps:$4 sm:$0xff]  }
  0x30   : > { %716 = vmatprep.mubr.bf16.mxu1 %v13932_v24  ;;  %11867 = vmatprep.subr.bf16.mxu1 %v13936_v22  ;;  %v14009_v21 = vld [vmem:[%s17629_s1 + $0x300] ss:$8 sps:$4 sm:$0xff]   ;;  %v15264_v22 = vld [vmem:[%s15117_s28 + $0x14] ss:$8 sps:$4 sm:$0xff]   ;;  %v14022_v24 = vld [vmem:[%s17629_s1 + $0x390] ss:$8 sps:$4 sm:$0xff]  }
  0x31   : > { %11978 = vmatpush3.bf16.msra.mxu0 %v13963_v35  ;;  %v14021_v35 = vld [vmem:[%s15117_s28 + $0x260] ss:$8 sps:$4 sm:$0xff]  }
  0x32   : > { %11979 = vmatprep.subr.bf16.mxu0 %v13964_v36  ;;  %v14064_v36 = vld [vmem:[%s17629_s1 + $0x3c0] ss:$8 sps:$4 sm:$0xff]  }
  0x33   : > { %11868 = vmatpush3.bf16.msra.mxu1 %v13937_v25  ;;  %v14023_v25 = vld [vmem:[%s17629_s1 + $0x310] ss:$8 sps:$4 sm:$0xff]  }
  0x34   : > { %11869 = vmatprep.subr.bf16.mxu1 %v13944_v26  ;;  %v14036_v26 = vld [vmem:[%s17629_s1 + $0x3a0] ss:$8 sps:$4 sm:$0xff]  }
  0x35   : > { %11980 = vmatpush3.bf16.msra.mxu0 %v13965_v39  ;;  %v14065_v39 = vld [vmem:[%s17629_s1 + $0x340] ss:$8 sps:$4 sm:$0xff]  }
  0x36   : > { %653 = vmatmul.mubr.bf16.gmra.mrb[4].mxu0 %v13934_v27  ;;  %717 = vmatmul.mubr.bf16.gmra.mrb[4].mxu1 %v13935_v28  ;;  %v15278_v27 = vld [vmem:[%s15117_s28 + $0x10] ss:$8 sps:$4 sm:$0xff]  }
  0x37   : > { %660 = vmatprep.mubr.bf16.mxu0 %v13938_v29  ;;  %724 = vmatprep.mubr.bf16.mxu1 %v13940_v31  ;;  %v14015_v28 = vld [vmem:[%s15117_s28 + $0x250] ss:$8 sps:$4 sm:$0xff]   ;;  %v15282_v29 = vld [vmem:[%s15117_s28 + $0x24] ss:$8 sps:$4 sm:$0xff]   ;;  %v14037_v31 = vld [vmem:[%s17629_s1 + $0x320] ss:$8 sps:$4 sm:$0xff]  }
  0x38   : > { %11870 = vmatpush3.bf16.msra.mxu1 %v13945_v30  ;;  %11981 = vmatprep.subr.bf16.mxu0 %v13973_v44  ;;  %v14018_v30 = vld [vmem:[%s15117_s28 + $0x264] ss:$8 sps:$4 sm:$0xff]  }
  0x39   : > { %11871 = vmatprep.subr.bf16.mxu1 %v13952_v33  ;;  %11982 = vmatpush3.bf16.msra.mxu0 %v13975_v46  ;;  %v15294_v33 = vld [vmem:[%s15117_s28 + $0x20] ss:$8 sps:$4 sm:$0xff]   ;;  %v15323_v44 = vld [vmem:[%s15117_s28 + $0x44] ss:$8 sps:$4 sm:$0xff]  }
  0x3a   : > { %11983 = vmatprep.subr.bf16.mxu0 %v13976_v47  ;;  %v14092_v46 = vld [vmem:[%s17629_s1 + $0x3e0] ss:$8 sps:$4 sm:$0xff]  }
  0x3b   : > { %v14093_v47 = vld [vmem:[%s17629_s1 + $0x480] ss:$8 sps:$4 sm:$0xff]  }
  0x3c   : > { %11872 = vmatpush3.bf16.msra.mxu1 %v13953_v34  ;;  %v14051_v34 = vld [vmem:[%s17629_s1 + $0x330] ss:$8 sps:$4 sm:$0xff]  }
  0x3d   : > { %11873 = vmatprep.subr.bf16.mxu1 %v13960_v38  ;;  %11984 = vmatpush3.bf16.msra.mxu0 %v13977_v50  ;;  %v14026_v38 = vld [vmem:[%s15117_s28 + $0x274] ss:$8 sps:$4 sm:$0xff]   ;;  %v14096_v50 = vld [vmem:[%s17629_s1 + $0x490] ss:$8 sps:$4 sm:$0xff]  }
  0x3e   : > { %661 = vmatmul.mubr.bf16.gmra.mrb[8].mxu0 %v13942_v37  ;;  %725 = vmatmul.mubr.bf16.gmra.mrb[8].mxu1 %v13943_v40  ;;  %v15304_v37 = vld [vmem:[%s15117_s28 + $0x34] ss:$8 sps:$4 sm:$0xff]   ;;  %v14078_v40 = vld [vmem:[%s17629_s1 + $0x3d0] ss:$8 sps:$4 sm:$0xff]  }
  0x3f   : > { %668 = vmatprep.mubr.bf16.mxu0 %v13946_v41  ;;  %732 = vmatprep.mubr.bf16.mxu1 %v13948_v42  ;;  %v15316_v41 = vld [vmem:[%s15117_s28 + $0x30] ss:$8 sps:$4 sm:$0xff]  }
  0x40   : > { %11874 = vmatpush3.bf16.msra.mxu1 %v13962_v43  ;;  %11985 = vmatprep.subr.bf16.mxu0 %v13985_v55  ;;  %v14029_v42 = vld [vmem:[%s15117_s28 + $0x270] ss:$8 sps:$4 sm:$0xff]   ;;  %v14104_v55 = vld [vmem:[%s17629_s1 + $0x4a0] ss:$8 sps:$4 sm:$0xff]  }
  0x41   : > { %11875 = vmatprep.subr.bf16.mxu1 %v13972_v45  ;;  %11986 = vmatpush3.bf16.msra.mxu0 %v13987_v57  ;;  %v14079_v43 = vld [vmem:[%s17629_s1 + $0x350] ss:$8 sps:$4 sm:$0xff]   ;;  %v14032_v45 = vld [vmem:[%s15117_s28 + $0x284] ss:$8 sps:$4 sm:$0xff]   ;;  %v14105_v57 = vld [vmem:[%s17629_s1 + $0x420] ss:$8 sps:$4 sm:$0xff]  }
  0x42   : > { %11987 = vmatprep.subr.bf16.mxu0 %v13988_v59  ;;  %v15366_v59 = vld [vmem:[%s15117_s28 + $0x50] ss:$8 sps:$4 sm:$0xff]  }
  0x44   : > { %11876 = vmatpush3.bf16.msra.mxu1 %v13974_v49  ;;  %v14095_v49 = vld [vmem:[%s17629_s1 + $0x400] ss:$8 sps:$4 sm:$0xff]  }
  0x45   : > { %11877 = vmatprep.subr.bf16.mxu1 %v13984_v54  ;;  %11988 = vmatpush3.bf16.msra.mxu0 %v13989_v60  ;;  %v15351_v54 = vld [vmem:[%s15117_s28 + $0x54] ss:$8 sps:$4 sm:$0xff]   ;;  %v14043_v60 = vld [vmem:[%s15117_s28 + $0x290] ss:$8 sps:$4 sm:$0xff]  }
  0x46   : > { %669 = vmatmul.mubr.bf16.gmra.mrb[12].mxu0 %v13950_v48  ;;  %733 = vmatmul.mubr.bf16.gmra.mrb[12].mxu1 %v13951_v51  ;;  %v14094_v48 = vld [vmem:[%s17629_s1 + $0x360] ss:$8 sps:$4 sm:$0xff]  }
  0x47   : > { %676 = vmatprep.mubr.bf16.mxu0 %v13954_v52  ;;  %740 = vmatprep.mubr.bf16.mxu1 %v13956_v53  ;;  %v15344_v51 = vld [vmem:[%s15117_s28 + $0x40] ss:$8 sps:$4 sm:$0xff]   ;;  %v14097_v52 = vld [vmem:[%s17629_s1 + $0x410] ss:$8 sps:$4 sm:$0xff]  }
  0x48   : > { %11878 = vmatpush3.bf16.msra.mxu1 %v13986_v56  ;;  %11989 = vmatprep.subr.bf16.mxu0 %v13997_v1  ;;  %v14035_v53 = vld [vmem:[%s15117_s28 + $0x280] ss:$8 sps:$4 sm:$0xff]   ;;  %v14040_v56 = vld [vmem:[%s15117_s28 + $0x294] ss:$8 sps:$4 sm:$0xff]  }
  0x49   : > { %11879 = vmatprep.subr.bf16.mxu1 %v13996_v0  ;;  %11990 = vmatpush3.bf16.msra.mxu0 %v13999_v4  ;;  %v14114_v0 = vld [vmem:[%s17629_s1 + $0x3f0] ss:$8 sps:$4 sm:$0xff]   ;;  %v14115_v1 = vld [vmem:[%s17629_s1 + $0x4c0] ss:$8 sps:$4 sm:$0xff]  }
  0x4a   : > { %11991 = vmatprep.subr.bf16.mxu0 %v14000_v5  ;;  %v14118_v4 = vld [vmem:[%s17629_s1 + $0x4d0] ss:$8 sps:$4 sm:$0xff]   ;;  %v15394_v5 = vld [vmem:[%s15117_s28 + $0x60] ss:$8 sps:$4 sm:$0xff]  }
  0x4c   : > { %11880 = vmatpush3.bf16.msra.mxu1 %v13998_v2  ;;  %v14116_v2 = vld [vmem:[%s17629_s1 + $0x370] ss:$8 sps:$4 sm:$0xff]  }
  0x4d   : > { %11992 = vmatpush3.bf16.msra.mxu0 %v14001_v9  ;;  %12089 = vmatprep.subr.bf16.mxu1 %v14008_v10  ;;  %v15404_v9 = vld [vmem:[%s15117_s28 + $0x74] ss:$8 sps:$4 sm:$0xff]  }
  0x4e   : > { %677 = vmatmul.mubr.bf16.gmra.mrb[16].mxu0 %v13958_v58  ;;  %741 = vmatmul.mubr.bf16.gmra.mrb[16].mxu1 %v13959_v61  ;;  %v14106_v58 = vld [vmem:[%s17629_s1 + $0x4b0] ss:$8 sps:$4 sm:$0xff]   ;;  %v14054_v10 = vld [vmem:[%s15117_s28 + $0x2b4] ss:$8 sps:$4 sm:$0xff]  }
  0x4f   : > { %684 = vmatprep.mubr.bf16.mxu0 %v13966_v62  ;;  %748 = vmatprep.mubr.bf16.mxu1 %v13968_v63  ;;  %v14107_v61 = vld [vmem:[%s17629_s1 + $0x430] ss:$8 sps:$4 sm:$0xff]   ;;  %v15373_v62 = vld [vmem:[%s15117_s28 + $0x64] ss:$8 sps:$4 sm:$0xff]  }
  0x50   : > { %12201 = vmatprep.subr.bf16.mxu0 %v14093_v47  ;;  %v14046_v63 = vld [vmem:[%s15117_s28 + $0x2a4] ss:$8 sps:$4 sm:$0xff]   ;;  %v14102_v47 = vld [vmem:[%s15117_s28 + $0xd0] ss:$8 sps:$4 sm:$0xff]  }
  0x56   : > { %685 = vmatmul.mubr.bf16.gmra.mrb[20].mxu0 %v13970_v3  ;;  %749 = vmatmul.mubr.bf16.gmra.mrb[20].mxu1 %v13971_v6  ;;  %v14117_v3 = vld [vmem:[%s17629_s1 + $0x440] ss:$8 sps:$4 sm:$0xff]  }
  0x57   : > { %692 = vmatprep.mubr.bf16.mxu0 %v13978_v7  ;;  %756 = vmatprep.mubr.bf16.mxu1 %v13980_v8  ;;  %v14049_v6 = vld [vmem:[%s15117_s28 + $0x2a0] ss:$8 sps:$4 sm:$0xff]   ;;  %v14119_v7 = vld [vmem:[%s17629_s1 + $0x450] ss:$8 sps:$4 sm:$0xff]  }
  0x58   : > { %v14126_v8 = vld [vmem:[%s17629_s1 + $0x4e0] ss:$8 sps:$4 sm:$0xff]  }
  0x5e   : > { %693 = vmatmul.mubr.bf16.gmra.mrb[24].mxu0 %v13982_v11  ;;  %757 = vmatmul.mubr.bf16.gmra.mrb[24].mxu1 %v13983_v12  ;;  %v14127_v11 = vld [vmem:[%s17629_s1 + $0x460] ss:$8 sps:$4 sm:$0xff]   ;;  %v14128_v12 = vld [vmem:[%s17629_s1 + $0x4f0] ss:$8 sps:$4 sm:$0xff]  }
  0x5f   : > { %700 = vmatprep.mubr.bf16.mxu0 %v13990_v13  ;;  %764 = vmatprep.mubr.bf16.mxu1 %v13992_v14  ;;  %v14133_v13 = vld [vmem:[%s17629_s1 + $0x580] ss:$8 sps:$4 sm:$0xff]   ;;  %v14129_v14 = vld [vmem:[%s17629_s1 + $0x470] ss:$8 sps:$4 sm:$0xff]  }
  0x66   : > { %701 = vmatmul.mubr.bf16.gmra.mrb[28].mxu0 %v13994_v15  ;;  %765 = vmatmul.mubr.bf16.gmra.mrb[28].mxu1 %v13995_v16  ;;  %v15422_v15 = vld [vmem:[%s15117_s28 + $0x70] ss:$8 sps:$4 sm:$0xff]  }
  0x67   : > { %1061 = vmatprep.mubr.bf16.mxu1 %v14004_v17  ;;  %1544 = vmatprep.mubr.bf16.mxu0 %v14007_v18  ;;  %v14057_v16 = vld [vmem:[%s15117_s28 + $0x2b0] ss:$8 sps:$4 sm:$0xff]   ;;  %v15426_v17 = vld [vmem:[%s15117_s28 + $0x84] ss:$8 sps:$4 sm:$0xff]  }
  0x68   : > { %v14060_v18 = vld [vmem:[%s15117_s28 + $0x2c4] ss:$8 sps:$4 sm:$0xff]  }
  0x6e   : > { %1062 = vmatmul.mubr.bf16.vlgmr.msra.gmra.mrb[32].mxu1 %v14002_v19  ;;  %1545 = vmatmul.mubr.bf16.vlgmr.msra.gmra.mrb[32].mxu0 %v14005_v20  ;;  %v15432_v19 = vld [vmem:[%s15117_s28 + $0x80] ss:$8 sps:$4 sm:$0xff]  }
  0x6f   : > { %12090 = vmatpush3.bf16.msra.mxu1 %v14009_v21  ;;  %1069 = vmatprep.mubr.bf16.mxu1 %v15264_v22  ;;  %v14063_v20 = vld [vmem:[%s15117_s28 + $0x2c0] ss:$8 sps:$4 sm:$0xff]   ;;  %v15436_v21 = vld [vmem:[%s15117_s28 + $0x94] ss:$8 sps:$4 sm:$0xff]  }
  0x70   : > { %1552 = vmatprep.mubr.bf16.mxu0 %v14012_v23  ;;  %12091 = vmatprep.subr.bf16.mxu1 %v14022_v24  ;;  %v14068_v23 = vld [vmem:[%s15117_s28 + $0x2d4] ss:$8 sps:$4 sm:$0xff]   ;;  %v14070_v24 = vld [vmem:[%s15117_s28 + $0x90] ss:$8 sps:$4 sm:$0xff]  }
  0x71   : > { %12202 = vmatpush3.bf16.msra.mxu0 %v14095_v49  ;;  %v14108_v49 = vld [vmem:[%s15117_s28 + $0xe4] ss:$8 sps:$4 sm:$0xff]  }
  0x72   : > { %12203 = vmatprep.subr.bf16.mxu0 %v14096_v50  ;;  %v14110_v50 = vld [vmem:[%s15117_s28 + $0x324] ss:$8 sps:$4 sm:$0xff]  }
  0x73   : > { %12092 = vmatpush3.bf16.msra.mxu1 %v14023_v25  ;;  %v14071_v25 = vld [vmem:[%s15117_s28 + $0x2d0] ss:$8 sps:$4 sm:$0xff]  }
  0x74   : > { %12093 = vmatprep.subr.bf16.mxu1 %v14036_v26  ;;  %v14072_v26 = vld [vmem:[%s15117_s28 + $0xa4] ss:$8 sps:$4 sm:$0xff]  }
  0x75   : > { %12204 = vmatpush3.bf16.msra.mxu0 %v14097_v52  ;;  %v14112_v52 = vld [vmem:[%s15117_s28 + $0xe0] ss:$8 sps:$4 sm:$0xff]  }
  0x76   : > { %1070 = vmatmul.mubr.bf16.gmra.mrb[36].mxu1 %v15278_v27  ;;  %1553 = vmatmul.mubr.bf16.gmra.mrb[36].mxu0 %v14015_v28  ;;  %v14074_v28 = vld [vmem:[%s15117_s28 + $0x2e4] ss:$8 sps:$4 sm:$0xff]  }
  0x77   : > { %1077 = vmatprep.mubr.bf16.mxu1 %v15282_v29  ;;  %1560 = vmatprep.mubr.bf16.mxu0 %v14018_v30  ;;  %v14076_v30 = vld [vmem:[%s15117_s28 + $0xa0] ss:$8 sps:$4 sm:$0xff]  }
  0x78   : > { %12094 = vmatpush3.bf16.msra.mxu1 %v14037_v31  ;;  %12205 = vmatprep.subr.bf16.mxu0 %v14104_v55  ;;  %v14077_v31 = vld [vmem:[%s15117_s28 + $0x2e0] ss:$8 sps:$4 sm:$0xff]   ;;  %v14120_v55 = vld [vmem:[%s15117_s28 + $0xf4] ss:$8 sps:$4 sm:$0xff]  }
  0x79   : > { %12095 = vmatprep.subr.bf16.mxu1 %v14050_v32  ;;  %12206 = vmatpush3.bf16.msra.mxu0 %v14105_v57  ;;  %v14080_v32 = vld [vmem:[%s15117_s28 + $0xb4] ss:$8 sps:$4 sm:$0xff]   ;;  %v14124_v57 = vld [vmem:[%s15117_s28 + $0xf0] ss:$8 sps:$4 sm:$0xff]  }
  0x7a   : > { %12207 = vmatprep.subr.bf16.mxu0 %v14106_v58  ;;  %v14125_v58 = vld [vmem:[%s15117_s28 + $0x330] ss:$8 sps:$4 sm:$0xff]  }
  0x7c   : > { %12096 = vmatpush3.bf16.msra.mxu1 %v14051_v34  ;;  %v14082_v34 = vld [vmem:[%s15117_s28 + $0x2f4] ss:$8 sps:$4 sm:$0xff]  }
  0x7d   : > { %12097 = vmatprep.subr.bf16.mxu1 %v14064_v36  ;;  %12208 = vmatpush3.bf16.msra.mxu0 %v14107_v61  ;;  %v14085_v36 = vld [vmem:[%s15117_s28 + $0x2f0] ss:$8 sps:$4 sm:$0xff]  }
  0x7e   : > { %1078 = vmatmul.mubr.bf16.gmra.mrb[40].mxu1 %v15294_v33  ;;  %1561 = vmatmul.mubr.bf16.gmra.mrb[40].mxu0 %v14021_v35  ;;  %v14084_v35 = vld [vmem:[%s15117_s28 + $0xb0] ss:$8 sps:$4 sm:$0xff]  }
  0x7f   : > { %1085 = vmatprep.mubr.bf16.mxu1 %v15304_v37  ;;  %1568 = vmatprep.mubr.bf16.mxu0 %v14026_v38  ;;  %v14086_v38 = vld [vmem:[%s15117_s28 + $0xc4] ss:$8 sps:$4 sm:$0xff]   ;;  %v14130_v61 = vld [vmem:[%s15117_s28 + $0x130] ss:$8 sps:$4 sm:$0xff]  }
  0x80   : > { %12098 = vmatpush3.bf16.msra.mxu1 %v14065_v39  ;;  %12209 = vmatprep.subr.bf16.mxu0 %v14115_v1  ;;  %v14088_v39 = vld [vmem:[%s15117_s28 + $0x304] ss:$8 sps:$4 sm:$0xff]   ;;  %v14141_v1 = vld [vmem:[%s17629_s1 + $0x590] ss:$8 sps:$4 sm:$0xff]  }
  0x81   : > { %12099 = vmatprep.subr.bf16.mxu1 %v14078_v40  ;;  %12210 = vmatpush3.bf16.msra.mxu0 %v14117_v3  ;;  %v14090_v40 = vld [vmem:[%s15117_s28 + $0xc0] ss:$8 sps:$4 sm:$0xff]   ;;  %v14142_v3 = vld [vmem:[%s17629_s1 + $0x510] ss:$8 sps:$4 sm:$0xff]  }
  0x82   : > { %12211 = vmatprep.subr.bf16.mxu0 %v14118_v4  ;;  %v14146_v4 = vld [vmem:[%s17629_s1 + $0x5a0] ss:$8 sps:$4 sm:$0xff]  }
  0x84   : > { %12100 = vmatpush3.bf16.msra.mxu1 %v14079_v43  ;;  %v14098_v43 = vld [vmem:[%s15117_s28 + $0xd4] ss:$8 sps:$4 sm:$0xff]  }
  0x85   : > { %12101 = vmatprep.subr.bf16.mxu1 %v14092_v46  ;;  %12212 = vmatpush3.bf16.msra.mxu0 %v14119_v7  ;;  %v14173_v46 = vld [vmem:[%s17629_s1 + $0x680] ss:$8 sps:$4 sm:$0xff]   ;;  %v14138_v7 = vld [vmem:[%s15117_s28 + $0x154] ss:$8 sps:$4 sm:$0xff]  }
  0x86   : > { %1086 = vmatmul.mubr.bf16.gmra.mrb[44].mxu1 %v15316_v41  ;;  %1569 = vmatmul.mubr.bf16.gmra.mrb[44].mxu0 %v14029_v42  ;;  %v14091_v42 = vld [vmem:[%s15117_s28 + $0x300] ss:$8 sps:$4 sm:$0xff]  }
  0x87   : > { %1093 = vmatprep.mubr.bf16.mxu1 %v15323_v44  ;;  %1576 = vmatprep.mubr.bf16.mxu0 %v14032_v45  ;;  %v14100_v45 = vld [vmem:[%s15117_s28 + $0x314] ss:$8 sps:$4 sm:$0xff]  }
  0x88   : > { %12102 = vmatpush3.bf16.msra.mxu1 %v14094_v48  ;;  %12213 = vmatprep.subr.bf16.mxu0 %v14126_v8  ;;  %v14103_v48 = vld [vmem:[%s15117_s28 + $0x310] ss:$8 sps:$4 sm:$0xff]  }
  0x89   : > { %12103 = vmatprep.subr.bf16.mxu1 %v14114_v0  ;;  %12214 = vmatpush3.bf16.msra.mxu0 %v14127_v11  ;;  %v14135_v0 = vld [vmem:[%s15117_s28 + $0x144] ss:$8 sps:$4 sm:$0xff]   ;;  %v14177_v8 = vld [vmem:[%s17629_s1 + $0x610] ss:$8 sps:$4 sm:$0xff]   ;;  %v14182_v11 = vld [vmem:[%s17629_s1 + $0x620] ss:$8 sps:$4 sm:$0xff]  }
  0x8a   : > { %12215 = vmatprep.subr.bf16.mxu0 %v14128_v12  ;;  %v14183_v12 = vld [vmem:[%s17629_s1 + $0x6b0] ss:$8 sps:$4 sm:$0xff]  }
  0x8c   : > { %12104 = vmatpush3.bf16.msra.mxu1 %v14116_v2  ;;  %v14175_v2 = vld [vmem:[%s17629_s1 + $0x600] ss:$8 sps:$4 sm:$0xff]  }
  0x8d   : > { %12313 = vmatprep.subr.bf16.mxu1 %v14133_v13  ;;  %12216 = vmatpush3.bf16.msra.mxu0 %v14129_v14  ;;  %v14149_v13 = vld [vmem:[%s17629_s1 + $0x530] ss:$8 sps:$4 sm:$0xff]   ;;  %v14156_v14 = vld [vmem:[%s17629_s1 + $0x5c0] ss:$8 sps:$4 sm:$0xff]  }
  0x8e   : > { %1094 = vmatmul.mubr.bf16.gmra.mrb[48].mxu1 %v15344_v51  ;;  %1577 = vmatmul.mubr.bf16.gmra.mrb[48].mxu0 %v14035_v53  ;;  %v14113_v53 = vld [vmem:[%s15117_s28 + $0x320] ss:$8 sps:$4 sm:$0xff]  }
  0x8f   : > { %1101 = vmatprep.mubr.bf16.mxu1 %v15351_v54  ;;  %1584 = vmatprep.mubr.bf16.mxu0 %v14040_v56  ;;  %v14122_v56 = vld [vmem:[%s15117_s28 + $0x334] ss:$8 sps:$4 sm:$0xff]  }
  0x90   : > { %12425 = vmatprep.subr.bf16.mxu0 %v14173_v46 }
  0x96   : > { %1102 = vmatmul.mubr.bf16.gmra.mrb[52].mxu1 %v15366_v59  ;;  %1585 = vmatmul.mubr.bf16.gmra.mrb[52].mxu0 %v14043_v60  ;;  %v14132_v60 = vld [vmem:[%s15117_s28 + $0x134] ss:$8 sps:$4 sm:$0xff]  }
  0x97   : > { %1109 = vmatprep.mubr.bf16.mxu1 %v15373_v62  ;;  %1592 = vmatprep.mubr.bf16.mxu0 %v14046_v63  ;;  %v14134_v63 = vld [vmem:[%s17629_s1 + $0x500] ss:$8 sps:$4 sm:$0xff]  }
  0x9e   : > { %1110 = vmatmul.mubr.bf16.gmra.mrb[56].mxu1 %v15394_v5  ;;  %1593 = vmatmul.mubr.bf16.gmra.mrb[56].mxu0 %v14049_v6  ;;  %v14137_v6 = vld [vmem:[%s15117_s28 + $0x140] ss:$8 sps:$4 sm:$0xff]  }
  0x9f   : > { %1117 = vmatprep.mubr.bf16.mxu1 %v15404_v9  ;;  %1600 = vmatprep.mubr.bf16.mxu0 %v14054_v10  ;;  %v14181_v10 = vld [vmem:[%s17629_s1 + $0x6a0] ss:$8 sps:$4 sm:$0xff]  }
  0xa6   : > { %1118 = vmatmul.mubr.bf16.gmra.mrb[60].mxu1 %v15422_v15  ;;  %1601 = vmatmul.mubr.bf16.gmra.mrb[60].mxu0 %v14057_v16  ;;  %v14184_v16 = vld [vmem:[%s17629_s1 + $0x630] ss:$8 sps:$4 sm:$0xff]  }
  0xa7   : > { %1125 = vmatprep.mubr.bf16.mxu1 %v15426_v17  ;;  %1608 = vmatprep.mubr.bf16.mxu0 %v14060_v18  ;;  %v14140_v18 = vld [vmem:[%s15117_s28 + $0x150] ss:$8 sps:$4 sm:$0xff]  }
  0xae   : > { %1126 = vmatmul.mubr.bf16.gmra.mrb[64].mxu1 %v15432_v19  ;;  %1609 = vmatmul.mubr.bf16.gmra.mrb[64].mxu0 %v14063_v20  ;;  %v14164_v20 = vld [vmem:[%s17629_s1 + $0x5d0] ss:$8 sps:$4 sm:$0xff]  }
  0xaf   : > { %1133 = vmatprep.mubr.bf16.mxu1 %v15436_v21  ;;  %1616 = vmatprep.mubr.bf16.mxu0 %v14068_v23  ;;  %v14189_v23 = vld [vmem:[%s17629_s1 + $0x6c0] ss:$8 sps:$4 sm:$0xff]  }
  0xb6   : > { %1134 = vmatmul.mubr.bf16.gmra.mrb[68].mxu1 %v14070_v24  ;;  %1617 = vmatmul.mubr.bf16.gmra.mrb[68].mxu0 %v14071_v25  ;;  %v14191_v24 = vld [vmem:[%s17629_s1 + $0x640] ss:$8 sps:$4 sm:$0xff]   ;;  %v14192_v25 = vld [vmem:[%s17629_s1 + $0x6d0] ss:$8 sps:$4 sm:$0xff]  }
  0xb7   : > { %1141 = vmatprep.mubr.bf16.mxu1 %v14072_v26  ;;  %1624 = vmatprep.mubr.bf16.mxu0 %v14074_v28  ;;  %v14165_v26 = vld [vmem:[%s17629_s1 + $0x550] ss:$8 sps:$4 sm:$0xff]   ;;  %v14145_v28 = vld [vmem:[%s15117_s28 + $0x160] ss:$8 sps:$4 sm:$0xff]  }
  0xbe   : > { %1142 = vmatmul.mubr.bf16.gmra.mrb[72].mxu1 %v14076_v30  ;;  %1625 = vmatmul.mubr.bf16.gmra.mrb[72].mxu0 %v14077_v31 }
  0xbf   : > { %1149 = vmatprep.mubr.bf16.mxu1 %v14080_v32  ;;  %1632 = vmatprep.mubr.bf16.mxu0 %v14082_v34  ;;  %v14172_v32 = vld [vmem:[%s17629_s1 + $0x5e0] ss:$8 sps:$4 sm:$0xff]  }
  0xc6   : > { %1150 = vmatmul.mubr.bf16.gmra.mrb[76].mxu1 %v14084_v35  ;;  %1633 = vmatmul.mubr.bf16.gmra.mrb[76].mxu0 %v14085_v36 }
  0xc7   : > { %1157 = vmatprep.mubr.bf16.mxu1 %v14086_v38  ;;  %1640 = vmatprep.mubr.bf16.mxu0 %v14088_v39 }
  0xce   : > { %1158 = vmatmul.mubr.bf16.gmra.mrb[80].mxu1 %v14090_v40  ;;  %1641 = vmatmul.mubr.bf16.gmra.mrb[80].mxu0 %v14091_v42  ;;  %v14188_v42 = vld [vmem:[%s17629_s1 + $0x5f0] ss:$8 sps:$4 sm:$0xff]  }
  0xcf   : > { %1165 = vmatprep.mubr.bf16.mxu1 %v14098_v43  ;;  %1648 = vmatprep.mubr.bf16.mxu0 %v14100_v45  ;;  %v14200_v43 = vld [vmem:[%s17629_s1 + $0x6e0] ss:$8 sps:$4 sm:$0xff]  }
  0xd6   : > { %1166 = vmatmul.mubr.bf16.gmra.mrb[84].mxu1 %v14102_v47  ;;  %1649 = vmatmul.mubr.bf16.gmra.mrb[84].mxu0 %v14103_v48  ;;  %v14201_v47 = vld [vmem:[%s17629_s1 + $0x660] ss:$8 sps:$4 sm:$0xff]   ;;  %v14202_v48 = vld [vmem:[%s17629_s1 + $0x6f0] ss:$8 sps:$4 sm:$0xff]  }
  0xd7   : > { %1173 = vmatprep.mubr.bf16.mxu1 %v14108_v49  ;;  %1656 = vmatprep.mubr.bf16.mxu0 %v14110_v50 }
  0xde   : > { %1174 = vmatmul.mubr.bf16.gmra.mrb[88].mxu1 %v14112_v52  ;;  %1657 = vmatmul.mubr.bf16.gmra.mrb[88].mxu0 %v14113_v53  ;;  %v14190_v52 = vld [vmem:[%s17629_s1 + $0x570] ss:$8 sps:$4 sm:$0xff]   ;;  %v14999_v53 = vld [vmem:[%s15117_s28 + $0x174] ss:$8 sps:$4 sm:$0xff]  }
  0xdf   : > { %1181 = vmatprep.mubr.bf16.mxu1 %v14120_v55  ;;  %1664 = vmatprep.mubr.bf16.mxu0 %v14122_v56  ;;  %v14203_v55 = vld [vmem:[%s17629_s1 + $0x670] ss:$8 sps:$4 sm:$0xff]   ;;  %v14210_v56 = vld [vmem:[%s17629_s1 + $0x780] ss:$8 sps:$4 sm:$0xff]  }
  0xe6   : > { %1182 = vmatmul.mubr.bf16.gmra.mrb[92].mxu1 %v14124_v57  ;;  %1665 = vmatmul.mubr.bf16.gmra.mrb[92].mxu0 %v14125_v58 }
  0xe7   : > { %2058 = vmatprep.mubr.bf16.mxu1 %v15264_v22  ;;  %2572 = vmatprep.mubr.bf16.mxu0 %v14132_v60  ;;  %v14176_v22 = vld [vmem:[%s17629_s1 + $0x690] ss:$8 sps:$4 sm:$0xff]  }
  0xee   : > { %2059 = vmatmul.mubr.bf16.vlgmr.msra.gmra.mrb[96].mxu1 %v15278_v27  ;;  %2573 = vmatmul.mubr.bf16.vlgmr.msra.gmra.mrb[96].mxu0 %v14130_v61  ;;  %v14147_v27 = vld [vmem:[%s17629_s1 + $0x520] ss:$8 sps:$4 sm:$0xff]  }
  0xef   : > { %12314 = vmatpush3.bf16.msra.mxu1 %v14134_v63  ;;  %2066 = vmatprep.mubr.bf16.mxu1 %v15282_v29  ;;  %v14148_v29 = vld [vmem:[%s17629_s1 + $0x5b0] ss:$8 sps:$4 sm:$0xff]  }
  0xf0   : > { %2580 = vmatprep.mubr.bf16.mxu0 %v14135_v0  ;;  %12315 = vmatprep.subr.bf16.mxu1 %v14141_v1 }
  0xf1   : > { %12426 = vmatpush3.bf16.msra.mxu0 %v14175_v2 }
  0xf2   : > { %12427 = vmatprep.subr.bf16.mxu0 %v14176_v22 }
  0xf3   : > { %12316 = vmatpush3.bf16.msra.mxu1 %v14142_v3 }
  0xf4   : > { %12317 = vmatprep.subr.bf16.mxu1 %v14146_v4  ;;  %v15000_v4 = vld [vmem:[%s15117_s28 + $0x170] ss:$8 sps:$4 sm:$0xff]  }
  0xf5   : > { %12428 = vmatpush3.bf16.msra.mxu0 %v14177_v8 }
  0xf6   : > { %2067 = vmatmul.mubr.bf16.gmra.mrb[100].mxu1 %v15294_v33  ;;  %2581 = vmatmul.mubr.bf16.gmra.mrb[100].mxu0 %v14137_v6  ;;  %v14143_v33 = vld [vmem:[%s15117_s28 + $0x164] ss:$8 sps:$4 sm:$0xff]  }
  0xf7   : > { %2074 = vmatprep.mubr.bf16.mxu1 %v15304_v37  ;;  %2588 = vmatprep.mubr.bf16.mxu0 %v14138_v7  ;;  %v14157_v37 = vld [vmem:[%s17629_s1 + $0x540] ss:$8 sps:$4 sm:$0xff]   ;;  %v15001_v6 = vld [vmem:[%s15117_s28 + $0x184] ss:$8 sps:$4 sm:$0xff]  }
  0xf8   : > { %12318 = vmatpush3.bf16.msra.mxu1 %v14147_v27  ;;  %12429 = vmatprep.subr.bf16.mxu0 %v14181_v10 }
  0xf9   : > { %12319 = vmatprep.subr.bf16.mxu1 %v14148_v29  ;;  %12430 = vmatpush3.bf16.msra.mxu0 %v14182_v11 }
  0xfa   : > { %12431 = vmatprep.subr.bf16.mxu0 %v14183_v12 }
  0xfc   : > { %12320 = vmatpush3.bf16.msra.mxu1 %v14149_v13 }
  0xfd   : > { %12321 = vmatprep.subr.bf16.mxu1 %v14156_v14  ;;  %12432 = vmatpush3.bf16.msra.mxu0 %v14184_v16 }
  0xfe   : > { %2075 = vmatmul.mubr.bf16.gmra.mrb[104].mxu1 %v15316_v41  ;;  %2589 = vmatmul.mubr.bf16.gmra.mrb[104].mxu0 %v14140_v18  ;;  %v14193_v41 = vld [vmem:[%s17629_s1 + $0x650] ss:$8 sps:$4 sm:$0xff]   ;;  %v15002_v18 = vld [vmem:[%s15117_s28 + $0x180] ss:$8 sps:$4 sm:$0xff]  }
  0xff   : > { %2082 = vmatprep.mubr.bf16.mxu1 %v15323_v44  ;;  %2596 = vmatprep.mubr.bf16.mxu0 %v14143_v33  ;;  %v14174_v44 = vld [vmem:[%s17629_s1 + $0x560] ss:$8 sps:$4 sm:$0xff]   ;;  %v15003_v33 = vld [vmem:[%s15117_s28 + $0x194] ss:$8 sps:$4 sm:$0xff]  }
 0x100   : > { %12322 = vmatpush3.bf16.msra.mxu1 %v14157_v37  ;;  %12433 = vmatprep.subr.bf16.mxu0 %v14189_v23 }
 0x101   : > { %v11817_v30 = vpop.f32.mrb[0].mxu1  ;;  %v11769_v31 = vpop.f32.mrb[0].mxu0  ;;  %12323 = vmatprep.subr.bf16.mxu1 %v14164_v20  ;;  %12434 = vmatpush3.bf16.msra.mxu0 %v14191_v24 }
 0x102   : > { %v11818_v34 = vpop.f32.mrb[1].mxu1  ;;  %v11770_v35 = vpop.f32.mrb[1].mxu0  ;;  %12435 = vmatprep.subr.bf16.mxu0 %v14192_v25 }
 0x103   : > { %v15557_v36 = vadd.f32 %v11818_v34, %v11817_v30  ;;  %v11820_v38 = vpop.f32.mrb[2].mxu1  ;;  %v15559_v39 = vadd.f32 %v11770_v35, %v11769_v31  ;;  %v11772_v40 = vpop.f32.mrb[2].mxu0  ;;  %v15004_v34 = vld [vmem:[%s15117_s28 + $0x190] ss:$8 sps:$4 sm:$0xff]  }
 0x104   : > { %v11821_v45 = vpop.f32.mrb[3].mxu1  ;;  %v11773_v46 = vpop.f32.mrb[3].mxu0  ;;  %12324 = vmatpush3.bf16.msra.mxu1 %v14165_v26 }
 0x105   : > { %v15573_v49 = vadd.f32 %v11821_v45, %v11820_v38  ;;  %v15575_v50 = vadd.f32 %v11773_v46, %v11772_v40  ;;  %12325 = vmatprep.subr.bf16.mxu1 %v14172_v32  ;;  %12436 = vmatpush3.bf16.msra.mxu0 %v14193_v41  ;;  %v14153_v46 = vld [vmem:[%s15117_s28 + $0x1b4] ss:$8 sps:$4 sm:$0xff]  }
 0x106   : > { %2083 = vmatmul.mubr.bf16.gmra.mrb[108].mxu1 %v15344_v51  ;;  %2597 = vmatmul.mubr.bf16.gmra.mrb[108].mxu0 %v14145_v28  ;;  %v14150_v28 = vld [vmem:[%s15117_s28 + $0x1a4] ss:$8 sps:$4 sm:$0xff]  }
 0x107   : > { %2090 = vmatprep.mubr.bf16.mxu1 %v15351_v54  ;;  %2604 = vmatprep.mubr.bf16.mxu0 %v14999_v53 }
 0x108   : > { %12326 = vmatpush3.bf16.msra.mxu1 %v14174_v44  ;;  %12437 = vmatprep.subr.bf16.mxu0 %v14200_v43  ;;  %v14152_v44 = vld [vmem:[%s15117_s28 + $0x1a0] ss:$8 sps:$4 sm:$0xff]  }
 0x109   : > { %v11823_v51 = vpop.f32.mrb[4].mxu1  ;;  %v11775_v57 = vpop.f32.mrb[4].mxu0  ;;  %12327 = vmatprep.subr.bf16.mxu1 %v14188_v42  ;;  %12438 = vmatpush3.bf16.msra.mxu0 %v14201_v47 }
 0x10a   : > { %v11824_v58 = vpop.f32.mrb[5].mxu1  ;;  %v11776_v60 = vpop.f32.mrb[5].mxu0  ;;  %12439 = vmatprep.subr.bf16.mxu0 %v14202_v48 }
 0x10b   : > { %v15589_v54 = vadd.f32 %v11824_v58, %v11823_v51  ;;  %v11826_v61 = vpop.f32.mrb[6].mxu1  ;;  %v15591_v63 = vadd.f32 %v11776_v60, %v11775_v57  ;;  %v11778_v0 = vpop.f32.mrb[6].mxu0 }
 0x10c   : > { %v11827_v1 = vpop.f32.mrb[7].mxu1  ;;  %v11779_v2 = vpop.f32.mrb[7].mxu0  ;;  %12328 = vmatpush3.bf16.msra.mxu1 %v14190_v52 }
 0x10d   : > { %v15593_v22 = vadd.f32 %v11827_v1, %v11826_v61  ;;  %v15595_v3 = vadd.f32 %v11779_v2, %v11778_v0  ;;  %12440 = vmatpush3.bf16.msra.mxu0 %v14203_v55  ;;  %12537 = vmatprep.subr.bf16.mxu1 %v14210_v56  ;;  %v14155_v55 = vld [vmem:[%s15117_s28 + $0x1b0] ss:$8 sps:$4 sm:$0xff]   ;;  %v14158_v0 = vld [vmem:[%s15117_s28 + $0x1c4] ss:$8 sps:$4 sm:$0xff]  }
 0x10e   : > { %2091 = vmatmul.mubr.bf16.gmra.mrb[112].mxu1 %v15366_v59  ;;  %2605 = vmatmul.mubr.bf16.gmra.mrb[112].mxu0 %v15000_v4 }
 0x10f   : > { %2098 = vmatprep.mubr.bf16.mxu1 %v15373_v62  ;;  %2612 = vmatprep.mubr.bf16.mxu0 %v15001_v6 }
 0x111   : > { %v11829_v7 = vpop.f32.mrb[8].mxu1  ;;  %v11781_v8 = vpop.f32.mrb[8].mxu0 }
 0x112   : > { %v11830_v27 = vpop.f32.mrb[9].mxu1  ;;  %v11782_v29 = vpop.f32.mrb[9].mxu0 }
 0x113   : > { %v15601_v10 = vadd.f32 %v11830_v27, %v11829_v7  ;;  %v11832_v11 = vpop.f32.mrb[10].mxu1  ;;  %v15603_v12 = vadd.f32 %v11782_v29, %v11781_v8  ;;  %v11784_v13 = vpop.f32.mrb[10].mxu0  ;;  %v15005_v7 = vld [vmem:[%s15117_s28 + $0x90] ss:$8 sps:$4 sm:$0xff]   ;;  %v15006_v8 = vld [vmem:[%s15117_s28 + $0xa4] ss:$8 sps:$4 sm:$0xff]  }
 0x114   : > { %v11833_v14 = vpop.f32.mrb[11].mxu1  ;;  %v11785_v59 = vpop.f32.mrb[11].mxu0  ;;  %v14160_v29 = vld [vmem:[%s15117_s28 + $0x1c0] ss:$8 sps:$4 sm:$0xff]  }
 0x115   : > { %v15605_v16 = vadd.f32 %v11833_v14, %v11832_v11  ;;  %v15607_v62 = vadd.f32 %v11785_v59, %v11784_v13 }
 0x116   : > { %2099 = vmatmul.mubr.bf16.gmra.mrb[116].mxu1 %v15394_v5  ;;  %2613 = vmatmul.mubr.bf16.gmra.mrb[116].mxu0 %v15002_v18 }
 0x117   : > { %2106 = vmatprep.mubr.bf16.mxu1 %v15404_v9  ;;  %2620 = vmatprep.mubr.bf16.mxu0 %v15003_v33 }
 0x119   : > { %v11835_v37 = vpop.f32.mrb[12].mxu1  ;;  %v11787_v20 = vpop.f32.mrb[12].mxu0 }
 0x11a   : > { %v11836_v23 = vpop.f32.mrb[13].mxu1  ;;  %v11788_v24 = vpop.f32.mrb[13].mxu0 }
 0x11b   : > { %v15613_v25 = vadd.f32 %v11836_v23, %v11835_v37  ;;  %v11838_v26 = vpop.f32.mrb[14].mxu1  ;;  %v15616_v30 = vadd.f32 %v11788_v24, %v11787_v20  ;;  %v11790_v31 = vpop.f32.mrb[14].mxu0  ;;  %v14161_v20 = vld [vmem:[%s15117_s28 + $0x1d4] ss:$8 sps:$4 sm:$0xff]  }
 0x11c   : > { %v11839_v5 = vpop.f32.mrb[15].mxu1  ;;  %v11791_v32 = vpop.f32.mrb[15].mxu0 }
 0x11d   : > { %v15618_v41 = vadd.f32 %v11839_v5, %v11838_v26  ;;  %v15620_v9 = vadd.f32 %v11791_v32, %v11790_v31  ;;  %v15007_v31 = vld [vmem:[%s15117_s28 + $0xa0] ss:$8 sps:$4 sm:$0xff]   ;;  %v15008_v5 = vld [vmem:[%s15117_s28 + $0xb4] ss:$8 sps:$4 sm:$0xff]   ;;  %v14163_v32 = vld [vmem:[%s15117_s28 + $0x1d0] ss:$8 sps:$4 sm:$0xff]  }
 0x11e   : > { %2107 = vmatmul.mubr.bf16.gmra.mrb[120].mxu1 %v15422_v15  ;;  %2621 = vmatmul.mubr.bf16.gmra.mrb[120].mxu0 %v15004_v34 }
 0x11f   : > { %2114 = vmatprep.mubr.bf16.mxu1 %v15426_v17  ;;  %2628 = vmatprep.mubr.bf16.mxu0 %v14150_v28 }
 0x121   : > { %v11841_v35 = vpop.f32.mrb[16].mxu1  ;;  %v11793_v38 = vpop.f32.mrb[16].mxu0 }
 0x122   : > { %v11842_v40 = vpop.f32.mrb[17].mxu1  ;;  %v11794_v42 = vpop.f32.mrb[17].mxu0 }
 0x123   : > { %v15626_v43 = vadd.f32 %v11842_v40, %v11841_v35  ;;  %v11844_v45 = vpop.f32.mrb[18].mxu1  ;;  %v15629_v47 = vadd.f32 %v11794_v42, %v11793_v38  ;;  %v11796_v48 = vpop.f32.mrb[18].mxu0 }
 0x124   : > { %v11845_v15 = vpop.f32.mrb[19].mxu1  ;;  %v11797_v52 = vpop.f32.mrb[19].mxu0 }
 0x125   : > { %v15631_v53 = vadd.f32 %v11845_v15, %v11844_v45  ;;  %v15633_v17 = vadd.f32 %v11797_v52, %v11796_v48  ;;  %v14166_v48 = vld [vmem:[%s15117_s28 + $0x1e4] ss:$8 sps:$4 sm:$0xff]  }
 0x126   : > { %2115 = vmatmul.mubr.bf16.gmra.mrb[124].mxu1 %v15432_v19  ;;  %2629 = vmatmul.mubr.bf16.gmra.mrb[124].mxu0 %v14152_v44 }
 0x127   : > { %2122 = vmatprep.mubr.bf16.mxu1 %v15436_v21  ;;  %2636 = vmatprep.mubr.bf16.mxu0 %v14153_v46 }
 0x129   : > { %v11847_v56 = vpop.f32.mrb[20].mxu1  ;;  %v11799_v51 = vpop.f32.mrb[20].mxu0 }
 0x12a   : > { %v11848_v57 = vpop.f32.mrb[21].mxu1  ;;  %v11800_v58 = vpop.f32.mrb[21].mxu0 }
 0x12b   : > { %v15638_v60 = vadd.f32 %v11848_v57, %v11847_v56  ;;  %v11850_v61 = vpop.f32.mrb[22].mxu1  ;;  %v15641_v1 = vadd.f32 %v11800_v58, %v11799_v51  ;;  %v11802_v2 = vpop.f32.mrb[22].mxu0  ;;  %v15009_v51 = vld [vmem:[%s15117_s28 + $0xb0] ss:$8 sps:$4 sm:$0xff]   ;;  %v15010_v57 = vld [vmem:[%s15117_s28 + $0xc4] ss:$8 sps:$4 sm:$0xff]  }
 0x12c   : > { %v11851_v19 = vpop.f32.mrb[23].mxu1  ;;  %v11803_v4 = vpop.f32.mrb[23].mxu0 }
 0x12d   : > { %v15643_v6 = vadd.f32 %v11851_v19, %v11850_v61  ;;  %v15645_v21 = vadd.f32 %v11803_v4, %v11802_v2 }
 0x12e   : > { %2123 = vmatmul.mubr.bf16.gmra.mrb[128].mxu1 %v15005_v7  ;;  %2637 = vmatmul.mubr.bf16.gmra.mrb[128].mxu0 %v14155_v55 }
 0x12f   : > { %2130 = vmatprep.mubr.bf16.mxu1 %v15006_v8  ;;  %2644 = vmatprep.mubr.bf16.mxu0 %v14158_v0  ;;  %v14168_v0 = vld [vmem:[%s15117_s28 + $0x1e0] ss:$8 sps:$4 sm:$0xff]  }
 0x131   : > { %v11853_v27 = vpop.f32.mrb[24].mxu1  ;;  %v11805_v11 = vpop.f32.mrb[24].mxu0 }
 0x132   : > { %v11854_v13 = vpop.f32.mrb[25].mxu1  ;;  %v11806_v14 = vpop.f32.mrb[25].mxu0 }
 0x133   : > { %v15650_v59 = vadd.f32 %v11854_v13, %v11853_v27  ;;  %v11856_v18 = vpop.f32.mrb[26].mxu1  ;;  %v15652_v33 = vadd.f32 %v11806_v14, %v11805_v11  ;;  %v11808_v37 = vpop.f32.mrb[26].mxu0 }
 0x134   : > { %v11857_v23 = vpop.f32.mrb[27].mxu1  ;;  %v11809_v24 = vpop.f32.mrb[27].mxu0 }
 0x135   : > { %v15655_v26 = vadd.f32 %v11857_v23, %v11856_v18  ;;  %v15657_v28 = vadd.f32 %v11809_v24, %v11808_v37 }
 0x136   : > { %2131 = vmatmul.mubr.bf16.gmra.mrb[132].mxu1 %v15007_v31  ;;  %2645 = vmatmul.mubr.bf16.gmra.mrb[132].mxu0 %v14160_v29  ;;  %v14169_v29 = vld [vmem:[%s15117_s28 + $0x1f4] ss:$8 sps:$4 sm:$0xff]  }
 0x137   : > { %2138 = vmatprep.mubr.bf16.mxu1 %v15008_v5  ;;  %2652 = vmatprep.mubr.bf16.mxu0 %v14161_v20  ;;  %v15011_v20 = vld [vmem:[%s15117_s28 + $0xc0] ss:$8 sps:$4 sm:$0xff]   ;;  %v15012_v31 = vld [vmem:[%s15117_s28 + $0xd4] ss:$8 sps:$4 sm:$0xff]   ;;  %v14171_v5 = vld [vmem:[%s15117_s28 + $0x1f0] ss:$8 sps:$4 sm:$0xff]  }
 0x139   : > { %v11859_v34 = vpop.f32.mrb[28].mxu1  ;;  %v11811_v35 = vpop.f32.mrb[28].mxu0 }
 0x13a   : > { %v11860_v44 = vpop.f32.mrb[29].mxu1  ;;  %v11812_v38 = vpop.f32.mrb[29].mxu0 }
 0x13b   : > { %v15662_v40 = vadd.f32 %v11860_v44, %v11859_v34  ;;  %v11862_v42 = vpop.f32.mrb[30].mxu1  ;;  %v15664_v45 = vadd.f32 %v11812_v38, %v11811_v35  ;;  %v11814_v46 = vpop.f32.mrb[30].mxu0 }
 0x13c   : > { %v11863_v15 = vpop.f32.mrb[31].mxu1  ;;  %v11815_v52 = vpop.f32.mrb[31].mxu0 }
 0x13d   : > { %v15667_v55 = vadd.f32 %v11863_v15, %v11862_v42  ;;  %v15669_v56 = vadd.f32 %v11815_v52, %v11814_v46  ;;  %v14178_v15 = vld [vmem:[%s15117_s28 + $0x204] ss:$8 sps:$4 sm:$0xff]  }
 0x13e   : > { %2139 = vmatmul.mubr.bf16.gmra.mrb[136].mxu1 %v15009_v51  ;;  %2653 = vmatmul.mubr.bf16.gmra.mrb[136].mxu0 %v14163_v32 }
 0x13f   : > { %2146 = vmatprep.mubr.bf16.mxu1 %v15010_v57  ;;  %2660 = vmatprep.mubr.bf16.mxu0 %v14166_v48 }
 0x141   : > { %v11881_v58 = vpop.f32.mrb[32].mxu1  ;;  %v11993_v61 = vpop.f32.mrb[32].mxu0 }
 0x142   : > { %v11882_v2 = vpop.f32.mrb[33].mxu1  ;;  %v11994_v19 = vpop.f32.mrb[33].mxu0 }
 0x143   : > { %v11883_v4 = vadd.f32 %v11882_v2, %v11881_v58  ;;  %v11884_v7 = vpop.f32.mrb[34].mxu1  ;;  %v11995_v8 = vadd.f32 %v11994_v19, %v11993_v61  ;;  %v11996_v27 = vpop.f32.mrb[34].mxu0  ;;  %v14295_v61 = vld [vmem:[%s17629_s1 + $0x880] ss:$8 sps:$4 sm:$0xff]  }
 0x144   : > { %v11885_v11 = vpop.f32.mrb[35].mxu1  ;;  %v11997_v13 = vpop.f32.mrb[35].mxu0  ;;  %12649 = vmatprep.subr.bf16.mxu0 %v14295_v61  ;;  %v14194_v61 = vld [vmem:[%s15117_s28 + $0x104] ss:$8 sps:$4 sm:$0xff]  }
 0x145   : > { %v1064_v14 = vadd.f32 %v11883_v4, %v15559_v39  ;;  %v11886_v18 = vadd.f32 %v11885_v11, %v11884_v7  ;;  %v11998_v37 = vadd.f32 %v11997_v13, %v11996_v27  ;;  %v15014_v4 = vld [vmem:[%s15117_s28 + $0xe4] ss:$8 sps:$4 sm:$0xff]   ;;  %v14180_v11 = vld [vmem:[%s15117_s28 + $0x200] ss:$8 sps:$4 sm:$0xff]  }
 0x146   : > { %2147 = vmatmul.mubr.bf16.gmra.mrb[140].mxu1 %v15011_v20  ;;  %2661 = vmatmul.mubr.bf16.gmra.mrb[140].mxu0 %v14168_v0  ;;  %v15013_v0 = vld [vmem:[%s15117_s28 + $0xd0] ss:$8 sps:$4 sm:$0xff]  }
 0x147   : > { %v1067_v23 = vadd.f32 %v11886_v18, %v15575_v50  ;;  %v15678_v24 = vadd.f32 %v11995_v8, %v1064_v14  ;;  %2154 = vmatprep.mubr.bf16.mxu1 %v15012_v31  ;;  %2668 = vmatprep.mubr.bf16.mxu0 %v14169_v29 }
 0x149   : > { %v15682_v32 = vadd.f32 %v11998_v37, %v1067_v23  ;;  %v11887_v34 = vpop.f32.mrb[36].mxu1  ;;  %v11999_v35 = vpop.f32.mrb[36].mxu0  ;;  %v14185_v37 = vld [vmem:[%s15117_s28 + $0x214] ss:$8 sps:$4 sm:$0xff]  }
 0x14a   : > { %v11888_v39 = vpop.f32.mrb[37].mxu1  ;;  %v12000_v44 = vpop.f32.mrb[37].mxu0 }
 0x14b   : > { %v11889_v38 = vadd.f32 %v11888_v39, %v11887_v34  ;;  %v11890_v42 = vpop.f32.mrb[38].mxu1  ;;  %v12001_v46 = vadd.f32 %v12000_v44, %v11999_v35  ;;  %v12002_v48 = vpop.f32.mrb[38].mxu0  ;;  %v15015_v35 = vld [vmem:[%s15117_s28 + $0xe0] ss:$8 sps:$4 sm:$0xff]  }
 0x14c   : > { %v11891_v50 = vpop.f32.mrb[39].mxu1  ;;  %v12003_v52 = vpop.f32.mrb[39].mxu0 }
 0x14d   : > { %v1072_v51 = vadd.f32 %v11889_v38, %v15591_v63  ;;  %v11892_v57 = vadd.f32 %v11891_v50, %v11890_v42  ;;  %v12004_v58 = vadd.f32 %v12003_v52, %v12002_v48  ;;  %v15016_v38 = vld [vmem:[%s15117_s28 + $0xf4] ss:$8 sps:$4 sm:$0xff]  }
 0x14e   : > { %2155 = vmatmul.mubr.bf16.gmra.mrb[144].mxu1 %v15013_v0  ;;  %2669 = vmatmul.mubr.bf16.gmra.mrb[144].mxu0 %v14171_v5 }
 0x14f   : > { %v1075_v2 = vadd.f32 %v11892_v57, %v15595_v3  ;;  %v15691_v19 = vadd.f32 %v12001_v46, %v1072_v51  ;;  %2162 = vmatprep.mubr.bf16.mxu1 %v15014_v4  ;;  %2676 = vmatprep.mubr.bf16.mxu0 %v14178_v15 }
 0x151   : > { %v15694_v63 = vadd.f32 %v12004_v58, %v1075_v2  ;;  %v11893_v7 = vpop.f32.mrb[40].mxu1  ;;  %v12005_v8 = vpop.f32.mrb[40].mxu0 }
 0x152   : > { %v11894_v27 = vpop.f32.mrb[41].mxu1  ;;  %v12006_v29 = vpop.f32.mrb[41].mxu0 }
 0x153   : > { %v11895_v13 = vadd.f32 %v11894_v27, %v11893_v7  ;;  %v11896_v14 = vpop.f32.mrb[42].mxu1  ;;  %v12007_v18 = vadd.f32 %v12006_v29, %v12005_v8  ;;  %v12008_v3 = vpop.f32.mrb[42].mxu0  ;;  %v15017_v27 = vld [vmem:[%s15117_s28 + $0xf0] ss:$8 sps:$4 sm:$0xff]  }
 0x154   : > { %v11897_v20 = vpop.f32.mrb[43].mxu1  ;;  %v12009_v23 = vpop.f32.mrb[43].mxu0 }
 0x155   : > { %v1080_v31 = vadd.f32 %v11895_v13, %v15603_v12  ;;  %v11898_v5 = vadd.f32 %v11897_v20, %v11896_v14  ;;  %v12010_v34 = vadd.f32 %v12009_v23, %v12008_v3  ;;  %v14187_v12 = vld [vmem:[%s15117_s28 + $0x210] ss:$8 sps:$4 sm:$0xff]   ;;  %v14198_v3 = vld [vmem:[%s15117_s28 + $0x100] ss:$8 sps:$4 sm:$0xff]  }
 0x156   : > { %2163 = vmatmul.mubr.bf16.gmra.mrb[148].mxu1 %v15015_v35  ;;  %2677 = vmatmul.mubr.bf16.gmra.mrb[148].mxu0 %v14180_v11  ;;  %v14199_v20 = vld [vmem:[%s15117_s28 + $0x220] ss:$8 sps:$4 sm:$0xff]   ;;  %v14209_v35 = vld [vmem:[%s15117_s28 + $0x24] ss:$8 sps:$4 sm:$0xff]  }
 0x157   : > { %v1083_v39 = vadd.f32 %v11898_v5, %v15607_v62  ;;  %v15701_v44 = vadd.f32 %v12007_v18, %v1080_v31  ;;  %2170 = vmatprep.mubr.bf16.mxu1 %v15016_v38  ;;  %2684 = vmatprep.mubr.bf16.mxu0 %v14185_v37  ;;  %v14196_v62 = vld [vmem:[%s15117_s28 + $0x224] ss:$8 sps:$4 sm:$0xff]  }
 0x159   : > { %v15704_v42 = vadd.f32 %v12010_v34, %v1083_v39  ;;  %v11899_v46 = vpop.f32.mrb[44].mxu1  ;;  %v12011_v48 = vpop.f32.mrb[44].mxu0 }
 0x15a   : > { %v11900_v15 = vpop.f32.mrb[45].mxu1  ;;  %v12012_v50 = vpop.f32.mrb[45].mxu0 }
 0x15b   : > { %v11901_v52 = vadd.f32 %v11900_v15, %v11899_v46  ;;  %v11902_v51 = vpop.f32.mrb[46].mxu1  ;;  %v12013_v57 = vadd.f32 %v12012_v50, %v12011_v48  ;;  %v12014_v58 = vpop.f32.mrb[46].mxu0 }
 0x15c   : > { %v11903_v0 = vpop.f32.mrb[47].mxu1  ;;  %v12015_v2 = vpop.f32.mrb[47].mxu0 }
 0x15d   : > { %v1088_v4 = vadd.f32 %v11901_v52, %v15616_v30  ;;  %v11904_v7 = vadd.f32 %v11903_v0, %v11902_v51  ;;  %v12016_v8 = vadd.f32 %v12015_v2, %v12014_v58  ;;  %v14204_v52 = vld [vmem:[%s15117_s28 + $0x250] ss:$8 sps:$4 sm:$0xff]   ;;  %v14207_v51 = vld [vmem:[%s15117_s28 + $0x20] ss:$8 sps:$4 sm:$0xff]  }
 0x15e   : > { %2171 = vmatmul.mubr.bf16.gmra.mrb[152].mxu1 %v15017_v27  ;;  %2685 = vmatmul.mubr.bf16.gmra.mrb[152].mxu0 %v14187_v12  ;;  %v14214_v27 = vld [vmem:[%s15117_s28 + $0x34] ss:$8 sps:$4 sm:$0xff]  }
 0x15f   : > { %v1091_v29 = vadd.f32 %v11904_v7, %v15620_v9  ;;  %v15712_v11 = vadd.f32 %v12013_v57, %v1088_v4  ;;  %2178 = vmatprep.mubr.bf16.mxu1 %v14194_v61  ;;  %2692 = vmatprep.mubr.bf16.mxu0 %v14196_v62  ;;  %v14206_v9 = vld [vmem:[%s15117_s28 + $0x254] ss:$8 sps:$4 sm:$0xff]   ;;  %v14212_v62 = vld [vmem:[%s15117_s28 + $0x264] ss:$8 sps:$4 sm:$0xff]  }
 0x161   : > { %v15714_v13 = vadd.f32 %v12016_v8, %v1091_v29  ;;  %v11905_v14 = vpop.f32.mrb[48].mxu1  ;;  %v12017_v18 = vpop.f32.mrb[48].mxu0  ;;  %v14224_v29 = vld [vmem:[%s17629_s1 + $0x790] ss:$8 sps:$4 sm:$0xff]  }
 0x162   : > { %v11906_v30 = vpop.f32.mrb[49].mxu1  ;;  %v12018_v37 = vpop.f32.mrb[49].mxu0 }
 0x163   : > { %v11907_v23 = vadd.f32 %v11906_v30, %v11905_v14  ;;  %v11908_v31 = vpop.f32.mrb[50].mxu1  ;;  %v12019_v5 = vadd.f32 %v12018_v37, %v12017_v18  ;;  %v12020_v34 = vpop.f32.mrb[50].mxu0  ;;  %v14298_v30 = vld [vmem:[%s17629_s1 + $0x890] ss:$8 sps:$4 sm:$0xff]  }
 0x164   : > { %v11909_v39 = vpop.f32.mrb[51].mxu1  ;;  %v12021_v38 = vpop.f32.mrb[51].mxu0 }
 0x165   : > { %v1096_v46 = vadd.f32 %v11907_v23, %v15629_v47  ;;  %v11910_v48 = vadd.f32 %v11909_v39, %v11908_v31  ;;  %v12022_v12 = vadd.f32 %v12021_v38, %v12020_v34  ;;  %v14211_v47 = vld [vmem:[%s17629_s1 + $0x700] ss:$8 sps:$4 sm:$0xff]   ;;  %v14225_v31 = vld [vmem:[%s17629_s1 + $0x710] ss:$8 sps:$4 sm:$0xff]  }
 0x166   : > { %2179 = vmatmul.mubr.bf16.gmra.mrb[156].mxu1 %v14198_v3  ;;  %2693 = vmatmul.mubr.bf16.gmra.mrb[156].mxu0 %v14199_v20  ;;  %v14297_v3 = vld [vmem:[%s17629_s1 + $0x800] ss:$8 sps:$4 sm:$0xff]  }
 0x167   : > { %v1099_v15 = vadd.f32 %v11910_v48, %v15633_v17  ;;  %v15722_v50 = vadd.f32 %v12019_v5, %v1096_v46  ;;  %3086 = vmatprep.mubr.bf16.mxu1 %v14206_v9  ;;  %3600 = vmatprep.mubr.bf16.mxu0 %v14209_v35  ;;  %v14238_v5 = vld [vmem:[%s17629_s1 + $0x7a0] ss:$8 sps:$4 sm:$0xff]   ;;  %v14217_v35 = vld [vmem:[%s15117_s28 + $0x30] ss:$8 sps:$4 sm:$0xff]   ;;  %v14218_v48 = vld [vmem:[%s15117_s28 + $0x274] ss:$8 sps:$4 sm:$0xff]  }
 0x169   : > { %v15726_v57 = vadd.f32 %v12022_v12, %v1099_v15  ;;  %v11911_v58 = vpop.f32.mrb[52].mxu1  ;;  %v12023_v61 = vpop.f32.mrb[52].mxu0  ;;  %v14220_v12 = vld [vmem:[%s15117_s28 + $0x44] ss:$8 sps:$4 sm:$0xff]   ;;  %v14299_v15 = vld [vmem:[%s17629_s1 + $0x810] ss:$8 sps:$4 sm:$0xff]  }
 0x16a   : > { %v11912_v0 = vpop.f32.mrb[53].mxu1  ;;  %v12024_v2 = vpop.f32.mrb[53].mxu0 }
 0x16b   : > { %v11913_v4 = vadd.f32 %v11912_v0, %v11911_v58  ;;  %v11914_v17 = vpop.f32.mrb[54].mxu1  ;;  %v12025_v7 = vadd.f32 %v12024_v2, %v12023_v61  ;;  %v12026_v8 = vpop.f32.mrb[54].mxu0  ;;  %v14252_v0 = vld [vmem:[%s17629_s1 + $0x7b0] ss:$8 sps:$4 sm:$0xff]   ;;  %v14306_v2 = vld [vmem:[%s17629_s1 + $0x8a0] ss:$8 sps:$4 sm:$0xff]  }
 0x16c   : > { %v11915_v14 = vpop.f32.mrb[55].mxu1  ;;  %v12027_v18 = vpop.f32.mrb[55].mxu0 }
 0x16d   : > { %v1104_v37 = vadd.f32 %v11913_v4, %v15641_v1  ;;  %v11916_v20 = vadd.f32 %v11915_v14, %v11914_v17  ;;  %v12028_v23 = vadd.f32 %v12027_v18, %v12026_v8  ;;  %v14216_v1 = vld [vmem:[%s15117_s28 + $0x260] ss:$8 sps:$4 sm:$0xff]   ;;  %v14308_v8 = vld [vmem:[%s17629_s1 + $0x8b0] ss:$8 sps:$4 sm:$0xff]  }
 0x16e   : > { %3087 = vmatmul.mubr.bf16.vlgmr.msra.gmra.mrb[160].mxu1 %v14204_v52  ;;  %3601 = vmatmul.mubr.bf16.vlgmr.msra.gmra.mrb[160].mxu0 %v14207_v51  ;;  %v14239_v51 = vld [vmem:[%s17629_s1 + $0x720] ss:$8 sps:$4 sm:$0xff]   ;;  %v14253_v18 = vld [vmem:[%s17629_s1 + $0x730] ss:$8 sps:$4 sm:$0xff]  }
 0x16f   : > { %v1107_v34 = vadd.f32 %v11916_v20, %v15645_v21  ;;  %v15750_v9 = vadd.f32 %v12025_v7, %v1104_v37  ;;  %12538 = vmatpush3.bf16.msra.mxu1 %v14211_v47  ;;  %3094 = vmatprep.mubr.bf16.mxu1 %v14212_v62  ;;  %v14307_v7 = vld [vmem:[%s17629_s1 + $0x820] ss:$8 sps:$4 sm:$0xff]   ;;  %v14309_v37 = vld [vmem:[%s17629_s1 + $0x830] ss:$8 sps:$4 sm:$0xff]  }
 0x170   : > { %3608 = vmatprep.mubr.bf16.mxu0 %v14214_v27  ;;  %12539 = vmatprep.subr.bf16.mxu1 %v14224_v29  ;;  %v14222_v20 = vld [vmem:[%s15117_s28 + $0x270] ss:$8 sps:$4 sm:$0xff]  }
 0x171   : > { %v15754_v39 = vadd.f32 %v12028_v23, %v1107_v34  ;;  %v11917_v38 = vpop.f32.mrb[56].mxu1  ;;  %v12029_v46 = vpop.f32.mrb[56].mxu0  ;;  %12650 = vmatpush3.bf16.msra.mxu0 %v14297_v3  ;;  %v14223_v23 = vld [vmem:[%s15117_s28 + $0x40] ss:$8 sps:$4 sm:$0xff]   ;;  %v14226_v34 = vld [vmem:[%s15117_s28 + $0x284] ss:$8 sps:$4 sm:$0xff]  }
 0x172   : > { %v11918_v21 = vpop.f32.mrb[57].mxu1  ;;  %v12030_v52 = vpop.f32.mrb[57].mxu0  ;;  %12651 = vmatprep.subr.bf16.mxu0 %v14298_v30 }
 0x173   : > { %v11919_v58 = vadd.f32 %v11918_v21, %v11917_v38  ;;  %v11920_v61 = vpop.f32.mrb[58].mxu1  ;;  %v12031_v47 = vadd.f32 %v12030_v52, %v12029_v46  ;;  %v12032_v62 = vpop.f32.mrb[58].mxu0  ;;  %12540 = vmatpush3.bf16.msra.mxu1 %v14225_v31  ;;  %v14267_v46 = vld [vmem:[%s17629_s1 + $0x740] ss:$8 sps:$4 sm:$0xff]   ;;  %v14280_v52 = vld [vmem:[%s17629_s1 + $0x7d0] ss:$8 sps:$4 sm:$0xff]  }
 0x174   : > { %v11921_v4 = vpop.f32.mrb[59].mxu1  ;;  %v12033_v17 = vpop.f32.mrb[59].mxu0  ;;  %12541 = vmatprep.subr.bf16.mxu1 %v14238_v5 }
 0x175   : > { %v1112_v27 = vadd.f32 %v11919_v58, %v15652_v33  ;;  %v11922_v29 = vadd.f32 %v11921_v4, %v11920_v61  ;;  %v12034_v14 = vadd.f32 %v12033_v17, %v12032_v62  ;;  %12652 = vmatpush3.bf16.msra.mxu0 %v14299_v15  ;;  %v14266_v33 = vld [vmem:[%s17629_s1 + $0x7c0] ss:$8 sps:$4 sm:$0xff]   ;;  %v14320_v62 = vld [vmem:[%s17629_s1 + $0x8d0] ss:$8 sps:$4 sm:$0xff]  }
 0x176   : > { %3095 = vmatmul.mubr.bf16.gmra.mrb[164].mxu1 %v14216_v1  ;;  %3609 = vmatmul.mubr.bf16.gmra.mrb[164].mxu0 %v14217_v35  ;;  %v14228_v1 = vld [vmem:[%s15117_s28 + $0x54] ss:$8 sps:$4 sm:$0xff]   ;;  %v14281_v17 = vld [vmem:[%s17629_s1 + $0x750] ss:$8 sps:$4 sm:$0xff]  }
 0x177   : > { %v1115_v3 = vadd.f32 %v11922_v29, %v15657_v28  ;;  %v15781_v30 = vadd.f32 %v12031_v47, %v1112_v27  ;;  %3102 = vmatprep.mubr.bf16.mxu1 %v14218_v48  ;;  %3616 = vmatprep.mubr.bf16.mxu0 %v14220_v12  ;;  %v14319_v47 = vld [vmem:[%s17629_s1 + $0x840] ss:$8 sps:$4 sm:$0xff]  }
 0x178   : > { %12542 = vmatpush3.bf16.msra.mxu1 %v14239_v51  ;;  %12653 = vmatprep.subr.bf16.mxu0 %v14306_v2  ;;  %v14317_v51 = vld [vmem:[%s17629_s1 + $0x8c0] ss:$8 sps:$4 sm:$0xff]  }
 0x179   : > { %v15791_v31 = vadd.f32 %v12034_v14, %v1115_v3  ;;  %v11923_v5 = vpop.f32.mrb[60].mxu1  ;;  %v12035_v28 = vpop.f32.mrb[60].mxu0  ;;  %12543 = vmatprep.subr.bf16.mxu1 %v14252_v0  ;;  %12654 = vmatpush3.bf16.msra.mxu0 %v14307_v7  ;;  %v14230_v27 = vld [vmem:[%s15117_s28 + $0x280] ss:$8 sps:$4 sm:$0xff]   ;;  %v14232_v3 = vld [vmem:[%s15117_s28 + $0x294] ss:$8 sps:$4 sm:$0xff]  }
 0x17a   : > { %v11924_v35 = vpop.f32.mrb[61].mxu1  ;;  %v12036_v38 = vpop.f32.mrb[61].mxu0  ;;  %12655 = vmatprep.subr.bf16.mxu0 %v14308_v8 }
 0x17b   : > { %v11925_v48 = vadd.f32 %v11924_v35, %v11923_v5  ;;  %v11926_v12 = vpop.f32.mrb[62].mxu1  ;;  %v12037_v15 = vadd.f32 %v12036_v38, %v12035_v28  ;;  %v12038_v21 = vpop.f32.mrb[62].mxu0  ;;  %v14296_v5 = vld [vmem:[%s17629_s1 + $0x760] ss:$8 sps:$4 sm:$0xff]   ;;  %v14316_v38 = vld [vmem:[%s17629_s1 + $0x7f0] ss:$8 sps:$4 sm:$0xff]  }
 0x17c   : > { %v11927_v58 = vpop.f32.mrb[63].mxu1  ;;  %v12039_v61 = vpop.f32.mrb[63].mxu0  ;;  %12544 = vmatpush3.bf16.msra.mxu1 %v14253_v18 }
 0x17d   : > { %v1120_v0 = vadd.f32 %v11925_v48, %v15664_v45  ;;  %v11928_v2 = vadd.f32 %v11927_v58, %v11926_v12  ;;  %v12040_v4 = vadd.f32 %v12039_v61, %v12038_v21  ;;  %12545 = vmatprep.subr.bf16.mxu1 %v14266_v33  ;;  %12656 = vmatpush3.bf16.msra.mxu0 %v14309_v37  ;;  %v14231_v45 = vld [vmem:[%s15117_s28 + $0x50] ss:$8 sps:$4 sm:$0xff]   ;;  %v14234_v33 = vld [vmem:[%s15117_s28 + $0x64] ss:$8 sps:$4 sm:$0xff]   ;;  %v14294_v37 = vld [vmem:[%s17629_s1 + $0x7e0] ss:$8 sps:$4 sm:$0xff]  }
 0x17e   : > { %3103 = vmatmul.mubr.bf16.gmra.mrb[168].mxu1 %v14222_v20  ;;  %3617 = vmatmul.mubr.bf16.gmra.mrb[168].mxu0 %v14223_v23  ;;  %v14330_v21 = vld [vmem:[%s17629_s1 + $0x8f0] ss:$8 sps:$4 sm:$0xff]  }
 0x17f   : > { %v1123_v7 = vadd.f32 %v11928_v2, %v15669_v56  ;;  %v15815_v8 = vadd.f32 %v12037_v15, %v1120_v0  ;;  %3110 = vmatprep.mubr.bf16.mxu1 %v14226_v34  ;;  %3624 = vmatprep.mubr.bf16.mxu0 %v14228_v1  ;;  %v14321_v56 = vld [vmem:[%s17629_s1 + $0x850] ss:$8 sps:$4 sm:$0xff]   ;;  %v14329_v15 = vld [vmem:[%s17629_s1 + $0x860] ss:$8 sps:$4 sm:$0xff]   ;;  %v14338_v0 = vld [vmem:[%s17629_s1 + $0x184] ss:$8 sps:$4 sm:$0xff]  }
 0x180   : > { %12546 = vmatpush3.bf16.msra.mxu1 %v14267_v46  ;;  %12657 = vmatprep.subr.bf16.mxu0 %v14317_v51  ;;  %v14328_v46 = vld [vmem:[%s17629_s1 + $0x8e0] ss:$8 sps:$4 sm:$0xff]   ;;  %v14318_v61 = vld [vmem:[%s17629_s1 + $0x770] ss:$8 sps:$4 sm:$0xff]  }
 0x181   : > { %v15819_v29 = vadd.f32 %v12040_v4, %v1123_v7  ;;  %v11929_v14 = vpop.f32.mrb[64].mxu1  ;;  %v12041_v18 = vpop.f32.mrb[64].mxu0  ;;  %12547 = vmatprep.subr.bf16.mxu1 %v14280_v52  ;;  %12658 = vmatpush3.bf16.msra.mxu0 %v14319_v47  ;;  %v14236_v2 = vld [vmem:[%s15117_s28 + $0x290] ss:$8 sps:$4 sm:$0xff]   ;;  %v14237_v4 = vld [vmem:[%s15117_s28 + $0x60] ss:$8 sps:$4 sm:$0xff]  }
 0x182   : > { %v11930_v20 = vpop.f32.mrb[65].mxu1  ;;  %v12042_v23 = vpop.f32.mrb[65].mxu0  ;;  %12659 = vmatprep.subr.bf16.mxu0 %v14320_v62 }
 0x183   : > { %v11931_v28 = vadd.f32 %v11930_v20, %v11929_v14  ;;  %v11932_v34 = vpop.f32.mrb[66].mxu1  ;;  %v12043_v1 = vadd.f32 %v12042_v23, %v12041_v18  ;;  %v12044_v35 = vpop.f32.mrb[66].mxu0 }
 0x184   : > { %v11933_v48 = vpop.f32.mrb[67].mxu1  ;;  %v12045_v12 = vpop.f32.mrb[67].mxu0  ;;  %12548 = vmatpush3.bf16.msra.mxu1 %v14281_v17 }
 0x185   : > { %v1128_v52 = vadd.f32 %v11931_v28, %v15557_v36  ;;  %v11934_v51 = vadd.f32 %v11933_v48, %v11932_v34  ;;  %v12046_v58 = vadd.f32 %v12045_v12, %v12044_v35  ;;  %12549 = vmatprep.subr.bf16.mxu1 %v14294_v37  ;;  %12660 = vmatpush3.bf16.msra.mxu0 %v14321_v56  ;;  %v14331_v36 = vld [vmem:[%s17629_s1 + $0x870] ss:$8 sps:$4 sm:$0xff]   ;;  %v14240_v37 = vld [vmem:[%s15117_s28 + $0x2a4] ss:$8 sps:$4 sm:$0xff]   ;;  %v14242_v56 = vld [vmem:[%s15117_s28 + $0x74] ss:$8 sps:$4 sm:$0xff]  }
 0x186   : > { %3111 = vmatmul.mubr.bf16.gmra.mrb[172].mxu1 %v14230_v27  ;;  %3625 = vmatmul.mubr.bf16.gmra.mrb[172].mxu0 %v14231_v45  ;;  %v14244_v12 = vld [vmem:[%s15117_s28 + $0x2a0] ss:$8 sps:$4 sm:$0xff]  }
 0x187   : > { %v1131_v47 = vadd.f32 %v11934_v51, %v15573_v49  ;;  %v15849_v62 = vadd.f32 %v12043_v1, %v1128_v52  ;;  %3118 = vmatprep.mubr.bf16.mxu1 %v14232_v3  ;;  %3632 = vmatprep.mubr.bf16.mxu0 %v14234_v33 }
 0x188   : > { %12550 = vmatpush3.bf16.msra.mxu1 %v14296_v5  ;;  %12661 = vmatprep.subr.bf16.mxu0 %v14328_v46 }
 0x189   : > { %v15859_v17 = vadd.f32 %v12046_v58, %v1131_v47  ;;  %v11935_v49 = vpop.f32.mrb[68].mxu1  ;;  %v12047_v7 = vpop.f32.mrb[68].mxu0  ;;  %12551 = vmatprep.subr.bf16.mxu1 %v14316_v38  ;;  %12662 = vmatpush3.bf16.msra.mxu0 %v14329_v15  ;;  %v14248_v47 = vld [vmem:[%s15117_s28 + $0x84] ss:$8 sps:$4 sm:$0xff]  }
 0x18a   : > { %v11936_v27 = vpop.f32.mrb[69].mxu1  ;;  %v12048_v45 = vpop.f32.mrb[69].mxu0  ;;  %12663 = vmatprep.subr.bf16.mxu0 %v14330_v21 }
 0x18b   : > { %v11937_v14 = vadd.f32 %v11936_v27, %v11935_v49  ;;  %v11938_v18 = vpop.f32.mrb[70].mxu1  ;;  %v12049_v3 = vadd.f32 %v12048_v45, %v12047_v7  ;;  %v12050_v33 = vpop.f32.mrb[70].mxu0  ;;  %v14250_v45 = vld [vmem:[%s15117_s28 + $0x2b0] ss:$8 sps:$4 sm:$0xff]  }
 0x18c   : > { %v11939_v20 = vpop.f32.mrb[71].mxu1  ;;  %v12051_v23 = vpop.f32.mrb[71].mxu0  ;;  %12552 = vmatpush3.bf16.msra.mxu1 %v14318_v61 }
 0x18d   : > { %v1136_v5 = vadd.f32 %v11937_v14, %v15589_v54  ;;  %v11940_v28 = vadd.f32 %v11939_v20, %v11938_v18  ;;  %v12052_v34 = vadd.f32 %v12051_v23, %v12050_v33  ;;  %12664 = vmatpush3.bf16.msra.mxu0 %v14331_v36  ;;  %12761 = vmatprep.subr.bf16.mxu1 %v14338_v0  ;;  %v14245_v54 = vld [vmem:[%s15117_s28 + $0x70] ss:$8 sps:$4 sm:$0xff]   ;;  %v14251_v14 = vld [vmem:[%s15117_s28 + $0x80] ss:$8 sps:$4 sm:$0xff]  }
 0x18e   : > { %3119 = vmatmul.mubr.bf16.gmra.mrb[176].mxu1 %v14236_v2  ;;  %3633 = vmatmul.mubr.bf16.gmra.mrb[176].mxu0 %v14237_v4 }
 0x18f   : > { %v1139_v1 = vadd.f32 %v11940_v28, %v15593_v22  ;;  %v15865_v35 = vadd.f32 %v12049_v3, %v1136_v5  ;;  %3126 = vmatprep.mubr.bf16.mxu1 %v14240_v37  ;;  %3640 = vmatprep.mubr.bf16.mxu0 %v14242_v56  ;;  %v14246_v22 = vld [vmem:[%s15117_s28 + $0x2b4] ss:$8 sps:$4 sm:$0xff]   ;;  %v14254_v28 = vld [vmem:[%s15117_s28 + $0x2c4] ss:$8 sps:$4 sm:$0xff]  }
 0x191   : > { %v15867_v38 = vadd.f32 %v12052_v34, %v1139_v1  ;;  %v11941_v46 = vpop.f32.mrb[72].mxu1  ;;  %v12053_v48 = vpop.f32.mrb[72].mxu0 }
 0x192   : > { %v11942_v15 = vpop.f32.mrb[73].mxu1  ;;  %v12054_v21 = vpop.f32.mrb[73].mxu0 }
 0x193   : > { %v11943_v52 = vadd.f32 %v11942_v15, %v11941_v46  ;;  %v11944_v51 = vpop.f32.mrb[74].mxu1  ;;  %v12055_v58 = vadd.f32 %v12054_v21, %v12053_v48  ;;  %v12056_v61 = vpop.f32.mrb[74].mxu0 }
 0x194   : > { %v11945_v36 = vpop.f32.mrb[75].mxu1  ;;  %v12057_v0 = vpop.f32.mrb[75].mxu0 }
 0x195   : > { %v1144_v2 = vadd.f32 %v11943_v52, %v15601_v10  ;;  %v11946_v4 = vadd.f32 %v11945_v36, %v11944_v51  ;;  %v12058_v49 = vadd.f32 %v12057_v0, %v12056_v61  ;;  %v14259_v61 = vld [vmem:[%s15117_s28 + $0x90] ss:$8 sps:$4 sm:$0xff]  }
 0x196   : > { %3127 = vmatmul.mubr.bf16.gmra.mrb[180].mxu1 %v14244_v12  ;;  %3641 = vmatmul.mubr.bf16.gmra.mrb[180].mxu0 %v14245_v54 }
 0x197   : > { %v1147_v7 = vadd.f32 %v11946_v4, %v15605_v16  ;;  %v15875_v27 = vadd.f32 %v12055_v58, %v1144_v2  ;;  %3134 = vmatprep.mubr.bf16.mxu1 %v14246_v22  ;;  %3648 = vmatprep.mubr.bf16.mxu0 %v14248_v47  ;;  %v14256_v16 = vld [vmem:[%s15117_s28 + $0x94] ss:$8 sps:$4 sm:$0xff]   ;;  %v14258_v58 = vld [vmem:[%s15117_s28 + $0x2c0] ss:$8 sps:$4 sm:$0xff]   ;;  %v14262_v4 = vld [vmem:[%s15117_s28 + $0xa4] ss:$8 sps:$4 sm:$0xff]  }
 0x199   : > { %v15879_v18 = vadd.f32 %v12058_v49, %v1147_v7  ;;  %v11947_v3 = vpop.f32.mrb[76].mxu1  ;;  %v12059_v33 = vpop.f32.mrb[76].mxu0 }
 0x19a   : > { %v11948_v37 = vpop.f32.mrb[77].mxu1  ;;  %v12060_v10 = vpop.f32.mrb[77].mxu0 }
 0x19b   : > { %v11949_v56 = vadd.f32 %v11948_v37, %v11947_v3  ;;  %v11950_v20 = vpop.f32.mrb[78].mxu1  ;;  %v12061_v23 = vadd.f32 %v12060_v10, %v12059_v33  ;;  %v12062_v5 = vpop.f32.mrb[78].mxu0  ;;  %v14264_v10 = vld [vmem:[%s15117_s28 + $0x2d0] ss:$8 sps:$4 sm:$0xff]  }
 0x19c   : > { %v11951_v34 = vpop.f32.mrb[79].mxu1  ;;  %v12063_v1 = vpop.f32.mrb[79].mxu0 }
 0x19d   : > { %v1152_v46 = vadd.f32 %v11949_v56, %v15613_v25  ;;  %v11952_v48 = vadd.f32 %v11951_v34, %v11950_v20  ;;  %v12064_v12 = vadd.f32 %v12063_v1, %v12062_v5  ;;  %v14265_v56 = vld [vmem:[%s15117_s28 + $0xa0] ss:$8 sps:$4 sm:$0xff]  }
 0x19e   : > { %3135 = vmatmul.mubr.bf16.gmra.mrb[184].mxu1 %v14250_v45  ;;  %3649 = vmatmul.mubr.bf16.gmra.mrb[184].mxu0 %v14251_v14 }
 0x19f   : > { %v1155_v54 = vadd.f32 %v11952_v48, %v15618_v41  ;;  %v15885_v15 = vadd.f32 %v12061_v23, %v1152_v46  ;;  %3142 = vmatprep.mubr.bf16.mxu1 %v14254_v28  ;;  %3656 = vmatprep.mubr.bf16.mxu0 %v14256_v16  ;;  %v14260_v41 = vld [vmem:[%s15117_s28 + $0x2d4] ss:$8 sps:$4 sm:$0xff]   ;;  %v14268_v48 = vld [vmem:[%s15117_s28 + $0x2e4] ss:$8 sps:$4 sm:$0xff]  }
 0x1a1   : > { %v15887_v21 = vadd.f32 %v12064_v12, %v1155_v54  ;;  %v11953_v52 = vpop.f32.mrb[80].mxu1  ;;  %v12065_v51 = vpop.f32.mrb[80].mxu0 }
 0x1a2   : > { %v11954_v22 = vpop.f32.mrb[81].mxu1  ;;  %v12066_v25 = vpop.f32.mrb[81].mxu0 }
 0x1a3   : > { %v11955_v47 = vadd.f32 %v11954_v22, %v11953_v52  ;;  %v11956_v36 = vpop.f32.mrb[82].mxu1  ;;  %v12067_v0 = vadd.f32 %v12066_v25, %v12065_v51  ;;  %v12068_v2 = vpop.f32.mrb[82].mxu0 }
 0x1a4   : > { %v11957_v49 = vpop.f32.mrb[83].mxu1  ;;  %v12069_v7 = vpop.f32.mrb[83].mxu0 }
 0x1a5   : > { %v1160_v45 = vadd.f32 %v11955_v47, %v15626_v43  ;;  %v11958_v14 = vadd.f32 %v11957_v49, %v11956_v36  ;;  %v12070_v3 = vadd.f32 %v12069_v7, %v12068_v2  ;;  %v14273_v2 = vld [vmem:[%s15117_s28 + $0xb0] ss:$8 sps:$4 sm:$0xff]  }
 0x1a6   : > { %3143 = vmatmul.mubr.bf16.gmra.mrb[188].mxu1 %v14258_v58  ;;  %3657 = vmatmul.mubr.bf16.gmra.mrb[188].mxu0 %v14259_v61 }
 0x1a7   : > { %v1163_v33 = vadd.f32 %v11958_v14, %v15631_v53  ;;  %v15895_v37 = vadd.f32 %v12067_v0, %v1160_v45  ;;  %3150 = vmatprep.mubr.bf16.mxu1 %v14260_v41  ;;  %3664 = vmatprep.mubr.bf16.mxu0 %v14262_v4  ;;  %v14270_v53 = vld [vmem:[%s15117_s28 + $0xb4] ss:$8 sps:$4 sm:$0xff]   ;;  %v14272_v0 = vld [vmem:[%s15117_s28 + $0x2e0] ss:$8 sps:$4 sm:$0xff]   ;;  %v14276_v14 = vld [vmem:[%s15117_s28 + $0xc4] ss:$8 sps:$4 sm:$0xff]  }
 0x1a9   : > { %v15899_v20 = vadd.f32 %v12070_v3, %v1163_v33  ;;  %v11959_v23 = vpop.f32.mrb[84].mxu1  ;;  %v12071_v5 = vpop.f32.mrb[84].mxu0 }
 0x1aa   : > { %v11960_v28 = vpop.f32.mrb[85].mxu1  ;;  %v12072_v43 = vpop.f32.mrb[85].mxu0 }
 0x1ab   : > { %v11961_v16 = vadd.f32 %v11960_v28, %v11959_v23  ;;  %v11962_v34 = vpop.f32.mrb[86].mxu1  ;;  %v12073_v1 = vadd.f32 %v12072_v43, %v12071_v5  ;;  %v12074_v46 = vpop.f32.mrb[86].mxu0  ;;  %v14278_v43 = vld [vmem:[%s15117_s28 + $0x2f0] ss:$8 sps:$4 sm:$0xff]  }
 0x1ac   : > { %v11963_v12 = vpop.f32.mrb[87].mxu1  ;;  %v12075_v54 = vpop.f32.mrb[87].mxu0 }
 0x1ad   : > { %v1168_v52 = vadd.f32 %v11961_v16, %v15638_v60  ;;  %v11964_v51 = vadd.f32 %v11963_v12, %v11962_v34  ;;  %v12076_v58 = vadd.f32 %v12075_v54, %v12074_v46  ;;  %v14279_v16 = vld [vmem:[%s15117_s28 + $0xc0] ss:$8 sps:$4 sm:$0xff]  }
 0x1ae   : > { %3151 = vmatmul.mubr.bf16.gmra.mrb[192].mxu1 %v14264_v10  ;;  %3665 = vmatmul.mubr.bf16.gmra.mrb[192].mxu0 %v14265_v56 }
 0x1af   : > { %v1171_v61 = vadd.f32 %v11964_v51, %v15643_v6  ;;  %v15905_v22 = vadd.f32 %v12073_v1, %v1168_v52  ;;  %3158 = vmatprep.mubr.bf16.mxu1 %v14268_v48  ;;  %3672 = vmatprep.mubr.bf16.mxu0 %v14270_v53  ;;  %v14274_v6 = vld [vmem:[%s15117_s28 + $0x2f4] ss:$8 sps:$4 sm:$0xff]   ;;  %v14282_v51 = vld [vmem:[%s15117_s28 + $0x304] ss:$8 sps:$4 sm:$0xff]  }
 0x1b1   : > { %v15907_v25 = vadd.f32 %v12076_v58, %v1171_v61  ;;  %v11965_v47 = vpop.f32.mrb[88].mxu1  ;;  %v12077_v36 = vpop.f32.mrb[88].mxu0 }
 0x1b2   : > { %v11966_v41 = vpop.f32.mrb[89].mxu1  ;;  %v12078_v60 = vpop.f32.mrb[89].mxu0 }
 0x1b3   : > { %v11967_v4 = vadd.f32 %v11966_v41, %v11965_v47  ;;  %v11968_v49 = vpop.f32.mrb[90].mxu1  ;;  %v12079_v7 = vadd.f32 %v12078_v60, %v12077_v36  ;;  %v12080_v45 = vpop.f32.mrb[90].mxu0 }
 0x1b4   : > { %v11969_v3 = vpop.f32.mrb[91].mxu1  ;;  %v12081_v33 = vpop.f32.mrb[91].mxu0 }
 0x1b5   : > { %v1176_v10 = vadd.f32 %v11967_v4, %v15650_v59  ;;  %v11970_v56 = vadd.f32 %v11969_v3, %v11968_v49  ;;  %v12082_v23 = vadd.f32 %v12081_v33, %v12080_v45  ;;  %v14287_v45 = vld [vmem:[%s15117_s28 + $0xd0] ss:$8 sps:$4 sm:$0xff]  }
 0x1b6   : > { %3159 = vmatmul.mubr.bf16.gmra.mrb[196].mxu1 %v14272_v0  ;;  %3673 = vmatmul.mubr.bf16.gmra.mrb[196].mxu0 %v14273_v2 }
 0x1b7   : > { %v1179_v5 = vadd.f32 %v11970_v56, %v15655_v26  ;;  %v15915_v28 = vadd.f32 %v12079_v7, %v1176_v10  ;;  %3166 = vmatprep.mubr.bf16.mxu1 %v14274_v6  ;;  %3680 = vmatprep.mubr.bf16.mxu0 %v14276_v14  ;;  %v14284_v26 = vld [vmem:[%s15117_s28 + $0xd4] ss:$8 sps:$4 sm:$0xff]   ;;  %v14286_v7 = vld [vmem:[%s15117_s28 + $0x300] ss:$8 sps:$4 sm:$0xff]   ;;  %v14290_v56 = vld [vmem:[%s15117_s28 + $0xe4] ss:$8 sps:$4 sm:$0xff]  }
 0x1b9   : > { %v15919_v34 = vadd.f32 %v12082_v23, %v1179_v5  ;;  %v11971_v1 = vpop.f32.mrb[92].mxu1  ;;  %v12083_v46 = vpop.f32.mrb[92].mxu0 }
 0x1ba   : > { %v11972_v48 = vpop.f32.mrb[93].mxu1  ;;  %v12084_v59 = vpop.f32.mrb[93].mxu0 }
 0x1bb   : > { %v11973_v53 = vadd.f32 %v11972_v48, %v11971_v1  ;;  %v11974_v12 = vpop.f32.mrb[94].mxu1  ;;  %v12085_v54 = vadd.f32 %v12084_v59, %v12083_v46  ;;  %v12086_v52 = vpop.f32.mrb[94].mxu0  ;;  %v14292_v59 = vld [vmem:[%s15117_s28 + $0x310] ss:$8 sps:$4 sm:$0xff]  }
 0x1bc   : > { %v11975_v58 = vpop.f32.mrb[95].mxu1  ;;  %v12087_v61 = vpop.f32.mrb[95].mxu0 }
 0x1bd   : > { %v1184_v47 = vadd.f32 %v11973_v53, %v15662_v40  ;;  %v11976_v36 = vadd.f32 %v11975_v58, %v11974_v12  ;;  %v12088_v0 = vadd.f32 %v12087_v61, %v12086_v52  ;;  %v14293_v53 = vld [vmem:[%s15117_s28 + $0xe0] ss:$8 sps:$4 sm:$0xff]  }
 0x1be   : > { %3167 = vmatmul.mubr.bf16.gmra.mrb[200].mxu1 %v14278_v43  ;;  %3681 = vmatmul.mubr.bf16.gmra.mrb[200].mxu0 %v14279_v16 }
 0x1bf   : > { %v1187_v2 = vadd.f32 %v11976_v36, %v15667_v55  ;;  %v15925_v41 = vadd.f32 %v12085_v54, %v1184_v47  ;;  %3174 = vmatprep.mubr.bf16.mxu1 %v14282_v51  ;;  %3688 = vmatprep.mubr.bf16.mxu0 %v14284_v26  ;;  %v14288_v55 = vld [vmem:[%s15117_s28 + $0x314] ss:$8 sps:$4 sm:$0xff]   ;;  %v14300_v36 = vld [vmem:[%s15117_s28 + $0x324] ss:$8 sps:$4 sm:$0xff]  }
 0x1c1   : > { %v15927_v60 = vadd.f32 %v12088_v0, %v1187_v2  ;;  %v12105_v4 = vpop.f32.mrb[96].mxu1  ;;  %v12217_v49 = vpop.f32.mrb[96].mxu0  ;;  %v14302_v0 = vld [vmem:[%s15117_s28 + $0xf4] ss:$8 sps:$4 sm:$0xff]  }
 0x1c2   : > { %v12106_v6 = vpop.f32.mrb[97].mxu1  ;;  %v12218_v40 = vpop.f32.mrb[97].mxu0 }
 0x1c3   : > { %v12107_v14 = vadd.f32 %v12106_v6, %v12105_v4  ;;  %v12108_v3 = vpop.f32.mrb[98].mxu1  ;;  %v12219_v33 = vadd.f32 %v12218_v40, %v12217_v49  ;;  %v12220_v10 = vpop.f32.mrb[98].mxu0 }
 0x1c4   : > { %v12109_v23 = vpop.f32.mrb[99].mxu1  ;;  %v12221_v5 = vpop.f32.mrb[99].mxu0 }
 0x1c5   : > { %v2187_v43 = vadd.f32 %v12107_v14, %v15678_v24  ;;  %v12110_v16 = vadd.f32 %v12109_v23, %v12108_v3  ;;  %v12222_v1 = vadd.f32 %v12221_v5, %v12220_v10 }
 0x1c6   : > { %3175 = vmatmul.mubr.bf16.gmra.mrb[204].mxu1 %v14286_v7  ;;  %3689 = vmatmul.mubr.bf16.gmra.mrb[204].mxu0 %v14287_v45  ;;  %v14423_v45 = vld [vmem:[%s17629_s1 + $0x84] ss:$8 sps:$4 sm:$0xff]  }
 0x1c7   : > { %v2188_v46 = vadd.f32 %v12110_v16, %v15682_v32  ;;  %v15935_v48 = vadd.f32 %v12219_v33, %v2187_v43  ;;  %3182 = vmatprep.mubr.bf16.mxu1 %v14288_v55  ;;  %3696 = vmatprep.mubr.bf16.mxu0 %v14290_v56  ;;  %v14304_v33 = vld [vmem:[%s15117_s28 + $0x320] ss:$8 sps:$4 sm:$0xff]   ;;  %v14305_v56 = vld [vmem:[%s15117_s28 + $0xf0] ss:$8 sps:$4 sm:$0xff]   ;;  %v14310_v16 = vld [vmem:[%s15117_s28 + $0x334] ss:$8 sps:$4 sm:$0xff]  }
 0x1c8   : > { %12873 = vmatprep.subr.bf16.mxu0 %v14423_v45 }
 0x1c9   : > { %v15939_v12 = vadd.f32 %v12222_v1, %v2188_v46  ;;  %v12111_v54 = vpop.f32.mrb[100].mxu1  ;;  %v12223_v52 = vpop.f32.mrb[100].mxu0  ;;  %v14312_v1 = vld [vmem:[%s15117_s28 + $0x104] ss:$8 sps:$4 sm:$0xff]  }
 0x1ca   : > { %v12112_v51 = vpop.f32.mrb[101].mxu1  ;;  %v12224_v24 = vpop.f32.mrb[101].mxu0 }
 0x1cb   : > { %v12113_v26 = vadd.f32 %v12112_v51, %v12111_v54  ;;  %v12114_v58 = vpop.f32.mrb[102].mxu1  ;;  %v12225_v61 = vadd.f32 %v12224_v24, %v12223_v52  ;;  %v12226_v47 = vpop.f32.mrb[102].mxu0 }
 0x1cc   : > { %v12115_v32 = vpop.f32.mrb[103].mxu1  ;;  %v12227_v2 = vpop.f32.mrb[103].mxu0 }
 0x1cd   : > { %v2189_v4 = vadd.f32 %v12113_v26, %v15691_v19  ;;  %v12116_v49 = vadd.f32 %v12115_v32, %v12114_v58  ;;  %v12228_v7 = vadd.f32 %v12227_v2, %v12226_v47  ;;  %v14314_v26 = vld [vmem:[%s15117_s28 + $0x330] ss:$8 sps:$4 sm:$0xff]  }
 0x1ce   : > { %3183 = vmatmul.mubr.bf16.gmra.mrb[208].mxu1 %v14292_v59  ;;  %3697 = vmatmul.mubr.bf16.gmra.mrb[208].mxu0 %v14293_v53 }
 0x1cf   : > { %v2190_v6 = vadd.f32 %v12116_v49, %v15694_v63  ;;  %v15948_v40 = vadd.f32 %v12225_v61, %v2189_v4  ;;  %3190 = vmatprep.mubr.bf16.mxu1 %v14300_v36  ;;  %3704 = vmatprep.mubr.bf16.mxu0 %v14302_v0  ;;  %v14315_v36 = vld [vmem:[%s15117_s28 + $0x100] ss:$8 sps:$4 sm:$0xff]  }
 0x1d1   : > { %v15950_v14 = vadd.f32 %v12228_v7, %v2190_v6  ;;  %v12117_v19 = vpop.f32.mrb[104].mxu1  ;;  %v12229_v3 = vpop.f32.mrb[104].mxu0  ;;  %v14322_v7 = vld [vmem:[%s15117_s28 + $0x344] ss:$8 sps:$4 sm:$0xff]  }
 0x1d2   : > { %v12118_v10 = vpop.f32.mrb[105].mxu1  ;;  %v12230_v55 = vpop.f32.mrb[105].mxu0 }
 0x1d3   : > { %v12119_v23 = vadd.f32 %v12118_v10, %v12117_v19  ;;  %v12120_v5 = vpop.f32.mrb[106].mxu1  ;;  %v12231_v43 = vadd.f32 %v12230_v55, %v12229_v3  ;;  %v12232_v63 = vpop.f32.mrb[106].mxu0 }
 0x1d4   : > { %v12121_v46 = vpop.f32.mrb[107].mxu1  ;;  %v12233_v59 = vpop.f32.mrb[107].mxu0 }
 0x1d5   : > { %v2191_v53 = vadd.f32 %v12119_v23, %v15701_v44  ;;  %v12122_v54 = vadd.f32 %v12121_v46, %v12120_v5  ;;  %v12234_v52 = vadd.f32 %v12233_v59, %v12232_v63 }
 0x1d6   : > { %3191 = vmatmul.mubr.bf16.gmra.mrb[212].mxu1 %v14304_v33  ;;  %3705 = vmatmul.mubr.bf16.gmra.mrb[212].mxu0 %v14305_v56 }
 0x1d7   : > { %v2192_v51 = vadd.f32 %v12122_v54, %v15704_v42  ;;  %v15958_v24 = vadd.f32 %v12231_v43, %v2191_v53  ;;  %3198 = vmatprep.mubr.bf16.mxu1 %v14310_v16  ;;  %3712 = vmatprep.mubr.bf16.mxu0 %v14312_v1  ;;  %v14324_v42 = vld [vmem:[%s15117_s28 + $0x114] ss:$8 sps:$4 sm:$0xff]   ;;  %v14326_v43 = vld [vmem:[%s15117_s28 + $0x340] ss:$8 sps:$4 sm:$0xff]   ;;  %v14337_v54 = vld [vmem:[%s15117_s28 + $0x264] ss:$8 sps:$4 sm:$0xff]  }
 0x1d9   : > { %v15961_v58 = vadd.f32 %v12234_v52, %v2192_v51  ;;  %v12123_v61 = vpop.f32.mrb[108].mxu1  ;;  %v12235_v47 = vpop.f32.mrb[108].mxu0 }
 0x1da   : > { %v12124_v0 = vpop.f32.mrb[109].mxu1  ;;  %v12236_v44 = vpop.f32.mrb[109].mxu0 }
 0x1db   : > { %v12125_v32 = vadd.f32 %v12124_v0, %v12123_v61  ;;  %v12126_v2 = vpop.f32.mrb[110].mxu1  ;;  %v12237_v4 = vadd.f32 %v12236_v44, %v12235_v47  ;;  %v12238_v49 = vpop.f32.mrb[110].mxu0  ;;  %v14332_v44 = vld [vmem:[%s15117_s28 + $0x140] ss:$8 sps:$4 sm:$0xff]  }
 0x1dc   : > { %v12127_v45 = vpop.f32.mrb[111].mxu1  ;;  %v12239_v6 = vpop.f32.mrb[111].mxu0 }
 0x1dd   : > { %v2193_v19 = vadd.f32 %v12125_v32, %v15712_v11  ;;  %v12128_v3 = vadd.f32 %v12127_v45, %v12126_v2  ;;  %v12240_v33 = vadd.f32 %v12239_v6, %v12238_v49  ;;  %v14327_v11 = vld [vmem:[%s15117_s28 + $0x110] ss:$8 sps:$4 sm:$0xff]   ;;  %v14335_v32 = vld [vmem:[%s15117_s28 + $0x260] ss:$8 sps:$4 sm:$0xff]  }
 0x1de   : > { %3199 = vmatmul.mubr.bf16.gmra.mrb[216].mxu1 %v14314_v26  ;;  %3713 = vmatmul.mubr.bf16.gmra.mrb[216].mxu0 %v14315_v36 }
 0x1df   : > { %v2194_v10 = vadd.f32 %v12128_v3, %v15714_v13  ;;  %v15968_v55 = vadd.f32 %v12237_v4, %v2193_v19  ;;  %3206 = vmatprep.mubr.bf16.mxu1 %v14322_v7  ;;  %3720 = vmatprep.mubr.bf16.mxu0 %v14324_v42  ;;  %v14334_v13 = vld [vmem:[%s15117_s28 + $0x144] ss:$8 sps:$4 sm:$0xff]   ;;  %v14340_v7 = vld [vmem:[%s15117_s28 + $0x154] ss:$8 sps:$4 sm:$0xff]  }
 0x1e1   : > { %v15970_v56 = vadd.f32 %v12240_v33, %v2194_v10  ;;  %v12129_v23 = vpop.f32.mrb[112].mxu1  ;;  %v12241_v5 = vpop.f32.mrb[112].mxu0  ;;  %v14342_v33 = vld [vmem:[%s15117_s28 + $0x274] ss:$8 sps:$4 sm:$0xff]  }
 0x1e2   : > { %v12130_v63 = vpop.f32.mrb[113].mxu1  ;;  %v12242_v16 = vpop.f32.mrb[113].mxu0  ;;  %v14352_v10 = vld [vmem:[%s17629_s1 + $0x194] ss:$8 sps:$4 sm:$0xff]  }
 0x1e3   : > { %v12131_v1 = vadd.f32 %v12130_v63, %v12129_v23  ;;  %v12132_v46 = vpop.f32.mrb[114].mxu1  ;;  %v12243_v59 = vadd.f32 %v12242_v16, %v12241_v5  ;;  %v12244_v53 = vpop.f32.mrb[114].mxu0  ;;  %v14426_v63 = vld [vmem:[%s17629_s1 + $0x94] ss:$8 sps:$4 sm:$0xff]  }
 0x1e4   : > { %v12133_v52 = vpop.f32.mrb[115].mxu1  ;;  %v12245_v51 = vpop.f32.mrb[115].mxu0 }
 0x1e5   : > { %v2195_v26 = vadd.f32 %v12131_v1, %v15722_v50  ;;  %v12134_v61 = vadd.f32 %v12133_v52, %v12132_v46  ;;  %v12246_v47 = vadd.f32 %v12245_v51, %v12244_v53  ;;  %v14339_v50 = vld [vmem:[%s17629_s1 + $0x104] ss:$8 sps:$4 sm:$0xff]   ;;  %v14353_v46 = vld [vmem:[%s17629_s1 + $0x114] ss:$8 sps:$4 sm:$0xff]  }
 0x1e6   : > { %3207 = vmatmul.mubr.bf16.gmra.mrb[220].mxu1 %v14326_v43  ;;  %3721 = vmatmul.mubr.bf16.gmra.mrb[220].mxu0 %v14327_v11  ;;  %v14425_v43 = vld [vmem:[%s17629_s1 + $0x4] ss:$8 sps:$4 sm:$0xff]  }
 0x1e7   : > { %v2196_v36 = vadd.f32 %v12134_v61, %v15726_v57  ;;  %v15978_v0 = vadd.f32 %v12243_v59, %v2195_v26  ;;  %4114 = vmatprep.mubr.bf16.mxu1 %v14334_v13  ;;  %4628 = vmatprep.mubr.bf16.mxu0 %v14337_v54  ;;  %v14366_v59 = vld [vmem:[%s17629_s1 + $0x1a4] ss:$8 sps:$4 sm:$0xff]   ;;  %v14345_v54 = vld [vmem:[%s15117_s28 + $0x270] ss:$8 sps:$4 sm:$0xff]  }
 0x1e8   : > { %v14346_v61 = vld [vmem:[%s15117_s28 + $0x164] ss:$8 sps:$4 sm:$0xff]  }
 0x1e9   : > { %v15982_v2 = vadd.f32 %v12246_v47, %v2196_v36  ;;  %v12135_v4 = vpop.f32.mrb[116].mxu1  ;;  %v12247_v49 = vpop.f32.mrb[116].mxu0  ;;  %v14348_v47 = vld [vmem:[%s15117_s28 + $0x284] ss:$8 sps:$4 sm:$0xff]   ;;  %v14427_v36 = vld [vmem:[%s17629_s1 + $0x14] ss:$8 sps:$4 sm:$0xff]  }
 0x1ea   : > { %v12136_v42 = vpop.f32.mrb[117].mxu1  ;;  %v12248_v45 = vpop.f32.mrb[117].mxu0 }
 0x1eb   : > { %v12137_v6 = vadd.f32 %v12136_v42, %v12135_v4  ;;  %v12138_v57 = vpop.f32.mrb[118].mxu1  ;;  %v12249_v19 = vadd.f32 %v12248_v45, %v12247_v49  ;;  %v12250_v3 = vpop.f32.mrb[118].mxu0  ;;  %v14380_v42 = vld [vmem:[%s17629_s1 + $0x1b4] ss:$8 sps:$4 sm:$0xff]   ;;  %v14434_v45 = vld [vmem:[%s17629_s1 + $0xa4] ss:$8 sps:$4 sm:$0xff]  }
 0x1ec   : > { %v12139_v23 = vpop.f32.mrb[119].mxu1  ;;  %v12251_v5 = vpop.f32.mrb[119].mxu0 }
 0x1ed   : > { %v2197_v16 = vadd.f32 %v12137_v6, %v15750_v9  ;;  %v12140_v11 = vadd.f32 %v12139_v23, %v12138_v57  ;;  %v12252_v1 = vadd.f32 %v12251_v5, %v12250_v3  ;;  %v14344_v9 = vld [vmem:[%s15117_s28 + $0x150] ss:$8 sps:$4 sm:$0xff]   ;;  %v14436_v3 = vld [vmem:[%s17629_s1 + $0xb4] ss:$8 sps:$4 sm:$0xff]  }
 0x1ee   : > { %4115 = vmatmul.mubr.bf16.vlgmr.msra.gmra.mrb[224].mxu1 %v14332_v44  ;;  %4629 = vmatmul.mubr.bf16.vlgmr.msra.gmra.mrb[224].mxu0 %v14335_v32  ;;  %v14367_v32 = vld [vmem:[%s17629_s1 + $0x124] ss:$8 sps:$4 sm:$0xff]   ;;  %v14381_v5 = vld [vmem:[%s17629_s1 + $0x134] ss:$8 sps:$4 sm:$0xff]  }
 0x1ef   : > { %v2198_v53 = vadd.f32 %v12140_v11, %v15754_v39  ;;  %v16006_v13 = vadd.f32 %v12249_v19, %v2197_v16  ;;  %12762 = vmatpush3.bf16.msra.mxu1 %v14339_v50  ;;  %4122 = vmatprep.mubr.bf16.mxu1 %v14340_v7  ;;  %v14435_v19 = vld [vmem:[%s17629_s1 + $0x24] ss:$8 sps:$4 sm:$0xff]   ;;  %v14437_v16 = vld [vmem:[%s17629_s1 + $0x34] ss:$8 sps:$4 sm:$0xff]   ;;  %v14350_v11 = vld [vmem:[%s15117_s28 + $0x160] ss:$8 sps:$4 sm:$0xff]  }
 0x1f0   : > { %4636 = vmatprep.mubr.bf16.mxu0 %v14342_v33  ;;  %12763 = vmatprep.subr.bf16.mxu1 %v14352_v10 }
 0x1f1   : > { %v16010_v52 = vadd.f32 %v12252_v1, %v2198_v53  ;;  %v12141_v51 = vpop.f32.mrb[120].mxu1  ;;  %v12253_v26 = vpop.f32.mrb[120].mxu0  ;;  %12874 = vmatpush3.bf16.msra.mxu0 %v14425_v43  ;;  %v14351_v1 = vld [vmem:[%s15117_s28 + $0x280] ss:$8 sps:$4 sm:$0xff]   ;;  %v14354_v53 = vld [vmem:[%s15117_s28 + $0x174] ss:$8 sps:$4 sm:$0xff]  }
 0x1f2   : > { %v12142_v39 = vpop.f32.mrb[121].mxu1  ;;  %v12254_v44 = vpop.f32.mrb[121].mxu0  ;;  %12875 = vmatprep.subr.bf16.mxu0 %v14426_v63 }
 0x1f3   : > { %v12143_v4 = vadd.f32 %v12142_v39, %v12141_v51  ;;  %v12144_v49 = vpop.f32.mrb[122].mxu1  ;;  %v12255_v50 = vadd.f32 %v12254_v44, %v12253_v26  ;;  %v12256_v7 = vpop.f32.mrb[122].mxu0  ;;  %12764 = vmatpush3.bf16.msra.mxu1 %v14353_v46  ;;  %v14395_v26 = vld [vmem:[%s17629_s1 + $0x144] ss:$8 sps:$4 sm:$0xff]   ;;  %v14408_v44 = vld [vmem:[%s17629_s1 + $0x1d4] ss:$8 sps:$4 sm:$0xff]  }
 0x1f4   : > { %v12145_v6 = vpop.f32.mrb[123].mxu1  ;;  %v12257_v57 = vpop.f32.mrb[123].mxu0  ;;  %12765 = vmatprep.subr.bf16.mxu1 %v14366_v59 }
 0x1f5   : > { %v2199_v33 = vadd.f32 %v12143_v4, %v15781_v30  ;;  %v12146_v10 = vadd.f32 %v12145_v6, %v12144_v49  ;;  %v12258_v23 = vadd.f32 %v12257_v57, %v12256_v7  ;;  %12876 = vmatpush3.bf16.msra.mxu0 %v14427_v36  ;;  %v14394_v30 = vld [vmem:[%s17629_s1 + $0x1c4] ss:$8 sps:$4 sm:$0xff]   ;;  %v14448_v7 = vld [vmem:[%s17629_s1 + $0xd4] ss:$8 sps:$4 sm:$0xff]  }
 0x1f6   : > { %4123 = vmatmul.mubr.bf16.gmra.mrb[228].mxu1 %v14344_v9  ;;  %4637 = vmatmul.mubr.bf16.gmra.mrb[228].mxu0 %v14345_v54  ;;  %v14356_v9 = vld [vmem:[%s15117_s28 + $0x294] ss:$8 sps:$4 sm:$0xff]  }
 0x1f7   : > { %v2200_v43 = vadd.f32 %v12146_v10, %v15791_v31  ;;  %v16037_v63 = vadd.f32 %v12255_v50, %v2199_v33  ;;  %4130 = vmatprep.mubr.bf16.mxu1 %v14346_v61  ;;  %4644 = vmatprep.mubr.bf16.mxu0 %v14348_v47  ;;  %v14447_v50 = vld [vmem:[%s17629_s1 + $0x44] ss:$8 sps:$4 sm:$0xff]   ;;  %v14409_v57 = vld [vmem:[%s17629_s1 + $0x154] ss:$8 sps:$4 sm:$0xff]   ;;  %v14358_v33 = vld [vmem:[%s15117_s28 + $0x170] ss:$8 sps:$4 sm:$0xff]  }
 0x1f8   : > { %12766 = vmatpush3.bf16.msra.mxu1 %v14367_v32  ;;  %12877 = vmatprep.subr.bf16.mxu0 %v14434_v45  ;;  %v14445_v32 = vld [vmem:[%s17629_s1 + $0xc4] ss:$8 sps:$4 sm:$0xff]  }
 0x1f9   : > { %v16047_v46 = vadd.f32 %v12258_v23, %v2200_v43  ;;  %v12147_v59 = vpop.f32.mrb[124].mxu1  ;;  %v12259_v31 = vpop.f32.mrb[124].mxu0  ;;  %12767 = vmatprep.subr.bf16.mxu1 %v14380_v42  ;;  %12878 = vmatpush3.bf16.msra.mxu0 %v14435_v19  ;;  %v14360_v43 = vld [vmem:[%s15117_s28 + $0x184] ss:$8 sps:$4 sm:$0xff]  }
 0x1fa   : > { %v12148_v54 = vpop.f32.mrb[125].mxu1  ;;  %v12260_v51 = vpop.f32.mrb[125].mxu0  ;;  %12879 = vmatprep.subr.bf16.mxu0 %v14436_v3 }
 0x1fb   : > { %v12149_v61 = vadd.f32 %v12148_v54, %v12147_v59  ;;  %v12150_v47 = vpop.f32.mrb[126].mxu1  ;;  %v12261_v36 = vadd.f32 %v12260_v51, %v12259_v31  ;;  %v12262_v39 = vpop.f32.mrb[126].mxu0  ;;  %v14424_v59 = vld [vmem:[%s17629_s1 + $0x164] ss:$8 sps:$4 sm:$0xff]   ;;  %v14444_v51 = vld [vmem:[%s17629_s1 + $0x1f4] ss:$8 sps:$4 sm:$0xff]  }
 0x1fc   : > { %v12151_v4 = vpop.f32.mrb[127].mxu1  ;;  %v12263_v49 = vpop.f32.mrb[127].mxu0  ;;  %12768 = vmatpush3.bf16.msra.mxu1 %v14381_v5 }
 0x1fd   : > { %v2201_v42 = vadd.f32 %v12149_v61, %v15815_v8  ;;  %v12152_v45 = vadd.f32 %v12151_v4, %v12150_v47  ;;  %v12264_v6 = vadd.f32 %v12263_v49, %v12262_v39  ;;  %12769 = vmatprep.subr.bf16.mxu1 %v14394_v30  ;;  %12880 = vmatpush3.bf16.msra.mxu0 %v14437_v16  ;;  %v14359_v8 = vld [vmem:[%s15117_s28 + $0x290] ss:$8 sps:$4 sm:$0xff]   ;;  %v14362_v30 = vld [vmem:[%s15117_s28 + $0x2a4] ss:$8 sps:$4 sm:$0xff]   ;;  %v14458_v39 = vld [vmem:[%s17629_s1 + $0xf4] ss:$8 sps:$4 sm:$0xff]  }
 0x1fe   : > { %4131 = vmatmul.mubr.bf16.gmra.mrb[232].mxu1 %v14350_v11  ;;  %4645 = vmatmul.mubr.bf16.gmra.mrb[232].mxu0 %v14351_v1  ;;  %v14422_v16 = vld [vmem:[%s17629_s1 + $0x1e4] ss:$8 sps:$4 sm:$0xff]   ;;  %v14446_v49 = vld [vmem:[%s17629_s1 + $0x174] ss:$8 sps:$4 sm:$0xff]  }
 0x1ff   : > { %v2202_v19 = vadd.f32 %v12152_v45, %v15819_v29  ;;  %v16071_v3 = vadd.f32 %v12261_v36, %v2201_v42  ;;  %4138 = vmatprep.mubr.bf16.mxu1 %v14354_v53  ;;  %4652 = vmatprep.mubr.bf16.mxu0 %v14356_v9  ;;  %v14449_v29 = vld [vmem:[%s17629_s1 + $0x54] ss:$8 sps:$4 sm:$0xff]   ;;  %v14457_v36 = vld [vmem:[%s17629_s1 + $0x64] ss:$8 sps:$4 sm:$0xff]   ;;  %v14364_v45 = vld [vmem:[%s15117_s28 + $0x180] ss:$8 sps:$4 sm:$0xff]  }
 0x200   : > { %12770 = vmatpush3.bf16.msra.mxu1 %v14395_v26  ;;  %12881 = vmatprep.subr.bf16.mxu0 %v14445_v32  ;;  %v14456_v26 = vld [vmem:[%s17629_s1 + $0xe4] ss:$8 sps:$4 sm:$0xff]  }
 0x201   : > { %v16075_v10 = vadd.f32 %v12264_v6, %v2202_v19  ;;  %v12153_v23 = vpop.f32.mrb[128].mxu1  ;;  %v12265_v5 = vpop.f32.mrb[128].mxu0  ;;  %12771 = vmatprep.subr.bf16.mxu1 %v14408_v44  ;;  %12882 = vmatpush3.bf16.msra.mxu0 %v14447_v50  ;;  %v14466_v42 = vld [vmem:[%s17629_s1 + $0x284] ss:$8 sps:$4 sm:$0xff]   ;;  %v14365_v6 = vld [vmem:[%s15117_s28 + $0x2a0] ss:$8 sps:$4 sm:$0xff]  }
 0x202   : > { %v12154_v11 = vpop.f32.mrb[129].mxu1  ;;  %v12266_v1 = vpop.f32.mrb[129].mxu0  ;;  %12883 = vmatprep.subr.bf16.mxu0 %v14448_v7 }
 0x203   : > { %v12155_v31 = vadd.f32 %v12154_v11, %v12153_v23  ;;  %v12156_v53 = vpop.f32.mrb[130].mxu1  ;;  %v12267_v9 = vadd.f32 %v12266_v1, %v12265_v5  ;;  %v12268_v54 = vpop.f32.mrb[130].mxu0 }
 0x204   : > { %v12157_v61 = vpop.f32.mrb[131].mxu1  ;;  %v12269_v47 = vpop.f32.mrb[131].mxu0  ;;  %12772 = vmatpush3.bf16.msra.mxu1 %v14409_v57 }
 0x205   : > { %v2203_v44 = vadd.f32 %v12155_v31, %v15849_v62  ;;  %v12158_v32 = vadd.f32 %v12157_v61, %v12156_v53  ;;  %v12270_v4 = vadd.f32 %v12269_v47, %v12268_v54  ;;  %12773 = vmatprep.subr.bf16.mxu1 %v14422_v16  ;;  %12884 = vmatpush3.bf16.msra.mxu0 %v14449_v29  ;;  %v14459_v62 = vld [vmem:[%s17629_s1 + $0x74] ss:$8 sps:$4 sm:$0xff]   ;;  %v14372_v47 = vld [vmem:[%s15117_s28 + $0x190] ss:$8 sps:$4 sm:$0xff]  }
 0x206   : > { %4139 = vmatmul.mubr.bf16.gmra.mrb[236].mxu1 %v14358_v33  ;;  %4653 = vmatmul.mubr.bf16.gmra.mrb[236].mxu0 %v14359_v8  ;;  %v14368_v16 = vld [vmem:[%s15117_s28 + $0x194] ss:$8 sps:$4 sm:$0xff]  }
 0x207   : > { %v2204_v50 = vadd.f32 %v12158_v32, %v15859_v17  ;;  %v16105_v7 = vadd.f32 %v12267_v9, %v2203_v44  ;;  %4146 = vmatprep.mubr.bf16.mxu1 %v14360_v43  ;;  %4660 = vmatprep.mubr.bf16.mxu0 %v14362_v30  ;;  %v14370_v29 = vld [vmem:[%s15117_s28 + $0x2b4] ss:$8 sps:$4 sm:$0xff]  }
 0x208   : > { %12774 = vmatpush3.bf16.msra.mxu1 %v14424_v59  ;;  %12885 = vmatprep.subr.bf16.mxu0 %v14456_v26 }
 0x209   : > { %v16115_v57 = vadd.f32 %v12270_v4, %v2204_v50  ;;  %v12159_v17 = vpop.f32.mrb[132].mxu1  ;;  %v12271_v19 = vpop.f32.mrb[132].mxu0  ;;  %12775 = vmatprep.subr.bf16.mxu1 %v14444_v51  ;;  %12886 = vmatpush3.bf16.msra.mxu0 %v14457_v36  ;;  %v14376_v50 = vld [vmem:[%s15117_s28 + $0x2c4] ss:$8 sps:$4 sm:$0xff]  }
 0x20a   : > { %v12160_v33 = vpop.f32.mrb[133].mxu1  ;;  %v12272_v8 = vpop.f32.mrb[133].mxu0  ;;  %12887 = vmatprep.subr.bf16.mxu0 %v14458_v39 }
 0x20b   : > { %v12161_v23 = vadd.f32 %v12160_v33, %v12159_v17  ;;  %v12162_v5 = vpop.f32.mrb[134].mxu1  ;;  %v12273_v43 = vadd.f32 %v12272_v8, %v12271_v19  ;;  %v12274_v30 = vpop.f32.mrb[134].mxu0  ;;  %v14378_v8 = vld [vmem:[%s15117_s28 + $0x1a0] ss:$8 sps:$4 sm:$0xff]  }
 0x20c   : > { %v12163_v11 = vpop.f32.mrb[135].mxu1  ;;  %v12275_v1 = vpop.f32.mrb[135].mxu0  ;;  %12776 = vmatpush3.bf16.msra.mxu1 %v14446_v49 }
 0x20d   : > { %v2205_v59 = vadd.f32 %v12161_v23, %v15865_v35  ;;  %v12164_v31 = vadd.f32 %v12163_v11, %v12162_v5  ;;  %v12276_v53 = vadd.f32 %v12275_v1, %v12274_v30  ;;  %12888 = vmatpush3.bf16.msra.mxu0 %v14459_v62  ;;  %12985 = vmatprep.subr.bf16.mxu1 %v14466_v42  ;;  %v14373_v35 = vld [vmem:[%s15117_s28 + $0x2b0] ss:$8 sps:$4 sm:$0xff]   ;;  %v14379_v23 = vld [vmem:[%s15117_s28 + $0x2c0] ss:$8 sps:$4 sm:$0xff]  }
 0x20e   : > { %4147 = vmatmul.mubr.bf16.gmra.mrb[240].mxu1 %v14364_v45  ;;  %4661 = vmatmul.mubr.bf16.gmra.mrb[240].mxu0 %v14365_v6 }
 0x20f   : > { %v2206_v9 = vadd.f32 %v12164_v31, %v15867_v38  ;;  %v16121_v54 = vadd.f32 %v12273_v43, %v2205_v59  ;;  %4154 = vmatprep.mubr.bf16.mxu1 %v14368_v16  ;;  %4668 = vmatprep.mubr.bf16.mxu0 %v14370_v29  ;;  %v14374_v38 = vld [vmem:[%s15117_s28 + $0x1a4] ss:$8 sps:$4 sm:$0xff]   ;;  %v14382_v31 = vld [vmem:[%s15117_s28 + $0x1b4] ss:$8 sps:$4 sm:$0xff]  }
 0x211   : > { %v16123_v51 = vadd.f32 %v12276_v53, %v2206_v9  ;;  %v12165_v26 = vpop.f32.mrb[136].mxu1  ;;  %v12277_v61 = vpop.f32.mrb[136].mxu0 }
 0x212   : > { %v12166_v36 = vpop.f32.mrb[137].mxu1  ;;  %v12278_v39 = vpop.f32.mrb[137].mxu0 }
 0x213   : > { %v12167_v44 = vadd.f32 %v12166_v36, %v12165_v26  ;;  %v12168_v32 = vpop.f32.mrb[138].mxu1  ;;  %v12279_v4 = vadd.f32 %v12278_v39, %v12277_v61  ;;  %v12280_v49 = vpop.f32.mrb[138].mxu0 }
 0x214   : > { %v12169_v62 = vpop.f32.mrb[139].mxu1  ;;  %v12281_v42 = vpop.f32.mrb[139].mxu0 }
 0x215   : > { %v2207_v45 = vadd.f32 %v12167_v44, %v15875_v27  ;;  %v12170_v6 = vadd.f32 %v12169_v62, %v12168_v32  ;;  %v12282_v17 = vadd.f32 %v12281_v42, %v12280_v49  ;;  %v14387_v49 = vld [vmem:[%s15117_s28 + $0x2d0] ss:$8 sps:$4 sm:$0xff]  }
 0x216   : > { %4155 = vmatmul.mubr.bf16.gmra.mrb[244].mxu1 %v14372_v47  ;;  %4669 = vmatmul.mubr.bf16.gmra.mrb[244].mxu0 %v14373_v35 }
 0x217   : > { %v2208_v19 = vadd.f32 %v12170_v6, %v15879_v18  ;;  %v16131_v33 = vadd.f32 %v12279_v4, %v2207_v45  ;;  %4162 = vmatprep.mubr.bf16.mxu1 %v14374_v38  ;;  %4676 = vmatprep.mubr.bf16.mxu0 %v14376_v50  ;;  %v14384_v18 = vld [vmem:[%s15117_s28 + $0x2d4] ss:$8 sps:$4 sm:$0xff]   ;;  %v14386_v4 = vld [vmem:[%s15117_s28 + $0x1b0] ss:$8 sps:$4 sm:$0xff]   ;;  %v14393_v6 = vld [vmem:[%s15117_s28 + $0x2e4] ss:$8 sps:$4 sm:$0xff]  }
 0x219   : > { %v16135_v5 = vadd.f32 %v12282_v17, %v2208_v19  ;;  %v12171_v43 = vpop.f32.mrb[140].mxu1  ;;  %v12283_v30 = vpop.f32.mrb[140].mxu0 }
 0x21a   : > { %v12172_v16 = vpop.f32.mrb[141].mxu1  ;;  %v12284_v27 = vpop.f32.mrb[141].mxu0 }
 0x21b   : > { %v12173_v29 = vadd.f32 %v12172_v16, %v12171_v43  ;;  %v12174_v11 = vpop.f32.mrb[142].mxu1  ;;  %v12285_v1 = vadd.f32 %v12284_v27, %v12283_v30  ;;  %v12286_v59 = vpop.f32.mrb[142].mxu0  ;;  %v14388_v27 = vld [vmem:[%s15117_s28 + $0x1c0] ss:$8 sps:$4 sm:$0xff]  }
 0x21c   : > { %v12175_v53 = vpop.f32.mrb[143].mxu1  ;;  %v12287_v9 = vpop.f32.mrb[143].mxu0 }
 0x21d   : > { %v2209_v26 = vadd.f32 %v12173_v29, %v15885_v15  ;;  %v12176_v61 = vadd.f32 %v12175_v53, %v12174_v11  ;;  %v12288_v47 = vadd.f32 %v12287_v9, %v12286_v59  ;;  %v14391_v29 = vld [vmem:[%s15117_s28 + $0x2e0] ss:$8 sps:$4 sm:$0xff]  }
 0x21e   : > { %4163 = vmatmul.mubr.bf16.gmra.mrb[248].mxu1 %v14378_v8  ;;  %4677 = vmatmul.mubr.bf16.gmra.mrb[248].mxu0 %v14379_v23 }
 0x21f   : > { %v2210_v35 = vadd.f32 %v12176_v61, %v15887_v21  ;;  %v16141_v36 = vadd.f32 %v12285_v1, %v2209_v26  ;;  %4170 = vmatprep.mubr.bf16.mxu1 %v14382_v31  ;;  %4684 = vmatprep.mubr.bf16.mxu0 %v14384_v18  ;;  %v14390_v21 = vld [vmem:[%s15117_s28 + $0x1c4] ss:$8 sps:$4 sm:$0xff]   ;;  %v14398_v61 = vld [vmem:[%s15117_s28 + $0x1d4] ss:$8 sps:$4 sm:$0xff]  }
 0x221   : > { %v16143_v39 = vadd.f32 %v12288_v47, %v2210_v35  ;;  %v12177_v44 = vpop.f32.mrb[144].mxu1  ;;  %v12289_v32 = vpop.f32.mrb[144].mxu0 }
 0x222   : > { %v12178_v38 = vpop.f32.mrb[145].mxu1  ;;  %v12290_v15 = vpop.f32.mrb[145].mxu0 }
 0x223   : > { %v12179_v50 = vadd.f32 %v12178_v38, %v12177_v44  ;;  %v12180_v62 = vpop.f32.mrb[146].mxu1  ;;  %v12291_v42 = vadd.f32 %v12290_v15, %v12289_v32  ;;  %v12292_v45 = vpop.f32.mrb[146].mxu0 }
 0x224   : > { %v12181_v17 = vpop.f32.mrb[147].mxu1  ;;  %v12293_v19 = vpop.f32.mrb[147].mxu0 }
 0x225   : > { %v2211_v8 = vadd.f32 %v12179_v50, %v15895_v37  ;;  %v12182_v23 = vadd.f32 %v12181_v17, %v12180_v62  ;;  %v12294_v43 = vadd.f32 %v12293_v19, %v12292_v45  ;;  %v14399_v45 = vld [vmem:[%s15117_s28 + $0x2f0] ss:$8 sps:$4 sm:$0xff]  }
 0x226   : > { %4171 = vmatmul.mubr.bf16.gmra.mrb[252].mxu1 %v14386_v4  ;;  %4685 = vmatmul.mubr.bf16.gmra.mrb[252].mxu0 %v14387_v49 }
 0x227   : > { %v2212_v30 = vadd.f32 %v12182_v23, %v15899_v20  ;;  %v16151_v16 = vadd.f32 %v12291_v42, %v2211_v8  ;;  %4178 = vmatprep.mubr.bf16.mxu1 %v14390_v21  ;;  %4692 = vmatprep.mubr.bf16.mxu0 %v14393_v6  ;;  %v14401_v20 = vld [vmem:[%s15117_s28 + $0x2f4] ss:$8 sps:$4 sm:$0xff]   ;;  %v14396_v42 = vld [vmem:[%s15117_s28 + $0x1d0] ss:$8 sps:$4 sm:$0xff]   ;;  %v14407_v23 = vld [vmem:[%s15117_s28 + $0x304] ss:$8 sps:$4 sm:$0xff]  }
 0x229   : > { %v16155_v11 = vadd.f32 %v12294_v43, %v2212_v30  ;;  %v12183_v1 = vpop.f32.mrb[148].mxu1  ;;  %v12295_v59 = vpop.f32.mrb[148].mxu0 }
 0x22a   : > { %v12184_v31 = vpop.f32.mrb[149].mxu1  ;;  %v12296_v37 = vpop.f32.mrb[149].mxu0 }
 0x22b   : > { %v12185_v18 = vadd.f32 %v12184_v31, %v12183_v1  ;;  %v12186_v53 = vpop.f32.mrb[150].mxu1  ;;  %v12297_v9 = vadd.f32 %v12296_v37, %v12295_v59  ;;  %v12298_v26 = vpop.f32.mrb[150].mxu0  ;;  %v14402_v37 = vld [vmem:[%s15117_s28 + $0x1e0] ss:$8 sps:$4 sm:$0xff]  }
 0x22c   : > { %v12187_v47 = vpop.f32.mrb[151].mxu1  ;;  %v12299_v35 = vpop.f32.mrb[151].mxu0 }
 0x22d   : > { %v2213_v44 = vadd.f32 %v12185_v18, %v15905_v22  ;;  %v12188_v32 = vadd.f32 %v12187_v47, %v12186_v53  ;;  %v12300_v4 = vadd.f32 %v12299_v35, %v12298_v26  ;;  %v14405_v18 = vld [vmem:[%s15117_s28 + $0x300] ss:$8 sps:$4 sm:$0xff]  }
 0x22e   : > { %4179 = vmatmul.mubr.bf16.gmra.mrb[0].mxu1 %v14388_v27  ;;  %4693 = vmatmul.mubr.bf16.gmra.mrb[0].mxu0 %v14391_v29 }
 0x22f   : > { %v2214_v49 = vadd.f32 %v12188_v32, %v15907_v25  ;;  %v16161_v38 = vadd.f32 %v12297_v9, %v2213_v44  ;;  %4186 = vmatprep.mubr.bf16.mxu1 %v14398_v61  ;;  %4700 = vmatprep.mubr.bf16.mxu0 %v14401_v20  ;;  %v14404_v25 = vld [vmem:[%s15117_s28 + $0x1e4] ss:$8 sps:$4 sm:$0xff]   ;;  %v14412_v32 = vld [vmem:[%s15117_s28 + $0x1f4] ss:$8 sps:$4 sm:$0xff]  }
 0x231   : > { %v16163_v15 = vadd.f32 %v12300_v4, %v2214_v49  ;;  %v12189_v50 = vpop.f32.mrb[152].mxu1  ;;  %v12301_v62 = vpop.f32.mrb[152].mxu0 }
 0x232   : > { %v12190_v21 = vpop.f32.mrb[153].mxu1  ;;  %v12302_v22 = vpop.f32.mrb[153].mxu0 }
 0x233   : > { %v12191_v6 = vadd.f32 %v12190_v21, %v12189_v50  ;;  %v12192_v17 = vpop.f32.mrb[154].mxu1  ;;  %v12303_v19 = vadd.f32 %v12302_v22, %v12301_v62  ;;  %v12304_v8 = vpop.f32.mrb[154].mxu0 }
 0x234   : > { %v12193_v43 = vpop.f32.mrb[155].mxu1  ;;  %v12305_v30 = vpop.f32.mrb[155].mxu0 }
 0x235   : > { %v2215_v27 = vadd.f32 %v12191_v6, %v15915_v28  ;;  %v12194_v29 = vadd.f32 %v12193_v43, %v12192_v17  ;;  %v12306_v1 = vadd.f32 %v12305_v30, %v12304_v8  ;;  %v14413_v8 = vld [vmem:[%s15117_s28 + $0x310] ss:$8 sps:$4 sm:$0xff]  }
 0x236   : > { %4187 = vmatmul.mubr.bf16.gmra.mrb[4].mxu1 %v14396_v42  ;;  %4701 = vmatmul.mubr.bf16.gmra.mrb[4].mxu0 %v14399_v45 }
 0x237   : > { %v2216_v59 = vadd.f32 %v12194_v29, %v15919_v34  ;;  %v16171_v31 = vadd.f32 %v12303_v19, %v2215_v27  ;;  %4194 = vmatprep.mubr.bf16.mxu1 %v14404_v25  ;;  %4708 = vmatprep.mubr.bf16.mxu0 %v14407_v23  ;;  %v14415_v34 = vld [vmem:[%s15117_s28 + $0x314] ss:$8 sps:$4 sm:$0xff]   ;;  %v14410_v19 = vld [vmem:[%s15117_s28 + $0x1f0] ss:$8 sps:$4 sm:$0xff]   ;;  %v14421_v29 = vld [vmem:[%s15117_s28 + $0x324] ss:$8 sps:$4 sm:$0xff]  }
 0x239   : > { %v16175_v53 = vadd.f32 %v12306_v1, %v2216_v59  ;;  %v12195_v9 = vpop.f32.mrb[156].mxu1  ;;  %v12307_v26 = vpop.f32.mrb[156].mxu0 }
 0x23a   : > { %v12196_v61 = vpop.f32.mrb[157].mxu1  ;;  %v12308_v28 = vpop.f32.mrb[157].mxu0 }
 0x23b   : > { %v12197_v20 = vadd.f32 %v12196_v61, %v12195_v9  ;;  %v12198_v47 = vpop.f32.mrb[158].mxu1  ;;  %v12309_v35 = vadd.f32 %v12308_v28, %v12307_v26  ;;  %v12310_v44 = vpop.f32.mrb[158].mxu0  ;;  %v14416_v28 = vld [vmem:[%s15117_s28 + $0x200] ss:$8 sps:$4 sm:$0xff]  }
 0x23c   : > { %v12199_v4 = vpop.f32.mrb[159].mxu1  ;;  %v12311_v49 = vpop.f32.mrb[159].mxu0 }
 0x23d   : > { %v2217_v50 = vadd.f32 %v12197_v20, %v15925_v41  ;;  %v12200_v62 = vadd.f32 %v12199_v4, %v12198_v47  ;;  %v12312_v42 = vadd.f32 %v12311_v49, %v12310_v44  ;;  %v14419_v20 = vld [vmem:[%s15117_s28 + $0x320] ss:$8 sps:$4 sm:$0xff]  }
 0x23e   : > { %4195 = vmatmul.mubr.bf16.gmra.mrb[8].mxu1 %v14402_v37  ;;  %4709 = vmatmul.mubr.bf16.gmra.mrb[8].mxu0 %v14405_v18 }
 0x23f   : > { %v2218_v45 = vadd.f32 %v12200_v62, %v15927_v60  ;;  %v16181_v21 = vadd.f32 %v12309_v35, %v2217_v50  ;;  %4202 = vmatprep.mubr.bf16.mxu1 %v14412_v32  ;;  %4716 = vmatprep.mubr.bf16.mxu0 %v14415_v34  ;;  %v14418_v60 = vld [vmem:[%s15117_s28 + $0x204] ss:$8 sps:$4 sm:$0xff]   ;;  %v14430_v62 = vld [vmem:[%s15117_s28 + $0x214] ss:$8 sps:$4 sm:$0xff]  }
 0x241   : > { %v16183_v22 = vadd.f32 %v12312_v42, %v2218_v45  ;;  %v12329_v6 = vpop.f32.mrb[160].mxu1  ;;  %v12441_v17 = vpop.f32.mrb[160].mxu0 }
 0x242   : > { %v12330_v25 = vpop.f32.mrb[161].mxu1  ;;  %v12442_v41 = vpop.f32.mrb[161].mxu0 }
 0x243   : > { %v12331_v23 = vadd.f32 %v12330_v25, %v12329_v6  ;;  %v12332_v43 = vpop.f32.mrb[162].mxu1  ;;  %v12443_v30 = vadd.f32 %v12442_v41, %v12441_v17  ;;  %v12444_v27 = vpop.f32.mrb[162].mxu0 }
 0x244   : > { %v12333_v1 = vpop.f32.mrb[163].mxu1  ;;  %v12445_v59 = vpop.f32.mrb[163].mxu0 }
 0x245   : > { %v3215_v37 = vadd.f32 %v12331_v23, %v15935_v48  ;;  %v12334_v18 = vadd.f32 %v12333_v1, %v12332_v43  ;;  %v12446_v9 = vadd.f32 %v12445_v59, %v12444_v27  ;;  %v14428_v23 = vld [vmem:[%s15117_s28 + $0x210] ss:$8 sps:$4 sm:$0xff]  }
 0x246   : > { %4203 = vmatmul.mubr.bf16.gmra.mrb[12].mxu1 %v14410_v19  ;;  %4717 = vmatmul.mubr.bf16.gmra.mrb[12].mxu0 %v14413_v8  ;;  %v14552_v8 = vld [vmem:[%s17629_s1 + $0x384] ss:$8 sps:$4 sm:$0xff]  }
 0x247   : > { %v3216_v26 = vadd.f32 %v12334_v18, %v15939_v12  ;;  %v16191_v61 = vadd.f32 %v12443_v30, %v3215_v37  ;;  %4210 = vmatprep.mubr.bf16.mxu1 %v14418_v60  ;;  %4724 = vmatprep.mubr.bf16.mxu0 %v14421_v29  ;;  %v14433_v12 = vld [vmem:[%s15117_s28 + $0x334] ss:$8 sps:$4 sm:$0xff]   ;;  %v14431_v29 = vld [vmem:[%s15117_s28 + $0x330] ss:$8 sps:$4 sm:$0xff]  }
 0x248   : > { %13097 = vmatprep.subr.bf16.mxu0 %v14552_v8  ;;  %v14455_v8 = vld [vmem:[%s15117_s28 + $0x354] ss:$8 sps:$4 sm:$0xff]  }
 0x249   : > { %v16195_v47 = vadd.f32 %v12446_v9, %v3216_v26  ;;  %v12335_v35 = vpop.f32.mrb[164].mxu1  ;;  %v12447_v44 = vpop.f32.mrb[164].mxu0  ;;  %v14443_v9 = vld [vmem:[%s15117_s28 + $0x344] ss:$8 sps:$4 sm:$0xff]  }
 0x24a   : > { %v12336_v32 = vpop.f32.mrb[165].mxu1  ;;  %v12448_v48 = vpop.f32.mrb[165].mxu0 }
 0x24b   : > { %v12337_v34 = vadd.f32 %v12336_v32, %v12335_v35  ;;  %v12338_v4 = vpop.f32.mrb[166].mxu1  ;;  %v12449_v49 = vadd.f32 %v12448_v48, %v12447_v44  ;;  %v12450_v50 = vpop.f32.mrb[166].mxu0 }
 0x24c   : > { %v12339_v42 = vpop.f32.mrb[167].mxu1  ;;  %v12451_v45 = vpop.f32.mrb[167].mxu0 }
 0x24d   : > { %v3217_v6 = vadd.f32 %v12337_v34, %v15948_v40  ;;  %v12340_v17 = vadd.f32 %v12339_v42, %v12338_v4  ;;  %v12452_v19 = vadd.f32 %v12451_v45, %v12450_v50 }
 0x24e   : > { %4211 = vmatmul.mubr.bf16.gmra.mrb[16].mxu1 %v14416_v28  ;;  %4725 = vmatmul.mubr.bf16.gmra.mrb[16].mxu0 %v14419_v20 }
 0x24f   : > { %v3218_v25 = vadd.f32 %v12340_v17, %v15950_v14  ;;  %v16204_v41 = vadd.f32 %v12449_v49, %v3217_v6  ;;  %4218 = vmatprep.mubr.bf16.mxu1 %v14430_v62  ;;  %4732 = vmatprep.mubr.bf16.mxu0 %v14433_v12  ;;  %v14440_v14 = vld [vmem:[%s15117_s28 + $0x224] ss:$8 sps:$4 sm:$0xff]   ;;  %v14438_v12 = vld [vmem:[%s15117_s28 + $0x220] ss:$8 sps:$4 sm:$0xff]  }
 0x251   : > { %v16207_v40 = vadd.f32 %v12452_v19, %v3218_v25  ;;  %v12341_v43 = vpop.f32.mrb[168].mxu1  ;;  %v12453_v30 = vpop.f32.mrb[168].mxu0  ;;  %v14452_v19 = vld [vmem:[%s15117_s28 + $0x234] ss:$8 sps:$4 sm:$0xff]  }
 0x252   : > { %v12342_v27 = vpop.f32.mrb[169].mxu1  ;;  %v12454_v60 = vpop.f32.mrb[169].mxu0 }
 0x253   : > { %v12343_v1 = vadd.f32 %v12342_v27, %v12341_v43  ;;  %v12344_v59 = vpop.f32.mrb[170].mxu1  ;;  %v12455_v37 = vadd.f32 %v12454_v60, %v12453_v30  ;;  %v12456_v18 = vpop.f32.mrb[170].mxu0 }
 0x254   : > { %v12345_v26 = vpop.f32.mrb[171].mxu1  ;;  %v12457_v28 = vpop.f32.mrb[171].mxu0 }
 0x255   : > { %v3219_v20 = vadd.f32 %v12343_v1, %v15958_v24  ;;  %v12346_v35 = vadd.f32 %v12345_v26, %v12344_v59  ;;  %v12458_v44 = vadd.f32 %v12457_v28, %v12456_v18  ;;  %v14441_v24 = vld [vmem:[%s15117_s28 + $0x340] ss:$8 sps:$4 sm:$0xff]  }
 0x256   : > { %4219 = vmatmul.mubr.bf16.gmra.mrb[20].mxu1 %v14428_v23  ;;  %4733 = vmatmul.mubr.bf16.gmra.mrb[20].mxu0 %v14431_v29 }
 0x257   : > { %v3220_v32 = vadd.f32 %v12346_v35, %v15961_v58  ;;  %v16214_v48 = vadd.f32 %v12455_v37, %v3219_v20  ;;  %4226 = vmatprep.mubr.bf16.mxu1 %v14440_v14  ;;  %4740 = vmatprep.mubr.bf16.mxu0 %v14443_v9  ;;  %v14450_v14 = vld [vmem:[%s15117_s28 + $0x230] ss:$8 sps:$4 sm:$0xff]   ;;  %v14462_v35 = vld [vmem:[%s15117_s28 + $0x124] ss:$8 sps:$4 sm:$0xff]  }
 0x259   : > { %v16216_v34 = vadd.f32 %v12458_v44, %v3220_v32  ;;  %v12347_v4 = vpop.f32.mrb[172].mxu1  ;;  %v12459_v49 = vpop.f32.mrb[172].mxu0  ;;  %v14465_v44 = vld [vmem:[%s15117_s28 + $0x4] ss:$8 sps:$4 sm:$0xff]  }
 0x25a   : > { %v12348_v50 = vpop.f32.mrb[173].mxu1  ;;  %v12460_v62 = vpop.f32.mrb[173].mxu0 }
 0x25b   : > { %v12349_v42 = vadd.f32 %v12348_v50, %v12347_v4  ;;  %v12350_v45 = vpop.f32.mrb[174].mxu1  ;;  %v12461_v6 = vadd.f32 %v12460_v62, %v12459_v49  ;;  %v12462_v17 = vpop.f32.mrb[174].mxu0 }
 0x25c   : > { %v12351_v58 = vpop.f32.mrb[175].mxu1  ;;  %v12463_v25 = vpop.f32.mrb[175].mxu0 }
 0x25d   : > { %v3221_v23 = vadd.f32 %v12349_v42, %v15968_v55  ;;  %v12352_v43 = vadd.f32 %v12351_v58, %v12350_v45  ;;  %v12464_v30 = vadd.f32 %v12463_v25, %v12462_v17  ;;  %v14453_v55 = vld [vmem:[%s15117_s28 + $0x350] ss:$8 sps:$4 sm:$0xff]  }
 0x25e   : > { %4227 = vmatmul.mubr.bf16.gmra.mrb[24].mxu1 %v14438_v12  ;;  %4741 = vmatmul.mubr.bf16.gmra.mrb[24].mxu0 %v14441_v24 }
 0x25f   : > { %v3222_v27 = vadd.f32 %v12352_v43, %v15970_v56  ;;  %v16224_v60 = vadd.f32 %v12461_v6, %v3221_v23  ;;  %4234 = vmatprep.mubr.bf16.mxu1 %v14452_v19  ;;  %4748 = vmatprep.mubr.bf16.mxu0 %v14455_v8  ;;  %v14460_v19 = vld [vmem:[%s15117_s28 + $0x120] ss:$8 sps:$4 sm:$0xff]   ;;  %v14470_v43 = vld [vmem:[%s15117_s28 + $0x134] ss:$8 sps:$4 sm:$0xff]  }
 0x261   : > { %v16226_v29 = vadd.f32 %v12464_v30, %v3222_v27  ;;  %v12353_v1 = vpop.f32.mrb[176].mxu1  ;;  %v12465_v59 = vpop.f32.mrb[176].mxu0 }
 0x262   : > { %v12354_v37 = vpop.f32.mrb[177].mxu1  ;;  %v12466_v18 = vpop.f32.mrb[177].mxu0 }
 0x263   : > { %v12355_v9 = vadd.f32 %v12354_v37, %v12353_v1  ;;  %v12356_v26 = vpop.f32.mrb[178].mxu1  ;;  %v12467_v28 = vadd.f32 %v12466_v18, %v12465_v59  ;;  %v12468_v20 = vpop.f32.mrb[178].mxu0  ;;  %v14473_v1 = vld [vmem:[%s15117_s28 + $0x14] ss:$8 sps:$4 sm:$0xff]  }
 0x264   : > { %v12357_v56 = vpop.f32.mrb[179].mxu1  ;;  %v12469_v32 = vpop.f32.mrb[179].mxu0  ;;  %v14480_v59 = vld [vmem:[%s17629_s1 + $0x294] ss:$8 sps:$4 sm:$0xff]  }
 0x265   : > { %v3223_v4 = vadd.f32 %v12355_v9, %v15978_v0  ;;  %v12358_v49 = vadd.f32 %v12357_v56, %v12356_v26  ;;  %v12470_v50 = vadd.f32 %v12469_v32, %v12468_v20  ;;  %v14463_v0 = vld [vmem:[%s15117_s28] ss:$8 sps:$4 sm:$0xff]   ;;  %v14554_v9 = vld [vmem:[%s17629_s1 + $0x394] ss:$8 sps:$4 sm:$0xff]   ;;  %v14494_v20 = vld [vmem:[%s17629_s1 + $0x2a4] ss:$8 sps:$4 sm:$0xff]  }
 0x266   : > { %4235 = vmatmul.mubr.bf16.gmra.mrb[28].mxu1 %v14450_v14  ;;  %4749 = vmatmul.mubr.bf16.gmra.mrb[28].mxu0 %v14453_v55  ;;  %v14553_v55 = vld [vmem:[%s17629_s1 + $0x304] ss:$8 sps:$4 sm:$0xff]   ;;  %v14561_v56 = vld [vmem:[%s17629_s1 + $0x314] ss:$8 sps:$4 sm:$0xff]  }
 0x267   : > { %v3224_v62 = vadd.f32 %v12358_v49, %v15982_v2  ;;  %v16234_v12 = vadd.f32 %v12467_v28, %v3223_v4  ;;  %5308 = vmatprep.mubr.bf16.mxu1 %v14462_v35  ;;  %5725 = vmatprep.mubr.bf16.mxu0 %v14465_v44  ;;  %v14467_v2 = vld [vmem:[%s17629_s1 + $0x204] ss:$8 sps:$4 sm:$0xff]   ;;  %v14468_v49 = vld [vmem:[%s15117_s28 + $0x130] ss:$8 sps:$4 sm:$0xff]  }
 0x269   : > { %v16236_v24 = vadd.f32 %v12470_v50, %v3224_v62  ;;  %v12359_v42 = vpop.f32.mrb[180].mxu1  ;;  %v12471_v45 = vpop.f32.mrb[180].mxu0  ;;  %v14471_v50 = vld [vmem:[%s15117_s28 + $0x10] ss:$8 sps:$4 sm:$0xff]  }
 0x26a   : > { %v12360_v6 = vpop.f32.mrb[181].mxu1  ;;  %v12472_v17 = vpop.f32.mrb[181].mxu0 }
 0x26b   : > { %v12361_v8 = vadd.f32 %v12360_v6, %v12359_v42  ;;  %v12362_v58 = vpop.f32.mrb[182].mxu1  ;;  %v12473_v25 = vadd.f32 %v12472_v17, %v12471_v45  ;;  %v12474_v23 = vpop.f32.mrb[182].mxu0  ;;  %v14476_v17 = vld [vmem:[%s15117_s28 + $0x144] ss:$8 sps:$4 sm:$0xff]  }
 0x26c   : > { %v12363_v30 = vpop.f32.mrb[183].mxu1  ;;  %v12475_v27 = vpop.f32.mrb[183].mxu0 }
 0x26d   : > { %v3225_v37 = vadd.f32 %v12361_v8, %v16006_v13  ;;  %v12364_v18 = vadd.f32 %v12363_v30, %v12362_v58  ;;  %v12476_v14 = vadd.f32 %v12475_v27, %v12474_v23  ;;  %v14481_v13 = vld [vmem:[%s17629_s1 + $0x214] ss:$8 sps:$4 sm:$0xff]   ;;  %v14495_v58 = vld [vmem:[%s17629_s1 + $0x224] ss:$8 sps:$4 sm:$0xff]  }
 0x26e   : > { %5309 = vmatmul.mubr.bf16.vlgmr.msra.gmra.mrb[32].mxu1 %v14460_v19  ;;  %5726 = vmatmul.mubr.bf16.vlgmr.msra.gmra.mrb[32].mxu0 %v14463_v0  ;;  %v14479_v19 = vld [vmem:[%s15117_s28 + $0x24] ss:$8 sps:$4 sm:$0xff]   ;;  %v14508_v30 = vld [vmem:[%s17629_s1 + $0x2b4] ss:$8 sps:$4 sm:$0xff]  }
 0x26f   : > { %v3226_v26 = vadd.f32 %v12364_v18, %v16010_v52  ;;  %v16256_v28 = vadd.f32 %v12473_v25, %v3225_v37  ;;  %12986 = vmatpush3.bf16.msra.mxu1 %v14467_v2  ;;  %5316 = vmatprep.mubr.bf16.mxu1 %v14470_v43  ;;  %v14562_v25 = vld [vmem:[%s17629_s1 + $0x3a4] ss:$8 sps:$4 sm:$0xff]   ;;  %v14509_v37 = vld [vmem:[%s17629_s1 + $0x234] ss:$8 sps:$4 sm:$0xff]  }
 0x270   : > { %5733 = vmatprep.mubr.bf16.mxu0 %v14473_v1  ;;  %12987 = vmatprep.subr.bf16.mxu1 %v14480_v59  ;;  %v14563_v27 = vld [vmem:[%s17629_s1 + $0x324] ss:$8 sps:$4 sm:$0xff]   ;;  %v14564_v1 = vld [vmem:[%s17629_s1 + $0x3b4] ss:$8 sps:$4 sm:$0xff]  }
 0x271   : > { %v16264_v35 = vadd.f32 %v12476_v14, %v3226_v26  ;;  %v12365_v52 = vpop.f32.mrb[184].mxu1  ;;  %v12477_v44 = vpop.f32.mrb[184].mxu0  ;;  %13098 = vmatpush3.bf16.msra.mxu0 %v14553_v55 }
 0x272   : > { %v12366_v32 = vpop.f32.mrb[185].mxu1  ;;  %v12478_v4 = vpop.f32.mrb[185].mxu0  ;;  %13099 = vmatprep.subr.bf16.mxu0 %v14554_v9  ;;  %v14571_v9 = vld [vmem:[%s17629_s1 + $0x334] ss:$8 sps:$4 sm:$0xff]  }
 0x273   : > { %v12367_v62 = vadd.f32 %v12366_v32, %v12365_v52  ;;  %v12368_v42 = vpop.f32.mrb[186].mxu1  ;;  %v12479_v45 = vadd.f32 %v12478_v4, %v12477_v44  ;;  %v12480_v6 = vpop.f32.mrb[186].mxu0  ;;  %12988 = vmatpush3.bf16.msra.mxu1 %v14481_v13  ;;  %v14477_v52 = vld [vmem:[%s15117_s28 + $0x20] ss:$8 sps:$4 sm:$0xff]  }
 0x274   : > { %v12369_v0 = vpop.f32.mrb[187].mxu1  ;;  %v12481_v8 = vpop.f32.mrb[187].mxu0  ;;  %12989 = vmatprep.subr.bf16.mxu1 %v14494_v20  ;;  %v14474_v20 = vld [vmem:[%s15117_s28 + $0x140] ss:$8 sps:$4 sm:$0xff]  }
 0x275   : > { %v3227_v23 = vadd.f32 %v12367_v62, %v16037_v63  ;;  %v12370_v2 = vadd.f32 %v12369_v0, %v12368_v42  ;;  %v12482_v43 = vadd.f32 %v12481_v8, %v12480_v6  ;;  %13100 = vmatpush3.bf16.msra.mxu0 %v14561_v56  ;;  %v14574_v6 = vld [vmem:[%s17629_s1 + $0x3c4] ss:$8 sps:$4 sm:$0xff]   ;;  %v14536_v8 = vld [vmem:[%s17629_s1 + $0x2d4] ss:$8 sps:$4 sm:$0xff]  }
 0x276   : > { %5317 = vmatmul.mubr.bf16.gmra.mrb[36].mxu1 %v14468_v49  ;;  %5734 = vmatmul.mubr.bf16.gmra.mrb[36].mxu0 %v14471_v50  ;;  %v14484_v49 = vld [vmem:[%s15117_s28 + $0x154] ss:$8 sps:$4 sm:$0xff]  }
 0x277   : > { %v3228_v59 = vadd.f32 %v12370_v2, %v16047_v46  ;;  %v16290_v63 = vadd.f32 %v12479_v45, %v3227_v23  ;;  %5324 = vmatprep.mubr.bf16.mxu1 %v14476_v17  ;;  %5741 = vmatprep.mubr.bf16.mxu0 %v14479_v19  ;;  %v14522_v46 = vld [vmem:[%s17629_s1 + $0x2c4] ss:$8 sps:$4 sm:$0xff]   ;;  %v14487_v50 = vld [vmem:[%s15117_s28 + $0x34] ss:$8 sps:$4 sm:$0xff]  }
 0x278   : > { %12990 = vmatpush3.bf16.msra.mxu1 %v14495_v58  ;;  %13101 = vmatprep.subr.bf16.mxu0 %v14562_v25  ;;  %v14523_v45 = vld [vmem:[%s17629_s1 + $0x244] ss:$8 sps:$4 sm:$0xff]   ;;  %v14576_v25 = vld [vmem:[%s17629_s1 + $0x3d4] ss:$8 sps:$4 sm:$0xff]  }
 0x279   : > { %v16295_v18 = vadd.f32 %v12482_v43, %v3228_v59  ;;  %v12371_v14 = vpop.f32.mrb[188].mxu1  ;;  %v12483_v55 = vpop.f32.mrb[188].mxu0  ;;  %12991 = vmatprep.subr.bf16.mxu1 %v14508_v30  ;;  %13102 = vmatpush3.bf16.msra.mxu0 %v14563_v27  ;;  %v14575_v58 = vld [vmem:[%s17629_s1 + $0x344] ss:$8 sps:$4 sm:$0xff]   ;;  %v14537_v2 = vld [vmem:[%s17629_s1 + $0x254] ss:$8 sps:$4 sm:$0xff]  }
 0x27a   : > { %v12372_v26 = vpop.f32.mrb[189].mxu1  ;;  %v12484_v13 = vpop.f32.mrb[189].mxu0  ;;  %13103 = vmatprep.subr.bf16.mxu0 %v14564_v1  ;;  %v14583_v1 = vld [vmem:[%s17629_s1 + $0x354] ss:$8 sps:$4 sm:$0xff]  }
 0x27b   : > { %v12373_v44 = vadd.f32 %v12372_v26, %v12371_v14  ;;  %v12374_v56 = vpop.f32.mrb[190].mxu1  ;;  %v12485_v32 = vadd.f32 %v12484_v13, %v12483_v55  ;;  %v12486_v4 = vpop.f32.mrb[190].mxu0  ;;  %v14482_v14 = vld [vmem:[%s15117_s28 + $0x150] ss:$8 sps:$4 sm:$0xff]  }
 0x27c   : > { %v12375_v62 = vpop.f32.mrb[191].mxu1  ;;  %v12487_v42 = vpop.f32.mrb[191].mxu0  ;;  %12992 = vmatpush3.bf16.msra.mxu1 %v14509_v37  ;;  %v14485_v55 = vld [vmem:[%s15117_s28 + $0x30] ss:$8 sps:$4 sm:$0xff]  }
 0x27d   : > { %v3229_v17 = vadd.f32 %v12373_v44, %v16071_v3  ;;  %v12376_v19 = vadd.f32 %v12375_v62, %v12374_v56  ;;  %v12488_v0 = vadd.f32 %v12487_v42, %v12486_v4  ;;  %12993 = vmatprep.subr.bf16.mxu1 %v14522_v46  ;;  %13104 = vmatpush3.bf16.msra.mxu0 %v14571_v9  ;;  %v14584_v4 = vld [vmem:[%s17629_s1 + $0x3e4] ss:$8 sps:$4 sm:$0xff]   ;;  %v14572_v42 = vld [vmem:[%s17629_s1 + $0x2f4] ss:$8 sps:$4 sm:$0xff]  }
 0x27e   : > { %5325 = vmatmul.mubr.bf16.gmra.mrb[40].mxu1 %v14474_v20  ;;  %5742 = vmatmul.mubr.bf16.gmra.mrb[40].mxu0 %v14477_v52  ;;  %v14490_v20 = vld [vmem:[%s15117_s28 + $0x164] ss:$8 sps:$4 sm:$0xff]  }
 0x27f   : > { %v3230_v3 = vadd.f32 %v12376_v19, %v16075_v10  ;;  %v16324_v23 = vadd.f32 %v12485_v32, %v3229_v17  ;;  %5332 = vmatprep.mubr.bf16.mxu1 %v14484_v49  ;;  %5749 = vmatprep.mubr.bf16.mxu0 %v14487_v50  ;;  %v14550_v10 = vld [vmem:[%s17629_s1 + $0x2e4] ss:$8 sps:$4 sm:$0xff]   ;;  %v14573_v19 = vld [vmem:[%s17629_s1 + $0x274] ss:$8 sps:$4 sm:$0xff]  }
 0x280   : > { %12994 = vmatpush3.bf16.msra.mxu1 %v14523_v45  ;;  %13105 = vmatprep.subr.bf16.mxu0 %v14574_v6  ;;  %v14493_v52 = vld [vmem:[%s15117_s28 + $0x44] ss:$8 sps:$4 sm:$0xff]   ;;  %v14586_v6 = vld [vmem:[%s17629_s1 + $0x3f4] ss:$8 sps:$4 sm:$0xff]  }
 0x281   : > { %v16329_v43 = vadd.f32 %v12488_v0, %v3230_v3  ;;  %v12377_v30 = vpop.f32.mrb[192].mxu1  ;;  %v12489_v27 = vpop.f32.mrb[192].mxu0  ;;  %12995 = vmatprep.subr.bf16.mxu1 %v14536_v8  ;;  %13106 = vmatpush3.bf16.msra.mxu0 %v14575_v58  ;;  %v14551_v32 = vld [vmem:[%s17629_s1 + $0x264] ss:$8 sps:$4 sm:$0xff]  }
 0x282   : > { %v12378_v59 = vpop.f32.mrb[193].mxu1  ;;  %v12490_v37 = vpop.f32.mrb[193].mxu0  ;;  %13107 = vmatprep.subr.bf16.mxu0 %v14576_v25  ;;  %v14585_v45 = vld [vmem:[%s17629_s1 + $0x364] ss:$8 sps:$4 sm:$0xff]  }
 0x283   : > { %v12379_v46 = vadd.f32 %v12378_v59, %v12377_v30  ;;  %v12380_v9 = vpop.f32.mrb[194].mxu1  ;;  %v12491_v26 = vadd.f32 %v12490_v37, %v12489_v27  ;;  %v12492_v13 = vpop.f32.mrb[194].mxu0  ;;  %v14591_v25 = vld [vmem:[%s17629_s1 + $0x484] ss:$8 sps:$4 sm:$0xff]   ;;  %v14488_v30 = vld [vmem:[%s15117_s28 + $0x160] ss:$8 sps:$4 sm:$0xff]  }
 0x284   : > { %v12381_v44 = vpop.f32.mrb[195].mxu1  ;;  %v12493_v56 = vpop.f32.mrb[195].mxu0  ;;  %12996 = vmatpush3.bf16.msra.mxu1 %v14537_v2  ;;  %v14491_v27 = vld [vmem:[%s15117_s28 + $0x40] ss:$8 sps:$4 sm:$0xff]  }
 0x285   : > { %v3231_v49 = vadd.f32 %v12379_v46, %v16105_v7  ;;  %v12382_v50 = vadd.f32 %v12381_v44, %v12380_v9  ;;  %v12494_v62 = vadd.f32 %v12493_v56, %v12492_v13  ;;  %12997 = vmatprep.subr.bf16.mxu1 %v14550_v10  ;;  %13108 = vmatpush3.bf16.msra.mxu0 %v14583_v1 }
 0x286   : > { %5333 = vmatmul.mubr.bf16.gmra.mrb[44].mxu1 %v14482_v14  ;;  %5750 = vmatmul.mubr.bf16.gmra.mrb[44].mxu0 %v14485_v55  ;;  %v14498_v14 = vld [vmem:[%s15117_s28 + $0x174] ss:$8 sps:$4 sm:$0xff]  }
 0x287   : > { %v3232_v7 = vadd.f32 %v12382_v50, %v16115_v57  ;;  %v16358_v17 = vadd.f32 %v12491_v26, %v3231_v49  ;;  %5340 = vmatprep.mubr.bf16.mxu1 %v14490_v20  ;;  %5757 = vmatprep.mubr.bf16.mxu0 %v14493_v52  ;;  %v14590_v57 = vld [vmem:[%s17629_s1 + $0x374] ss:$8 sps:$4 sm:$0xff]   ;;  %v14496_v50 = vld [vmem:[%s15117_s28 + $0x170] ss:$8 sps:$4 sm:$0xff]  }
 0x288   : > { %12998 = vmatpush3.bf16.msra.mxu1 %v14551_v32  ;;  %13109 = vmatprep.subr.bf16.mxu0 %v14584_v4  ;;  %v14501_v55 = vld [vmem:[%s15117_s28 + $0x54] ss:$8 sps:$4 sm:$0xff]  }
 0x289   : > { %v16363_v0 = vadd.f32 %v12494_v62, %v3232_v7  ;;  %v12383_v8 = vpop.f32.mrb[196].mxu1  ;;  %v12495_v58 = vpop.f32.mrb[196].mxu0  ;;  %12999 = vmatprep.subr.bf16.mxu1 %v14572_v42  ;;  %13110 = vmatpush3.bf16.msra.mxu0 %v14585_v45  ;;  %v14499_v62 = vld [vmem:[%s15117_s28 + $0x50] ss:$8 sps:$4 sm:$0xff]  }
 0x28a   : > { %v12384_v3 = vpop.f32.mrb[197].mxu1  ;;  %v12496_v2 = vpop.f32.mrb[197].mxu0  ;;  %13111 = vmatprep.subr.bf16.mxu0 %v14586_v6 }
 0x28b   : > { %v12385_v10 = vadd.f32 %v12384_v3, %v12383_v8  ;;  %v12386_v1 = vpop.f32.mrb[198].mxu1  ;;  %v12497_v59 = vadd.f32 %v12496_v2, %v12495_v58  ;;  %v12498_v37 = vpop.f32.mrb[198].mxu0  ;;  %v14507_v8 = vld [vmem:[%s15117_s28 + $0x64] ss:$8 sps:$4 sm:$0xff]  }
 0x28c   : > { %v12387_v46 = vpop.f32.mrb[199].mxu1  ;;  %v12499_v9 = vpop.f32.mrb[199].mxu0  ;;  %13000 = vmatpush3.bf16.msra.mxu1 %v14573_v19  ;;  %v14504_v19 = vld [vmem:[%s15117_s28 + $0x184] ss:$8 sps:$4 sm:$0xff]  }
 0x28d   : > { %v3233_v26 = vadd.f32 %v12385_v10, %v16121_v54  ;;  %v12388_v13 = vadd.f32 %v12387_v46, %v12386_v1  ;;  %v12500_v20 = vadd.f32 %v12499_v9, %v12498_v37  ;;  %13112 = vmatpush3.bf16.msra.mxu0 %v14590_v57  ;;  %13209 = vmatprep.subr.bf16.mxu1 %v14591_v25 }
 0x28e   : > { %5341 = vmatmul.mubr.bf16.gmra.mrb[48].mxu1 %v14488_v30  ;;  %5758 = vmatmul.mubr.bf16.gmra.mrb[48].mxu0 %v14491_v27 }
 0x28f   : > { %v3234_v52 = vadd.f32 %v12388_v13, %v16123_v51  ;;  %v16377_v44 = vadd.f32 %v12497_v59, %v3233_v26  ;;  %5348 = vmatprep.mubr.bf16.mxu1 %v14498_v14  ;;  %5765 = vmatprep.mubr.bf16.mxu0 %v14501_v55  ;;  %v14502_v14 = vld [vmem:[%s15117_s28 + $0x180] ss:$8 sps:$4 sm:$0xff]   ;;  %v14512_v13 = vld [vmem:[%s15117_s28 + $0x194] ss:$8 sps:$4 sm:$0xff]  }
 0x291   : > { %v16379_v56 = vadd.f32 %v12500_v20, %v3234_v52  ;;  %v12389_v32 = vpop.f32.mrb[200].mxu1  ;;  %v12501_v54 = vpop.f32.mrb[200].mxu0  ;;  %v14515_v20 = vld [vmem:[%s15117_s28 + $0x74] ss:$8 sps:$4 sm:$0xff]  }
 0x292   : > { %v12390_v4 = vpop.f32.mrb[201].mxu1  ;;  %v12502_v49 = vpop.f32.mrb[201].mxu0 }
 0x293   : > { %v12391_v42 = vadd.f32 %v12390_v4, %v12389_v32  ;;  %v12392_v45 = vpop.f32.mrb[202].mxu1  ;;  %v12503_v6 = vadd.f32 %v12502_v49, %v12501_v54  ;;  %v12504_v7 = vpop.f32.mrb[202].mxu0 }
 0x294   : > { %v12393_v51 = vpop.f32.mrb[203].mxu1  ;;  %v12505_v58 = vpop.f32.mrb[203].mxu0 }
 0x295   : > { %v3235_v57 = vadd.f32 %v12391_v42, %v16131_v33  ;;  %v12394_v25 = vadd.f32 %v12393_v51, %v12392_v45  ;;  %v12506_v3 = vadd.f32 %v12505_v58, %v12504_v7  ;;  %v14505_v33 = vld [vmem:[%s15117_s28 + $0x60] ss:$8 sps:$4 sm:$0xff]  }
 0x296   : > { %5349 = vmatmul.mubr.bf16.gmra.mrb[52].mxu1 %v14496_v50  ;;  %5766 = vmatmul.mubr.bf16.gmra.mrb[52].mxu0 %v14499_v62 }
 0x297   : > { %v3236_v2 = vadd.f32 %v12394_v25, %v16135_v5  ;;  %v16387_v30 = vadd.f32 %v12503_v6, %v3235_v57  ;;  %5356 = vmatprep.mubr.bf16.mxu1 %v14504_v19  ;;  %5773 = vmatprep.mubr.bf16.mxu0 %v14507_v8  ;;  %v14510_v19 = vld [vmem:[%s15117_s28 + $0x190] ss:$8 sps:$4 sm:$0xff]   ;;  %v14518_v25 = vld [vmem:[%s15117_s28 + $0x1a4] ss:$8 sps:$4 sm:$0xff]  }
 0x299   : > { %v16389_v27 = vadd.f32 %v12506_v3, %v3236_v2  ;;  %v12395_v10 = vpop.f32.mrb[204].mxu1  ;;  %v12507_v1 = vpop.f32.mrb[204].mxu0  ;;  %v14521_v3 = vld [vmem:[%s15117_s28 + $0x84] ss:$8 sps:$4 sm:$0xff]  }
 0x29a   : > { %v12396_v59 = vpop.f32.mrb[205].mxu1  ;;  %v12508_v37 = vpop.f32.mrb[205].mxu0 }
 0x29b   : > { %v12397_v55 = vadd.f32 %v12396_v59, %v12395_v10  ;;  %v12398_v46 = vpop.f32.mrb[206].mxu1  ;;  %v12509_v9 = vadd.f32 %v12508_v37, %v12507_v1  ;;  %v12510_v26 = vpop.f32.mrb[206].mxu0 }
 0x29c   : > { %v12399_v5 = vpop.f32.mrb[207].mxu1  ;;  %v12511_v52 = vpop.f32.mrb[207].mxu0 }
 0x29d   : > { %v3237_v32 = vadd.f32 %v12397_v55, %v16141_v36  ;;  %v12400_v54 = vadd.f32 %v12399_v5, %v12398_v46  ;;  %v12512_v4 = vadd.f32 %v12511_v52, %v12510_v26  ;;  %v14513_v36 = vld [vmem:[%s15117_s28 + $0x70] ss:$8 sps:$4 sm:$0xff]  }
 0x29e   : > { %5357 = vmatmul.mubr.bf16.gmra.mrb[56].mxu1 %v14502_v14  ;;  %5774 = vmatmul.mubr.bf16.gmra.mrb[56].mxu0 %v14505_v33 }
 0x29f   : > { %v3238_v49 = vadd.f32 %v12400_v54, %v16143_v39  ;;  %v16397_v50 = vadd.f32 %v12509_v9, %v3237_v32  ;;  %5364 = vmatprep.mubr.bf16.mxu1 %v14512_v13  ;;  %5781 = vmatprep.mubr.bf16.mxu0 %v14515_v20  ;;  %v14516_v13 = vld [vmem:[%s15117_s28 + $0x1a0] ss:$8 sps:$4 sm:$0xff]   ;;  %v14526_v54 = vld [vmem:[%s15117_s28 + $0x1b4] ss:$8 sps:$4 sm:$0xff]  }
 0x2a1   : > { %v16399_v62 = vadd.f32 %v12512_v4, %v3238_v49  ;;  %v12401_v42 = vpop.f32.mrb[208].mxu1  ;;  %v12513_v45 = vpop.f32.mrb[208].mxu0  ;;  %v14529_v4 = vld [vmem:[%s15117_s28 + $0x94] ss:$8 sps:$4 sm:$0xff]  }
 0x2a2   : > { %v12402_v6 = vpop.f32.mrb[209].mxu1  ;;  %v12514_v7 = vpop.f32.mrb[209].mxu0 }
 0x2a3   : > { %v12403_v8 = vadd.f32 %v12402_v6, %v12401_v42  ;;  %v12404_v51 = vpop.f32.mrb[210].mxu1  ;;  %v12515_v58 = vadd.f32 %v12514_v7, %v12513_v45  ;;  %v12516_v57 = vpop.f32.mrb[210].mxu0 }
 0x2a4   : > { %v12405_v39 = vpop.f32.mrb[211].mxu1  ;;  %v12517_v2 = vpop.f32.mrb[211].mxu0 }
 0x2a5   : > { %v3239_v10 = vadd.f32 %v12403_v8, %v16151_v16  ;;  %v12406_v1 = vadd.f32 %v12405_v39, %v12404_v51  ;;  %v12518_v59 = vadd.f32 %v12517_v2, %v12516_v57  ;;  %v14519_v16 = vld [vmem:[%s15117_s28 + $0x80] ss:$8 sps:$4 sm:$0xff]  }
 0x2a6   : > { %5365 = vmatmul.mubr.bf16.gmra.mrb[60].mxu1 %v14510_v19  ;;  %5782 = vmatmul.mubr.bf16.gmra.mrb[60].mxu0 %v14513_v36 }
 0x2a7   : > { %v3240_v37 = vadd.f32 %v12406_v1, %v16155_v11  ;;  %v16407_v14 = vadd.f32 %v12515_v58, %v3239_v10  ;;  %5372 = vmatprep.mubr.bf16.mxu1 %v14518_v25  ;;  %5789 = vmatprep.mubr.bf16.mxu0 %v14521_v3  ;;  %v14524_v25 = vld [vmem:[%s15117_s28 + $0x1b0] ss:$8 sps:$4 sm:$0xff]   ;;  %v14532_v1 = vld [vmem:[%s15117_s28 + $0x1c4] ss:$8 sps:$4 sm:$0xff]  }
 0x2a9   : > { %v16409_v33 = vadd.f32 %v12518_v59, %v3240_v37  ;;  %v12407_v55 = vpop.f32.mrb[212].mxu1  ;;  %v12519_v46 = vpop.f32.mrb[212].mxu0  ;;  %v14535_v59 = vld [vmem:[%s15117_s28 + $0xa4] ss:$8 sps:$4 sm:$0xff]  }
 0x2aa   : > { %v12408_v9 = vpop.f32.mrb[213].mxu1  ;;  %v12520_v26 = vpop.f32.mrb[213].mxu0 }
 0x2ab   : > { %v12409_v20 = vadd.f32 %v12408_v9, %v12407_v55  ;;  %v12410_v5 = vpop.f32.mrb[214].mxu1  ;;  %v12521_v52 = vadd.f32 %v12520_v26, %v12519_v46  ;;  %v12522_v32 = vpop.f32.mrb[214].mxu0 }
 0x2ac   : > { %v12411_v11 = vpop.f32.mrb[215].mxu1  ;;  %v12523_v49 = vpop.f32.mrb[215].mxu0 }
 0x2ad   : > { %v3241_v42 = vadd.f32 %v12409_v20, %v16161_v38  ;;  %v12412_v45 = vadd.f32 %v12411_v11, %v12410_v5  ;;  %v12524_v6 = vadd.f32 %v12523_v49, %v12522_v32  ;;  %v14527_v38 = vld [vmem:[%s15117_s28 + $0x90] ss:$8 sps:$4 sm:$0xff]  }
 0x2ae   : > { %5373 = vmatmul.mubr.bf16.gmra.mrb[64].mxu1 %v14516_v13  ;;  %5790 = vmatmul.mubr.bf16.gmra.mrb[64].mxu0 %v14519_v16 }
 0x2af   : > { %v3242_v7 = vadd.f32 %v12412_v45, %v16163_v15  ;;  %v16417_v19 = vadd.f32 %v12521_v52, %v3241_v42  ;;  %5380 = vmatprep.mubr.bf16.mxu1 %v14526_v54  ;;  %5797 = vmatprep.mubr.bf16.mxu0 %v14529_v4  ;;  %v14530_v54 = vld [vmem:[%s15117_s28 + $0x1c0] ss:$8 sps:$4 sm:$0xff]   ;;  %v14540_v45 = vld [vmem:[%s15117_s28 + $0x1d4] ss:$8 sps:$4 sm:$0xff]  }
 0x2b1   : > { %v16419_v36 = vadd.f32 %v12524_v6, %v3242_v7  ;;  %v12413_v8 = vpop.f32.mrb[216].mxu1  ;;  %v12525_v51 = vpop.f32.mrb[216].mxu0  ;;  %v14543_v6 = vld [vmem:[%s15117_s28 + $0xb4] ss:$8 sps:$4 sm:$0xff]  }
 0x2b2   : > { %v12414_v58 = vpop.f32.mrb[217].mxu1  ;;  %v12526_v57 = vpop.f32.mrb[217].mxu0 }
 0x2b3   : > { %v12415_v3 = vadd.f32 %v12414_v58, %v12413_v8  ;;  %v12416_v39 = vpop.f32.mrb[218].mxu1  ;;  %v12527_v2 = vadd.f32 %v12526_v57, %v12525_v51  ;;  %v12528_v10 = vpop.f32.mrb[218].mxu0 }
 0x2b4   : > { %v12417_v15 = vpop.f32.mrb[219].mxu1  ;;  %v12529_v37 = vpop.f32.mrb[219].mxu0 }
 0x2b5   : > { %v3243_v55 = vadd.f32 %v12415_v3, %v16171_v31  ;;  %v12418_v46 = vadd.f32 %v12417_v15, %v12416_v39  ;;  %v12530_v9 = vadd.f32 %v12529_v37, %v12528_v10  ;;  %v14533_v31 = vld [vmem:[%s15117_s28 + $0xa0] ss:$8 sps:$4 sm:$0xff]  }
 0x2b6   : > { %5381 = vmatmul.mubr.bf16.gmra.mrb[68].mxu1 %v14524_v25  ;;  %5798 = vmatmul.mubr.bf16.gmra.mrb[68].mxu0 %v14527_v38 }
 0x2b7   : > { %v3244_v26 = vadd.f32 %v12418_v46, %v16175_v53  ;;  %v16427_v13 = vadd.f32 %v12527_v2, %v3243_v55  ;;  %5388 = vmatprep.mubr.bf16.mxu1 %v14532_v1  ;;  %5805 = vmatprep.mubr.bf16.mxu0 %v14535_v59  ;;  %v14538_v1 = vld [vmem:[%s15117_s28 + $0x1d0] ss:$8 sps:$4 sm:$0xff]   ;;  %v14546_v46 = vld [vmem:[%s15117_s28 + $0x1e4] ss:$8 sps:$4 sm:$0xff]  }
 0x2b9   : > { %v16429_v16 = vadd.f32 %v12530_v9, %v3244_v26  ;;  %v12419_v20 = vpop.f32.mrb[220].mxu1  ;;  %v12531_v5 = vpop.f32.mrb[220].mxu0  ;;  %v14549_v9 = vld [vmem:[%s15117_s28 + $0xc4] ss:$8 sps:$4 sm:$0xff]  }
 0x2ba   : > { %v12420_v52 = vpop.f32.mrb[221].mxu1  ;;  %v12532_v32 = vpop.f32.mrb[221].mxu0 }
 0x2bb   : > { %v12421_v4 = vadd.f32 %v12420_v52, %v12419_v20  ;;  %v12422_v11 = vpop.f32.mrb[222].mxu1  ;;  %v12533_v49 = vadd.f32 %v12532_v32, %v12531_v5  ;;  %v12534_v42 = vpop.f32.mrb[222].mxu0  ;;  %v16449_v32 = vld [vmem:[%s17630_s2] ss:$0 sm:$0xff] }
 0x2bc   : > { %v12423_v53 = vpop.f32.mrb[223].mxu1  ;;  %v12535_v7 = vpop.f32.mrb[223].mxu0 }
 0x2bd   : > { %v3245_v8 = vadd.f32 %v12421_v4, %v16181_v21  ;;  %v12424_v51 = vadd.f32 %v12423_v53, %v12422_v11  ;;  %v12536_v58 = vadd.f32 %v12535_v7, %v12534_v42  ;;  %v14541_v21 = vld [vmem:[%s15117_s28 + $0xb0] ss:$8 sps:$4 sm:$0xff]   ;;  %v14547_v53 = vld [vmem:[%s15117_s28 + $0xc0] ss:$8 sps:$4 sm:$0xff]  }
 0x2be   : > { %5389 = vmatmul.mubr.bf16.gmra.mrb[72].mxu1 %v14530_v54  ;;  %5806 = vmatmul.mubr.bf16.gmra.mrb[72].mxu0 %v14533_v31 }
 0x2bf   : > { %v3246_v57 = vadd.f32 %v12424_v51, %v16183_v22  ;;  %v16437_v25 = vadd.f32 %v12533_v49, %v3245_v8  ;;  %5396 = vmatprep.mubr.bf16.mxu1 %v14540_v45  ;;  %5813 = vmatprep.mubr.bf16.mxu0 %v14543_v6  ;;  %v14544_v6 = vld [vmem:[%s15117_s28 + $0x1e0] ss:$8 sps:$4 sm:$0xff]  }
 0x2c1   : > { %v16439_v38 = vadd.f32 %v12536_v58, %v3246_v57  ;;  %v12553_v3 = vpop.f32.mrb[224].mxu1  ;;  %v12665_v39 = vpop.f32.mrb[224].mxu0  ;;  %v14557_v57 = vld [vmem:[%s15117_s28 + $0x1f4] ss:$8 sps:$4 sm:$0xff]  }
 0x2c2   : > { %v12554_v2 = vpop.f32.mrb[225].mxu1  ;;  %v12666_v10 = vpop.f32.mrb[225].mxu0 }
 0x2c3   : > { %v12555_v59 = vadd.f32 %v12554_v2, %v12553_v3  ;;  %v12556_v15 = vpop.f32.mrb[226].mxu1  ;;  %v12667_v37 = vadd.f32 %v12666_v10, %v12665_v39  ;;  %v12668_v55 = vpop.f32.mrb[226].mxu0  ;;  %v14560_v3 = vld [vmem:[%s15117_s28 + $0xd4] ss:$8 sps:$4 sm:$0xff]  }
 0x2c4   : > { %v12557_v22 = vpop.f32.mrb[227].mxu1  ;;  %v12669_v26 = vpop.f32.mrb[227].mxu0 }
 0x2c5   : > { %v4243_v20 = vadd.f32 %v12555_v59, %v16191_v61  ;;  %v12558_v5 = vadd.f32 %v12557_v22, %v12556_v15  ;;  %v12670_v52 = vadd.f32 %v12669_v26, %v12668_v55 }
 0x2c6   : > { %5397 = vmatmul.mubr.bf16.gmra.mrb[76].mxu1 %v14538_v1  ;;  %5814 = vmatmul.mubr.bf16.gmra.mrb[76].mxu0 %v14541_v21 }
 0x2c7   : > { %v4244_v54 = vadd.f32 %v12558_v5, %v16195_v47  ;;  %v4757_v31 = vadd.f32 %v12667_v37, %v4243_v20  ;;  %5404 = vmatprep.mubr.bf16.mxu1 %v14546_v46  ;;  %5821 = vmatprep.mubr.bf16.mxu0 %v14549_v9  ;;  %v14680_v9 = vld [vmem:[%s17629_s1 + $0x584] ss:$8 sps:$4 sm:$0xff]  }
 0x2c8   : > { %13321 = vmatprep.subr.bf16.mxu0 %v14680_v9 }
 0x2c9   : > { %v4796_v61 = vadd.f32 %v16449_v32, %v4757_v31  ;;  %v4758_v4 = vadd.f32 %v12670_v52, %v4244_v54  ;;  %v12559_v11 = vpop.f32.mrb[228].mxu1  ;;  %v12671_v49 = vpop.f32.mrb[228].mxu0  ;;  %v14555_v54 = vld [vmem:[%s15117_s28 + $0x1f0] ss:$8 sps:$4 sm:$0xff]  }
 0x2ca   : > { %v12560_v42 = vpop.f32.mrb[229].mxu1  ;;  %v12672_v45 = vpop.f32.mrb[229].mxu0  ;;  %v14558_v31 = vld [vmem:[%s15117_s28 + $0xd0] ss:$8 sps:$4 sm:$0xff]  }
 0x2cb   : > { %v4797_v7 = vadd.f32 %v16449_v32, %v4758_v4  ;;  %v12561_v8 = vadd.f32 %v12560_v42, %v12559_v11  ;;  %v12562_v51 = vpop.f32.mrb[230].mxu1  ;;  %v12673_v58 = vadd.f32 %v12672_v45, %v12671_v49  ;;  %v12674_v47 = vpop.f32.mrb[230].mxu0  ;;  %v4828_v39 = vmax.f32 %v4796_v61, 0.0  ;;  %v14567_v42 = vld [vmem:[%s15117_s28 + $0x204] ss:$8 sps:$4 sm:$0xff]  }
 0x2cc   : > { %v12563_v2 = vpop.f32.mrb[231].mxu1  ;;  %v12675_v10 = vpop.f32.mrb[231].mxu0  ;;  %v14570_v45 = vld [vmem:[%s15117_s28 + $0xe4] ss:$8 sps:$4 sm:$0xff]  }
 0x2cd   : > { %v4829_v1 = vmax.f32 %v4797_v7, 0.0  ;;  %v4245_v21 = vadd.f32 %v12561_v8, %v16204_v41  ;;  %v12564_v59 = vadd.f32 %v12563_v2, %v12562_v51  ;;  %v12676_v15 = vadd.f32 %v12675_v10, %v12674_v47 }
 0x2ce   : > { %5405 = vmatmul.mubr.bf16.gmra.mrb[80].mxu1 %v14544_v6  ;;  %5822 = vmatmul.mubr.bf16.gmra.mrb[80].mxu0 %v14547_v53 }
 0x2cf   : > { %v16459_v37 = vpack.c.bf16 %v4829_v1, %v4828_v39  ;;  %v4246_v55 = vadd.f32 %v12564_v59, %v16207_v40  ;;  %v4759_v46 = vadd.f32 %v12673_v58, %v4245_v21  ;;  %5412 = vmatprep.mubr.bf16.mxu1 %v14557_v57  ;;  %5829 = vmatprep.mubr.bf16.mxu0 %v14560_v3 }
 0x2d1   : > { %v4798_v41 = vadd.f32 %v16449_v32, %v4759_v46  ;;  %v4760_v22 = vadd.f32 %v12676_v15, %v4246_v55  ;;  %v12565_v26 = vpop.f32.mrb[232].mxu1  ;;  %v12677_v20 = vpop.f32.mrb[232].mxu0  ;;  %v14565_v15 = vld [vmem:[%s15117_s28 + $0x200] ss:$8 sps:$4 sm:$0xff]  }
 0x2d2   : > { %v12566_v5 = vpop.f32.mrb[233].mxu1  ;;  %v12678_v52 = vpop.f32.mrb[233].mxu0  ;;  %v14568_v55 = vld [vmem:[%s15117_s28 + $0xe0] ss:$8 sps:$4 sm:$0xff]  }
 0x2d3   : > { %v4799_v40 = vadd.f32 %v16449_v32, %v4760_v22  ;;  %v12567_v61 = vadd.f32 %v12566_v5, %v12565_v26  ;;  %v12568_v4 = vpop.f32.mrb[234].mxu1  ;;  %v12679_v11 = vadd.f32 %v12678_v52, %v12677_v20  ;;  %v12680_v49 = vpop.f32.mrb[234].mxu0  ;;  %v4830_v6 = vmax.f32 %v4798_v41, 0.0  ;;  %v14579_v26 = vld [vmem:[%s15117_s28 + $0x214] ss:$8 sps:$4 sm:$0xff]  }
 0x2d4   : > { %v12569_v53 = vpop.f32.mrb[235].mxu1  ;;  %v12681_v7 = vpop.f32.mrb[235].mxu0  ;;  %v14582_v20 = vld [vmem:[%s15117_s28 + $0xf4] ss:$8 sps:$4 sm:$0xff]  }
 0x2d5   : > { %v4831_v8 = vmax.f32 %v4799_v40, 0.0  ;;  %v4247_v51 = vadd.f32 %v12567_v61, %v16214_v48  ;;  %v12570_v58 = vadd.f32 %v12569_v53, %v12568_v4  ;;  %v12682_v47 = vadd.f32 %v12681_v7, %v12680_v49 }
 0x2d6   : > { %5413 = vmatmul.mubr.bf16.gmra.mrb[84].mxu1 %v14555_v54  ;;  %5830 = vmatmul.mubr.bf16.gmra.mrb[84].mxu0 %v14558_v31 }
 0x2d7   : > { %v16472_v57 = vpack.c.bf16 %v4831_v8, %v4830_v6  ;;  %v4248_v3 = vadd.f32 %v12570_v58, %v16216_v34  ;;  %v4761_v39 = vadd.f32 %v12679_v11, %v4247_v51  ;;  %5420 = vmatprep.mubr.bf16.mxu1 %v14567_v42  ;;  %5837 = vmatprep.mubr.bf16.mxu0 %v14570_v45  ;;  %v14577_v51 = vld [vmem:[%s15117_s28 + $0x210] ss:$8 sps:$4 sm:$0xff]  }
 0x2d8   : > { %v14580_v58 = vld [vmem:[%s15117_s28 + $0xf0] ss:$8 sps:$4 sm:$0xff]  }
 0x2d9   : > { %v4800_v2 = vadd.f32 %v16449_v32, %v4761_v39  ;;  %v4762_v10 = vadd.f32 %v12682_v47, %v4248_v3  ;;  %v12571_v1 = vpop.f32.mrb[236].mxu1  ;;  %v12683_v48 = vpop.f32.mrb[236].mxu0 }
 0x2da   : > { %v12572_v21 = vpop.f32.mrb[237].mxu1  ;;  %v12684_v59 = vpop.f32.mrb[237].mxu0 }
 0x2db   : > { %v4801_v46 = vadd.f32 %v16449_v32, %v4762_v10  ;;  %v12573_v9 = vadd.f32 %v12572_v21, %v12571_v1  ;;  %v12574_v41 = vpop.f32.mrb[238].mxu1  ;;  %v12685_v22 = vadd.f32 %v12684_v59, %v12683_v48  ;;  %v12686_v34 = vpop.f32.mrb[238].mxu0  ;;  %v4832_v5 = vmax.f32 %v4800_v2, 0.0  ;;  %v14589_v10 = vld [vmem:[%s15117_s28 + $0x244] ss:$8 sps:$4 sm:$0xff]  }
 0x2dc   : > { %v12575_v52 = vpop.f32.mrb[239].mxu1  ;;  %v12687_v54 = vpop.f32.mrb[239].mxu0  ;;  %v14594_v1 = vld [vmem:[%s15117_s28 + $0x14] ss:$8 sps:$4 sm:$0xff]  }
 0x2dd   : > { %v4833_v31 = vmax.f32 %v4801_v46, 0.0  ;;  %v4249_v40 = vadd.f32 %v12573_v9, %v16224_v60  ;;  %v12576_v61 = vadd.f32 %v12575_v52, %v12574_v41  ;;  %v12688_v4 = vadd.f32 %v12687_v54, %v12686_v34 }
 0x2de   : > { %5421 = vmatmul.mubr.bf16.gmra.mrb[88].mxu1 %v14565_v15  ;;  %5838 = vmatmul.mubr.bf16.gmra.mrb[88].mxu0 %v14568_v55 }
 0x2df   : > { %v16482_v11 = vpack.c.bf16 %v4833_v31, %v4832_v5  ;;  %v4250_v49 = vadd.f32 %v12576_v61, %v16226_v29  ;;  %v4763_v42 = vadd.f32 %v12685_v22, %v4249_v40  ;;  %5428 = vmatprep.mubr.bf16.mxu1 %v14579_v26  ;;  %5845 = vmatprep.mubr.bf16.mxu0 %v14582_v20  ;;  %v14592_v40 = vld [vmem:[%s15117_s28 + $0x10] ss:$8 sps:$4 sm:$0xff]   ;;  %v14598_v61 = vld [vmem:[%s15117_s28 + $0x254] ss:$8 sps:$4 sm:$0xff]  }
 0x2e1   : > { %v4802_v45 = vadd.f32 %v16449_v32, %v4763_v42  ;;  %v4764_v6 = vadd.f32 %v12688_v4, %v4250_v49  ;;  %v12577_v53 = vpop.f32.mrb[240].mxu1  ;;  %v12689_v60 = vpop.f32.mrb[240].mxu0 }
 0x2e2   : > { %v12578_v7 = vpop.f32.mrb[241].mxu1  ;;  %v12690_v8 = vpop.f32.mrb[241].mxu0 }
 0x2e3   : > { %v4803_v47 = vadd.f32 %v16449_v32, %v4764_v6  ;;  %v12579_v3 = vadd.f32 %v12578_v7, %v12577_v53  ;;  %v12580_v39 = vpop.f32.mrb[242].mxu1  ;;  %v12691_v2 = vadd.f32 %v12690_v8, %v12689_v60  ;;  %v12692_v29 = vpop.f32.mrb[242].mxu0  ;;  %v4834_v48 = vmax.f32 %v4802_v45, 0.0  ;;  %v14595_v6 = vld [vmem:[%s17629_s1 + $0x404] ss:$8 sps:$4 sm:$0xff]  }
 0x2e4   : > { %v12581_v21 = vpop.f32.mrb[243].mxu1  ;;  %v12693_v59 = vpop.f32.mrb[243].mxu0  ;;  %v14601_v53 = vld [vmem:[%s15117_s28 + $0x24] ss:$8 sps:$4 sm:$0xff]  }
 0x2e5   : > { %v4835_v15 = vmax.f32 %v4803_v47, 0.0  ;;  %v4251_v55 = vadd.f32 %v12579_v3, %v16234_v12  ;;  %v12582_v46 = vadd.f32 %v12581_v21, %v12580_v39  ;;  %v12694_v9 = vadd.f32 %v12693_v59, %v12692_v29  ;;  %v14587_v12 = vld [vmem:[%s15117_s28 + $0x240] ss:$8 sps:$4 sm:$0xff]   ;;  %v14682_v29 = vld [vmem:[%s17629_s1 + $0x594] ss:$8 sps:$4 sm:$0xff]  }
 0x2e6   : > { %5429 = vmatmul.mubr.bf16.gmra.mrb[92].mxu1 %v14577_v51  ;;  %5846 = vmatmul.mubr.bf16.gmra.mrb[92].mxu0 %v14580_v58  ;;  %v14605_v51 = vld [vmem:[%s17629_s1 + $0x494] ss:$8 sps:$4 sm:$0xff]   ;;  %v14619_v21 = vld [vmem:[%s17629_s1 + $0x4a4] ss:$8 sps:$4 sm:$0xff]  }
 0x2e7   : > { %v16492_v41 = vpack.c.bf16 %v4835_v15, %v4834_v48  ;;  %v4252_v22 = vadd.f32 %v12582_v46, %v16236_v24  ;;  %v4765_v34 = vadd.f32 %v12691_v2, %v4251_v55  ;;  %6206 = vmatprep.mubr.bf16.mxu1 %v14589_v10  ;;  %6719 = vmatprep.mubr.bf16.mxu0 %v14594_v1  ;;  %v14681_v2 = vld [vmem:[%s17629_s1 + $0x504] ss:$8 sps:$4 sm:$0xff]   ;;  %v14596_v46 = vld [vmem:[%s15117_s28 + $0x250] ss:$8 sps:$4 sm:$0xff]  }
 0x2e9   : > { %v4804_v26 = vadd.f32 %v16449_v32, %v4765_v34  ;;  %v4766_v20 = vadd.f32 %v12694_v9, %v4252_v22  ;;  %v12583_v5 = vpop.f32.mrb[244].mxu1  ;;  %v12695_v52 = vpop.f32.mrb[244].mxu0  ;;  %v14686_v9 = vld [vmem:[%s17629_s1 + $0x514] ss:$8 sps:$4 sm:$0xff]  }
 0x2ea   : > { %v12584_v54 = vpop.f32.mrb[245].mxu1  ;;  %v12696_v31 = vpop.f32.mrb[245].mxu0 }
 0x2eb   : > { %v4805_v4 = vadd.f32 %v16449_v32, %v4766_v20  ;;  %v12585_v49 = vadd.f32 %v12584_v54, %v12583_v5  ;;  %v12586_v42 = vpop.f32.mrb[246].mxu1  ;;  %v12697_v45 = vadd.f32 %v12696_v31, %v12695_v52  ;;  %v12698_v24 = vpop.f32.mrb[246].mxu0  ;;  %v4836_v60 = vmax.f32 %v4804_v26, 0.0  ;;  %v14599_v26 = vld [vmem:[%s15117_s28 + $0x20] ss:$8 sps:$4 sm:$0xff]  }
 0x2ec   : > { %v12587_v7 = vpop.f32.mrb[247].mxu1  ;;  %v12699_v8 = vpop.f32.mrb[247].mxu0  ;;  %v14604_v20 = vld [vmem:[%s15117_s28 + $0x264] ss:$8 sps:$4 sm:$0xff]  }
 0x2ed   : > { %v4837_v58 = vmax.f32 %v4805_v4, 0.0  ;;  %v4253_v47 = vadd.f32 %v12585_v49, %v16256_v28  ;;  %v12588_v3 = vadd.f32 %v12587_v7, %v12586_v42  ;;  %v12700_v39 = vadd.f32 %v12699_v8, %v12698_v24  ;;  %v14609_v28 = vld [vmem:[%s17629_s1 + $0x414] ss:$8 sps:$4 sm:$0xff]   ;;  %v14691_v8 = vld [vmem:[%s17629_s1 + $0x524] ss:$8 sps:$4 sm:$0xff]  }
 0x2ee   : > { %6207 = vmatmul.mubr.bf16.vlgmr.msra.gmra.mrb[96].mxu1 %v14587_v12  ;;  %6720 = vmatmul.mubr.bf16.vlgmr.msra.gmra.mrb[96].mxu0 %v14592_v40  ;;  %v14608_v40 = vld [vmem:[%s15117_s28 + $0x34] ss:$8 sps:$4 sm:$0xff]  }
 0x2ef   : > { %v16514_v10 = vpack.c.bf16 %v4837_v58, %v4836_v60  ;;  %v4254_v1 = vadd.f32 %v12588_v3, %v16264_v35  ;;  %v4767_v48 = vadd.f32 %v12697_v45, %v4253_v47  ;;  %13210 = vmatpush3.bf16.msra.mxu1 %v14595_v6  ;;  %6214 = vmatprep.mubr.bf16.mxu1 %v14598_v61  ;;  %v14623_v61 = vld [vmem:[%s17629_s1 + $0x424] ss:$8 sps:$4 sm:$0xff]   ;;  %v14633_v7 = vld [vmem:[%s17629_s1 + $0x4b4] ss:$8 sps:$4 sm:$0xff]   ;;  %v14602_v3 = vld [vmem:[%s15117_s28 + $0x260] ss:$8 sps:$4 sm:$0xff]  }
 0x2f0   : > { %6727 = vmatprep.mubr.bf16.mxu0 %v14601_v53  ;;  %13211 = vmatprep.subr.bf16.mxu1 %v14605_v51  ;;  %v14690_v45 = vld [vmem:[%s17629_s1 + $0x5a4] ss:$8 sps:$4 sm:$0xff]   ;;  %v14692_v51 = vld [vmem:[%s17629_s1 + $0x5b4] ss:$8 sps:$4 sm:$0xff]  }
 0x2f1   : > { %v4806_v59 = vadd.f32 %v16449_v32, %v4767_v48  ;;  %v4768_v15 = vadd.f32 %v12700_v39, %v4254_v1  ;;  %v12589_v35 = vpop.f32.mrb[248].mxu1  ;;  %v12701_v55 = vpop.f32.mrb[248].mxu0  ;;  %13322 = vmatpush3.bf16.msra.mxu0 %v14681_v2  ;;  %v14637_v39 = vld [vmem:[%s17629_s1 + $0x434] ss:$8 sps:$4 sm:$0xff]  }
 0x2f2   : > { %v12590_v22 = vpop.f32.mrb[249].mxu1  ;;  %v12702_v34 = vpop.f32.mrb[249].mxu0  ;;  %13323 = vmatprep.subr.bf16.mxu0 %v14682_v29 }
 0x2f3   : > { %v4807_v5 = vadd.f32 %v16449_v32, %v4768_v15  ;;  %v12591_v52 = vadd.f32 %v12590_v22, %v12589_v35  ;;  %v12592_v12 = vpop.f32.mrb[250].mxu1  ;;  %v12703_v54 = vadd.f32 %v12702_v34, %v12701_v55  ;;  %v12704_v31 = vpop.f32.mrb[250].mxu0  ;;  %13212 = vmatpush3.bf16.msra.mxu1 %v14609_v28  ;;  %v4838_v4 = vmax.f32 %v4806_v59, 0.0  ;;  %v14696_v28 = vld [vmem:[%s17629_s1 + $0x534] ss:$8 sps:$4 sm:$0xff]  }
 0x2f4   : > { %v12593_v49 = vpop.f32.mrb[251].mxu1  ;;  %v12705_v42 = vpop.f32.mrb[251].mxu0  ;;  %13213 = vmatprep.subr.bf16.mxu1 %v14619_v21  ;;  %v14606_v15 = vld [vmem:[%s15117_s28 + $0x30] ss:$8 sps:$4 sm:$0xff]   ;;  %v14612_v35 = vld [vmem:[%s15117_s28 + $0x274] ss:$8 sps:$4 sm:$0xff]  }
 0x2f5   : > { %v4839_v24 = vmax.f32 %v4807_v5, 0.0  ;;  %v4255_v6 = vadd.f32 %v12591_v52, %v16290_v63  ;;  %v12594_v53 = vadd.f32 %v12593_v49, %v12592_v12  ;;  %v12706_v60 = vadd.f32 %v12705_v42, %v12704_v31  ;;  %13324 = vmatpush3.bf16.msra.mxu0 %v14686_v9  ;;  %v14661_v49 = vld [vmem:[%s17629_s1 + $0x4d4] ss:$8 sps:$4 sm:$0xff]   ;;  %v14703_v42 = vld [vmem:[%s17629_s1 + $0x544] ss:$8 sps:$4 sm:$0xff]  }
 0x2f6   : > { %6215 = vmatmul.mubr.bf16.gmra.mrb[100].mxu1 %v14596_v46  ;;  %6728 = vmatmul.mubr.bf16.gmra.mrb[100].mxu0 %v14599_v26  ;;  %v14615_v26 = vld [vmem:[%s15117_s28 + $0x44] ss:$8 sps:$4 sm:$0xff]  }
 0x2f7   : > { %v16548_v58 = vpack.c.bf16 %v4839_v24, %v4838_v4  ;;  %v4256_v63 = vadd.f32 %v12594_v53, %v16295_v18  ;;  %v4769_v47 = vadd.f32 %v12703_v54, %v4255_v6  ;;  %6222 = vmatprep.mubr.bf16.mxu1 %v14604_v20  ;;  %6735 = vmatprep.mubr.bf16.mxu0 %v14608_v40  ;;  %v14647_v18 = vld [vmem:[%s17629_s1 + $0x4c4] ss:$8 sps:$4 sm:$0xff]   ;;  %v14610_v53 = vld [vmem:[%s15117_s28 + $0x270] ss:$8 sps:$4 sm:$0xff]  }
 0x2f8   : > { %13214 = vmatpush3.bf16.msra.mxu1 %v14623_v61  ;;  %13325 = vmatprep.subr.bf16.mxu0 %v14690_v45  ;;  %v14651_v20 = vld [vmem:[%s17629_s1 + $0x444] ss:$8 sps:$4 sm:$0xff]   ;;  %v14704_v45 = vld [vmem:[%s17629_s1 + $0x5d4] ss:$8 sps:$4 sm:$0xff]  }
 0x2f9   : > { %17634 = vst [vmem:[#allocation3_spill] sm:$0xff] %v16548_v58  ;;  %v4808_v2 = vadd.f32 %v16449_v32, %v4769_v47  ;;  %v4770_v29 = vadd.f32 %v12706_v60, %v4256_v63  ;;  %v12595_v1 = vpop.f32.mrb[252].mxu1  ;;  %v12707_v48 = vpop.f32.mrb[252].mxu0  ;;  %13215 = vmatprep.subr.bf16.mxu1 %v14633_v7  ;;  %13326 = vmatpush3.bf16.msra.mxu0 %v14691_v8  ;;  %v14702_v54 = vld [vmem:[%s17629_s1 + $0x5c4] ss:$8 sps:$4 sm:$0xff]  }
 0x2fa   : > { %v12596_v21 = vpop.f32.mrb[253].mxu1  ;;  %v12708_v59 = vpop.f32.mrb[253].mxu0  ;;  %13327 = vmatprep.subr.bf16.mxu0 %v14692_v51  ;;  %v14665_v60 = vld [vmem:[%s17629_s1 + $0x454] ss:$8 sps:$4 sm:$0xff]  }
 0x2fb   : > { %v4809_v55 = vadd.f32 %v16449_v32, %v4770_v29  ;;  %v12597_v46 = vadd.f32 %v12596_v21, %v12595_v1  ;;  %v12598_v9 = vpop.f32.mrb[254].mxu1  ;;  %v12709_v22 = vadd.f32 %v12708_v59, %v12707_v48  ;;  %v12710_v34 = vpop.f32.mrb[254].mxu0  ;;  %v4840_v5 = vmax.f32 %v4808_v2, 0.0  ;;  %v14708_v47 = vld [vmem:[%s17629_s1 + $0x554] ss:$8 sps:$4 sm:$0xff]  }
 0x2fc   : > { %v12599_v52 = vpop.f32.mrb[255].mxu1  ;;  %v12711_v12 = vpop.f32.mrb[255].mxu0  ;;  %13216 = vmatpush3.bf16.msra.mxu1 %v14637_v39  ;;  %v14613_v2 = vld [vmem:[%s15117_s28 + $0x40] ss:$8 sps:$4 sm:$0xff]   ;;  %v14618_v29 = vld [vmem:[%s15117_s28 + $0x284] ss:$8 sps:$4 sm:$0xff]  }
 0x2fd   : > { %v4841_v31 = vmax.f32 %v4809_v55, 0.0  ;;  %v4257_v40 = vadd.f32 %v12597_v46, %v16324_v23  ;;  %v12600_v61 = vadd.f32 %v12599_v52, %v12598_v9  ;;  %v12712_v4 = vadd.f32 %v12711_v12, %v12710_v34  ;;  %13217 = vmatprep.subr.bf16.mxu1 %v14647_v18  ;;  %13328 = vmatpush3.bf16.msra.mxu0 %v14696_v28  ;;  %v14622_v59 = vld [vmem:[%s15117_s28 + $0x54] ss:$8 sps:$4 sm:$0xff]   ;;  %v14712_v9 = vld [vmem:[%s17629_s1 + $0x5e4] ss:$8 sps:$4 sm:$0xff]  }
 0x2fe   : > { %6223 = vmatmul.mubr.bf16.gmra.mrb[104].mxu1 %v14602_v3  ;;  %6736 = vmatmul.mubr.bf16.gmra.mrb[104].mxu0 %v14606_v15  ;;  %v14679_v15 = vld [vmem:[%s17629_s1 + $0x464] ss:$8 sps:$4 sm:$0xff]   ;;  %v14714_v12 = vld [vmem:[%s17629_s1 + $0x5f4] ss:$8 sps:$4 sm:$0xff]  }
 0x2ff   : > { %v16582_v24 = vpack.c.bf16 %v4841_v31, %v4840_v5  ;;  %v4258_v23 = vadd.f32 %v12600_v61, %v16329_v43  ;;  %v4771_v6 = vadd.f32 %v12709_v22, %v4257_v40  ;;  %6230 = vmatprep.mubr.bf16.mxu1 %v14612_v35  ;;  %6743 = vmatprep.mubr.bf16.mxu0 %v14615_v26  ;;  %v14675_v43 = vld [vmem:[%s17629_s1 + $0x4e4] ss:$8 sps:$4 sm:$0xff]   ;;  %v14697_v5 = vld [vmem:[%s17629_s1 + $0x4f4] ss:$8 sps:$4 sm:$0xff]  }
 0x300   : > { %13218 = vmatpush3.bf16.msra.mxu1 %v14651_v20  ;;  %13329 = vmatprep.subr.bf16.mxu0 %v14702_v54  ;;  %v14713_v52 = vld [vmem:[%s17629_s1 + $0x564] ss:$8 sps:$4 sm:$0xff]   ;;  %v14701_v40 = vld [vmem:[%s17629_s1 + $0x474] ss:$8 sps:$4 sm:$0xff]  }
 0x301   : > { %17635 = vst [vmem:[#allocation4_spill] sm:$0xff] %v16582_v24  ;;  %v4810_v7 = vadd.f32 %v16449_v32, %v4771_v6  ;;  %v4772_v8 = vadd.f32 %v12712_v4, %v4258_v23  ;;  %v12601_v51 = vpop.f32.mrb[0].mxu1  ;;  %v12713_v63 = vpop.f32.mrb[0].mxu0  ;;  %13219 = vmatprep.subr.bf16.mxu1 %v14661_v49  ;;  %13330 = vmatpush3.bf16.msra.mxu0 %v14703_v42 }
 0x302   : > { %v12602_v3 = vpop.f32.mrb[1].mxu1  ;;  %v12714_v39 = vpop.f32.mrb[1].mxu0  ;;  %13331 = vmatprep.subr.bf16.mxu0 %v14704_v45  ;;  %v14719_v45 = vld [vmem:[%s17629_s1 + $0x684] ss:$8 sps:$4 sm:$0xff]  }
 0x303   : > { %v4811_v1 = vadd.f32 %v16449_v32, %v4772_v8  ;;  %v12603_v48 = vadd.f32 %v12602_v3, %v12601_v51  ;;  %v12604_v18 = vpop.f32.mrb[2].mxu1  ;;  %v12715_v28 = vadd.f32 %v12714_v39, %v12713_v63  ;;  %v12716_v21 = vpop.f32.mrb[2].mxu0  ;;  %v4842_v35 = vmax.f32 %v4810_v7, 0.0  ;;  %v14629_v3 = vld [vmem:[%s15117_s28 + $0x64] ss:$8 sps:$4 sm:$0xff]  }
 0x304   : > { %v12605_v55 = vpop.f32.mrb[3].mxu1  ;;  %v12717_v46 = vpop.f32.mrb[3].mxu0  ;;  %13220 = vmatpush3.bf16.msra.mxu1 %v14665_v60  ;;  %v14620_v60 = vld [vmem:[%s15117_s28 + $0x50] ss:$8 sps:$4 sm:$0xff]  }
 0x305   : > { %v4843_v22 = vmax.f32 %v4811_v1, 0.0  ;;  %v4259_v34 = vadd.f32 %v12603_v48, %v16358_v17  ;;  %v12606_v26 = vadd.f32 %v12605_v55, %v12604_v18  ;;  %v12718_v20 = vadd.f32 %v12717_v46, %v12716_v21  ;;  %13221 = vmatprep.subr.bf16.mxu1 %v14675_v43  ;;  %13332 = vmatpush3.bf16.msra.mxu0 %v14708_v47  ;;  %v14626_v47 = vld [vmem:[%s15117_s28 + $0x294] ss:$8 sps:$4 sm:$0xff]  }
 0x306   : > { %6231 = vmatmul.mubr.bf16.gmra.mrb[108].mxu1 %v14610_v53  ;;  %6744 = vmatmul.mubr.bf16.gmra.mrb[108].mxu0 %v14613_v2  ;;  %v14616_v53 = vld [vmem:[%s15117_s28 + $0x280] ss:$8 sps:$4 sm:$0xff]  }
 0x307   : > { %v16616_v54 = vpack.c.bf16 %v4843_v22, %v4842_v35  ;;  %v4260_v17 = vadd.f32 %v12606_v26, %v16363_v0  ;;  %v4773_v31 = vadd.f32 %v12715_v28, %v4259_v34  ;;  %6238 = vmatprep.mubr.bf16.mxu1 %v14618_v29  ;;  %6751 = vmatprep.mubr.bf16.mxu0 %v14622_v59  ;;  %v14718_v0 = vld [vmem:[%s17629_s1 + $0x574] ss:$8 sps:$4 sm:$0xff]   ;;  %v14624_v34 = vld [vmem:[%s15117_s28 + $0x290] ss:$8 sps:$4 sm:$0xff]   ;;  %v14627_v26 = vld [vmem:[%s15117_s28 + $0x60] ss:$8 sps:$4 sm:$0xff]  }
 0x308   : > { %13222 = vmatpush3.bf16.msra.mxu1 %v14679_v15  ;;  %13333 = vmatprep.subr.bf16.mxu0 %v14712_v9 }
 0x309   : > { %17636 = vst [vmem:[#allocation5_spill] sm:$0xff] %v16616_v54  ;;  %v4812_v61 = vadd.f32 %v16449_v32, %v4773_v31  ;;  %v4774_v4 = vadd.f32 %v12718_v20, %v4260_v17  ;;  %v12607_v49 = vpop.f32.mrb[4].mxu1  ;;  %v12719_v42 = vpop.f32.mrb[4].mxu0  ;;  %13223 = vmatprep.subr.bf16.mxu1 %v14697_v5  ;;  %13334 = vmatpush3.bf16.msra.mxu0 %v14713_v52  ;;  %v14632_v17 = vld [vmem:[%s15117_s28 + $0x2a4] ss:$8 sps:$4 sm:$0xff]  }
 0x30a   : > { %v12608_v23 = vpop.f32.mrb[5].mxu1  ;;  %v12720_v6 = vpop.f32.mrb[5].mxu0  ;;  %13335 = vmatprep.subr.bf16.mxu0 %v14714_v12  ;;  %v14636_v31 = vld [vmem:[%s15117_s28 + $0x74] ss:$8 sps:$4 sm:$0xff]  }
 0x30b   : > { %v4813_v7 = vadd.f32 %v16449_v32, %v4774_v4  ;;  %v12609_v8 = vadd.f32 %v12608_v23, %v12607_v49  ;;  %v12610_v51 = vpop.f32.mrb[6].mxu1  ;;  %v12721_v63 = vadd.f32 %v12720_v6, %v12719_v42  ;;  %v12722_v43 = vpop.f32.mrb[6].mxu0  ;;  %v4844_v39 = vmax.f32 %v4812_v61, 0.0 }
 0x30c   : > { %v12611_v2 = vpop.f32.mrb[7].mxu1  ;;  %v12723_v29 = vpop.f32.mrb[7].mxu0  ;;  %13224 = vmatpush3.bf16.msra.mxu1 %v14701_v40 }
 0x30d   : > { %v4845_v1 = vmax.f32 %v4813_v7, 0.0  ;;  %v4261_v48 = vadd.f32 %v12609_v8, %v16377_v44  ;;  %v12612_v18 = vadd.f32 %v12611_v2, %v12610_v51  ;;  %v12724_v28 = vadd.f32 %v12723_v29, %v12722_v43  ;;  %13336 = vmatpush3.bf16.msra.mxu0 %v14718_v0  ;;  %13433 = vmatprep.subr.bf16.mxu1 %v14719_v45  ;;  %v14630_v43 = vld [vmem:[%s15117_s28 + $0x2a0] ss:$8 sps:$4 sm:$0xff]  }
 0x30e   : > { %6239 = vmatmul.mubr.bf16.gmra.mrb[112].mxu1 %v14616_v53  ;;  %6752 = vmatmul.mubr.bf16.gmra.mrb[112].mxu0 %v14620_v60 }
 0x30f   : > { %v16635_v21 = vpack.c.bf16 %v4845_v1, %v4844_v39  ;;  %v4262_v59 = vadd.f32 %v12612_v18, %v16379_v56  ;;  %v4775_v15 = vadd.f32 %v12721_v63, %v4261_v48  ;;  %6246 = vmatprep.mubr.bf16.mxu1 %v14626_v47  ;;  %6759 = vmatprep.mubr.bf16.mxu0 %v14629_v3  ;;  %v14634_v47 = vld [vmem:[%s15117_s28 + $0x70] ss:$8 sps:$4 sm:$0xff]   ;;  %v14640_v1 = vld [vmem:[%s15117_s28 + $0x2b4] ss:$8 sps:$4 sm:$0xff]   ;;  %v14643_v48 = vld [vmem:[%s15117_s28 + $0x84] ss:$8 sps:$4 sm:$0xff]  }
 0x311   : > { %17637 = vst [vmem:[#allocation6_spill] sm:$0xff] %v16635_v21  ;;  %v4814_v35 = vadd.f32 %v16449_v32, %v4775_v15  ;;  %v4776_v44 = vadd.f32 %v12724_v28, %v4262_v59  ;;  %v12613_v55 = vpop.f32.mrb[8].mxu1  ;;  %v12725_v46 = vpop.f32.mrb[8].mxu0 }
 0x312   : > { %v12614_v9 = vpop.f32.mrb[9].mxu1  ;;  %v12726_v22 = vpop.f32.mrb[9].mxu0 }
 0x313   : > { %v4815_v20 = vadd.f32 %v16449_v32, %v4776_v44  ;;  %v12615_v5 = vadd.f32 %v12614_v9, %v12613_v55  ;;  %v12616_v52 = vpop.f32.mrb[10].mxu1  ;;  %v12727_v12 = vadd.f32 %v12726_v22, %v12725_v46  ;;  %v12728_v56 = vpop.f32.mrb[10].mxu0  ;;  %v4846_v40 = vmax.f32 %v4814_v35, 0.0 }
 0x314   : > { %v12617_v61 = vpop.f32.mrb[11].mxu1  ;;  %v12729_v4 = vpop.f32.mrb[11].mxu0 }
 0x315   : > { %v4847_v49 = vmax.f32 %v4815_v20, 0.0  ;;  %v4263_v42 = vadd.f32 %v12615_v5, %v16387_v30  ;;  %v12618_v0 = vadd.f32 %v12617_v61, %v12616_v52  ;;  %v12730_v45 = vadd.f32 %v12729_v4, %v12728_v56  ;;  %v14641_v56 = vld [vmem:[%s15117_s28 + $0x80] ss:$8 sps:$4 sm:$0xff]   ;;  %v14646_v4 = vld [vmem:[%s15117_s28 + $0x2c4] ss:$8 sps:$4 sm:$0xff]  }
 0x316   : > { %6247 = vmatmul.mubr.bf16.gmra.mrb[116].mxu1 %v14624_v34  ;;  %6760 = vmatmul.mubr.bf16.gmra.mrb[116].mxu0 %v14627_v26 }
 0x317   : > { %v16645_v23 = vpack.c.bf16 %v4847_v49, %v4846_v40  ;;  %v4264_v6 = vadd.f32 %v12618_v0, %v16389_v27  ;;  %v4777_v53 = vadd.f32 %v12727_v12, %v4263_v42  ;;  %6254 = vmatprep.mubr.bf16.mxu1 %v14632_v17  ;;  %6767 = vmatprep.mubr.bf16.mxu0 %v14636_v31  ;;  %v14638_v12 = vld [vmem:[%s15117_s28 + $0x2b0] ss:$8 sps:$4 sm:$0xff]   ;;  %v14650_v49 = vld [vmem:[%s15117_s28 + $0x94] ss:$8 sps:$4 sm:$0xff]  }
 0x319   : > { %17638 = vst [vmem:[#allocation7_spill] sm:$0xff] %v16645_v23  ;;  %v4816_v60 = vadd.f32 %v16449_v32, %v4777_v53  ;;  %v4778_v7 = vadd.f32 %v12730_v45, %v4264_v6  ;;  %v12619_v8 = vpop.f32.mrb[12].mxu1  ;;  %v12731_v30 = vpop.f32.mrb[12].mxu0 }
 0x31a   : > { %v12620_v51 = vpop.f32.mrb[13].mxu1  ;;  %v12732_v63 = vpop.f32.mrb[13].mxu0 }
 0x31b   : > { %v4817_v3 = vadd.f32 %v16449_v32, %v4778_v7  ;;  %v12621_v39 = vadd.f32 %v12620_v51, %v12619_v8  ;;  %v12622_v2 = vpop.f32.mrb[14].mxu1  ;;  %v12733_v29 = vadd.f32 %v12732_v63, %v12731_v30  ;;  %v12734_v27 = vpop.f32.mrb[14].mxu0  ;;  %v4848_v18 = vmax.f32 %v4816_v60, 0.0 }
 0x31c   : > { %v12623_v28 = vpop.f32.mrb[15].mxu1  ;;  %v12735_v59 = vpop.f32.mrb[15].mxu0 }
 0x31d   : > { %v4849_v15 = vmax.f32 %v4817_v3, 0.0  ;;  %v4265_v35 = vadd.f32 %v12621_v39, %v16397_v50  ;;  %v12624_v44 = vadd.f32 %v12623_v28, %v12622_v2  ;;  %v12736_v55 = vadd.f32 %v12735_v59, %v12734_v27  ;;  %v14644_v2 = vld [vmem:[%s15117_s28 + $0x2c0] ss:$8 sps:$4 sm:$0xff]   ;;  %v16673_v28 = vld [vmem:[%s15117_s28 + $0x2d4] ss:$8 sps:$4 sm:$0xff]  }
 0x31e   : > { %6255 = vmatmul.mubr.bf16.gmra.mrb[120].mxu1 %v14630_v43  ;;  %6768 = vmatmul.mubr.bf16.gmra.mrb[120].mxu0 %v14634_v47  ;;  %v14657_v59 = vld [vmem:[%s15117_s28 + $0xa4] ss:$8 sps:$4 sm:$0xff]  }
 0x31f   : > { %v16655_v46 = vpack.c.bf16 %v4849_v15, %v4848_v18  ;;  %v4266_v9 = vadd.f32 %v12624_v44, %v16399_v62  ;;  %v4779_v22 = vadd.f32 %v12733_v29, %v4265_v35  ;;  %6262 = vmatprep.mubr.bf16.mxu1 %v14640_v1  ;;  %6775 = vmatprep.mubr.bf16.mxu0 %v14643_v48  ;;  %v14648_v29 = vld [vmem:[%s15117_s28 + $0x90] ss:$8 sps:$4 sm:$0xff]  }
 0x321   : > { %17639 = vst [vmem:[#allocation8_spill] sm:$0xff] %v16655_v46  ;;  %v4818_v34 = vadd.f32 %v16449_v32, %v4779_v22  ;;  %v4780_v26 = vadd.f32 %v12736_v55, %v4266_v9  ;;  %v12625_v20 = vpop.f32.mrb[16].mxu1  ;;  %v12737_v50 = vpop.f32.mrb[16].mxu0  ;;  %v14755_v46 = vld [vmem:[%s15117_s28 + $0x2a0] ss:$8 sps:$4 sm:$0xff]  }
 0x322   : > { %v12626_v5 = vpop.f32.mrb[17].mxu1  ;;  %v12738_v52 = vpop.f32.mrb[17].mxu0 }
 0x323   : > { %v4819_v17 = vadd.f32 %v16449_v32, %v4780_v26  ;;  %v12627_v31 = vadd.f32 %v12626_v5, %v12625_v20  ;;  %v12628_v40 = vpop.f32.mrb[18].mxu1  ;;  %v12739_v61 = vadd.f32 %v12738_v52, %v12737_v50  ;;  %v12740_v62 = vpop.f32.mrb[18].mxu0  ;;  %v4850_v42 = vmax.f32 %v4818_v34, 0.0 }
 0x324   : > { %v12629_v0 = vpop.f32.mrb[19].mxu1  ;;  %v12741_v45 = vpop.f32.mrb[19].mxu0 }
 0x325   : > { %v4851_v6 = vmax.f32 %v4819_v17, 0.0  ;;  %v4267_v53 = vadd.f32 %v12627_v31, %v16407_v14  ;;  %v12630_v60 = vadd.f32 %v12629_v0, %v12628_v40  ;;  %v12742_v7 = vadd.f32 %v12741_v45, %v12740_v62  ;;  %v16683_v31 = vld [vmem:[%s15117_s28 + $0x2d0] ss:$8 sps:$4 sm:$0xff]   ;;  %v14655_v40 = vld [vmem:[%s15117_s28 + $0xa0] ss:$8 sps:$4 sm:$0xff]  }
 0x326   : > { %6263 = vmatmul.mubr.bf16.gmra.mrb[124].mxu1 %v14638_v12  ;;  %6776 = vmatmul.mubr.bf16.gmra.mrb[124].mxu0 %v14641_v56  ;;  %v14664_v0 = vld [vmem:[%s15117_s28 + $0xb4] ss:$8 sps:$4 sm:$0xff]  }
 0x327   : > { %v16665_v8 = vpack.c.bf16 %v4851_v6, %v4850_v42  ;;  %v4268_v30 = vadd.f32 %v12630_v60, %v16409_v33  ;;  %v4781_v51 = vadd.f32 %v12739_v61, %v4267_v53  ;;  %6270 = vmatprep.mubr.bf16.mxu1 %v14646_v4  ;;  %6783 = vmatprep.mubr.bf16.mxu0 %v14650_v49  ;;  %v16688_v42 = vld [vmem:[%s15117_s28 + $0x2e4] ss:$8 sps:$4 sm:$0xff]  }
 0x329   : > { %17640 = vst [vmem:[#allocation9_spill] sm:$0xff] %v16665_v8  ;;  %v4820_v63 = vadd.f32 %v16449_v32, %v4781_v51  ;;  %v4782_v43 = vadd.f32 %v12742_v7, %v4268_v30  ;;  %v12631_v47 = vpop.f32.mrb[20].mxu1  ;;  %v12743_v14 = vpop.f32.mrb[20].mxu0 }
 0x32a   : > { %v12632_v3 = vpop.f32.mrb[21].mxu1  ;;  %v12744_v39 = vpop.f32.mrb[21].mxu0 }
 0x32b   : > { %v4821_v27 = vadd.f32 %v16449_v32, %v4782_v43  ;;  %v12633_v1 = vadd.f32 %v12632_v3, %v12631_v47  ;;  %v12634_v48 = vpop.f32.mrb[22].mxu1  ;;  %v12745_v18 = vadd.f32 %v12744_v39, %v12743_v14  ;;  %v12746_v33 = vpop.f32.mrb[22].mxu0  ;;  %v4852_v15 = vmax.f32 %v4820_v63, 0.0 }
 0x32c   : > { %v12635_v35 = vpop.f32.mrb[23].mxu1  ;;  %v12747_v44 = vpop.f32.mrb[23].mxu0 }
 0x32d   : > { %v4853_v55 = vmax.f32 %v4821_v27, 0.0  ;;  %v4269_v9 = vadd.f32 %v12633_v1, %v16417_v19  ;;  %v12636_v22 = vadd.f32 %v12635_v35, %v12634_v48  ;;  %v12748_v34 = vadd.f32 %v12747_v44, %v12746_v33  ;;  %v16699_v27 = vld [vmem:[%s15117_s28 + $0x2e0] ss:$8 sps:$4 sm:$0xff]   ;;  %v14662_v1 = vld [vmem:[%s15117_s28 + $0xb0] ss:$8 sps:$4 sm:$0xff]  }
 0x32e   : > { %6271 = vmatmul.mubr.bf16.gmra.mrb[128].mxu1 %v14644_v2  ;;  %6784 = vmatmul.mubr.bf16.gmra.mrb[128].mxu0 %v14648_v29  ;;  %v14671_v35 = vld [vmem:[%s15117_s28 + $0xc4] ss:$8 sps:$4 sm:$0xff]  }
 0x32f   : > { %v16677_v26 = vpack.c.bf16 %v4853_v55, %v4852_v15  ;;  %v4270_v20 = vadd.f32 %v12636_v22, %v16419_v36  ;;  %v4783_v50 = vadd.f32 %v12745_v18, %v4269_v9  ;;  %6278 = vmatprep.mubr.bf16.mxu1 %v16673_v28  ;;  %6791 = vmatprep.mubr.bf16.mxu0 %v14657_v59  ;;  %v16704_v15 = vld [vmem:[%s15117_s28 + $0x2f4] ss:$8 sps:$4 sm:$0xff]  }
 0x331   : > { %17641 = vst [vmem:[#allocation10_spill] sm:$0xff] %v16677_v26  ;;  %v4822_v5 = vadd.f32 %v16449_v32, %v4783_v50  ;;  %v4784_v52 = vadd.f32 %v12748_v34, %v4270_v20  ;;  %v12637_v19 = vpop.f32.mrb[24].mxu1  ;;  %v12749_v12 = vpop.f32.mrb[24].mxu0 }
 0x332   : > { %v12638_v56 = vpop.f32.mrb[25].mxu1  ;;  %v12750_v17 = vpop.f32.mrb[25].mxu0 }
 0x333   : > { %v4823_v61 = vadd.f32 %v16449_v32, %v4784_v52  ;;  %v12639_v62 = vadd.f32 %v12638_v56, %v12637_v19  ;;  %v12640_v36 = vpop.f32.mrb[26].mxu1  ;;  %v12751_v4 = vadd.f32 %v12750_v17, %v12749_v12  ;;  %v12752_v49 = vpop.f32.mrb[26].mxu0  ;;  %v4854_v45 = vmax.f32 %v4822_v5, 0.0 }
 0x334   : > { %v12641_v6 = vpop.f32.mrb[27].mxu1  ;;  %v12753_v53 = vpop.f32.mrb[27].mxu0 }
 0x335   : > { %v4855_v60 = vmax.f32 %v4823_v61, 0.0  ;;  %v4271_v7 = vadd.f32 %v12639_v62, %v16427_v13  ;;  %v12642_v30 = vadd.f32 %v12641_v6, %v12640_v36  ;;  %v12754_v51 = vadd.f32 %v12753_v53, %v12752_v49  ;;  %v16715_v62 = vld [vmem:[%s15117_s28 + $0x2f0] ss:$8 sps:$4 sm:$0xff]   ;;  %v14669_v36 = vld [vmem:[%s15117_s28 + $0xc0] ss:$8 sps:$4 sm:$0xff]  }
 0x336   : > { %6279 = vmatmul.mubr.bf16.gmra.mrb[132].mxu1 %v16683_v31  ;;  %6792 = vmatmul.mubr.bf16.gmra.mrb[132].mxu0 %v14655_v40  ;;  %v16722_v53 = vld [vmem:[%s15117_s28 + $0x304] ss:$8 sps:$4 sm:$0xff]  }
 0x337   : > { %v16693_v63 = vpack.c.bf16 %v4855_v60, %v4854_v45  ;;  %v4272_v43 = vadd.f32 %v12642_v30, %v16429_v16  ;;  %v4785_v47 = vadd.f32 %v12751_v4, %v4271_v7  ;;  %6286 = vmatprep.mubr.bf16.mxu1 %v16688_v42  ;;  %6799 = vmatprep.mubr.bf16.mxu0 %v14664_v0 }
 0x339   : > { %17642 = vst [vmem:[#allocation11_spill] sm:$0xff] %v16693_v63  ;;  %v4824_v14 = vadd.f32 %v16449_v32, %v4785_v47  ;;  %v4786_v13 = vadd.f32 %v12754_v51, %v4272_v43  ;;  %v12643_v3 = vpop.f32.mrb[28].mxu1  ;;  %v12755_v39 = vpop.f32.mrb[28].mxu0 }
 0x33a   : > { %v12644_v2 = vpop.f32.mrb[29].mxu1  ;;  %v12756_v29 = vpop.f32.mrb[29].mxu0 }
 0x33b   : > { %v4825_v48 = vadd.f32 %v16449_v32, %v4786_v13  ;;  %v12645_v18 = vadd.f32 %v12644_v2, %v12643_v3  ;;  %v12646_v16 = vpop.f32.mrb[30].mxu1  ;;  %v12757_v33 = vadd.f32 %v12756_v29, %v12755_v39  ;;  %v12758_v59 = vpop.f32.mrb[30].mxu0  ;;  %v4856_v44 = vmax.f32 %v4824_v14, 0.0 }
 0x33c   : > { %v12647_v55 = vpop.f32.mrb[31].mxu1  ;;  %v12759_v9 = vpop.f32.mrb[31].mxu0 }
 0x33d   : > { %v4857_v22 = vmax.f32 %v4825_v48, 0.0  ;;  %v4273_v34 = vadd.f32 %v12645_v18, %v16437_v25  ;;  %v12648_v20 = vadd.f32 %v12647_v55, %v12646_v16  ;;  %v12760_v50 = vadd.f32 %v12759_v9, %v12758_v59  ;;  %v16734_v48 = vld [vmem:[%s15117_s28 + $0x300] ss:$8 sps:$4 sm:$0xff]   ;;  %v14676_v18 = vld [vmem:[%s15117_s28 + $0xd0] ss:$8 sps:$4 sm:$0xff]  }
 0x33e   : > { %6287 = vmatmul.mubr.bf16.gmra.mrb[136].mxu1 %v16699_v27  ;;  %6800 = vmatmul.mubr.bf16.gmra.mrb[136].mxu0 %v14662_v1  ;;  %v14689_v55 = vld [vmem:[%s15117_s28 + $0xe4] ss:$8 sps:$4 sm:$0xff]  }
 0x33f   : > { %v16709_v5 = vpack.c.bf16 %v4857_v22, %v4856_v44  ;;  %v4274_v52 = vadd.f32 %v12648_v20, %v16439_v38  ;;  %v4787_v19 = vadd.f32 %v12757_v33, %v4273_v34  ;;  %6294 = vmatprep.mubr.bf16.mxu1 %v16704_v15  ;;  %6807 = vmatprep.mubr.bf16.mxu0 %v14671_v35  ;;  %v15018_v38 = vld [vmem:[%s17630_s2] ss:$0 sm:$0xff]  ;;  %v16738_v44 = vld [vmem:[%s15117_s28 + $0x314] ss:$8 sps:$4 sm:$0xff]  }
 0x341   : > { %17643 = vst [vmem:[#allocation12_spill] sm:$0xff] %v16709_v5  ;;  %v4826_v12 = vadd.f32 %v16449_v32, %v4787_v19  ;;  %v4788_v25 = vadd.f32 %v12760_v50, %v4274_v52  ;;  %v12777_v56 = vpop.f32.mrb[32].mxu1  ;;  %v12889_v17 = vpop.f32.mrb[32].mxu0  ;;  %v14678_v32 = vld [vmem:[%s15117_s28 + $0xd4] ss:$8 sps:$4 sm:$0xff]  }
 0x342   : > { %v12778_v40 = vpop.f32.mrb[33].mxu1  ;;  %v12890_v61 = vpop.f32.mrb[33].mxu0  ;;  %v14793_v52 = vld [vmem:[%s17629_s1 + $0x784] ss:$8 sps:$4 sm:$0xff]  }
 0x343   : > { %v4827_v4 = vadd.f32 %v15018_v38, %v4788_v25  ;;  %v12779_v49 = vadd.f32 %v12778_v40, %v12777_v56  ;;  %v12891_v0 = vadd.f32 %v12890_v61, %v12889_v17  ;;  %v12780_v45 = vpop.f32.mrb[34].mxu1  ;;  %v12892_v6 = vpop.f32.mrb[34].mxu0  ;;  %v4858_v60 = vmax.f32 %v4826_v12, 0.0  ;;  %13545 = vmatprep.subr.bf16.mxu0 %v14793_v52  ;;  %v16751_v40 = vld [vmem:[%s15117_s28 + $0x310] ss:$8 sps:$4 sm:$0xff]  }
 0x344   : > { %v12781_v7 = vpop.f32.mrb[35].mxu1  ;;  %v12893_v30 = vpop.f32.mrb[35].mxu0  ;;  %v14687_v61 = vld [vmem:[%s15117_s28 + $0xe0] ss:$8 sps:$4 sm:$0xff]  }
 0x345   : > { %v4859_v51 = vmax.f32 %v4827_v4, 0.0  ;;  %v12782_v43 = vadd.f32 %v12781_v7, %v12780_v45  ;;  %v12894_v47 = vadd.f32 %v12893_v30, %v12892_v6  ;;  %v16725_v14 = vadd.f32 %v12891_v0, %v12779_v49  ;;  %v16755_v0 = vld [vmem:[%s15117_s28 + $0x324] ss:$8 sps:$4 sm:$0xff]   ;;  %v14700_v45 = vld [vmem:[%s15117_s28 + $0xf4] ss:$8 sps:$4 sm:$0xff]  }
 0x346   : > { %6295 = vmatmul.mubr.bf16.gmra.mrb[140].mxu1 %v16715_v62  ;;  %6808 = vmatmul.mubr.bf16.gmra.mrb[140].mxu0 %v14669_v36 }
 0x347   : > { %v16728_v13 = vpack.c.bf16 %v4859_v51, %v4858_v60  ;;  %6302 = vmatprep.mubr.bf16.mxu1 %v16722_v53  ;;  %6815 = vmatprep.mubr.bf16.mxu0 %v14678_v32  ;;  %v16731_v3 = vadd.f32 %v12894_v47, %v12782_v43 }
 0x349   : > { %17644 = vst [vmem:[#allocation13_spill] sm:$0xff] %v16728_v13  ;;  %v12783_v39 = vpop.f32.mrb[36].mxu1  ;;  %v12895_v2 = vpop.f32.mrb[36].mxu0 }
 0x34a   : > { %v12784_v29 = vpop.f32.mrb[37].mxu1  ;;  %v12896_v1 = vpop.f32.mrb[37].mxu0 }
 0x34b   : > { %v12785_v16 = vadd.f32 %v12784_v29, %v12783_v39  ;;  %v12897_v33 = vadd.f32 %v12896_v1, %v12895_v2  ;;  %v12786_v59 = vpop.f32.mrb[38].mxu1  ;;  %v12898_v35 = vpop.f32.mrb[38].mxu0  ;;  %v16765_v29 = vld [vmem:[%s15117_s28 + $0x320] ss:$8 sps:$4 sm:$0xff]   ;;  %v14698_v1 = vld [vmem:[%s15117_s28 + $0xf0] ss:$8 sps:$4 sm:$0xff]  }
 0x34c   : > { %v12787_v9 = vpop.f32.mrb[39].mxu1  ;;  %v12899_v22 = vpop.f32.mrb[39].mxu0 }
 0x34d   : > { %v12788_v34 = vadd.f32 %v12787_v9, %v12786_v59  ;;  %v12900_v20 = vadd.f32 %v12899_v22, %v12898_v35  ;;  %v16741_v50 = vadd.f32 %v12897_v33, %v12785_v16  ;;  %v16769_v35 = vld [vmem:[%s15117_s28 + $0x334] ss:$8 sps:$4 sm:$0xff]  }
 0x34e   : > { %6303 = vmatmul.mubr.bf16.gmra.mrb[144].mxu1 %v16734_v48  ;;  %6816 = vmatmul.mubr.bf16.gmra.mrb[144].mxu0 %v14676_v18 }
 0x34f   : > { %6310 = vmatprep.mubr.bf16.mxu1 %v16738_v44  ;;  %6823 = vmatprep.mubr.bf16.mxu0 %v14689_v55  ;;  %v16748_v19 = vadd.f32 %v12900_v20, %v12788_v34  ;;  %v14711_v55 = vld [vmem:[%s15117_s28 + $0x104] ss:$8 sps:$4 sm:$0xff]  }
 0x351   : > { %v12789_v12 = vpop.f32.mrb[40].mxu1  ;;  %v12901_v25 = vpop.f32.mrb[40].mxu0 }
 0x352   : > { %v12790_v56 = vpop.f32.mrb[41].mxu1  ;;  %v12902_v17 = vpop.f32.mrb[41].mxu0 }
 0x353   : > { %v12791_v36 = vadd.f32 %v12790_v56, %v12789_v12  ;;  %v12903_v38 = vadd.f32 %v12902_v17, %v12901_v25  ;;  %v12792_v4 = vpop.f32.mrb[42].mxu1  ;;  %v12904_v49 = vpop.f32.mrb[42].mxu0 }
 0x354   : > { %v12793_v6 = vpop.f32.mrb[43].mxu1  ;;  %v12905_v32 = vpop.f32.mrb[43].mxu0 }
 0x355   : > { %v12794_v60 = vadd.f32 %v12793_v6, %v12792_v4  ;;  %v12906_v7 = vadd.f32 %v12905_v32, %v12904_v49  ;;  %v16758_v30 = vadd.f32 %v12903_v38, %v12791_v36  ;;  %v16779_v36 = vld [vmem:[%s15117_s28 + $0x330] ss:$8 sps:$4 sm:$0xff]   ;;  %v14709_v38 = vld [vmem:[%s15117_s28 + $0x100] ss:$8 sps:$4 sm:$0xff]   ;;  %v14717_v32 = vld [vmem:[%s15117_s28 + $0x134] ss:$8 sps:$4 sm:$0xff]  }
 0x356   : > { %6311 = vmatmul.mubr.bf16.gmra.mrb[148].mxu1 %v16751_v40  ;;  %6824 = vmatmul.mubr.bf16.gmra.mrb[148].mxu0 %v14687_v61 }
 0x357   : > { %6318 = vmatprep.mubr.bf16.mxu1 %v16755_v0  ;;  %6831 = vmatprep.mubr.bf16.mxu0 %v14700_v45  ;;  %v16762_v51 = vadd.f32 %v12906_v7, %v12794_v60  ;;  %v14722_v60 = vld [vmem:[%s15117_s28 + $0x254] ss:$8 sps:$4 sm:$0xff]  }
 0x359   : > { %v12795_v43 = vpop.f32.mrb[44].mxu1  ;;  %v12907_v47 = vpop.f32.mrb[44].mxu0 }
 0x35a   : > { %v12796_v39 = vpop.f32.mrb[45].mxu1  ;;  %v12908_v2 = vpop.f32.mrb[45].mxu0 }
 0x35b   : > { %v12797_v18 = vadd.f32 %v12796_v39, %v12795_v43  ;;  %v12909_v16 = vadd.f32 %v12908_v2, %v12907_v47  ;;  %v12798_v33 = vpop.f32.mrb[46].mxu1  ;;  %v12910_v59 = vpop.f32.mrb[46].mxu0 }
 0x35c   : > { %v12799_v9 = vpop.f32.mrb[47].mxu1  ;;  %v12911_v22 = vpop.f32.mrb[47].mxu0 }
 0x35d   : > { %v12800_v34 = vadd.f32 %v12799_v9, %v12798_v33  ;;  %v12912_v20 = vadd.f32 %v12911_v22, %v12910_v59  ;;  %v16772_v52 = vadd.f32 %v12909_v16, %v12797_v18  ;;  %v14720_v9 = vld [vmem:[%s15117_s28 + $0x250] ss:$8 sps:$4 sm:$0xff]  }
 0x35e   : > { %6319 = vmatmul.mubr.bf16.gmra.mrb[152].mxu1 %v16765_v29  ;;  %6832 = vmatmul.mubr.bf16.gmra.mrb[152].mxu0 %v14698_v1 }
 0x35f   : > { %6326 = vmatprep.mubr.bf16.mxu1 %v16769_v35  ;;  %6839 = vmatprep.mubr.bf16.mxu0 %v14711_v55  ;;  %v16776_v12 = vadd.f32 %v12912_v20, %v12800_v34  ;;  %v14715_v55 = vld [vmem:[%s15117_s28 + $0x130] ss:$8 sps:$4 sm:$0xff]  }
 0x361   : > { %v12801_v25 = vpop.f32.mrb[48].mxu1  ;;  %v12913_v56 = vpop.f32.mrb[48].mxu0 }
 0x362   : > { %v12802_v17 = vpop.f32.mrb[49].mxu1  ;;  %v12914_v61 = vpop.f32.mrb[49].mxu0 }
 0x363   : > { %v12803_v4 = vadd.f32 %v12802_v17, %v12801_v25  ;;  %v12915_v49 = vadd.f32 %v12914_v61, %v12913_v56  ;;  %v12804_v45 = vpop.f32.mrb[50].mxu1  ;;  %v12916_v6 = vpop.f32.mrb[50].mxu0  ;;  %v14723_v56 = vld [vmem:[%s17629_s1 + $0x604] ss:$8 sps:$4 sm:$0xff]  }
 0x364   : > { %v12805_v7 = vpop.f32.mrb[51].mxu1  ;;  %v12917_v43 = vpop.f32.mrb[51].mxu0  ;;  %v14726_v17 = vld [vmem:[%s15117_s28 + $0x144] ss:$8 sps:$4 sm:$0xff]  }
 0x365   : > { %v12806_v47 = vadd.f32 %v12805_v7, %v12804_v45  ;;  %v12918_v39 = vadd.f32 %v12917_v43, %v12916_v6  ;;  %v16784_v2 = vadd.f32 %v12915_v49, %v12803_v4  ;;  %v14729_v4 = vld [vmem:[%s15117_s28 + $0x264] ss:$8 sps:$4 sm:$0xff]   ;;  %v14733_v49 = vld [vmem:[%s17629_s1 + $0x694] ss:$8 sps:$4 sm:$0xff]  }
 0x366   : > { %6327 = vmatmul.mubr.bf16.gmra.mrb[156].mxu1 %v16779_v36  ;;  %6840 = vmatmul.mubr.bf16.gmra.mrb[156].mxu0 %v14709_v38  ;;  %v14795_v7 = vld [vmem:[%s17629_s1 + $0x794] ss:$8 sps:$4 sm:$0xff]  }
 0x367   : > { %7232 = vmatprep.mubr.bf16.mxu1 %v14717_v32  ;;  %7745 = vmatprep.mubr.bf16.mxu0 %v14722_v60  ;;  %v16787_v1 = vadd.f32 %v12918_v39, %v12806_v47  ;;  %v14794_v32 = vld [vmem:[%s17629_s1 + $0x704] ss:$8 sps:$4 sm:$0xff]   ;;  %v14737_v43 = vld [vmem:[%s17629_s1 + $0x614] ss:$8 sps:$4 sm:$0xff]  }
 0x368   : > { %v14747_v39 = vld [vmem:[%s17629_s1 + $0x6a4] ss:$8 sps:$4 sm:$0xff]  }
 0x369   : > { %v12807_v18 = vpop.f32.mrb[52].mxu1  ;;  %v12919_v16 = vpop.f32.mrb[52].mxu0 }
 0x36a   : > { %v12808_v33 = vpop.f32.mrb[53].mxu1  ;;  %v12920_v59 = vpop.f32.mrb[53].mxu0 }
 0x36b   : > { %v12809_v22 = vadd.f32 %v12808_v33, %v12807_v18  ;;  %v12921_v34 = vadd.f32 %v12920_v59, %v12919_v16  ;;  %v12810_v20 = vpop.f32.mrb[54].mxu1  ;;  %v12922_v25 = vpop.f32.mrb[54].mxu0  ;;  %v14799_v33 = vld [vmem:[%s17629_s1 + $0x714] ss:$8 sps:$4 sm:$0xff]  }
 0x36c   : > { %v12811_v61 = vpop.f32.mrb[55].mxu1  ;;  %v12923_v38 = vpop.f32.mrb[55].mxu0 }
 0x36d   : > { %v12812_v45 = vadd.f32 %v12811_v61, %v12810_v20  ;;  %v12924_v6 = vadd.f32 %v12923_v38, %v12922_v25  ;;  %v16802_v60 = vadd.f32 %v12921_v34, %v12809_v22  ;;  %v14727_v22 = vld [vmem:[%s15117_s28 + $0x260] ss:$8 sps:$4 sm:$0xff]   ;;  %v14736_v61 = vld [vmem:[%s15117_s28 + $0x274] ss:$8 sps:$4 sm:$0xff]  }
 0x36e   : > { %7233 = vmatmul.mubr.bf16.vlgmr.msra.gmra.mrb[160].mxu1 %v14715_v55  ;;  %7746 = vmatmul.mubr.bf16.vlgmr.msra.gmra.mrb[160].mxu0 %v14720_v9  ;;  %v14724_v9 = vld [vmem:[%s15117_s28 + $0x140] ss:$8 sps:$4 sm:$0xff]  }
 0x36f   : > { %13434 = vmatpush3.bf16.msra.mxu1 %v14723_v56  ;;  %7240 = vmatprep.mubr.bf16.mxu1 %v14726_v17  ;;  %v16810_v47 = vadd.f32 %v12924_v6, %v12812_v45  ;;  %v14732_v17 = vld [vmem:[%s15117_s28 + $0x154] ss:$8 sps:$4 sm:$0xff]   ;;  %v14800_v45 = vld [vmem:[%s17629_s1 + $0x7a4] ss:$8 sps:$4 sm:$0xff]  }
 0x370   : > { %7753 = vmatprep.mubr.bf16.mxu0 %v14729_v4  ;;  %13435 = vmatprep.subr.bf16.mxu1 %v14733_v49  ;;  %v14751_v49 = vld [vmem:[%s17629_s1 + $0x624] ss:$8 sps:$4 sm:$0xff]  }
 0x371   : > { %v12813_v18 = vpop.f32.mrb[56].mxu1  ;;  %v12925_v16 = vpop.f32.mrb[56].mxu0  ;;  %13546 = vmatpush3.bf16.msra.mxu0 %v14794_v32 }
 0x372   : > { %v12814_v59 = vpop.f32.mrb[57].mxu1  ;;  %v12926_v55 = vpop.f32.mrb[57].mxu0  ;;  %13547 = vmatprep.subr.bf16.mxu0 %v14795_v7  ;;  %v14761_v7 = vld [vmem:[%s17629_s1 + $0x6b4] ss:$8 sps:$4 sm:$0xff]  }
 0x373   : > { %v12815_v34 = vadd.f32 %v12814_v59, %v12813_v18  ;;  %v12927_v20 = vadd.f32 %v12926_v55, %v12925_v16  ;;  %v12816_v25 = vpop.f32.mrb[58].mxu1  ;;  %v12928_v56 = vpop.f32.mrb[58].mxu0  ;;  %13436 = vmatpush3.bf16.msra.mxu1 %v14737_v43  ;;  %v14801_v43 = vld [vmem:[%s17629_s1 + $0x724] ss:$8 sps:$4 sm:$0xff]   ;;  %v14802_v18 = vld [vmem:[%s17629_s1 + $0x7b4] ss:$8 sps:$4 sm:$0xff]  }
 0x374   : > { %v12817_v38 = vpop.f32.mrb[59].mxu1  ;;  %v12929_v4 = vpop.f32.mrb[59].mxu0  ;;  %13437 = vmatprep.subr.bf16.mxu1 %v14747_v39 }
 0x375   : > { %v12818_v6 = vadd.f32 %v12817_v38, %v12816_v25  ;;  %v12930_v32 = vadd.f32 %v12929_v4, %v12928_v56  ;;  %13548 = vmatpush3.bf16.msra.mxu0 %v14799_v33  ;;  %v16834_v39 = vadd.f32 %v12927_v20, %v12815_v34  ;;  %v14765_v33 = vld [vmem:[%s17629_s1 + $0x634] ss:$8 sps:$4 sm:$0xff]   ;;  %v14730_v25 = vld [vmem:[%s15117_s28 + $0x150] ss:$8 sps:$4 sm:$0xff]  }
 0x376   : > { %7241 = vmatmul.mubr.bf16.gmra.mrb[164].mxu1 %v14724_v9  ;;  %7754 = vmatmul.mubr.bf16.gmra.mrb[164].mxu0 %v14727_v22  ;;  %v14775_v9 = vld [vmem:[%s17629_s1 + $0x6c4] ss:$8 sps:$4 sm:$0xff]   ;;  %v14806_v22 = vld [vmem:[%s17629_s1 + $0x734] ss:$8 sps:$4 sm:$0xff]   ;;  %v14734_v56 = vld [vmem:[%s15117_s28 + $0x270] ss:$8 sps:$4 sm:$0xff]  }
 0x377   : > { %7248 = vmatprep.mubr.bf16.mxu1 %v14732_v17  ;;  %7761 = vmatprep.mubr.bf16.mxu0 %v14736_v61  ;;  %v16839_v16 = vadd.f32 %v12930_v32, %v12818_v6 }
 0x378   : > { %13438 = vmatpush3.bf16.msra.mxu1 %v14751_v49  ;;  %13549 = vmatprep.subr.bf16.mxu0 %v14800_v45  ;;  %v14740_v49 = vld [vmem:[%s15117_s28 + $0x164] ss:$8 sps:$4 sm:$0xff]  }
 0x379   : > { %v12819_v59 = vpop.f32.mrb[60].mxu1  ;;  %v12931_v55 = vpop.f32.mrb[60].mxu0  ;;  %13439 = vmatprep.subr.bf16.mxu1 %v14761_v7  ;;  %13550 = vmatpush3.bf16.msra.mxu0 %v14801_v43  ;;  %v14743_v45 = vld [vmem:[%s15117_s28 + $0x284] ss:$8 sps:$4 sm:$0xff]  }
 0x37a   : > { %v12820_v34 = vpop.f32.mrb[61].mxu1  ;;  %v12932_v20 = vpop.f32.mrb[61].mxu0  ;;  %13551 = vmatprep.subr.bf16.mxu0 %v14802_v18  ;;  %v14776_v7 = vld [vmem:[%s17629_s1 + $0x644] ss:$8 sps:$4 sm:$0xff]   ;;  %v14783_v18 = vld [vmem:[%s17629_s1 + $0x6d4] ss:$8 sps:$4 sm:$0xff]  }
 0x37b   : > { %v12821_v17 = vadd.f32 %v12820_v34, %v12819_v59  ;;  %v12933_v61 = vadd.f32 %v12932_v20, %v12931_v55  ;;  %v12822_v38 = vpop.f32.mrb[62].mxu1  ;;  %v12934_v4 = vpop.f32.mrb[62].mxu0  ;;  %v14809_v43 = vld [vmem:[%s17629_s1 + $0x7c4] ss:$8 sps:$4 sm:$0xff]   ;;  %v14811_v55 = vld [vmem:[%s17629_s1 + $0x7d4] ss:$8 sps:$4 sm:$0xff]  }
 0x37c   : > { %v12823_v6 = vpop.f32.mrb[63].mxu1  ;;  %v12935_v32 = vpop.f32.mrb[63].mxu0  ;;  %13440 = vmatpush3.bf16.msra.mxu1 %v14765_v33  ;;  %v14810_v33 = vld [vmem:[%s17629_s1 + $0x744] ss:$8 sps:$4 sm:$0xff]  }
 0x37d   : > { %v12824_v13 = vadd.f32 %v12823_v6, %v12822_v38  ;;  %v12936_v5 = vadd.f32 %v12935_v32, %v12934_v4  ;;  %13441 = vmatprep.subr.bf16.mxu1 %v14775_v9  ;;  %13552 = vmatpush3.bf16.msra.mxu0 %v14806_v22  ;;  %v16866_v59 = vadd.f32 %v12933_v61, %v12821_v17  ;;  %v14784_v22 = vld [vmem:[%s17629_s1 + $0x654] ss:$8 sps:$4 sm:$0xff]   ;;  %v14738_v17 = vld [vmem:[%s15117_s28 + $0x160] ss:$8 sps:$4 sm:$0xff]  }
 0x37e   : > { %7249 = vmatmul.mubr.bf16.gmra.mrb[168].mxu1 %v14730_v25  ;;  %7762 = vmatmul.mubr.bf16.gmra.mrb[168].mxu0 %v14734_v56  ;;  %v14791_v25 = vld [vmem:[%s17629_s1 + $0x6e4] ss:$8 sps:$4 sm:$0xff]   ;;  %v14741_v61 = vld [vmem:[%s15117_s28 + $0x280] ss:$8 sps:$4 sm:$0xff]   ;;  %v14746_v6 = vld [vmem:[%s15117_s28 + $0x174] ss:$8 sps:$4 sm:$0xff]  }
 0x37f   : > { %7256 = vmatprep.mubr.bf16.mxu1 %v14740_v49  ;;  %7769 = vmatprep.mubr.bf16.mxu0 %v14743_v45  ;;  %v16871_v9 = vadd.f32 %v12936_v5, %v12824_v13  ;;  %v14815_v5 = vld [vmem:[%s17629_s1 + $0x754] ss:$8 sps:$4 sm:$0xff]  }
 0x380   : > { %13442 = vmatpush3.bf16.msra.mxu1 %v14776_v7  ;;  %13553 = vmatprep.subr.bf16.mxu0 %v14809_v43  ;;  %v14750_v32 = vld [vmem:[%s15117_s28 + $0x294] ss:$8 sps:$4 sm:$0xff]  }
 0x381   : > { %v12825_v34 = vpop.f32.mrb[64].mxu1  ;;  %v12937_v20 = vpop.f32.mrb[64].mxu0  ;;  %13443 = vmatprep.subr.bf16.mxu1 %v14783_v18  ;;  %13554 = vmatpush3.bf16.msra.mxu0 %v14810_v33  ;;  %v14792_v18 = vld [vmem:[%s17629_s1 + $0x664] ss:$8 sps:$4 sm:$0xff]  }
 0x382   : > { %v12826_v13 = vpop.f32.mrb[65].mxu1  ;;  %v12938_v56 = vpop.f32.mrb[65].mxu0  ;;  %13555 = vmatprep.subr.bf16.mxu0 %v14811_v55  ;;  %v14819_v33 = vld [vmem:[%s17629_s1 + $0x7e4] ss:$8 sps:$4 sm:$0xff]   ;;  %v14807_v55 = vld [vmem:[%s17629_s1 + $0x6f4] ss:$8 sps:$4 sm:$0xff]  }
 0x383   : > { %v12827_v38 = vadd.f32 %v12826_v13, %v12825_v34  ;;  %v12939_v4 = vadd.f32 %v12938_v56, %v12937_v20  ;;  %v12828_v49 = vpop.f32.mrb[66].mxu1  ;;  %v12940_v45 = vpop.f32.mrb[66].mxu0  ;;  %v14821_v20 = vld [vmem:[%s17629_s1 + $0x7f4] ss:$8 sps:$4 sm:$0xff]  }
 0x384   : > { %v12829_v7 = vpop.f32.mrb[67].mxu1  ;;  %v12941_v43 = vpop.f32.mrb[67].mxu0  ;;  %13444 = vmatpush3.bf16.msra.mxu1 %v14784_v22  ;;  %v14820_v22 = vld [vmem:[%s17629_s1 + $0x764] ss:$8 sps:$4 sm:$0xff]  }
 0x385   : > { %v12830_v63 = vadd.f32 %v12829_v7, %v12828_v49  ;;  %v12942_v26 = vadd.f32 %v12941_v43, %v12940_v45  ;;  %13445 = vmatprep.subr.bf16.mxu1 %v14791_v25  ;;  %13556 = vmatpush3.bf16.msra.mxu0 %v14815_v5  ;;  %v16898_v34 = vadd.f32 %v12939_v4, %v12827_v38  ;;  %v14808_v5 = vld [vmem:[%s17629_s1 + $0x674] ss:$8 sps:$4 sm:$0xff]   ;;  %v14744_v38 = vld [vmem:[%s15117_s28 + $0x170] ss:$8 sps:$4 sm:$0xff]   ;;  %v14754_v7 = vld [vmem:[%s15117_s28 + $0x184] ss:$8 sps:$4 sm:$0xff]  }
 0x386   : > { %7257 = vmatmul.mubr.bf16.gmra.mrb[172].mxu1 %v14738_v17  ;;  %7770 = vmatmul.mubr.bf16.gmra.mrb[172].mxu0 %v14741_v61  ;;  %v14825_v17 = vld [vmem:[%s17629_s1 + $0x774] ss:$8 sps:$4 sm:$0xff]   ;;  %v14748_v4 = vld [vmem:[%s15117_s28 + $0x290] ss:$8 sps:$4 sm:$0xff]   ;;  %v14757_v43 = vld [vmem:[%s15117_s28 + $0x2a4] ss:$8 sps:$4 sm:$0xff]  }
 0x387   : > { %7264 = vmatprep.mubr.bf16.mxu1 %v14746_v6  ;;  %7777 = vmatprep.mubr.bf16.mxu0 %v14750_v32  ;;  %v16903_v25 = vadd.f32 %v12942_v26, %v12830_v63  ;;  %v14826_v26 = vld [vmem:[%s17629_s1 + $0x884] ss:$8 sps:$4 sm:$0xff]  }
 0x388   : > { %13446 = vmatpush3.bf16.msra.mxu1 %v14792_v18  ;;  %13557 = vmatprep.subr.bf16.mxu0 %v14819_v33 }
 0x389   : > { %v12831_v13 = vpop.f32.mrb[68].mxu1  ;;  %v12943_v56 = vpop.f32.mrb[68].mxu0  ;;  %13447 = vmatprep.subr.bf16.mxu1 %v14807_v55  ;;  %13558 = vmatpush3.bf16.msra.mxu0 %v14820_v22 }
 0x38a   : > { %v12832_v63 = vpop.f32.mrb[69].mxu1  ;;  %v12944_v61 = vpop.f32.mrb[69].mxu0  ;;  %13559 = vmatprep.subr.bf16.mxu0 %v14821_v20 }
 0x38b   : > { %v12833_v49 = vadd.f32 %v12832_v63, %v12831_v13  ;;  %v12945_v45 = vadd.f32 %v12944_v61, %v12943_v56  ;;  %v12834_v6 = vpop.f32.mrb[70].mxu1  ;;  %v12946_v32 = vpop.f32.mrb[70].mxu0 }
 0x38c   : > { %v12835_v18 = vpop.f32.mrb[71].mxu1  ;;  %v12947_v33 = vpop.f32.mrb[71].mxu0  ;;  %13448 = vmatpush3.bf16.msra.mxu1 %v14808_v5  ;;  %v14752_v5 = vld [vmem:[%s15117_s28 + $0x180] ss:$8 sps:$4 sm:$0xff]  }
 0x38d   : > { %v12836_v55 = vadd.f32 %v12835_v18, %v12834_v6  ;;  %v12948_v22 = vadd.f32 %v12947_v33, %v12946_v32  ;;  %13560 = vmatpush3.bf16.msra.mxu0 %v14825_v17  ;;  %13657 = vmatprep.subr.bf16.mxu1 %v14826_v26  ;;  %v16918_v8 = vadd.f32 %v12945_v45, %v12833_v49  ;;  %v14760_v49 = vld [vmem:[%s15117_s28 + $0x194] ss:$8 sps:$4 sm:$0xff]  }
 0x38e   : > { %7265 = vmatmul.mubr.bf16.gmra.mrb[176].mxu1 %v14744_v38  ;;  %7778 = vmatmul.mubr.bf16.gmra.mrb[176].mxu0 %v14748_v4  ;;  %v14764_v45 = vld [vmem:[%s15117_s28 + $0x2b4] ss:$8 sps:$4 sm:$0xff]  }
 0x38f   : > { %7272 = vmatprep.mubr.bf16.mxu1 %v14754_v7  ;;  %7785 = vmatprep.mubr.bf16.mxu0 %v14757_v43  ;;  %v16920_v20 = vadd.f32 %v12948_v22, %v12836_v55 }
 0x391   : > { %v12837_v13 = vpop.f32.mrb[72].mxu1  ;;  %v12949_v56 = vpop.f32.mrb[72].mxu0 }
 0x392   : > { %v12838_v63 = vpop.f32.mrb[73].mxu1  ;;  %v12950_v61 = vpop.f32.mrb[73].mxu0 }
 0x393   : > { %v12839_v6 = vadd.f32 %v12838_v63, %v12837_v13  ;;  %v12951_v32 = vadd.f32 %v12950_v61, %v12949_v56  ;;  %v12840_v17 = vpop.f32.mrb[74].mxu1  ;;  %v12952_v26 = vpop.f32.mrb[74].mxu0  ;;  %v14758_v63 = vld [vmem:[%s15117_s28 + $0x190] ss:$8 sps:$4 sm:$0xff]  }
 0x394   : > { %v12841_v38 = vpop.f32.mrb[75].mxu1  ;;  %v12953_v4 = vpop.f32.mrb[75].mxu0  ;;  %v14762_v61 = vld [vmem:[%s15117_s28 + $0x2b0] ss:$8 sps:$4 sm:$0xff]  }
 0x395   : > { %v12842_v7 = vadd.f32 %v12841_v38, %v12840_v17  ;;  %v12954_v43 = vadd.f32 %v12953_v4, %v12952_v26  ;;  %v16926_v18 = vadd.f32 %v12951_v32, %v12839_v6  ;;  %v14768_v6 = vld [vmem:[%s15117_s28 + $0x1a4] ss:$8 sps:$4 sm:$0xff]  }
 0x396   : > { %7273 = vmatmul.mubr.bf16.gmra.mrb[180].mxu1 %v14752_v5  ;;  %7786 = vmatmul.mubr.bf16.gmra.mrb[180].mxu0 %v14755_v46  ;;  %v14771_v32 = vld [vmem:[%s15117_s28 + $0x2c4] ss:$8 sps:$4 sm:$0xff]  }
 0x397   : > { %7280 = vmatprep.mubr.bf16.mxu1 %v14760_v49  ;;  %7793 = vmatprep.mubr.bf16.mxu0 %v14764_v45  ;;  %v16928_v33 = vadd.f32 %v12954_v43, %v12842_v7 }
 0x399   : > { %v12843_v55 = vpop.f32.mrb[76].mxu1  ;;  %v12955_v22 = vpop.f32.mrb[76].mxu0 }
 0x39a   : > { %v12844_v13 = vpop.f32.mrb[77].mxu1  ;;  %v12956_v56 = vpop.f32.mrb[77].mxu0 }
 0x39b   : > { %v12845_v23 = vadd.f32 %v12844_v13, %v12843_v55  ;;  %v12957_v21 = vadd.f32 %v12956_v56, %v12955_v22  ;;  %v12846_v17 = vpop.f32.mrb[78].mxu1  ;;  %v12958_v26 = vpop.f32.mrb[78].mxu0  ;;  %v14766_v13 = vld [vmem:[%s15117_s28 + $0x1a0] ss:$8 sps:$4 sm:$0xff]  }
 0x39c   : > { %v12847_v5 = vpop.f32.mrb[79].mxu1  ;;  %v12959_v46 = vpop.f32.mrb[79].mxu0  ;;  %v14769_v56 = vld [vmem:[%s15117_s28 + $0x2c0] ss:$8 sps:$4 sm:$0xff]  }
 0x39d   : > { %v12848_v49 = vadd.f32 %v12847_v5, %v12846_v17  ;;  %v12960_v45 = vadd.f32 %v12959_v46, %v12958_v26  ;;  %v16934_v38 = vadd.f32 %v12957_v21, %v12845_v23  ;;  %v14774_v21 = vld [vmem:[%s15117_s28 + $0x1b4] ss:$8 sps:$4 sm:$0xff]  }
 0x39e   : > { %7281 = vmatmul.mubr.bf16.gmra.mrb[184].mxu1 %v14758_v63  ;;  %7794 = vmatmul.mubr.bf16.gmra.mrb[184].mxu0 %v14762_v61 }
 0x39f   : > { %7288 = vmatprep.mubr.bf16.mxu1 %v14768_v6  ;;  %7801 = vmatprep.mubr.bf16.mxu0 %v14771_v32  ;;  %v16936_v4 = vadd.f32 %v12960_v45, %v12848_v49 }
 0x3a1   : > { %v12849_v7 = vpop.f32.mrb[80].mxu1  ;;  %v12961_v43 = vpop.f32.mrb[80].mxu0 }
 0x3a2   : > { %v12850_v55 = vpop.f32.mrb[81].mxu1  ;;  %v12962_v22 = vpop.f32.mrb[81].mxu0 }
 0x3a3   : > { %v12851_v54 = vadd.f32 %v12850_v55, %v12849_v7  ;;  %v12963_v24 = vadd.f32 %v12962_v22, %v12961_v43  ;;  %v12852_v58 = vpop.f32.mrb[82].mxu1  ;;  %v12964_v17 = vpop.f32.mrb[82].mxu0  ;;  %v14772_v7 = vld [vmem:[%s15117_s28 + $0x1b0] ss:$8 sps:$4 sm:$0xff]  }
 0x3a4   : > { %v12853_v23 = vpop.f32.mrb[83].mxu1  ;;  %v12965_v26 = vpop.f32.mrb[83].mxu0 }
 0x3a5   : > { %v12854_v63 = vadd.f32 %v12853_v23, %v12852_v58  ;;  %v12966_v61 = vadd.f32 %v12965_v26, %v12964_v17  ;;  %v16941_v6 = vadd.f32 %v12963_v24, %v12851_v54  ;;  %v14779_v17 = vld [vmem:[%s15117_s28 + $0x1c4] ss:$8 sps:$4 sm:$0xff]  }
 0x3a6   : > { %7289 = vmatmul.mubr.bf16.gmra.mrb[188].mxu1 %v14766_v13  ;;  %7802 = vmatmul.mubr.bf16.gmra.mrb[188].mxu0 %v14769_v56 }
 0x3a7   : > { %7296 = vmatprep.mubr.bf16.mxu1 %v14774_v21  ;;  %7809 = vmatprep.mubr.bf16.mxu0 %v16673_v28  ;;  %v16944_v32 = vadd.f32 %v12966_v61, %v12854_v63 }
 0x3a9   : > { %v12855_v5 = vpop.f32.mrb[84].mxu1  ;;  %v12967_v46 = vpop.f32.mrb[84].mxu0 }
 0x3aa   : > { %v12856_v49 = vpop.f32.mrb[85].mxu1  ;;  %v12968_v45 = vpop.f32.mrb[85].mxu0 }
 0x3ab   : > { %v12857_v43 = vadd.f32 %v12856_v49, %v12855_v5  ;;  %v12969_v55 = vadd.f32 %v12968_v45, %v12967_v46  ;;  %v12858_v22 = vpop.f32.mrb[86].mxu1  ;;  %v12970_v58 = vpop.f32.mrb[86].mxu0  ;;  %v14777_v5 = vld [vmem:[%s15117_s28 + $0x1c0] ss:$8 sps:$4 sm:$0xff]  }
 0x3ac   : > { %v12859_v24 = vpop.f32.mrb[87].mxu1  ;;  %v12971_v54 = vpop.f32.mrb[87].mxu0 }
 0x3ad   : > { %v12860_v13 = vadd.f32 %v12859_v24, %v12858_v22  ;;  %v12972_v56 = vadd.f32 %v12971_v54, %v12970_v58  ;;  %v16948_v21 = vadd.f32 %v12969_v55, %v12857_v43  ;;  %v14782_v43 = vld [vmem:[%s15117_s28 + $0x1d4] ss:$8 sps:$4 sm:$0xff]  }
 0x3ae   : > { %7297 = vmatmul.mubr.bf16.gmra.mrb[192].mxu1 %v14772_v7  ;;  %7810 = vmatmul.mubr.bf16.gmra.mrb[192].mxu0 %v16683_v31 }
 0x3af   : > { %7304 = vmatprep.mubr.bf16.mxu1 %v14779_v17  ;;  %7817 = vmatprep.mubr.bf16.mxu0 %v16688_v42  ;;  %v16952_v28 = vadd.f32 %v12972_v56, %v12860_v13 }
 0x3b1   : > { %v12861_v23 = vpop.f32.mrb[88].mxu1  ;;  %v12973_v26 = vpop.f32.mrb[88].mxu0 }
 0x3b2   : > { %v12862_v63 = vpop.f32.mrb[89].mxu1  ;;  %v12974_v61 = vpop.f32.mrb[89].mxu0 }
 0x3b3   : > { %v12863_v46 = vadd.f32 %v12862_v63, %v12861_v23  ;;  %v12975_v49 = vadd.f32 %v12974_v61, %v12973_v26  ;;  %v12864_v45 = vpop.f32.mrb[90].mxu1  ;;  %v12976_v22 = vpop.f32.mrb[90].mxu0  ;;  %v14780_v23 = vld [vmem:[%s15117_s28 + $0x1d0] ss:$8 sps:$4 sm:$0xff]  }
 0x3b4   : > { %v12865_v55 = vpop.f32.mrb[91].mxu1  ;;  %v12977_v7 = vpop.f32.mrb[91].mxu0 }
 0x3b5   : > { %v12866_v58 = vadd.f32 %v12865_v55, %v12864_v45  ;;  %v12978_v31 = vadd.f32 %v12977_v7, %v12976_v22  ;;  %v16956_v17 = vadd.f32 %v12975_v49, %v12863_v46  ;;  %v14787_v46 = vld [vmem:[%s15117_s28 + $0x1e4] ss:$8 sps:$4 sm:$0xff]  }
 0x3b6   : > { %7305 = vmatmul.mubr.bf16.gmra.mrb[196].mxu1 %v14777_v5  ;;  %7818 = vmatmul.mubr.bf16.gmra.mrb[196].mxu0 %v16699_v27 }
 0x3b7   : > { %7312 = vmatprep.mubr.bf16.mxu1 %v14782_v43  ;;  %7825 = vmatprep.mubr.bf16.mxu0 %v16704_v15  ;;  %v16960_v42 = vadd.f32 %v12978_v31, %v12866_v58 }
 0x3b9   : > { %v12867_v24 = vpop.f32.mrb[92].mxu1  ;;  %v12979_v54 = vpop.f32.mrb[92].mxu0 }
 0x3ba   : > { %v12868_v13 = vpop.f32.mrb[93].mxu1  ;;  %v12980_v56 = vpop.f32.mrb[93].mxu0 }
 0x3bb   : > { %v12869_v26 = vadd.f32 %v12868_v13, %v12867_v24  ;;  %v12981_v63 = vadd.f32 %v12980_v56, %v12979_v54  ;;  %v12870_v61 = vpop.f32.mrb[94].mxu1  ;;  %v12982_v45 = vpop.f32.mrb[94].mxu0  ;;  %v14785_v24 = vld [vmem:[%s15117_s28 + $0x1e0] ss:$8 sps:$4 sm:$0xff]  }
 0x3bc   : > { %v12871_v49 = vpop.f32.mrb[95].mxu1  ;;  %v12983_v5 = vpop.f32.mrb[95].mxu0 }
 0x3bd   : > { %v12872_v22 = vadd.f32 %v12871_v49, %v12870_v61  ;;  %v12984_v27 = vadd.f32 %v12983_v5, %v12982_v45  ;;  %v16964_v43 = vadd.f32 %v12981_v63, %v12869_v26  ;;  %v14790_v45 = vld [vmem:[%s15117_s28 + $0x1f4] ss:$8 sps:$4 sm:$0xff]  }
 0x3be   : > { %7313 = vmatmul.mubr.bf16.gmra.mrb[200].mxu1 %v14780_v23  ;;  %7826 = vmatmul.mubr.bf16.gmra.mrb[200].mxu0 %v16715_v62 }
 0x3bf   : > { %7320 = vmatprep.mubr.bf16.mxu1 %v14787_v46  ;;  %7833 = vmatprep.mubr.bf16.mxu0 %v16722_v53  ;;  %v16968_v15 = vadd.f32 %v12984_v27, %v12872_v22 }
 0x3c1   : > { %v13001_v55 = vpop.f32.mrb[96].mxu1  ;;  %v13113_v7 = vpop.f32.mrb[96].mxu0 }
 0x3c2   : > { %v13002_v58 = vpop.f32.mrb[97].mxu1  ;;  %v13114_v31 = vpop.f32.mrb[97].mxu0 }
 0x3c3   : > { %v13003_v54 = vadd.f32 %v13002_v58, %v13001_v55  ;;  %v13004_v13 = vpop.f32.mrb[98].mxu1  ;;  %v13115_v56 = vadd.f32 %v13114_v31, %v13113_v7  ;;  %v13116_v61 = vpop.f32.mrb[98].mxu0 }
 0x3c4   : > { %v13005_v26 = vpop.f32.mrb[99].mxu1  ;;  %v13117_v23 = vpop.f32.mrb[99].mxu0 }
 0x3c5   : > { %v6335_v62 = vadd.f32 %v13003_v54, %v16725_v14  ;;  %v13006_v63 = vadd.f32 %v13005_v26, %v13004_v13  ;;  %v13118_v46 = vadd.f32 %v13117_v23, %v13116_v61  ;;  %v14788_v14 = vld [vmem:[%s15117_s28 + $0x1f0] ss:$8 sps:$4 sm:$0xff]   ;;  %v14798_v13 = vld [vmem:[%s15117_s28 + $0x204] ss:$8 sps:$4 sm:$0xff]  }
 0x3c6   : > { %7321 = vmatmul.mubr.bf16.gmra.mrb[204].mxu1 %v14785_v24  ;;  %7834 = vmatmul.mubr.bf16.gmra.mrb[204].mxu0 %v16734_v48 }
 0x3c7   : > { %v6336_v53 = vadd.f32 %v13006_v63, %v16731_v3  ;;  %v16975_v49 = vadd.f32 %v13115_v56, %v6335_v62  ;;  %7328 = vmatprep.mubr.bf16.mxu1 %v14790_v45  ;;  %7841 = vmatprep.mubr.bf16.mxu0 %v16738_v44 }
 0x3c9   : > { %v16978_v5 = vadd.f32 %v13118_v46, %v6336_v53  ;;  %v13007_v22 = vpop.f32.mrb[100].mxu1  ;;  %v13119_v27 = vpop.f32.mrb[100].mxu0 }
 0x3ca   : > { %v13008_v55 = vpop.f32.mrb[101].mxu1  ;;  %v13120_v7 = vpop.f32.mrb[101].mxu0 }
 0x3cb   : > { %v13009_v58 = vadd.f32 %v13008_v55, %v13007_v22  ;;  %v13010_v31 = vpop.f32.mrb[102].mxu1  ;;  %v13121_v24 = vadd.f32 %v13120_v7, %v13119_v27  ;;  %v13122_v54 = vpop.f32.mrb[102].mxu0 }
 0x3cc   : > { %v13011_v48 = vpop.f32.mrb[103].mxu1  ;;  %v13123_v3 = vpop.f32.mrb[103].mxu0 }
 0x3cd   : > { %v6337_v56 = vadd.f32 %v13009_v58, %v16741_v50  ;;  %v13012_v61 = vadd.f32 %v13011_v48, %v13010_v31  ;;  %v13124_v45 = vadd.f32 %v13123_v3, %v13122_v54  ;;  %v14796_v50 = vld [vmem:[%s15117_s28 + $0x200] ss:$8 sps:$4 sm:$0xff]  }
 0x3ce   : > { %7329 = vmatmul.mubr.bf16.gmra.mrb[208].mxu1 %v14788_v14  ;;  %7842 = vmatmul.mubr.bf16.gmra.mrb[208].mxu0 %v16751_v40  ;;  %v14805_v14 = vld [vmem:[%s15117_s28 + $0x214] ss:$8 sps:$4 sm:$0xff]  }
 0x3cf   : > { %v6338_v44 = vadd.f32 %v13012_v61, %v16748_v19  ;;  %v16985_v26 = vadd.f32 %v13121_v24, %v6337_v56  ;;  %7336 = vmatprep.mubr.bf16.mxu1 %v14798_v13  ;;  %7849 = vmatprep.mubr.bf16.mxu0 %v16755_v0  ;;  %v14803_v61 = vld [vmem:[%s15117_s28 + $0x210] ss:$8 sps:$4 sm:$0xff]  }
 0x3d1   : > { %v16988_v23 = vadd.f32 %v13124_v45, %v6338_v44  ;;  %v13013_v62 = vpop.f32.mrb[104].mxu1  ;;  %v13125_v63 = vpop.f32.mrb[104].mxu0 }
 0x3d2   : > { %v13014_v46 = vpop.f32.mrb[105].mxu1  ;;  %v13126_v53 = vpop.f32.mrb[105].mxu0 }
 0x3d3   : > { %v13015_v22 = vadd.f32 %v13014_v46, %v13013_v62  ;;  %v13016_v27 = vpop.f32.mrb[106].mxu1  ;;  %v13127_v55 = vadd.f32 %v13126_v53, %v13125_v63  ;;  %v13128_v7 = vpop.f32.mrb[106].mxu0  ;;  %v14818_v46 = vld [vmem:[%s15117_s28 + $0x344] ss:$8 sps:$4 sm:$0xff]  }
 0x3d4   : > { %v13017_v40 = vpop.f32.mrb[107].mxu1  ;;  %v13129_v19 = vpop.f32.mrb[107].mxu0 }
 0x3d5   : > { %v6339_v58 = vadd.f32 %v13015_v22, %v16758_v30  ;;  %v13018_v31 = vadd.f32 %v13017_v40, %v13016_v27  ;;  %v13130_v24 = vadd.f32 %v13129_v19, %v13128_v7 }
 0x3d6   : > { %7337 = vmatmul.mubr.bf16.gmra.mrb[212].mxu1 %v14796_v50  ;;  %7850 = vmatmul.mubr.bf16.gmra.mrb[212].mxu0 %v16765_v29  ;;  %v14814_v29 = vld [vmem:[%s15117_s28 + $0x224] ss:$8 sps:$4 sm:$0xff]  }
 0x3d7   : > { %v6340_v0 = vadd.f32 %v13018_v31, %v16762_v51  ;;  %v16995_v54 = vadd.f32 %v13127_v55, %v6339_v58  ;;  %7344 = vmatprep.mubr.bf16.mxu1 %v14805_v14  ;;  %7857 = vmatprep.mubr.bf16.mxu0 %v16769_v35  ;;  %v14816_v31 = vld [vmem:[%s15117_s28 + $0x340] ss:$8 sps:$4 sm:$0xff]  }
 0x3d9   : > { %v16998_v13 = vadd.f32 %v13130_v24, %v6340_v0  ;;  %v13019_v48 = vpop.f32.mrb[108].mxu1  ;;  %v13131_v3 = vpop.f32.mrb[108].mxu0 }
 0x3da   : > { %v13020_v56 = vpop.f32.mrb[109].mxu1  ;;  %v13132_v30 = vpop.f32.mrb[109].mxu0 }
 0x3db   : > { %v13021_v45 = vadd.f32 %v13020_v56, %v13019_v48  ;;  %v13022_v44 = vpop.f32.mrb[110].mxu1  ;;  %v13133_v62 = vadd.f32 %v13132_v30, %v13131_v3  ;;  %v13134_v63 = vpop.f32.mrb[110].mxu0  ;;  %v14824_v3 = vld [vmem:[%s15117_s28 + $0x24] ss:$8 sps:$4 sm:$0xff]  }
 0x3dc   : > { %v13023_v53 = vpop.f32.mrb[111].mxu1  ;;  %v13135_v51 = vpop.f32.mrb[111].mxu0  ;;  %v14829_v56 = vld [vmem:[%s15117_s28 + $0x144] ss:$8 sps:$4 sm:$0xff]  }
 0x3dd   : > { %v6341_v50 = vadd.f32 %v13021_v45, %v16772_v52  ;;  %v13024_v35 = vadd.f32 %v13023_v53, %v13022_v44  ;;  %v13136_v22 = vadd.f32 %v13135_v51, %v13134_v63  ;;  %v14812_v52 = vld [vmem:[%s15117_s28 + $0x220] ss:$8 sps:$4 sm:$0xff]  }
 0x3de   : > { %7345 = vmatmul.mubr.bf16.gmra.mrb[216].mxu1 %v14803_v61  ;;  %7858 = vmatmul.mubr.bf16.gmra.mrb[216].mxu0 %v16779_v36 }
 0x3df   : > { %v6342_v27 = vadd.f32 %v13024_v35, %v16776_v12  ;;  %v17006_v55 = vadd.f32 %v13133_v62, %v6341_v50  ;;  %7352 = vmatprep.mubr.bf16.mxu1 %v14814_v29  ;;  %7865 = vmatprep.mubr.bf16.mxu0 %v14818_v46  ;;  %v14822_v35 = vld [vmem:[%s15117_s28 + $0x20] ss:$8 sps:$4 sm:$0xff]  }
 0x3e1   : > { %v17008_v7 = vadd.f32 %v13136_v22, %v6342_v27  ;;  %v13025_v14 = vpop.f32.mrb[112].mxu1  ;;  %v13137_v40 = vpop.f32.mrb[112].mxu0 }
 0x3e2   : > { %v13026_v19 = vpop.f32.mrb[113].mxu1  ;;  %v13138_v58 = vpop.f32.mrb[113].mxu0 }
 0x3e3   : > { %v13027_v24 = vadd.f32 %v13026_v19, %v13025_v14  ;;  %v13028_v0 = vpop.f32.mrb[114].mxu1  ;;  %v13139_v48 = vadd.f32 %v13138_v58, %v13137_v40  ;;  %v13140_v36 = vpop.f32.mrb[114].mxu0  ;;  %v14833_v19 = vld [vmem:[%s15117_s28 + $0x34] ss:$8 sps:$4 sm:$0xff]  }
 0x3e4   : > { %v13029_v12 = vpop.f32.mrb[115].mxu1  ;;  %v13141_v30 = vpop.f32.mrb[115].mxu0 }
 0x3e5   : > { %v6343_v61 = vadd.f32 %v13027_v24, %v16784_v2  ;;  %v13030_v45 = vadd.f32 %v13029_v12, %v13028_v0  ;;  %v13142_v44 = vadd.f32 %v13141_v30, %v13140_v36  ;;  %v14827_v2 = vld [vmem:[%s15117_s28 + $0x140] ss:$8 sps:$4 sm:$0xff]   ;;  %v14840_v24 = vld [vmem:[%s17629_s1 + $0x894] ss:$8 sps:$4 sm:$0xff]  }
 0x3e6   : > { %7353 = vmatmul.mubr.bf16.gmra.mrb[220].mxu1 %v14812_v52  ;;  %7866 = vmatmul.mubr.bf16.gmra.mrb[220].mxu0 %v14816_v31  ;;  %v14836_v31 = vld [vmem:[%s15117_s28 + $0x154] ss:$8 sps:$4 sm:$0xff]  }
 0x3e7   : > { %v6344_v62 = vadd.f32 %v13030_v45, %v16787_v1  ;;  %v17016_v63 = vadd.f32 %v13139_v48, %v6343_v61  ;;  %8258 = vmatprep.mubr.bf16.mxu1 %v14824_v3  ;;  %8771 = vmatprep.mubr.bf16.mxu0 %v14829_v56  ;;  %v14830_v1 = vld [vmem:[%s17629_s1 + $0x804] ss:$8 sps:$4 sm:$0xff]   ;;  %v14844_v12 = vld [vmem:[%s17629_s1 + $0x814] ss:$8 sps:$4 sm:$0xff]  }
 0x3e9   : > { %v17018_v29 = vadd.f32 %v13142_v44, %v6344_v62  ;;  %v13031_v46 = vpop.f32.mrb[116].mxu1  ;;  %v13143_v53 = vpop.f32.mrb[116].mxu0  ;;  %v14831_v62 = vld [vmem:[%s15117_s28 + $0x30] ss:$8 sps:$4 sm:$0xff]  }
 0x3ea   : > { %v13032_v51 = vpop.f32.mrb[117].mxu1  ;;  %v13144_v50 = vpop.f32.mrb[117].mxu0 }
 0x3eb   : > { %v13033_v22 = vadd.f32 %v13032_v51, %v13031_v46  ;;  %v13034_v27 = vpop.f32.mrb[118].mxu1  ;;  %v13145_v14 = vadd.f32 %v13144_v50, %v13143_v53  ;;  %v13146_v40 = vpop.f32.mrb[118].mxu0  ;;  %v14834_v46 = vld [vmem:[%s15117_s28 + $0x150] ss:$8 sps:$4 sm:$0xff]  }
 0x3ec   : > { %v13035_v58 = vpop.f32.mrb[119].mxu1  ;;  %v13147_v52 = vpop.f32.mrb[119].mxu0 }
 0x3ed   : > { %v6345_v0 = vadd.f32 %v13033_v22, %v16802_v60  ;;  %v13036_v48 = vadd.f32 %v13035_v58, %v13034_v27  ;;  %v13148_v36 = vadd.f32 %v13147_v52, %v13146_v40  ;;  %v14854_v60 = vld [vmem:[%s17629_s1 + $0x8a4] ss:$8 sps:$4 sm:$0xff]   ;;  %v14868_v52 = vld [vmem:[%s17629_s1 + $0x8b4] ss:$8 sps:$4 sm:$0xff]  }
 0x3ee   : > { %8259 = vmatmul.mubr.bf16.vlgmr.msra.gmra.mrb[224].mxu1 %v14822_v35  ;;  %8772 = vmatmul.mubr.bf16.vlgmr.msra.gmra.mrb[224].mxu0 %v14827_v2  ;;  %v14839_v2 = vld [vmem:[%s15117_s28 + $0x44] ss:$8 sps:$4 sm:$0xff]  }
 0x3ef   : > { %v6346_v3 = vadd.f32 %v13036_v48, %v16810_v47  ;;  %v17032_v56 = vadd.f32 %v13145_v14, %v6345_v0  ;;  %13658 = vmatpush3.bf16.msra.mxu1 %v14830_v1  ;;  %8266 = vmatprep.mubr.bf16.mxu1 %v14833_v19  ;;  %v14843_v22 = vld [vmem:[%s15117_s28 + $0x164] ss:$8 sps:$4 sm:$0xff]  }
 0x3f0   : > { %8779 = vmatprep.mubr.bf16.mxu0 %v14836_v31  ;;  %13659 = vmatprep.subr.bf16.mxu1 %v14840_v24  ;;  %v14858_v40 = vld [vmem:[%s17629_s1 + $0x824] ss:$8 sps:$4 sm:$0xff]  }
 0x3f1   : > { %v17040_v30 = vadd.f32 %v13148_v36, %v6346_v3  ;;  %v13037_v61 = vpop.f32.mrb[120].mxu1  ;;  %v13149_v47 = vpop.f32.mrb[120].mxu0 }
 0x3f2   : > { %v13038_v45 = vpop.f32.mrb[121].mxu1  ;;  %v13150_v44 = vpop.f32.mrb[121].mxu0 }
 0x3f3   : > { %v13039_v53 = vadd.f32 %v13038_v45, %v13037_v61  ;;  %v13040_v51 = vpop.f32.mrb[122].mxu1  ;;  %v13151_v50 = vadd.f32 %v13150_v44, %v13149_v47  ;;  %v13152_v35 = vpop.f32.mrb[122].mxu0  ;;  %13660 = vmatpush3.bf16.msra.mxu1 %v14844_v12  ;;  %v14841_v61 = vld [vmem:[%s15117_s28 + $0x160] ss:$8 sps:$4 sm:$0xff]  }
 0x3f4   : > { %v13041_v27 = vpop.f32.mrb[123].mxu1  ;;  %v13153_v14 = vpop.f32.mrb[123].mxu0  ;;  %13661 = vmatprep.subr.bf16.mxu1 %v14854_v60  ;;  %v14837_v60 = vld [vmem:[%s15117_s28 + $0x40] ss:$8 sps:$4 sm:$0xff]  }
 0x3f5   : > { %v6347_v1 = vadd.f32 %v13039_v53, %v16834_v39  ;;  %v13042_v19 = vadd.f32 %v13041_v27, %v13040_v51  ;;  %v13154_v58 = vadd.f32 %v13153_v14, %v13152_v35  ;;  %v14872_v39 = vld [vmem:[%s17629_s1 + $0x834] ss:$8 sps:$4 sm:$0xff]   ;;  %v14886_v35 = vld [vmem:[%s17629_s1 + $0x844] ss:$8 sps:$4 sm:$0xff]  }
 0x3f6   : > { %8267 = vmatmul.mubr.bf16.gmra.mrb[228].mxu1 %v14831_v62  ;;  %8780 = vmatmul.mubr.bf16.gmra.mrb[228].mxu0 %v14834_v46  ;;  %v14847_v46 = vld [vmem:[%s15117_s28 + $0x54] ss:$8 sps:$4 sm:$0xff]  }
 0x3f7   : > { %v6348_v31 = vadd.f32 %v13042_v19, %v16839_v16  ;;  %v17054_v24 = vadd.f32 %v13151_v50, %v6347_v1  ;;  %8274 = vmatprep.mubr.bf16.mxu1 %v14839_v2  ;;  %8787 = vmatprep.mubr.bf16.mxu0 %v14843_v22  ;;  %v14882_v16 = vld [vmem:[%s17629_s1 + $0x8c4] ss:$8 sps:$4 sm:$0xff]   ;;  %v14850_v53 = vld [vmem:[%s15117_s28 + $0x174] ss:$8 sps:$4 sm:$0xff]  }
 0x3f8   : > { %13662 = vmatpush3.bf16.msra.mxu1 %v14858_v40  ;;  %v14896_v14 = vld [vmem:[%s17629_s1 + $0x8d4] ss:$8 sps:$4 sm:$0xff]  }
 0x3f9   : > { %v17059_v0 = vadd.f32 %v13154_v58, %v6348_v31  ;;  %v13043_v48 = vpop.f32.mrb[124].mxu1  ;;  %v13155_v36 = vpop.f32.mrb[124].mxu0  ;;  %13663 = vmatprep.subr.bf16.mxu1 %v14868_v52 }
 0x3fa   : > { %v13044_v3 = vpop.f32.mrb[125].mxu1  ;;  %v13156_v12 = vpop.f32.mrb[125].mxu0 }
 0x3fb   : > { %v13045_v47 = vadd.f32 %v13044_v3, %v13043_v48  ;;  %v13046_v45 = vpop.f32.mrb[126].mxu1  ;;  %v13157_v44 = vadd.f32 %v13156_v12, %v13155_v36  ;;  %v13158_v62 = vpop.f32.mrb[126].mxu0  ;;  %v14845_v48 = vld [vmem:[%s15117_s28 + $0x50] ss:$8 sps:$4 sm:$0xff]  }
 0x3fc   : > { %v13047_v51 = vpop.f32.mrb[127].mxu1  ;;  %v13159_v50 = vpop.f32.mrb[127].mxu0  ;;  %13664 = vmatpush3.bf16.msra.mxu1 %v14872_v39  ;;  %v14848_v36 = vld [vmem:[%s15117_s28 + $0x170] ss:$8 sps:$4 sm:$0xff]  }
 0x3fd   : > { %v6349_v2 = vadd.f32 %v13045_v47, %v16866_v59  ;;  %v13048_v22 = vadd.f32 %v13047_v51, %v13046_v45  ;;  %v13160_v27 = vadd.f32 %v13159_v50, %v13158_v62  ;;  %13665 = vmatprep.subr.bf16.mxu1 %v14882_v16  ;;  %v14900_v59 = vld [vmem:[%s17629_s1 + $0x854] ss:$8 sps:$4 sm:$0xff]   ;;  %v14857_v47 = vld [vmem:[%s15117_s28 + $0x184] ss:$8 sps:$4 sm:$0xff]  }
 0x3fe   : > { %8275 = vmatmul.mubr.bf16.gmra.mrb[232].mxu1 %v14837_v60  ;;  %8788 = vmatmul.mubr.bf16.gmra.mrb[232].mxu0 %v14841_v61  ;;  %v14853_v61 = vld [vmem:[%s15117_s28 + $0x64] ss:$8 sps:$4 sm:$0xff]   ;;  %v14924_v50 = vld [vmem:[%s17629_s1 + $0x8f4] ss:$8 sps:$4 sm:$0xff]  }
 0x3ff   : > { %v6350_v40 = vadd.f32 %v13048_v22, %v16871_v9  ;;  %v17076_v1 = vadd.f32 %v13157_v44, %v6349_v2  ;;  %8282 = vmatprep.mubr.bf16.mxu1 %v14847_v46  ;;  %8795 = vmatprep.mubr.bf16.mxu0 %v14850_v53  ;;  %v14910_v9 = vld [vmem:[%s17629_s1 + $0x8e4] ss:$8 sps:$4 sm:$0xff]  }
 0x400   : > { %13666 = vmatpush3.bf16.msra.mxu1 %v14886_v35  ;;  %v14914_v62 = vld [vmem:[%s17629_s1 + $0x864] ss:$8 sps:$4 sm:$0xff]  }
 0x401   : > { %v17081_v19 = vadd.f32 %v13160_v27, %v6350_v40  ;;  %v13049_v58 = vpop.f32.mrb[128].mxu1  ;;  %v13161_v52 = vpop.f32.mrb[128].mxu0  ;;  %13667 = vmatprep.subr.bf16.mxu1 %v14896_v14 }
 0x402   : > { %v13050_v31 = vpop.f32.mrb[129].mxu1  ;;  %v13162_v39 = vpop.f32.mrb[129].mxu0 }
 0x403   : > { %v13051_v16 = vadd.f32 %v13050_v31, %v13049_v58  ;;  %v13052_v3 = vpop.f32.mrb[130].mxu1  ;;  %v13163_v12 = vadd.f32 %v13162_v39, %v13161_v52  ;;  %v13164_v60 = vpop.f32.mrb[130].mxu0  ;;  %v14851_v58 = vld [vmem:[%s15117_s28 + $0x60] ss:$8 sps:$4 sm:$0xff]  }
 0x404   : > { %v13053_v45 = vpop.f32.mrb[131].mxu1  ;;  %v13165_v44 = vpop.f32.mrb[131].mxu0  ;;  %13668 = vmatpush3.bf16.msra.mxu1 %v14900_v59 }
 0x405   : > { %v6351_v46 = vadd.f32 %v13051_v16, %v16898_v34  ;;  %v13054_v53 = vadd.f32 %v13053_v45, %v13052_v3  ;;  %v13166_v51 = vadd.f32 %v13165_v44, %v13164_v60  ;;  %13669 = vmatprep.subr.bf16.mxu1 %v14910_v9  ;;  %v14928_v34 = vld [vmem:[%s17629_s1 + $0x874] ss:$8 sps:$4 sm:$0xff]  }
 0x406   : > { %8283 = vmatmul.mubr.bf16.gmra.mrb[236].mxu1 %v14845_v48  ;;  %8796 = vmatmul.mubr.bf16.gmra.mrb[236].mxu0 %v14848_v36  ;;  %v14861_v48 = vld [vmem:[%s15117_s28 + $0x74] ss:$8 sps:$4 sm:$0xff]  }
 0x407   : > { %v6352_v35 = vadd.f32 %v13054_v53, %v16903_v25  ;;  %v17098_v2 = vadd.f32 %v13163_v12, %v6351_v46  ;;  %8290 = vmatprep.mubr.bf16.mxu1 %v14853_v61  ;;  %8803 = vmatprep.mubr.bf16.mxu0 %v14857_v47  ;;  %v14855_v25 = vld [vmem:[%s15117_s28 + $0x180] ss:$8 sps:$4 sm:$0xff]   ;;  %v14864_v36 = vld [vmem:[%s15117_s28 + $0x194] ss:$8 sps:$4 sm:$0xff]  }
 0x408   : > { %13670 = vmatpush3.bf16.msra.mxu1 %v14914_v62 }
 0x409   : > { %v17103_v22 = vadd.f32 %v13166_v51, %v6352_v35  ;;  %v13055_v27 = vpop.f32.mrb[132].mxu1  ;;  %v13167_v14 = vpop.f32.mrb[132].mxu0  ;;  %13671 = vmatprep.subr.bf16.mxu1 %v14924_v50  ;;  %v14859_v50 = vld [vmem:[%s15117_s28 + $0x70] ss:$8 sps:$4 sm:$0xff]  }
 0x40a   : > { %v13056_v40 = vpop.f32.mrb[133].mxu1  ;;  %v13168_v59 = vpop.f32.mrb[133].mxu0 }
 0x40b   : > { %v13057_v52 = vadd.f32 %v13056_v40, %v13055_v27  ;;  %v13058_v9 = vpop.f32.mrb[134].mxu1  ;;  %v13169_v31 = vadd.f32 %v13168_v59, %v13167_v14  ;;  %v13170_v39 = vpop.f32.mrb[134].mxu0  ;;  %v14867_v40 = vld [vmem:[%s15117_s28 + $0x84] ss:$8 sps:$4 sm:$0xff]  }
 0x40c   : > { %v13059_v16 = vpop.f32.mrb[135].mxu1  ;;  %v13171_v3 = vpop.f32.mrb[135].mxu0  ;;  %13672 = vmatpush3.bf16.msra.mxu1 %v14928_v34  ;;  %v14871_v59 = vld [vmem:[%s15117_s28 + $0x1a4] ss:$8 sps:$4 sm:$0xff]  }
 0x40d   : > { %v6353_v12 = vadd.f32 %v13057_v52, %v16918_v8  ;;  %v13060_v60 = vadd.f32 %v13059_v16, %v13058_v9  ;;  %v13172_v61 = vadd.f32 %v13171_v3, %v13170_v39  ;;  %v14862_v8 = vld [vmem:[%s15117_s28 + $0x190] ss:$8 sps:$4 sm:$0xff]  }
 0x40e   : > { %8291 = vmatmul.mubr.bf16.gmra.mrb[240].mxu1 %v14851_v58  ;;  %8804 = vmatmul.mubr.bf16.gmra.mrb[240].mxu0 %v14855_v25 }
 0x40f   : > { %v6354_v47 = vadd.f32 %v13060_v60, %v16920_v20  ;;  %v17111_v45 = vadd.f32 %v13169_v31, %v6353_v12  ;;  %8298 = vmatprep.mubr.bf16.mxu1 %v14861_v48  ;;  %8811 = vmatprep.mubr.bf16.mxu0 %v14864_v36  ;;  %v14865_v60 = vld [vmem:[%s15117_s28 + $0x80] ss:$8 sps:$4 sm:$0xff]  }
 0x411   : > { %v17113_v44 = vadd.f32 %v13172_v61, %v6354_v47  ;;  %v13061_v62 = vpop.f32.mrb[136].mxu1  ;;  %v13173_v46 = vpop.f32.mrb[136].mxu0 }
 0x412   : > { %v13062_v53 = vpop.f32.mrb[137].mxu1  ;;  %v13174_v51 = vpop.f32.mrb[137].mxu0 }
 0x413   : > { %v13063_v35 = vadd.f32 %v13062_v53, %v13061_v62  ;;  %v13064_v34 = vpop.f32.mrb[138].mxu1  ;;  %v13175_v27 = vadd.f32 %v13174_v51, %v13173_v46  ;;  %v13176_v14 = vpop.f32.mrb[138].mxu0  ;;  %v14875_v53 = vld [vmem:[%s15117_s28 + $0x94] ss:$8 sps:$4 sm:$0xff]  }
 0x414   : > { %v13065_v20 = vpop.f32.mrb[139].mxu1  ;;  %v13177_v58 = vpop.f32.mrb[139].mxu0  ;;  %v14878_v51 = vld [vmem:[%s15117_s28 + $0x1b4] ss:$8 sps:$4 sm:$0xff]  }
 0x415   : > { %v6355_v25 = vadd.f32 %v13063_v35, %v16926_v18  ;;  %v13066_v52 = vadd.f32 %v13065_v20, %v13064_v34  ;;  %v13178_v9 = vadd.f32 %v13177_v58, %v13176_v14  ;;  %v14869_v18 = vld [vmem:[%s15117_s28 + $0x1a0] ss:$8 sps:$4 sm:$0xff]  }
 0x416   : > { %8299 = vmatmul.mubr.bf16.gmra.mrb[244].mxu1 %v14859_v50  ;;  %8812 = vmatmul.mubr.bf16.gmra.mrb[244].mxu0 %v14862_v8 }
 0x417   : > { %v6356_v31 = vadd.f32 %v13066_v52, %v16928_v33  ;;  %v17121_v39 = vadd.f32 %v13175_v27, %v6355_v25  ;;  %8306 = vmatprep.mubr.bf16.mxu1 %v14867_v40  ;;  %8819 = vmatprep.mubr.bf16.mxu0 %v14871_v59  ;;  %v14873_v52 = vld [vmem:[%s15117_s28 + $0x90] ss:$8 sps:$4 sm:$0xff]  }
 0x419   : > { %v17123_v48 = vadd.f32 %v13178_v9, %v6356_v31  ;;  %v13067_v36 = vpop.f32.mrb[140].mxu1  ;;  %v13179_v16 = vpop.f32.mrb[140].mxu0 }
 0x41a   : > { %v13068_v3 = vpop.f32.mrb[141].mxu1  ;;  %v13180_v12 = vpop.f32.mrb[141].mxu0 }
 0x41b   : > { %v13069_v61 = vadd.f32 %v13068_v3, %v13067_v36  ;;  %v13070_v47 = vpop.f32.mrb[142].mxu1  ;;  %v13181_v62 = vadd.f32 %v13180_v12, %v13179_v16  ;;  %v13182_v46 = vpop.f32.mrb[142].mxu0  ;;  %v14881_v3 = vld [vmem:[%s15117_s28 + $0xa4] ss:$8 sps:$4 sm:$0xff]  }
 0x41c   : > { %v13071_v33 = vpop.f32.mrb[143].mxu1  ;;  %v13183_v50 = vpop.f32.mrb[143].mxu0  ;;  %v14885_v12 = vld [vmem:[%s15117_s28 + $0x1c4] ss:$8 sps:$4 sm:$0xff]  }
 0x41d   : > { %v6357_v8 = vadd.f32 %v13069_v61, %v16934_v38  ;;  %v13072_v35 = vadd.f32 %v13071_v33, %v13070_v47  ;;  %v13184_v34 = vadd.f32 %v13183_v50, %v13182_v46  ;;  %v14876_v38 = vld [vmem:[%s15117_s28 + $0x1b0] ss:$8 sps:$4 sm:$0xff]  }
 0x41e   : > { %8307 = vmatmul.mubr.bf16.gmra.mrb[248].mxu1 %v14865_v60  ;;  %8820 = vmatmul.mubr.bf16.gmra.mrb[248].mxu0 %v14869_v18 }
 0x41f   : > { %v6358_v27 = vadd.f32 %v13072_v35, %v16936_v4  ;;  %v17131_v14 = vadd.f32 %v13181_v62, %v6357_v8  ;;  %8314 = vmatprep.mubr.bf16.mxu1 %v14875_v53  ;;  %8827 = vmatprep.mubr.bf16.mxu0 %v14878_v51  ;;  %v14879_v35 = vld [vmem:[%s15117_s28 + $0xa0] ss:$8 sps:$4 sm:$0xff]  }
 0x421   : > { %v17133_v40 = vadd.f32 %v13184_v34, %v6358_v27  ;;  %v13073_v59 = vpop.f32.mrb[144].mxu1  ;;  %v13185_v20 = vpop.f32.mrb[144].mxu0 }
 0x422   : > { %v13074_v58 = vpop.f32.mrb[145].mxu1  ;;  %v13186_v25 = vpop.f32.mrb[145].mxu0 }
 0x423   : > { %v13075_v9 = vadd.f32 %v13074_v58, %v13073_v59  ;;  %v13076_v31 = vpop.f32.mrb[146].mxu1  ;;  %v13187_v36 = vadd.f32 %v13186_v25, %v13185_v20  ;;  %v13188_v16 = vpop.f32.mrb[146].mxu0  ;;  %v14889_v58 = vld [vmem:[%s15117_s28 + $0xb4] ss:$8 sps:$4 sm:$0xff]  }
 0x424   : > { %v13077_v4 = vpop.f32.mrb[147].mxu1  ;;  %v13189_v60 = vpop.f32.mrb[147].mxu0  ;;  %v14892_v25 = vld [vmem:[%s15117_s28 + $0x1d4] ss:$8 sps:$4 sm:$0xff]  }
 0x425   : > { %v6359_v18 = vadd.f32 %v13075_v9, %v16941_v6  ;;  %v13078_v61 = vadd.f32 %v13077_v4, %v13076_v31  ;;  %v13190_v47 = vadd.f32 %v13189_v60, %v13188_v16  ;;  %v14883_v6 = vld [vmem:[%s15117_s28 + $0x1c0] ss:$8 sps:$4 sm:$0xff]  }
 0x426   : > { %8315 = vmatmul.mubr.bf16.gmra.mrb[252].mxu1 %v14873_v52  ;;  %8828 = vmatmul.mubr.bf16.gmra.mrb[252].mxu0 %v14876_v38 }
 0x427   : > { %v6360_v62 = vadd.f32 %v13078_v61, %v16944_v32  ;;  %v17141_v46 = vadd.f32 %v13187_v36, %v6359_v18  ;;  %8322 = vmatprep.mubr.bf16.mxu1 %v14881_v3  ;;  %8835 = vmatprep.mubr.bf16.mxu0 %v14885_v12  ;;  %v14887_v61 = vld [vmem:[%s15117_s28 + $0xb0] ss:$8 sps:$4 sm:$0xff]  }
 0x429   : > { %v17143_v53 = vadd.f32 %v13190_v47, %v6360_v62  ;;  %v13079_v51 = vpop.f32.mrb[148].mxu1  ;;  %v13191_v33 = vpop.f32.mrb[148].mxu0 }
 0x42a   : > { %v13080_v50 = vpop.f32.mrb[149].mxu1  ;;  %v13192_v8 = vpop.f32.mrb[149].mxu0 }
 0x42b   : > { %v13081_v34 = vadd.f32 %v13080_v50, %v13079_v51  ;;  %v13082_v27 = vpop.f32.mrb[150].mxu1  ;;  %v13193_v59 = vadd.f32 %v13192_v8, %v13191_v33  ;;  %v13194_v20 = vpop.f32.mrb[150].mxu0  ;;  %v14895_v50 = vld [vmem:[%s15117_s28 + $0xc4] ss:$8 sps:$4 sm:$0xff]  }
 0x42c   : > { %v13083_v32 = vpop.f32.mrb[151].mxu1  ;;  %v13195_v52 = vpop.f32.mrb[151].mxu0  ;;  %v14899_v8 = vld [vmem:[%s15117_s28 + $0x1e4] ss:$8 sps:$4 sm:$0xff]  }
 0x42d   : > { %v6361_v38 = vadd.f32 %v13081_v34, %v16948_v21  ;;  %v13084_v9 = vadd.f32 %v13083_v32, %v13082_v27  ;;  %v13196_v31 = vadd.f32 %v13195_v52, %v13194_v20  ;;  %v14890_v21 = vld [vmem:[%s15117_s28 + $0x1d0] ss:$8 sps:$4 sm:$0xff]  }
 0x42e   : > { %8323 = vmatmul.mubr.bf16.gmra.mrb[0].mxu1 %v14879_v35  ;;  %8836 = vmatmul.mubr.bf16.gmra.mrb[0].mxu0 %v14883_v6 }
 0x42f   : > { %v6362_v36 = vadd.f32 %v13084_v9, %v16952_v28  ;;  %v17151_v16 = vadd.f32 %v13193_v59, %v6361_v38  ;;  %8330 = vmatprep.mubr.bf16.mxu1 %v14889_v58  ;;  %8843 = vmatprep.mubr.bf16.mxu0 %v14892_v25  ;;  %v14893_v9 = vld [vmem:[%s15117_s28 + $0xc0] ss:$8 sps:$4 sm:$0xff]  }
 0x431   : > { %v17153_v3 = vadd.f32 %v13196_v31, %v6362_v36  ;;  %v13085_v12 = vpop.f32.mrb[152].mxu1  ;;  %v13197_v4 = vpop.f32.mrb[152].mxu0 }
 0x432   : > { %v13086_v60 = vpop.f32.mrb[153].mxu1  ;;  %v13198_v18 = vpop.f32.mrb[153].mxu0 }
 0x433   : > { %v13087_v47 = vadd.f32 %v13086_v60, %v13085_v12  ;;  %v13088_v62 = vpop.f32.mrb[154].mxu1  ;;  %v13199_v51 = vadd.f32 %v13198_v18, %v13197_v4  ;;  %v13200_v33 = vpop.f32.mrb[154].mxu0  ;;  %v14903_v60 = vld [vmem:[%s15117_s28 + $0xd4] ss:$8 sps:$4 sm:$0xff]  }
 0x434   : > { %v13089_v28 = vpop.f32.mrb[155].mxu1  ;;  %v13201_v35 = vpop.f32.mrb[155].mxu0  ;;  %v14906_v18 = vld [vmem:[%s15117_s28 + $0x1f4] ss:$8 sps:$4 sm:$0xff]  }
 0x435   : > { %v6363_v6 = vadd.f32 %v13087_v47, %v16956_v17  ;;  %v13090_v34 = vadd.f32 %v13089_v28, %v13088_v62  ;;  %v13202_v27 = vadd.f32 %v13201_v35, %v13200_v33  ;;  %v14897_v17 = vld [vmem:[%s15117_s28 + $0x1e0] ss:$8 sps:$4 sm:$0xff]  }
 0x436   : > { %8331 = vmatmul.mubr.bf16.gmra.mrb[4].mxu1 %v14887_v61  ;;  %8844 = vmatmul.mubr.bf16.gmra.mrb[4].mxu0 %v14890_v21 }
 0x437   : > { %v6364_v59 = vadd.f32 %v13090_v34, %v16960_v42  ;;  %v17161_v20 = vadd.f32 %v13199_v51, %v6363_v6  ;;  %8338 = vmatprep.mubr.bf16.mxu1 %v14895_v50  ;;  %8851 = vmatprep.mubr.bf16.mxu0 %v14899_v8  ;;  %v14901_v34 = vld [vmem:[%s15117_s28 + $0xd0] ss:$8 sps:$4 sm:$0xff]  }
 0x439   : > { %v17163_v58 = vadd.f32 %v13202_v27, %v6364_v59  ;;  %v13091_v25 = vpop.f32.mrb[156].mxu1  ;;  %v13203_v32 = vpop.f32.mrb[156].mxu0 }
 0x43a   : > { %v13092_v52 = vpop.f32.mrb[157].mxu1  ;;  %v13204_v38 = vpop.f32.mrb[157].mxu0 }
 0x43b   : > { %v13093_v31 = vadd.f32 %v13092_v52, %v13091_v25  ;;  %v13094_v36 = vpop.f32.mrb[158].mxu1  ;;  %v13205_v12 = vadd.f32 %v13204_v38, %v13203_v32  ;;  %v13206_v4 = vpop.f32.mrb[158].mxu0  ;;  %v14909_v52 = vld [vmem:[%s15117_s28 + $0xe4] ss:$8 sps:$4 sm:$0xff]  }
 0x43c   : > { %v13095_v42 = vpop.f32.mrb[159].mxu1  ;;  %v13207_v61 = vpop.f32.mrb[159].mxu0  ;;  %v14913_v38 = vld [vmem:[%s15117_s28 + $0x204] ss:$8 sps:$4 sm:$0xff]  }
 0x43d   : > { %v6365_v21 = vadd.f32 %v13093_v31, %v16964_v43  ;;  %v13096_v47 = vadd.f32 %v13095_v42, %v13094_v36  ;;  %v13208_v62 = vadd.f32 %v13207_v61, %v13206_v4  ;;  %v14904_v43 = vld [vmem:[%s15117_s28 + $0x1f0] ss:$8 sps:$4 sm:$0xff]  }
 0x43e   : > { %8339 = vmatmul.mubr.bf16.gmra.mrb[8].mxu1 %v14893_v9  ;;  %8852 = vmatmul.mubr.bf16.gmra.mrb[8].mxu0 %v14897_v17 }
 0x43f   : > { %v6366_v51 = vadd.f32 %v13096_v47, %v16968_v15  ;;  %v17171_v33 = vadd.f32 %v13205_v12, %v6365_v21  ;;  %8346 = vmatprep.mubr.bf16.mxu1 %v14903_v60  ;;  %8859 = vmatprep.mubr.bf16.mxu0 %v14906_v18  ;;  %v14907_v47 = vld [vmem:[%s15117_s28 + $0xe0] ss:$8 sps:$4 sm:$0xff]  }
 0x441   : > { %v17173_v50 = vadd.f32 %v13208_v62, %v6366_v51  ;;  %v13225_v8 = vpop.f32.mrb[160].mxu1  ;;  %v13337_v28 = vpop.f32.mrb[160].mxu0 }
 0x442   : > { %v13226_v35 = vpop.f32.mrb[161].mxu1  ;;  %v13338_v6 = vpop.f32.mrb[161].mxu0 }
 0x443   : > { %v13227_v27 = vadd.f32 %v13226_v35, %v13225_v8  ;;  %v13228_v59 = vpop.f32.mrb[162].mxu1  ;;  %v13339_v25 = vadd.f32 %v13338_v6, %v13337_v28  ;;  %v13340_v32 = vpop.f32.mrb[162].mxu0  ;;  %v14917_v35 = vld [vmem:[%s15117_s28 + $0xf4] ss:$8 sps:$4 sm:$0xff]  }
 0x444   : > { %v13229_v15 = vpop.f32.mrb[163].mxu1  ;;  %v13341_v9 = vpop.f32.mrb[163].mxu0  ;;  %v14920_v6 = vld [vmem:[%s15117_s28 + $0x214] ss:$8 sps:$4 sm:$0xff]  }
 0x445   : > { %v7361_v17 = vadd.f32 %v13227_v27, %v16975_v49  ;;  %v13230_v31 = vadd.f32 %v13229_v15, %v13228_v59  ;;  %v13342_v36 = vadd.f32 %v13341_v9, %v13340_v32  ;;  %v14911_v49 = vld [vmem:[%s15117_s28 + $0x200] ss:$8 sps:$4 sm:$0xff]  }
 0x446   : > { %8347 = vmatmul.mubr.bf16.gmra.mrb[12].mxu1 %v14901_v34  ;;  %8860 = vmatmul.mubr.bf16.gmra.mrb[12].mxu0 %v14904_v43  ;;  %v14975_v9 = vld [vmem:[%s17631_s3] sm:$0xff]  }
 0x447   : > { %v7362_v12 = vadd.f32 %v13230_v31, %v16978_v5  ;;  %v17181_v4 = vadd.f32 %v13339_v25, %v7361_v17  ;;  %8354 = vmatprep.mubr.bf16.mxu1 %v14909_v52  ;;  %8867 = vmatprep.mubr.bf16.mxu0 %v14913_v38  ;;  %v14915_v31 = vld [vmem:[%s15117_s28 + $0xf0] ss:$8 sps:$4 sm:$0xff]  }
 0x449   : > { %v17183_v60 = vadd.f32 %v13342_v36, %v7362_v12  ;;  %v13231_v18 = vpop.f32.mrb[164].mxu1  ;;  %v13343_v42 = vpop.f32.mrb[164].mxu0  ;;  %v14918_v36 = vld [vmem:[%s15117_s28 + $0x210] ss:$8 sps:$4 sm:$0xff]  }
 0x44a   : > { %v13232_v61 = vpop.f32.mrb[165].mxu1  ;;  %v13344_v21 = vpop.f32.mrb[165].mxu0 }
 0x44b   : > { %v13233_v62 = vadd.f32 %v13232_v61, %v13231_v18  ;;  %v13234_v51 = vpop.f32.mrb[166].mxu1  ;;  %v13345_v8 = vadd.f32 %v13344_v21, %v13343_v42  ;;  %v13346_v28 = vpop.f32.mrb[166].mxu0  ;;  %v14923_v21 = vld [vmem:[%s15117_s28 + $0x104] ss:$8 sps:$4 sm:$0xff]  }
 0x44c   : > { %v13235_v5 = vpop.f32.mrb[167].mxu1  ;;  %v13347_v34 = vpop.f32.mrb[167].mxu0 }
 0x44d   : > { %v7363_v43 = vadd.f32 %v13233_v62, %v16985_v26  ;;  %v13236_v27 = vadd.f32 %v13235_v5, %v13234_v51  ;;  %v13348_v59 = vadd.f32 %v13347_v34, %v13346_v28  ;;  %v14974_v26 = vld [vmem:[%s17631_s3 + $0x40] sm:$0xff]  }
 0x44e   : > { %8355 = vmatmul.mubr.bf16.gmra.mrb[16].mxu1 %v14907_v47  ;;  %8868 = vmatmul.mubr.bf16.gmra.mrb[16].mxu0 %v14911_v49  ;;  %v14927_v47 = vld [vmem:[%s15117_s28 + $0x224] ss:$8 sps:$4 sm:$0xff]  }
 0x44f   : > { %v7364_v25 = vadd.f32 %v13236_v27, %v16988_v23  ;;  %v17191_v32 = vadd.f32 %v13345_v8, %v7363_v43  ;;  %8362 = vmatprep.mubr.bf16.mxu1 %v14917_v35  ;;  %8875 = vmatprep.mubr.bf16.mxu0 %v14920_v6 }
 0x450   : > { %13769 = vmatprep.subr.bf16.mxu0 %v14974_v26 }
 0x451   : > { %v17193_v52 = vadd.f32 %v13348_v59, %v7364_v25  ;;  %v13237_v38 = vpop.f32.mrb[168].mxu1  ;;  %v13349_v15 = vpop.f32.mrb[168].mxu0  ;;  %13770 = vmatpush3.bf16.msra.mxu0 %v14975_v9  ;;  %v14921_v25 = vld [vmem:[%s15117_s28 + $0x100] ss:$8 sps:$4 sm:$0xff]  }
 0x452   : > { %v13238_v17 = vpop.f32.mrb[169].mxu1  ;;  %v13350_v23 = vpop.f32.mrb[169].mxu0 }
 0x453   : > { %v13239_v12 = vadd.f32 %v13238_v17, %v13237_v38  ;;  %v13240_v18 = vpop.f32.mrb[170].mxu1  ;;  %v13351_v42 = vadd.f32 %v13350_v23, %v13349_v15  ;;  %v13352_v61 = vpop.f32.mrb[170].mxu0  ;;  %v14931_v17 = vld [vmem:[%s15117_s28 + $0x114] ss:$8 sps:$4 sm:$0xff]  }
 0x454   : > { %v13241_v49 = vpop.f32.mrb[171].mxu1  ;;  %v13353_v62 = vpop.f32.mrb[171].mxu0  ;;  %v14934_v23 = vld [vmem:[%s15117_s28 + $0x234] ss:$8 sps:$4 sm:$0xff]  }
 0x455   : > { %v7365_v51 = vadd.f32 %v13239_v12, %v16995_v54  ;;  %v13242_v8 = vadd.f32 %v13241_v49, %v13240_v18  ;;  %v13354_v28 = vadd.f32 %v13353_v62, %v13352_v61  ;;  %v14925_v54 = vld [vmem:[%s15117_s28 + $0x220] ss:$8 sps:$4 sm:$0xff]  }
 0x456   : > { %8363 = vmatmul.mubr.bf16.gmra.mrb[20].mxu1 %v14915_v31  ;;  %8876 = vmatmul.mubr.bf16.gmra.mrb[20].mxu0 %v14918_v36  ;;  %v14983_v62 = vld [vmem:[%s17631_s3 + $0x8] sm:$0xff]  }
 0x457   : > { %v7366_v35 = vadd.f32 %v13242_v8, %v16998_v13  ;;  %v17207_v6 = vadd.f32 %v13351_v42, %v7365_v51  ;;  %8370 = vmatprep.mubr.bf16.mxu1 %v14923_v21  ;;  %8883 = vmatprep.mubr.bf16.mxu0 %v14927_v47 }
 0x459   : > { %v17209_v5 = vadd.f32 %v13354_v28, %v7366_v35  ;;  %v13243_v34 = vpop.f32.mrb[172].mxu1  ;;  %v13355_v43 = vpop.f32.mrb[172].mxu0  ;;  %v14932_v28 = vld [vmem:[%s15117_s28 + $0x230] ss:$8 sps:$4 sm:$0xff]  }
 0x45a   : > { %v13244_v27 = vpop.f32.mrb[173].mxu1  ;;  %v13356_v59 = vpop.f32.mrb[173].mxu0 }
 0x45b   : > { %v13245_v38 = vadd.f32 %v13244_v27, %v13243_v34  ;;  %v13246_v15 = vpop.f32.mrb[174].mxu1  ;;  %v13357_v26 = vadd.f32 %v13356_v59, %v13355_v43  ;;  %v13358_v9 = vpop.f32.mrb[174].mxu0  ;;  %v14937_v59 = vld [vmem:[%s15117_s28 + $0x264] ss:$8 sps:$4 sm:$0xff]  }
 0x45c   : > { %v13247_v13 = vpop.f32.mrb[175].mxu1  ;;  %v13359_v31 = vpop.f32.mrb[175].mxu0 }
 0x45d   : > { %v7367_v36 = vadd.f32 %v13245_v38, %v17006_v55  ;;  %v13248_v12 = vadd.f32 %v13247_v13, %v13246_v15  ;;  %v13360_v18 = vadd.f32 %v13359_v31, %v13358_v9  ;;  %v14982_v55 = vld [vmem:[%s17631_s3 + $0x48] sm:$0xff]  }
 0x45e   : > { %8371 = vmatmul.mubr.bf16.gmra.mrb[24].mxu1 %v14921_v25  ;;  %8884 = vmatmul.mubr.bf16.gmra.mrb[24].mxu0 %v14925_v54 }
 0x45f   : > { %v7368_v42 = vadd.f32 %v13248_v12, %v17008_v7  ;;  %v17217_v61 = vadd.f32 %v13357_v26, %v7367_v36  ;;  %8378 = vmatprep.mubr.bf16.mxu1 %v14931_v17  ;;  %8891 = vmatprep.mubr.bf16.mxu0 %v14934_v23  ;;  %v14929_v7 = vld [vmem:[%s15117_s28 + $0x110] ss:$8 sps:$4 sm:$0xff]  }
 0x460   : > { %13771 = vmatprep.subr.bf16.mxu0 %v14982_v55  ;;  %v14940_v55 = vld [vmem:[%s15117_s28 + $0x274] ss:$8 sps:$4 sm:$0xff]  }
 0x461   : > { %v17219_v21 = vadd.f32 %v13360_v18, %v7368_v42  ;;  %v13249_v47 = vpop.f32.mrb[176].mxu1  ;;  %v13361_v49 = vpop.f32.mrb[176].mxu0  ;;  %13772 = vmatpush3.bf16.msra.mxu0 %v14983_v62  ;;  %v14935_v18 = vld [vmem:[%s15117_s28 + $0x260] ss:$8 sps:$4 sm:$0xff]  }
 0x462   : > { %v13250_v51 = vpop.f32.mrb[177].mxu1  ;;  %v13362_v8 = vpop.f32.mrb[177].mxu0 }
 0x463   : > { %v13251_v35 = vadd.f32 %v13250_v51, %v13249_v47  ;;  %v13252_v34 = vpop.f32.mrb[178].mxu1  ;;  %v13363_v43 = vadd.f32 %v13362_v8, %v13361_v49  ;;  %v13364_v27 = vpop.f32.mrb[178].mxu0 }
 0x464   : > { %v13253_v25 = vpop.f32.mrb[179].mxu1  ;;  %v13365_v54 = vpop.f32.mrb[179].mxu0 }
 0x465   : > { %v7369_v38 = vadd.f32 %v13251_v35, %v17016_v63  ;;  %v13254_v15 = vadd.f32 %v13253_v25, %v13252_v34  ;;  %v13366_v26 = vadd.f32 %v13365_v54, %v13364_v27 }
 0x466   : > { %8379 = vmatmul.mubr.bf16.gmra.mrb[28].mxu1 %v14929_v7  ;;  %8892 = vmatmul.mubr.bf16.gmra.mrb[28].mxu0 %v14932_v28 }
 0x467   : > { %v7370_v9 = vadd.f32 %v13254_v15, %v17018_v29  ;;  %v17232_v17 = vadd.f32 %v13363_v43, %v7369_v38  ;;  %9284 = vmatprep.mubr.bf16.mxu1 %v14937_v59  ;;  %v14987_v59 = vld [vmem:[%s17631_s3 + $0x50] sm:$0xff]  }
 0x468   : > { %v14938_v38 = vld [vmem:[%s15117_s28 + $0x270] ss:$8 sps:$4 sm:$0xff]   ;;  %13773 = vmatprep.subr.bf16.mxu0 %v14987_v59 }
 0x469   : > { %v17234_v23 = vadd.f32 %v13366_v26, %v7370_v9  ;;  %v13255_v13 = vpop.f32.mrb[180].mxu1  ;;  %v13367_v31 = vpop.f32.mrb[180].mxu0 }
 0x46a   : > { %v13256_v36 = vpop.f32.mrb[181].mxu1  ;;  %v13368_v12 = vpop.f32.mrb[181].mxu0 }
 0x46b   : > { %v13257_v42 = vadd.f32 %v13256_v36, %v13255_v13  ;;  %v13258_v47 = vpop.f32.mrb[182].mxu1  ;;  %v13369_v63 = vadd.f32 %v13368_v12, %v13367_v31  ;;  %v13370_v49 = vpop.f32.mrb[182].mxu0  ;;  %v14943_v13 = vld [vmem:[%s15117_s28 + $0x284] ss:$8 sps:$4 sm:$0xff]  }
 0x46c   : > { %v13259_v62 = vpop.f32.mrb[183].mxu1  ;;  %v13371_v51 = vpop.f32.mrb[183].mxu0 }
 0x46d   : > { %v7371_v29 = vadd.f32 %v13257_v42, %v17032_v56  ;;  %v13260_v8 = vadd.f32 %v13259_v62, %v13258_v47  ;;  %v13372_v7 = vadd.f32 %v13371_v51, %v13370_v49  ;;  %v14988_v56 = vld [vmem:[%s17631_s3 + $0x10] sm:$0xff]  }
 0x46e   : > { %9285 = vmatmul.mubr.bf16.vlgmr.msra.gmra.mrb[32].mxu1 %v14935_v18  ;;  %13774 = vmatpush3.bf16.msra.mxu0 %v14988_v56 }
 0x46f   : > { %v7372_v28 = vadd.f32 %v13260_v8, %v17040_v30  ;;  %v17240_v35 = vadd.f32 %v13369_v63, %v7371_v29  ;;  %9292 = vmatprep.mubr.bf16.mxu1 %v14940_v55  ;;  %v14941_v8 = vld [vmem:[%s15117_s28 + $0x280] ss:$8 sps:$4 sm:$0xff]  }
 0x471   : > { %v17242_v34 = vadd.f32 %v13372_v7, %v7372_v28  ;;  %v13261_v43 = vpop.f32.mrb[184].mxu1  ;;  %v13373_v27 = vpop.f32.mrb[184].mxu0 }
 0x472   : > { %v13262_v25 = vpop.f32.mrb[185].mxu1  ;;  %v13374_v54 = vpop.f32.mrb[185].mxu0 }
 0x473   : > { %v13263_v15 = vadd.f32 %v13262_v25, %v13261_v43  ;;  %v13264_v30 = vpop.f32.mrb[186].mxu1  ;;  %v13375_v26 = vadd.f32 %v13374_v54, %v13373_v27  ;;  %v13376_v9 = vpop.f32.mrb[186].mxu0  ;;  %v14946_v27 = vld [vmem:[%s15117_s28 + $0x294] ss:$8 sps:$4 sm:$0xff]  }
 0x474   : > { %v13265_v31 = vpop.f32.mrb[187].mxu1  ;;  %v13377_v36 = vpop.f32.mrb[187].mxu0 }
 0x475   : > { %v7373_v12 = vadd.f32 %v13263_v15, %v17054_v24  ;;  %v13266_v18 = vadd.f32 %v13265_v31, %v13264_v30  ;;  %v13378_v42 = vadd.f32 %v13377_v36, %v13376_v9 }
 0x476   : > { %9293 = vmatmul.mubr.bf16.gmra.mrb[36].mxu1 %v14938_v38 }
 0x477   : > { %v7374_v47 = vadd.f32 %v13266_v18, %v17059_v0  ;;  %v17254_v63 = vadd.f32 %v13375_v26, %v7373_v12  ;;  %9300 = vmatprep.mubr.bf16.mxu1 %v14943_v13  ;;  %v14989_v13 = vld [vmem:[%s17631_s3 + $0x58] sm:$0xff]  }
 0x478   : > { %v14944_v12 = vld [vmem:[%s15117_s28 + $0x290] ss:$8 sps:$4 sm:$0xff]   ;;  %13775 = vmatprep.subr.bf16.mxu0 %v14989_v13 }
 0x479   : > { %v17256_v49 = vadd.f32 %v13378_v42, %v7374_v47  ;;  %v13267_v55 = vpop.f32.mrb[188].mxu1  ;;  %v13379_v62 = vpop.f32.mrb[188].mxu0 }
 0x47a   : > { %v13268_v51 = vpop.f32.mrb[189].mxu1  ;;  %v13380_v29 = vpop.f32.mrb[189].mxu0 }
 0x47b   : > { %v13269_v7 = vadd.f32 %v13268_v51, %v13267_v55  ;;  %v13270_v28 = vpop.f32.mrb[190].mxu1  ;;  %v13381_v43 = vadd.f32 %v13380_v29, %v13379_v62  ;;  %v13382_v24 = vpop.f32.mrb[190].mxu0  ;;  %v14949_v55 = vld [vmem:[%s15117_s28 + $0x2a4] ss:$8 sps:$4 sm:$0xff]  }
 0x47c   : > { %v13271_v59 = vpop.f32.mrb[191].mxu1  ;;  %v13383_v56 = vpop.f32.mrb[191].mxu0 }
 0x47d   : > { %v7375_v0 = vadd.f32 %v13269_v7, %v17076_v1  ;;  %v13272_v25 = vadd.f32 %v13271_v59, %v13270_v28  ;;  %v13384_v54 = vadd.f32 %v13383_v56, %v13382_v24  ;;  %v14990_v1 = vld [vmem:[%s17631_s3 + $0x18] sm:$0xff]  }
 0x47e   : > { %9301 = vmatmul.mubr.bf16.gmra.mrb[40].mxu1 %v14941_v8  ;;  %13776 = vmatpush3.bf16.msra.mxu0 %v14990_v1 }
 0x47f   : > { %v7376_v38 = vadd.f32 %v13272_v25, %v17081_v19  ;;  %v17262_v15 = vadd.f32 %v13381_v43, %v7375_v0  ;;  %9308 = vmatprep.mubr.bf16.mxu1 %v14946_v27  ;;  %v14947_v25 = vld [vmem:[%s15117_s28 + $0x2a0] ss:$8 sps:$4 sm:$0xff]  }
 0x481   : > { %v17264_v30 = vadd.f32 %v13384_v54, %v7376_v38  ;;  %v13273_v26 = vpop.f32.mrb[192].mxu1  ;;  %v13385_v9 = vpop.f32.mrb[192].mxu0 }
 0x482   : > { %v13274_v31 = vpop.f32.mrb[193].mxu1  ;;  %v13386_v36 = vpop.f32.mrb[193].mxu0 }
 0x483   : > { %v13275_v18 = vadd.f32 %v13274_v31, %v13273_v26  ;;  %v13276_v19 = vpop.f32.mrb[194].mxu1  ;;  %v13387_v42 = vadd.f32 %v13386_v36, %v13385_v9  ;;  %v13388_v47 = vpop.f32.mrb[194].mxu0  ;;  %v14952_v9 = vld [vmem:[%s15117_s28 + $0x2b4] ss:$8 sps:$4 sm:$0xff]  }
 0x484   : > { %v13277_v62 = vpop.f32.mrb[195].mxu1  ;;  %v13389_v51 = vpop.f32.mrb[195].mxu0 }
 0x485   : > { %v7377_v29 = vadd.f32 %v13275_v18, %v17098_v2  ;;  %v13278_v8 = vadd.f32 %v13277_v62, %v13276_v19  ;;  %v13390_v7 = vadd.f32 %v13389_v51, %v13388_v47 }
 0x486   : > { %9309 = vmatmul.mubr.bf16.gmra.mrb[44].mxu1 %v14944_v12 }
 0x487   : > { %v7378_v28 = vadd.f32 %v13278_v8, %v17103_v22  ;;  %v17276_v43 = vadd.f32 %v13387_v42, %v7377_v29  ;;  %9316 = vmatprep.mubr.bf16.mxu1 %v14949_v55  ;;  %v14991_v55 = vld [vmem:[%s17631_s3 + $0x60] sm:$0xff]   ;;  %v14950_v29 = vld [vmem:[%s15117_s28 + $0x2b0] ss:$8 sps:$4 sm:$0xff]  }
 0x488   : > { %13777 = vmatprep.subr.bf16.mxu0 %v14991_v55 }
 0x489   : > { %v17278_v24 = vadd.f32 %v13390_v7, %v7378_v28  ;;  %v13279_v27 = vpop.f32.mrb[196].mxu1  ;;  %v13391_v59 = vpop.f32.mrb[196].mxu0 }
 0x48a   : > { %v13280_v56 = vpop.f32.mrb[197].mxu1  ;;  %v13392_v0 = vpop.f32.mrb[197].mxu0 }
 0x48b   : > { %v13281_v54 = vadd.f32 %v13280_v56, %v13279_v27  ;;  %v13282_v38 = vpop.f32.mrb[198].mxu1  ;;  %v13393_v26 = vadd.f32 %v13392_v0, %v13391_v59  ;;  %v13394_v2 = vpop.f32.mrb[198].mxu0  ;;  %v14955_v27 = vld [vmem:[%s15117_s28 + $0x2c4] ss:$8 sps:$4 sm:$0xff]  }
 0x48c   : > { %v13283_v13 = vpop.f32.mrb[199].mxu1  ;;  %v13395_v1 = vpop.f32.mrb[199].mxu0 }
 0x48d   : > { %v7379_v22 = vadd.f32 %v13281_v54, %v17111_v45  ;;  %v13284_v31 = vadd.f32 %v13283_v13, %v13282_v38  ;;  %v13396_v36 = vadd.f32 %v13395_v1, %v13394_v2  ;;  %v14992_v45 = vld [vmem:[%s17631_s3 + $0x20] sm:$0xff]  }
 0x48e   : > { %9317 = vmatmul.mubr.bf16.gmra.mrb[48].mxu1 %v14947_v25  ;;  %13778 = vmatpush3.bf16.msra.mxu0 %v14992_v45 }
 0x48f   : > { %v7380_v12 = vadd.f32 %v13284_v31, %v17113_v44  ;;  %v17284_v18 = vadd.f32 %v13393_v26, %v7379_v22  ;;  %9324 = vmatprep.mubr.bf16.mxu1 %v14952_v9  ;;  %v14953_v31 = vld [vmem:[%s15117_s28 + $0x2c0] ss:$8 sps:$4 sm:$0xff]  }
 0x491   : > { %v17286_v19 = vadd.f32 %v13396_v36, %v7380_v12  ;;  %v13285_v42 = vpop.f32.mrb[200].mxu1  ;;  %v13397_v47 = vpop.f32.mrb[200].mxu0 }
 0x492   : > { %v13286_v62 = vpop.f32.mrb[201].mxu1  ;;  %v13398_v51 = vpop.f32.mrb[201].mxu0 }
 0x493   : > { %v13287_v8 = vadd.f32 %v13286_v62, %v13285_v42  ;;  %v13288_v44 = vpop.f32.mrb[202].mxu1  ;;  %v13399_v7 = vadd.f32 %v13398_v51, %v13397_v47  ;;  %v13400_v28 = vpop.f32.mrb[202].mxu0  ;;  %v14958_v47 = vld [vmem:[%s15117_s28 + $0x2d4] ss:$8 sps:$4 sm:$0xff]  }
 0x494   : > { %v13289_v59 = vpop.f32.mrb[203].mxu1  ;;  %v13401_v56 = vpop.f32.mrb[203].mxu0 }
 0x495   : > { %v7381_v0 = vadd.f32 %v13287_v8, %v17121_v39  ;;  %v13290_v25 = vadd.f32 %v13289_v59, %v13288_v44  ;;  %v13402_v54 = vadd.f32 %v13401_v56, %v13400_v28 }
 0x496   : > { %9325 = vmatmul.mubr.bf16.gmra.mrb[52].mxu1 %v14950_v29 }
 0x497   : > { %v7382_v38 = vadd.f32 %v13290_v25, %v17123_v48  ;;  %v17298_v26 = vadd.f32 %v13399_v7, %v7381_v0  ;;  %9332 = vmatprep.mubr.bf16.mxu1 %v14955_v27  ;;  %v14993_v27 = vld [vmem:[%s17631_s3 + $0x68] sm:$0xff]   ;;  %v14956_v0 = vld [vmem:[%s15117_s28 + $0x2d0] ss:$8 sps:$4 sm:$0xff]  }
 0x498   : > { %13779 = vmatprep.subr.bf16.mxu0 %v14993_v27 }
 0x499   : > { %v17300_v2 = vadd.f32 %v13402_v54, %v7382_v38  ;;  %v13291_v9 = vpop.f32.mrb[204].mxu1  ;;  %v13403_v13 = vpop.f32.mrb[204].mxu0 }
 0x49a   : > { %v13292_v1 = vpop.f32.mrb[205].mxu1  ;;  %v13404_v22 = vpop.f32.mrb[205].mxu0 }
 0x49b   : > { %v13293_v36 = vadd.f32 %v13292_v1, %v13291_v9  ;;  %v13294_v12 = vpop.f32.mrb[206].mxu1  ;;  %v13405_v42 = vadd.f32 %v13404_v22, %v13403_v13  ;;  %v13406_v39 = vpop.f32.mrb[206].mxu0  ;;  %v14961_v9 = vld [vmem:[%s15117_s28 + $0x2e4] ss:$8 sps:$4 sm:$0xff]  }
 0x49c   : > { %v13295_v55 = vpop.f32.mrb[207].mxu1  ;;  %v13407_v45 = vpop.f32.mrb[207].mxu0 }
 0x49d   : > { %v7383_v48 = vadd.f32 %v13293_v36, %v17131_v14  ;;  %v13296_v62 = vadd.f32 %v13295_v55, %v13294_v12  ;;  %v13408_v51 = vadd.f32 %v13407_v45, %v13406_v39  ;;  %v14994_v14 = vld [vmem:[%s17631_s3 + $0x28] sm:$0xff]  }
 0x49e   : > { %9333 = vmatmul.mubr.bf16.gmra.mrb[56].mxu1 %v14953_v31  ;;  %13780 = vmatpush3.bf16.msra.mxu0 %v14994_v14 }
 0x49f   : > { %v7384_v29 = vadd.f32 %v13296_v62, %v17133_v40  ;;  %v17306_v8 = vadd.f32 %v13405_v42, %v7383_v48  ;;  %9340 = vmatprep.mubr.bf16.mxu1 %v14958_v47  ;;  %v14959_v62 = vld [vmem:[%s15117_s28 + $0x2e0] ss:$8 sps:$4 sm:$0xff]  }
 0x4a1   : > { %v17308_v44 = vadd.f32 %v13408_v51, %v7384_v29  ;;  %v13297_v7 = vpop.f32.mrb[208].mxu1  ;;  %v13409_v28 = vpop.f32.mrb[208].mxu0 }
 0x4a2   : > { %v13298_v59 = vpop.f32.mrb[209].mxu1  ;;  %v13410_v56 = vpop.f32.mrb[209].mxu0 }
 0x4a3   : > { %v13299_v25 = vadd.f32 %v13298_v59, %v13297_v7  ;;  %v13300_v40 = vpop.f32.mrb[210].mxu1  ;;  %v13411_v54 = vadd.f32 %v13410_v56, %v13409_v28  ;;  %v13412_v38 = vpop.f32.mrb[210].mxu0  ;;  %v14964_v28 = vld [vmem:[%s15117_s28 + $0x2f4] ss:$8 sps:$4 sm:$0xff]  }
 0x4a4   : > { %v13301_v13 = vpop.f32.mrb[211].mxu1  ;;  %v13413_v1 = vpop.f32.mrb[211].mxu0 }
 0x4a5   : > { %v7385_v22 = vadd.f32 %v13299_v25, %v17141_v46  ;;  %v13302_v31 = vadd.f32 %v13301_v13, %v13300_v40  ;;  %v13414_v36 = vadd.f32 %v13413_v1, %v13412_v38 }
 0x4a6   : > { %9341 = vmatmul.mubr.bf16.gmra.mrb[60].mxu1 %v14956_v0 }
 0x4a7   : > { %v7386_v12 = vadd.f32 %v13302_v31, %v17143_v53  ;;  %v17320_v42 = vadd.f32 %v13411_v54, %v7385_v22  ;;  %9348 = vmatprep.mubr.bf16.mxu1 %v14961_v9  ;;  %v14995_v9 = vld [vmem:[%s17631_s3 + $0x70] sm:$0xff]  }
 0x4a8   : > { %v14962_v22 = vld [vmem:[%s15117_s28 + $0x2f0] ss:$8 sps:$4 sm:$0xff]   ;;  %13781 = vmatprep.subr.bf16.mxu0 %v14995_v9 }
 0x4a9   : > { %v17322_v39 = vadd.f32 %v13414_v36, %v7386_v12  ;;  %v13303_v47 = vpop.f32.mrb[212].mxu1  ;;  %v13415_v55 = vpop.f32.mrb[212].mxu0 }
 0x4aa   : > { %v13304_v45 = vpop.f32.mrb[213].mxu1  ;;  %v13416_v48 = vpop.f32.mrb[213].mxu0 }
 0x4ab   : > { %v13305_v51 = vadd.f32 %v13304_v45, %v13303_v47  ;;  %v13306_v29 = vpop.f32.mrb[214].mxu1  ;;  %v13417_v7 = vadd.f32 %v13416_v48, %v13415_v55  ;;  %v13418_v46 = vpop.f32.mrb[214].mxu0  ;;  %v14967_v47 = vld [vmem:[%s15117_s28 + $0x304] ss:$8 sps:$4 sm:$0xff]  }
 0x4ac   : > { %v13307_v27 = vpop.f32.mrb[215].mxu1  ;;  %v13419_v14 = vpop.f32.mrb[215].mxu0 }
 0x4ad   : > { %v7387_v53 = vadd.f32 %v13305_v51, %v17151_v16  ;;  %v13308_v59 = vadd.f32 %v13307_v27, %v13306_v29  ;;  %v13420_v56 = vadd.f32 %v13419_v14, %v13418_v46  ;;  %v14996_v16 = vld [vmem:[%s17631_s3 + $0x30] sm:$0xff]  }
 0x4ae   : > { %9349 = vmatmul.mubr.bf16.gmra.mrb[64].mxu1 %v14959_v62  ;;  %13782 = vmatpush3.bf16.msra.mxu0 %v14996_v16 }
 0x4af   : > { %v7388_v0 = vadd.f32 %v13308_v59, %v17153_v3  ;;  %v17328_v25 = vadd.f32 %v13417_v7, %v7387_v53  ;;  %9356 = vmatprep.mubr.bf16.mxu1 %v14964_v28  ;;  %v14965_v59 = vld [vmem:[%s15117_s28 + $0x300] ss:$8 sps:$4 sm:$0xff]  }
 0x4b1   : > { %v17330_v40 = vadd.f32 %v13420_v56, %v7388_v0  ;;  %v13309_v54 = vpop.f32.mrb[216].mxu1  ;;  %v13421_v38 = vpop.f32.mrb[216].mxu0 }
 0x4b2   : > { %v13310_v13 = vpop.f32.mrb[217].mxu1  ;;  %v13422_v1 = vpop.f32.mrb[217].mxu0 }
 0x4b3   : > { %v13311_v31 = vadd.f32 %v13310_v13, %v13309_v54  ;;  %v13312_v3 = vpop.f32.mrb[218].mxu1  ;;  %v13423_v36 = vadd.f32 %v13422_v1, %v13421_v38  ;;  %v13424_v12 = vpop.f32.mrb[218].mxu0  ;;  %v14970_v38 = vld [vmem:[%s15117_s28 + $0x314] ss:$8 sps:$4 sm:$0xff]  }
 0x4b4   : > { %v13313_v55 = vpop.f32.mrb[219].mxu1  ;;  %v13425_v45 = vpop.f32.mrb[219].mxu0 }
 0x4b5   : > { %v7389_v48 = vadd.f32 %v13311_v31, %v17161_v20  ;;  %v13314_v62 = vadd.f32 %v13313_v55, %v13312_v3  ;;  %v13426_v51 = vadd.f32 %v13425_v45, %v13424_v12 }
 0x4b6   : > { %9357 = vmatmul.mubr.bf16.gmra.mrb[68].mxu1 %v14962_v22 }
 0x4b7   : > { %v7390_v29 = vadd.f32 %v13314_v62, %v17163_v58  ;;  %v17342_v7 = vadd.f32 %v13423_v36, %v7389_v48  ;;  %9364 = vmatprep.mubr.bf16.mxu1 %v14967_v47  ;;  %v14997_v47 = vld [vmem:[%s17631_s3 + $0x78] sm:$0xff]  }
 0x4b8   : > { %v14968_v48 = vld [vmem:[%s15117_s28 + $0x310] ss:$8 sps:$4 sm:$0xff]   ;;  %13783 = vmatprep.subr.bf16.mxu0 %v14997_v47 }
 0x4b9   : > { %v17344_v46 = vadd.f32 %v13426_v51, %v7390_v29  ;;  %v13315_v28 = vpop.f32.mrb[220].mxu1  ;;  %v13427_v27 = vpop.f32.mrb[220].mxu0 }
 0x4ba   : > { %v13316_v14 = vpop.f32.mrb[221].mxu1  ;;  %v13428_v53 = vpop.f32.mrb[221].mxu0 }
 0x4bb   : > { %v13317_v56 = vadd.f32 %v13316_v14, %v13315_v28  ;;  %v13318_v0 = vpop.f32.mrb[222].mxu1  ;;  %v13429_v54 = vadd.f32 %v13428_v53, %v13427_v27  ;;  %v13430_v20 = vpop.f32.mrb[222].mxu0  ;;  %v14973_v28 = vld [vmem:[%s15117_s28 + $0x324] ss:$8 sps:$4 sm:$0xff]  }
 0x4bc   : > { %v13319_v9 = vpop.f32.mrb[223].mxu1  ;;  %v13431_v16 = vpop.f32.mrb[223].mxu0 }
 0x4bd   : > { %v7391_v58 = vadd.f32 %v13317_v56, %v17171_v33  ;;  %v13320_v13 = vadd.f32 %v13319_v9, %v13318_v0  ;;  %v13432_v1 = vadd.f32 %v13431_v16, %v13430_v20  ;;  %v14998_v33 = vld [vmem:[%s17631_s3 + $0x38] sm:$0xff]  }
 0x4be   : > { %9365 = vmatmul.mubr.bf16.gmra.mrb[72].mxu1 %v14965_v59  ;;  %13784 = vmatpush3.bf16.msra.mxu0 %v14998_v33 }
 0x4bf   : > { %v7392_v22 = vadd.f32 %v13320_v13, %v17173_v50  ;;  %v17350_v31 = vadd.f32 %v13429_v54, %v7391_v58  ;;  %9372 = vmatprep.mubr.bf16.mxu1 %v14970_v38  ;;  %v14971_v13 = vld [vmem:[%s15117_s28 + $0x320] ss:$8 sps:$4 sm:$0xff]  }
 0x4c1   : > { %v17352_v3 = vadd.f32 %v13432_v1, %v7392_v22  ;;  %v13449_v36 = vpop.f32.mrb[224].mxu1  ;;  %v13561_v12 = vpop.f32.mrb[224].mxu0 }
 0x4c2   : > { %v13450_v55 = vpop.f32.mrb[225].mxu1  ;;  %v13562_v45 = vpop.f32.mrb[225].mxu0 }
 0x4c3   : > { %v13451_v62 = vadd.f32 %v13450_v55, %v13449_v36  ;;  %v13452_v50 = vpop.f32.mrb[226].mxu1  ;;  %v13563_v51 = vadd.f32 %v13562_v45, %v13561_v12  ;;  %v13564_v29 = vpop.f32.mrb[226].mxu0  ;;  %v14978_v12 = vld [vmem:[%s15117_s28 + $0x334] ss:$8 sps:$4 sm:$0xff]  }
 0x4c4   : > { %v13453_v27 = vpop.f32.mrb[227].mxu1  ;;  %v13565_v14 = vpop.f32.mrb[227].mxu0 }
 0x4c5   : > { %v8387_v53 = vadd.f32 %v13451_v62, %v17181_v4  ;;  %v13454_v59 = vadd.f32 %v13453_v27, %v13452_v50  ;;  %v13566_v56 = vadd.f32 %v13565_v14, %v13564_v29  ;;  %v14976_v14 = vld [vmem:[%s15117_s28 + $0x330] ss:$8 sps:$4 sm:$0xff]  }
 0x4c6   : > { %9373 = vmatmul.mubr.bf16.gmra.mrb[76].mxu1 %v14968_v48 }
 0x4c7   : > { %v8388_v0 = vadd.f32 %v13454_v59, %v17183_v60  ;;  %v17364_v54 = vadd.f32 %v13563_v51, %v8387_v53  ;;  %9380 = vmatprep.mubr.bf16.mxu1 %v14973_v28 }
 0x4c9   : > { %v17366_v20 = vadd.f32 %v13566_v56, %v8388_v0  ;;  %v13455_v38 = vpop.f32.mrb[228].mxu1  ;;  %v13567_v9 = vpop.f32.mrb[228].mxu0  ;;  %v14981_v0 = vld [vmem:[%s15117_s28 + $0x344] ss:$8 sps:$4 sm:$0xff]  }
 0x4ca   : > { %v13456_v16 = vpop.f32.mrb[229].mxu1  ;;  %v13568_v58 = vpop.f32.mrb[229].mxu0 }
 0x4cb   : > { %v13457_v1 = vadd.f32 %v13456_v16, %v13455_v38  ;;  %v13458_v22 = vpop.f32.mrb[230].mxu1  ;;  %v13569_v36 = vadd.f32 %v13568_v58, %v13567_v9  ;;  %v13570_v4 = vpop.f32.mrb[230].mxu0 }
 0x4cc   : > { %v13459_v47 = vpop.f32.mrb[231].mxu1  ;;  %v13571_v33 = vpop.f32.mrb[231].mxu0 }
 0x4cd   : > { %v8389_v60 = vadd.f32 %v13457_v1, %v17191_v32  ;;  %v13460_v55 = vadd.f32 %v13459_v47, %v13458_v22  ;;  %v13572_v45 = vadd.f32 %v13571_v33, %v13570_v4  ;;  %v14979_v33 = vld [vmem:[%s15117_s28 + $0x340] ss:$8 sps:$4 sm:$0xff]  }
 0x4ce   : > { %9381 = vmatmul.mubr.bf16.gmra.mrb[80].mxu1 %v14971_v13 }
 0x4cf   : > { %v8390_v48 = vadd.f32 %v13460_v55, %v17193_v52  ;;  %v17372_v62 = vadd.f32 %v13569_v36, %v8389_v60  ;;  %9388 = vmatprep.mubr.bf16.mxu1 %v14978_v12 }
 0x4d1   : > { %v17374_v50 = vadd.f32 %v13572_v45, %v8390_v48  ;;  %v13461_v51 = vpop.f32.mrb[232].mxu1  ;;  %v13573_v29 = vpop.f32.mrb[232].mxu0  ;;  %v14986_v48 = vld [vmem:[%s15117_s28 + $0x354] ss:$8 sps:$4 sm:$0xff]  }
 0x4d2   : > { %v13462_v28 = vpop.f32.mrb[233].mxu1  ;;  %v13574_v27 = vpop.f32.mrb[233].mxu0 }
 0x4d3   : > { %v13463_v53 = vadd.f32 %v13462_v28, %v13461_v51  ;;  %v13464_v59 = vpop.f32.mrb[234].mxu1  ;;  %v13575_v56 = vadd.f32 %v13574_v27, %v13573_v29  ;;  %v13576_v32 = vpop.f32.mrb[234].mxu0 }
 0x4d4   : > { %v13465_v38 = vpop.f32.mrb[235].mxu1  ;;  %v13577_v9 = vpop.f32.mrb[235].mxu0 }
 0x4d5   : > { %v8391_v52 = vadd.f32 %v13463_v53, %v17207_v6  ;;  %v13466_v16 = vadd.f32 %v13465_v38, %v13464_v59  ;;  %v13578_v58 = vadd.f32 %v13577_v9, %v13576_v32  ;;  %v14984_v9 = vld [vmem:[%s15117_s28 + $0x350] ss:$8 sps:$4 sm:$0xff]  }
 0x4d6   : > { %9389 = vmatmul.mubr.bf16.gmra.mrb[84].mxu1 %v14976_v14 }
 0x4d7   : > { %v8392_v13 = vadd.f32 %v13466_v16, %v17209_v5  ;;  %v17380_v1 = vadd.f32 %v13575_v56, %v8391_v52  ;;  %9396 = vmatprep.mubr.bf16.mxu1 %v14981_v0 }
 0x4d9   : > { %v17382_v22 = vadd.f32 %v13578_v58, %v8392_v13  ;;  %v13467_v36 = vpop.f32.mrb[236].mxu1  ;;  %v13579_v4 = vpop.f32.mrb[236].mxu0 }
 0x4da   : > { %v13468_v12 = vpop.f32.mrb[237].mxu1  ;;  %v13580_v47 = vpop.f32.mrb[237].mxu0 }
 0x4db   : > { %v13469_v60 = vadd.f32 %v13468_v12, %v13467_v36  ;;  %v13470_v55 = vpop.f32.mrb[238].mxu1  ;;  %v13581_v45 = vadd.f32 %v13580_v47, %v13579_v4  ;;  %v13582_v6 = vpop.f32.mrb[238].mxu0 }
 0x4dc   : > { %v13471_v51 = vpop.f32.mrb[239].mxu1  ;;  %v13583_v29 = vpop.f32.mrb[239].mxu0 }
 0x4dd   : > { %v8393_v5 = vadd.f32 %v13469_v60, %v17217_v61  ;;  %v13472_v28 = vadd.f32 %v13471_v51, %v13470_v55  ;;  %v13584_v27 = vadd.f32 %v13583_v29, %v13582_v6 }
 0x4de   : > { %9397 = vmatmul.mubr.bf16.gmra.mrb[88].mxu1 %v14979_v33 }
 0x4df   : > { %v8394_v14 = vadd.f32 %v13472_v28, %v17219_v21  ;;  %v17388_v53 = vadd.f32 %v13581_v45, %v8393_v5  ;;  %9404 = vmatprep.mubr.bf16.mxu1 %v14986_v48 }
 0x4e1   : > { %v17390_v59 = vadd.f32 %v13584_v27, %v8394_v14  ;;  %v13473_v56 = vpop.f32.mrb[240].mxu1  ;;  %v13585_v32 = vpop.f32.mrb[240].mxu0 }
 0x4e2   : > { %v13474_v0 = vpop.f32.mrb[241].mxu1  ;;  %v13586_v38 = vpop.f32.mrb[241].mxu0 }
 0x4e3   : > { %v13475_v52 = vadd.f32 %v13474_v0, %v13473_v56  ;;  %v13476_v16 = vpop.f32.mrb[242].mxu1  ;;  %v13587_v58 = vadd.f32 %v13586_v38, %v13585_v32  ;;  %v13588_v13 = vpop.f32.mrb[242].mxu0 }
 0x4e4   : > { %v13477_v61 = vpop.f32.mrb[243].mxu1  ;;  %v13589_v36 = vpop.f32.mrb[243].mxu0 }
 0x4e5   : > { %v8395_v4 = vadd.f32 %v13475_v52, %v17232_v17  ;;  %v13478_v12 = vadd.f32 %v13477_v61, %v13476_v16  ;;  %v13590_v21 = vadd.f32 %v13589_v36, %v13588_v13 }
 0x4e6   : > { %9405 = vmatmul.mubr.bf16.gmra.mrb[92].mxu1 %v14984_v9 }
 0x4e7   : > { %v8396_v47 = vadd.f32 %v13478_v12, %v17234_v23  ;;  %v17395_v33 = vadd.f32 %v13587_v58, %v8395_v4 }
 0x4e9   : > { %v17397_v60 = vadd.f32 %v13590_v21, %v8396_v47  ;;  %v13479_v55 = vpop.f32.mrb[244].mxu1  ;;  %v13591_v45 = vpop.f32.mrb[244].mxu0 }
 0x4ea   : > { %v13480_v6 = vpop.f32.mrb[245].mxu1  ;;  %v13592_v48 = vpop.f32.mrb[245].mxu0 }
 0x4eb   : > { %v13481_v51 = vadd.f32 %v13480_v6, %v13479_v55  ;;  %v13482_v29 = vpop.f32.mrb[246].mxu1  ;;  %v13593_v5 = vadd.f32 %v13592_v48, %v13591_v45  ;;  %v13594_v28 = vpop.f32.mrb[246].mxu0 }
 0x4ec   : > { %v13483_v27 = vpop.f32.mrb[247].mxu1  ;;  %v13595_v14 = vpop.f32.mrb[247].mxu0 }
 0x4ed   : > { %v8397_v17 = vadd.f32 %v13481_v51, %v17240_v35  ;;  %v13484_v56 = vadd.f32 %v13483_v27, %v13482_v29  ;;  %v13596_v32 = vadd.f32 %v13595_v14, %v13594_v28 }
 0x4ef   : > { %v8398_v23 = vadd.f32 %v13484_v56, %v17242_v34  ;;  %v17401_v0 = vadd.f32 %v13593_v5, %v8397_v17 }
 0x4f1   : > { %v17403_v38 = vadd.f32 %v13596_v32, %v8398_v23  ;;  %v13485_v9 = vpop.f32.mrb[248].mxu1  ;;  %v13597_v52 = vpop.f32.mrb[248].mxu0 }
 0x4f2   : > { %v13486_v16 = vpop.f32.mrb[249].mxu1  ;;  %v13598_v58 = vpop.f32.mrb[249].mxu0 }
 0x4f3   : > { %v13487_v13 = vadd.f32 %v13486_v16, %v13485_v9  ;;  %v13488_v61 = vpop.f32.mrb[250].mxu1  ;;  %v13599_v36 = vadd.f32 %v13598_v58, %v13597_v52  ;;  %v13600_v4 = vpop.f32.mrb[250].mxu0 }
 0x4f4   : > { %v13489_v12 = vpop.f32.mrb[251].mxu1  ;;  %v13601_v21 = vpop.f32.mrb[251].mxu0 }
 0x4f5   : > { %v8399_v35 = vadd.f32 %v13487_v13, %v17254_v63  ;;  %v13490_v47 = vadd.f32 %v13489_v12, %v13488_v61  ;;  %v13602_v55 = vadd.f32 %v13601_v21, %v13600_v4 }
 0x4f7   : > { %v8400_v34 = vadd.f32 %v13490_v47, %v17256_v49  ;;  %v17407_v45 = vadd.f32 %v13599_v36, %v8399_v35 }
 0x4f9   : > { %v17409_v6 = vadd.f32 %v13602_v55, %v8400_v34  ;;  %v13491_v48 = vpop.f32.mrb[252].mxu1  ;;  %v13603_v51 = vpop.f32.mrb[252].mxu0 }
 0x4fa   : > { %v13492_v29 = vpop.f32.mrb[253].mxu1  ;;  %v13604_v5 = vpop.f32.mrb[253].mxu0 }
 0x4fb   : > { %v13493_v28 = vadd.f32 %v13492_v29, %v13491_v48  ;;  %v13494_v27 = vpop.f32.mrb[254].mxu1  ;;  %v13605_v14 = vadd.f32 %v13604_v5, %v13603_v51  ;;  %v13606_v17 = vpop.f32.mrb[254].mxu0 }
 0x4fc   : > { %v13495_v56 = vpop.f32.mrb[255].mxu1  ;;  %v13607_v32 = vpop.f32.mrb[255].mxu0 }
 0x4fd   : > { %v8401_v63 = vadd.f32 %v13493_v28, %v17262_v15  ;;  %v13496_v23 = vadd.f32 %v13495_v56, %v13494_v27  ;;  %v13608_v9 = vadd.f32 %v13607_v32, %v13606_v17 }
 0x4ff   : > { %v8402_v49 = vadd.f32 %v13496_v23, %v17264_v30  ;;  %v17413_v52 = vadd.f32 %v13605_v14, %v8401_v63 }
 0x501   : > { %v17415_v16 = vadd.f32 %v13608_v9, %v8402_v49  ;;  %v13497_v58 = vpop.f32.mrb[0].mxu1  ;;  %v13609_v13 = vpop.f32.mrb[0].mxu0 }
 0x502   : > { %v13498_v61 = vpop.f32.mrb[1].mxu1  ;;  %v13610_v36 = vpop.f32.mrb[1].mxu0 }
 0x503   : > { %v13499_v4 = vadd.f32 %v13498_v61, %v13497_v58  ;;  %v13500_v12 = vpop.f32.mrb[2].mxu1  ;;  %v13611_v21 = vadd.f32 %v13610_v36, %v13609_v13  ;;  %v13612_v35 = vpop.f32.mrb[2].mxu0 }
 0x504   : > { %v13501_v47 = vpop.f32.mrb[3].mxu1  ;;  %v13613_v55 = vpop.f32.mrb[3].mxu0 }
 0x505   : > { %v8403_v15 = vadd.f32 %v13499_v4, %v17276_v43  ;;  %v13502_v34 = vadd.f32 %v13501_v47, %v13500_v12  ;;  %v13614_v48 = vadd.f32 %v13613_v55, %v13612_v35 }
 0x507   : > { %v8404_v30 = vadd.f32 %v13502_v34, %v17278_v24  ;;  %v17419_v51 = vadd.f32 %v13611_v21, %v8403_v15 }
 0x509   : > { %v17421_v29 = vadd.f32 %v13614_v48, %v8404_v30  ;;  %v13503_v5 = vpop.f32.mrb[4].mxu1  ;;  %v13615_v28 = vpop.f32.mrb[4].mxu0 }
 0x50a   : > { %v13504_v27 = vpop.f32.mrb[5].mxu1  ;;  %v13616_v14 = vpop.f32.mrb[5].mxu0 }
 0x50b   : > { %v13505_v17 = vadd.f32 %v13504_v27, %v13503_v5  ;;  %v13506_v56 = vpop.f32.mrb[6].mxu1  ;;  %v13617_v32 = vadd.f32 %v13616_v14, %v13615_v28  ;;  %v13618_v63 = vpop.f32.mrb[6].mxu0 }
 0x50c   : > { %v13507_v23 = vpop.f32.mrb[7].mxu1  ;;  %v13619_v9 = vpop.f32.mrb[7].mxu0 }
 0x50d   : > { %v8405_v43 = vadd.f32 %v13505_v17, %v17284_v18  ;;  %v13508_v49 = vadd.f32 %v13507_v23, %v13506_v56  ;;  %v13620_v58 = vadd.f32 %v13619_v9, %v13618_v63 }
 0x50f   : > { %v8406_v24 = vadd.f32 %v13508_v49, %v17286_v19  ;;  %v17425_v13 = vadd.f32 %v13617_v32, %v8405_v43 }
 0x511   : > { %v17427_v61 = vadd.f32 %v13620_v58, %v8406_v24  ;;  %v13509_v36 = vpop.f32.mrb[8].mxu1  ;;  %v13621_v4 = vpop.f32.mrb[8].mxu0 }
 0x512   : > { %v13510_v12 = vpop.f32.mrb[9].mxu1  ;;  %v13622_v21 = vpop.f32.mrb[9].mxu0 }
 0x513   : > { %v13511_v35 = vadd.f32 %v13510_v12, %v13509_v36  ;;  %v13512_v47 = vpop.f32.mrb[10].mxu1  ;;  %v13623_v55 = vadd.f32 %v13622_v21, %v13621_v4  ;;  %v13624_v15 = vpop.f32.mrb[10].mxu0 }
 0x514   : > { %v13513_v34 = vpop.f32.mrb[11].mxu1  ;;  %v13625_v48 = vpop.f32.mrb[11].mxu0 }
 0x515   : > { %v8407_v18 = vadd.f32 %v13511_v35, %v17298_v26  ;;  %v13514_v30 = vadd.f32 %v13513_v34, %v13512_v47  ;;  %v13626_v5 = vadd.f32 %v13625_v48, %v13624_v15 }
 0x517   : > { %v8408_v19 = vadd.f32 %v13514_v30, %v17300_v2  ;;  %v17431_v28 = vadd.f32 %v13623_v55, %v8407_v18 }
 0x519   : > { %v17433_v27 = vadd.f32 %v13626_v5, %v8408_v19  ;;  %v13515_v14 = vpop.f32.mrb[12].mxu1  ;;  %v13627_v17 = vpop.f32.mrb[12].mxu0 }
 0x51a   : > { %v13516_v56 = vpop.f32.mrb[13].mxu1  ;;  %v13628_v32 = vpop.f32.mrb[13].mxu0 }
 0x51b   : > { %v13517_v63 = vadd.f32 %v13516_v56, %v13515_v14  ;;  %v13518_v23 = vpop.f32.mrb[14].mxu1  ;;  %v13629_v9 = vadd.f32 %v13628_v32, %v13627_v17  ;;  %v13630_v43 = vpop.f32.mrb[14].mxu0 }
 0x51c   : > { %v13519_v49 = vpop.f32.mrb[15].mxu1  ;;  %v13631_v58 = vpop.f32.mrb[15].mxu0 }
 0x51d   : > { %v8409_v26 = vadd.f32 %v13517_v63, %v17306_v8  ;;  %v13520_v24 = vadd.f32 %v13519_v49, %v13518_v23  ;;  %v13632_v36 = vadd.f32 %v13631_v58, %v13630_v43 }
 0x51f   : > { %v8410_v2 = vadd.f32 %v13520_v24, %v17308_v44  ;;  %v17437_v4 = vadd.f32 %v13629_v9, %v8409_v26 }
 0x521   : > { %v17439_v12 = vadd.f32 %v13632_v36, %v8410_v2  ;;  %v13521_v21 = vpop.f32.mrb[16].mxu1  ;;  %v13633_v35 = vpop.f32.mrb[16].mxu0 }
 0x522   : > { %v13522_v47 = vpop.f32.mrb[17].mxu1  ;;  %v13634_v55 = vpop.f32.mrb[17].mxu0 }
 0x523   : > { %v13523_v15 = vadd.f32 %v13522_v47, %v13521_v21  ;;  %v13524_v34 = vpop.f32.mrb[18].mxu1  ;;  %v13635_v48 = vadd.f32 %v13634_v55, %v13633_v35  ;;  %v13636_v18 = vpop.f32.mrb[18].mxu0 }
 0x524   : > { %v13525_v30 = vpop.f32.mrb[19].mxu1  ;;  %v13637_v5 = vpop.f32.mrb[19].mxu0 }
 0x525   : > { %v8411_v8 = vadd.f32 %v13523_v15, %v17320_v42  ;;  %v13526_v19 = vadd.f32 %v13525_v30, %v13524_v34  ;;  %v13638_v14 = vadd.f32 %v13637_v5, %v13636_v18 }
 0x527   : > { %v8412_v44 = vadd.f32 %v13526_v19, %v17322_v39  ;;  %v17443_v17 = vadd.f32 %v13635_v48, %v8411_v8 }
 0x529   : > { %v17445_v56 = vadd.f32 %v13638_v14, %v8412_v44  ;;  %v13527_v32 = vpop.f32.mrb[20].mxu1  ;;  %v13639_v63 = vpop.f32.mrb[20].mxu0 }
 0x52a   : > { %v13528_v23 = vpop.f32.mrb[21].mxu1  ;;  %v13640_v9 = vpop.f32.mrb[21].mxu0 }
 0x52b   : > { %v13529_v43 = vadd.f32 %v13528_v23, %v13527_v32  ;;  %v13530_v49 = vpop.f32.mrb[22].mxu1  ;;  %v13641_v58 = vadd.f32 %v13640_v9, %v13639_v63  ;;  %v13642_v26 = vpop.f32.mrb[22].mxu0 }
 0x52c   : > { %v13531_v24 = vpop.f32.mrb[23].mxu1  ;;  %v13643_v36 = vpop.f32.mrb[23].mxu0 }
 0x52d   : > { %v8413_v42 = vadd.f32 %v13529_v43, %v17328_v25  ;;  %v13532_v2 = vadd.f32 %v13531_v24, %v13530_v49  ;;  %v13644_v21 = vadd.f32 %v13643_v36, %v13642_v26 }
 0x52f   : > { %v8414_v39 = vadd.f32 %v13532_v2, %v17330_v40  ;;  %v17449_v35 = vadd.f32 %v13641_v58, %v8413_v42 }
 0x531   : > { %v17451_v47 = vadd.f32 %v13644_v21, %v8414_v39  ;;  %v13533_v55 = vpop.f32.mrb[24].mxu1  ;;  %v13645_v15 = vpop.f32.mrb[24].mxu0 }
 0x532   : > { %v13534_v34 = vpop.f32.mrb[25].mxu1  ;;  %v13646_v48 = vpop.f32.mrb[25].mxu0 }
 0x533   : > { %v13535_v18 = vadd.f32 %v13534_v34, %v13533_v55  ;;  %v13536_v30 = vpop.f32.mrb[26].mxu1  ;;  %v13647_v5 = vadd.f32 %v13646_v48, %v13645_v15  ;;  %v13648_v8 = vpop.f32.mrb[26].mxu0 }
 0x534   : > { %v13537_v19 = vpop.f32.mrb[27].mxu1  ;;  %v13649_v14 = vpop.f32.mrb[27].mxu0 }
 0x535   : > { %v8415_v25 = vadd.f32 %v13535_v18, %v17342_v7  ;;  %v13538_v44 = vadd.f32 %v13537_v19, %v13536_v30  ;;  %v13650_v32 = vadd.f32 %v13649_v14, %v13648_v8  ;;  %v17468_v8 = vld [vmem:[%s17630_s2 + $0x1] ss:$0 sm:$0xff] }
 0x537   : > { %v8416_v40 = vadd.f32 %v13538_v44, %v17344_v46  ;;  %v17455_v63 = vadd.f32 %v13647_v5, %v8415_v25 }
 0x539   : > { %v17457_v23 = vadd.f32 %v13650_v32, %v8416_v40  ;;  %v13539_v9 = vpop.f32.mrb[28].mxu1  ;;  %v13651_v43 = vpop.f32.mrb[28].mxu0 }
 0x53a   : > { %v13540_v49 = vpop.f32.mrb[29].mxu1  ;;  %v13652_v58 = vpop.f32.mrb[29].mxu0 }
 0x53b   : > { %v13541_v26 = vadd.f32 %v13540_v49, %v13539_v9  ;;  %v13542_v24 = vpop.f32.mrb[30].mxu1  ;;  %v13653_v36 = vadd.f32 %v13652_v58, %v13651_v43  ;;  %v13654_v42 = vpop.f32.mrb[30].mxu0 }
 0x53c   : > { %v13543_v2 = vpop.f32.mrb[31].mxu1  ;;  %v13655_v21 = vpop.f32.mrb[31].mxu0 }
 0x53d   : > { %v8417_v7 = vadd.f32 %v13541_v26, %v17350_v31  ;;  %v13544_v39 = vadd.f32 %v13543_v2, %v13542_v24  ;;  %v13656_v55 = vadd.f32 %v13655_v21, %v13654_v42 }
 0x53f   : > { %v8418_v46 = vadd.f32 %v13544_v39, %v17352_v3  ;;  %v17461_v15 = vadd.f32 %v13653_v36, %v8417_v7 }
 0x541   : > { %v17463_v34 = vadd.f32 %v13656_v55, %v8418_v46  ;;  %v13673_v48 = vpop.f32.mrb[32].mxu1 }
 0x542   : > { %v13674_v18 = vpop.f32.mrb[33].mxu1 }
 0x543   : > { %v13675_v30 = vadd.f32 %v13674_v18, %v13673_v48  ;;  %v13676_v5 = vpop.f32.mrb[34].mxu1 }
 0x544   : > { %v13677_v19 = vpop.f32.mrb[35].mxu1 }
 0x545   : > { %v9413_v31 = vadd.f32 %v13675_v30, %v17364_v54  ;;  %v13678_v14 = vadd.f32 %v13677_v19, %v13676_v5 }
 0x547   : > { %v9452_v25 = vadd.f32 %v17468_v8, %v9413_v31  ;;  %v9414_v3 = vadd.f32 %v13678_v14, %v17366_v20 }
 0x549   : > { %v9453_v44 = vadd.f32 %v17468_v8, %v9414_v3  ;;  %v13679_v32 = vpop.f32.mrb[36].mxu1  ;;  %v9484_v9 = vmax.f32 %v9452_v25, 0.0 }
 0x54a   : > { %v13680_v40 = vpop.f32.mrb[37].mxu1 }
 0x54b   : > { %v9485_v43 = vmax.f32 %v9453_v44, 0.0  ;;  %v13681_v49 = vadd.f32 %v13680_v40, %v13679_v32  ;;  %v13682_v58 = vpop.f32.mrb[38].mxu1 }
 0x54c   : > { %v13683_v26 = vpop.f32.mrb[39].mxu1 }
 0x54d   : > { %v9415_v24 = vadd.f32 %v13681_v49, %v17372_v62  ;;  %v13684_v36 = vadd.f32 %v13683_v26, %v13682_v58  ;;  %v9516_v42 = vpack.c.bf16 %v9485_v43, %v9484_v9 }
 0x54f   : > { %v9454_v54 = vadd.f32 %v17468_v8, %v9415_v24  ;;  %v9416_v2 = vadd.f32 %v13684_v36, %v17374_v50  ;;  %9747 = vmatprep.mubr.bf16.mxu0 %v9516_v42 }
 0x550   : > { %9748 = vmatmul.mubr.bf16.vlgmr.msra.gmra.mrb[32].mxu0 %v16459_v37 }
 0x551   : > { %v9455_v20 = vadd.f32 %v17468_v8, %v9416_v2  ;;  %v13685_v21 = vpop.f32.mrb[40].mxu1  ;;  %v9486_v39 = vmax.f32 %v9454_v54, 0.0 }
 0x552   : > { %v13686_v7 = vpop.f32.mrb[41].mxu1 }
 0x553   : > { %v9487_v55 = vmax.f32 %v9455_v20, 0.0  ;;  %v13687_v46 = vadd.f32 %v13686_v7, %v13685_v21  ;;  %v13688_v48 = vpop.f32.mrb[42].mxu1 }
 0x554   : > { %v13689_v18 = vpop.f32.mrb[43].mxu1 }
 0x555   : > { %v9417_v62 = vadd.f32 %v13687_v46, %v17380_v1  ;;  %v13690_v30 = vadd.f32 %v13689_v18, %v13688_v48  ;;  %v9517_v5 = vpack.c.bf16 %v9487_v55, %v9486_v39 }
 0x557   : > { %v9456_v19 = vadd.f32 %v17468_v8, %v9417_v62  ;;  %v9418_v50 = vadd.f32 %v13690_v30, %v17382_v22  ;;  %9755 = vmatprep.mubr.bf16.mxu0 %v9517_v5 }
 0x558   : > { %9756 = vmatmul.mubr.bf16.gmra.mrb[36].mxu0 %v16472_v57 }
 0x559   : > { %v9457_v37 = vadd.f32 %v17468_v8, %v9418_v50  ;;  %v13691_v31 = vpop.f32.mrb[44].mxu1  ;;  %v9488_v25 = vmax.f32 %v9456_v19, 0.0 }
 0x55a   : > { %v13692_v14 = vpop.f32.mrb[45].mxu1 }
 0x55b   : > { %v9489_v3 = vmax.f32 %v9457_v37, 0.0  ;;  %v13693_v44 = vadd.f32 %v13692_v14, %v13691_v31  ;;  %v13694_v32 = vpop.f32.mrb[46].mxu1 }
 0x55c   : > { %v13695_v40 = vpop.f32.mrb[47].mxu1 }
 0x55d   : > { %v9419_v1 = vadd.f32 %v13693_v44, %v17388_v53  ;;  %v13696_v9 = vadd.f32 %v13695_v40, %v13694_v32  ;;  %v9518_v43 = vpack.c.bf16 %v9489_v3, %v9488_v25 }
 0x55f   : > { %v9458_v49 = vadd.f32 %v17468_v8, %v9419_v1  ;;  %v9420_v22 = vadd.f32 %v13696_v9, %v17390_v59  ;;  %9763 = vmatprep.mubr.bf16.mxu0 %v9518_v43  ;;  %v17645_v43 = vld [vmem:[#allocation3_spill] sm:$0xff] }
 0x560   : > { %9764 = vmatmul.mubr.bf16.gmra.mrb[40].mxu0 %v16482_v11 }
 0x561   : > { %v9459_v57 = vadd.f32 %v17468_v8, %v9420_v22  ;;  %v13697_v58 = vpop.f32.mrb[48].mxu1  ;;  %v9490_v24 = vmax.f32 %v9458_v49, 0.0 }
 0x562   : > { %v13698_v26 = vpop.f32.mrb[49].mxu1 }
 0x563   : > { %v9491_v36 = vmax.f32 %v9459_v57, 0.0  ;;  %v13699_v42 = vadd.f32 %v13698_v26, %v13697_v58  ;;  %v13700_v54 = vpop.f32.mrb[50].mxu1 }
 0x564   : > { %v13701_v2 = vpop.f32.mrb[51].mxu1 }
 0x565   : > { %v9421_v53 = vadd.f32 %v13699_v42, %v17395_v33  ;;  %v13702_v20 = vadd.f32 %v13701_v2, %v13700_v54  ;;  %v9519_v21 = vpack.c.bf16 %v9491_v36, %v9490_v24 }
 0x567   : > { %v9460_v7 = vadd.f32 %v17468_v8, %v9421_v53  ;;  %v9422_v59 = vadd.f32 %v13702_v20, %v17397_v60  ;;  %9771 = vmatprep.mubr.bf16.mxu0 %v9519_v21  ;;  %v17646_v53 = vld [vmem:[#allocation4_spill] sm:$0xff] }
 0x568   : > { %9772 = vmatmul.mubr.bf16.gmra.mrb[44].mxu0 %v16492_v41 }
 0x569   : > { %v9461_v11 = vadd.f32 %v17468_v8, %v9422_v59  ;;  %v13703_v39 = vpop.f32.mrb[52].mxu1  ;;  %v9492_v46 = vmax.f32 %v9460_v7, 0.0 }
 0x56a   : > { %v13704_v55 = vpop.f32.mrb[53].mxu1 }
 0x56b   : > { %v9493_v48 = vmax.f32 %v9461_v11, 0.0  ;;  %v13705_v18 = vadd.f32 %v13704_v55, %v13703_v39  ;;  %v13706_v62 = vpop.f32.mrb[54].mxu1 }
 0x56c   : > { %v13707_v30 = vpop.f32.mrb[55].mxu1 }
 0x56d   : > { %v9423_v33 = vadd.f32 %v13705_v18, %v17401_v0  ;;  %v13708_v5 = vadd.f32 %v13707_v30, %v13706_v62  ;;  %v9520_v19 = vpack.c.bf16 %v9493_v48, %v9492_v46  ;;  %v17647_v30 = vld [vmem:[#allocation5_spill] sm:$0xff] }
 0x56f   : > { %v9462_v50 = vadd.f32 %v17468_v8, %v9423_v33  ;;  %v9424_v60 = vadd.f32 %v13708_v5, %v17403_v38  ;;  %9779 = vmatprep.mubr.bf16.mxu0 %v9520_v19 }
 0x570   : > { %9780 = vmatmul.mubr.bf16.gmra.mrb[48].mxu0 %v16514_v10 }
 0x571   : > { %v9463_v41 = vadd.f32 %v17468_v8, %v9424_v60  ;;  %v13709_v37 = vpop.f32.mrb[56].mxu1  ;;  %v9494_v14 = vmax.f32 %v9462_v50, 0.0 }
 0x572   : > { %v13710_v31 = vpop.f32.mrb[57].mxu1 }
 0x573   : > { %v9495_v25 = vmax.f32 %v9463_v41, 0.0  ;;  %v13711_v3 = vadd.f32 %v13710_v31, %v13709_v37  ;;  %v13712_v44 = vpop.f32.mrb[58].mxu1 }
 0x574   : > { %v13713_v32 = vpop.f32.mrb[59].mxu1 }
 0x575   : > { %v9425_v0 = vadd.f32 %v13711_v3, %v17407_v45  ;;  %v13714_v40 = vadd.f32 %v13713_v32, %v13712_v44  ;;  %v9521_v1 = vpack.c.bf16 %v9495_v25, %v9494_v14  ;;  %v17648_v44 = vld [vmem:[#allocation6_spill] sm:$0xff] }
 0x577   : > { %v9464_v9 = vadd.f32 %v17468_v8, %v9425_v0  ;;  %v9426_v38 = vadd.f32 %v13714_v40, %v17409_v6  ;;  %9787 = vmatprep.mubr.bf16.mxu0 %v9521_v1 }
 0x578   : > { %9788 = vmatmul.mubr.bf16.gmra.mrb[52].mxu0 %v17645_v43 }
 0x579   : > { %v9465_v10 = vadd.f32 %v17468_v8, %v9426_v38  ;;  %v13715_v49 = vpop.f32.mrb[60].mxu1  ;;  %v9496_v57 = vmax.f32 %v9464_v9, 0.0 }
 0x57a   : > { %v13716_v22 = vpop.f32.mrb[61].mxu1 }
 0x57b   : > { %v9497_v58 = vmax.f32 %v9465_v10, 0.0  ;;  %v13717_v26 = vadd.f32 %v13716_v22, %v13715_v49  ;;  %v13718_v24 = vpop.f32.mrb[62].mxu1 }
 0x57c   : > { %v13719_v36 = vpop.f32.mrb[63].mxu1 }
 0x57d   : > { %v9427_v45 = vadd.f32 %v13717_v26, %v17413_v52  ;;  %v13720_v42 = vadd.f32 %v13719_v36, %v13718_v24  ;;  %v9522_v54 = vpack.c.bf16 %v9497_v58, %v9496_v57  ;;  %v17649_v58 = vld [vmem:[#allocation7_spill] sm:$0xff] }
 0x57f   : > { %v9466_v2 = vadd.f32 %v17468_v8, %v9427_v45  ;;  %v9428_v6 = vadd.f32 %v13720_v42, %v17415_v16  ;;  %9795 = vmatprep.mubr.bf16.mxu0 %v9522_v54 }
 0x580   : > { %9796 = vmatmul.mubr.bf16.gmra.mrb[56].mxu0 %v17646_v53 }
 0x581   : > { %v9467_v20 = vadd.f32 %v17468_v8, %v9428_v6  ;;  %v13721_v21 = vpop.f32.mrb[64].mxu1  ;;  %v9498_v59 = vmax.f32 %v9466_v2, 0.0 }
 0x582   : > { %v13722_v7 = vpop.f32.mrb[65].mxu1 }
 0x583   : > { %v9499_v11 = vmax.f32 %v9467_v20, 0.0  ;;  %v13723_v39 = vadd.f32 %v13722_v7, %v13721_v21  ;;  %v13724_v55 = vpop.f32.mrb[66].mxu1  ;;  %v17650_v7 = vld [vmem:[#allocation8_spill] sm:$0xff] }
 0x584   : > { %v13725_v46 = vpop.f32.mrb[67].mxu1 }
 0x585   : > { %v9429_v52 = vadd.f32 %v13723_v39, %v17419_v51  ;;  %v13726_v48 = vadd.f32 %v13725_v46, %v13724_v55  ;;  %v9523_v18 = vpack.c.bf16 %v9499_v11, %v9498_v59 }
 0x587   : > { %v9468_v62 = vadd.f32 %v17468_v8, %v9429_v52  ;;  %v9430_v16 = vadd.f32 %v13726_v48, %v17421_v29  ;;  %9803 = vmatprep.mubr.bf16.mxu0 %v9523_v18 }
 0x588   : > { %9804 = vmatmul.mubr.bf16.gmra.mrb[60].mxu0 %v17647_v30 }
 0x589   : > { %v9469_v33 = vadd.f32 %v17468_v8, %v9430_v16  ;;  %v13727_v5 = vpop.f32.mrb[68].mxu1  ;;  %v9500_v50 = vmax.f32 %v9468_v62, 0.0 }
 0x58a   : > { %v13728_v19 = vpop.f32.mrb[69].mxu1 }
 0x58b   : > { %v9501_v60 = vmax.f32 %v9469_v33, 0.0  ;;  %v13729_v41 = vadd.f32 %v13728_v19, %v13727_v5  ;;  %v13730_v37 = vpop.f32.mrb[70].mxu1  ;;  %v17651_v33 = vld [vmem:[#allocation9_spill] sm:$0xff] }
 0x58c   : > { %v13731_v31 = vpop.f32.mrb[71].mxu1 }
 0x58d   : > { %v9431_v51 = vadd.f32 %v13729_v41, %v17425_v13  ;;  %v13732_v14 = vadd.f32 %v13731_v31, %v13730_v37  ;;  %v9524_v25 = vpack.c.bf16 %v9501_v60, %v9500_v50 }
 0x58f   : > { %v9470_v3 = vadd.f32 %v17468_v8, %v9431_v51  ;;  %v9432_v29 = vadd.f32 %v13732_v14, %v17427_v61  ;;  %9811 = vmatprep.mubr.bf16.mxu0 %v9524_v25 }
 0x590   : > { %9812 = vmatmul.mubr.bf16.gmra.mrb[64].mxu0 %v17648_v44 }
 0x591   : > { %v9471_v32 = vadd.f32 %v17468_v8, %v9432_v29  ;;  %v13733_v0 = vpop.f32.mrb[72].mxu1  ;;  %v9502_v1 = vmax.f32 %v9470_v3, 0.0  ;;  %v17652_v29 = vld [vmem:[#allocation10_spill] sm:$0xff] }
 0x592   : > { %v13734_v40 = vpop.f32.mrb[73].mxu1 }
 0x593   : > { %v9503_v9 = vmax.f32 %v9471_v32, 0.0  ;;  %v13735_v38 = vadd.f32 %v13734_v40, %v13733_v0  ;;  %v13736_v43 = vpop.f32.mrb[74].mxu1 }
 0x594   : > { %v13737_v10 = vpop.f32.mrb[75].mxu1 }
 0x595   : > { %v9433_v13 = vadd.f32 %v13735_v38, %v17431_v28  ;;  %v13738_v49 = vadd.f32 %v13737_v10, %v13736_v43  ;;  %v9525_v22 = vpack.c.bf16 %v9503_v9, %v9502_v1 }
 0x597   : > { %v9472_v57 = vadd.f32 %v17468_v8, %v9433_v13  ;;  %v9434_v61 = vadd.f32 %v13738_v49, %v17433_v27  ;;  %9819 = vmatprep.mubr.bf16.mxu0 %v9525_v22  ;;  %v17653_v22 = vld [vmem:[#allocation11_spill] sm:$0xff] }
 0x598   : > { %9820 = vmatmul.mubr.bf16.gmra.mrb[68].mxu0 %v17649_v58 }
 0x599   : > { %v9473_v26 = vadd.f32 %v17468_v8, %v9434_v61  ;;  %v13739_v24 = vpop.f32.mrb[76].mxu1  ;;  %v9504_v45 = vmax.f32 %v9472_v57, 0.0 }
 0x59a   : > { %v13740_v36 = vpop.f32.mrb[77].mxu1 }
 0x59b   : > { %v9505_v42 = vmax.f32 %v9473_v26, 0.0  ;;  %v13741_v54 = vadd.f32 %v13740_v36, %v13739_v24  ;;  %v13742_v2 = vpop.f32.mrb[78].mxu1 }
 0x59c   : > { %v13743_v6 = vpop.f32.mrb[79].mxu1 }
 0x59d   : > { %v9435_v28 = vadd.f32 %v13741_v54, %v17437_v4  ;;  %v13744_v53 = vadd.f32 %v13743_v6, %v13742_v2  ;;  %v9526_v20 = vpack.c.bf16 %v9505_v42, %v9504_v45 }
 0x59f   : > { %v9474_v21 = vadd.f32 %v17468_v8, %v9435_v28  ;;  %v9436_v27 = vadd.f32 %v13744_v53, %v17439_v12  ;;  %9827 = vmatprep.mubr.bf16.mxu0 %v9526_v20  ;;  %v17654_v28 = vld [vmem:[#allocation12_spill] sm:$0xff] }
 0x5a0   : > { %9828 = vmatmul.mubr.bf16.gmra.mrb[72].mxu0 %v17650_v7  ;;  %v17655_v7 = vld [vmem:[#allocation13_spill] sm:$0xff] }
 0x5a1   : > { %v9475_v59 = vadd.f32 %v17468_v8, %v9436_v27  ;;  %v13745_v11 = vpop.f32.mrb[80].mxu1  ;;  %v9506_v55 = vmax.f32 %v9474_v21, 0.0 }
 0x5a2   : > { %v13746_v39 = vpop.f32.mrb[81].mxu1 }
 0x5a3   : > { %v9507_v46 = vmax.f32 %v9475_v59, 0.0  ;;  %v13747_v52 = vadd.f32 %v13746_v39, %v13745_v11  ;;  %v13748_v48 = vpop.f32.mrb[82].mxu1 }
 0x5a4   : > { %v13749_v18 = vpop.f32.mrb[83].mxu1 }
 0x5a5   : > { %v9437_v4 = vadd.f32 %v13747_v52, %v17443_v17  ;;  %v13750_v62 = vadd.f32 %v13749_v18, %v13748_v48  ;;  %v9527_v16 = vpack.c.bf16 %v9507_v46, %v9506_v55 }
 0x5a7   : > { %v9476_v30 = vadd.f32 %v17468_v8, %v9437_v4  ;;  %v9438_v12 = vadd.f32 %v13750_v62, %v17445_v56  ;;  %9835 = vmatprep.mubr.bf16.mxu0 %v9527_v16 }
 0x5a8   : > { %9836 = vmatmul.mubr.bf16.gmra.mrb[76].mxu0 %v17651_v33 }
 0x5a9   : > { %v9477_v5 = vadd.f32 %v17468_v8, %v9438_v12  ;;  %v13751_v19 = vpop.f32.mrb[84].mxu1  ;;  %v9508_v60 = vmax.f32 %v9476_v30, 0.0 }
 0x5aa   : > { %v13752_v50 = vpop.f32.mrb[85].mxu1 }
 0x5ab   : > { %v9509_v41 = vmax.f32 %v9477_v5, 0.0  ;;  %v13753_v37 = vadd.f32 %v13752_v50, %v13751_v19  ;;  %v13754_v31 = vpop.f32.mrb[86].mxu1 }
 0x5ac   : > { %v13755_v51 = vpop.f32.mrb[87].mxu1 }
 0x5ad   : > { %v9439_v17 = vadd.f32 %v13753_v37, %v17449_v35  ;;  %v13756_v14 = vadd.f32 %v13755_v51, %v13754_v31  ;;  %v9528_v25 = vpack.c.bf16 %v9509_v41, %v9508_v60 }
 0x5af   : > { %v9478_v3 = vadd.f32 %v17468_v8, %v9439_v17  ;;  %v9440_v56 = vadd.f32 %v13756_v14, %v17451_v47  ;;  %9843 = vmatprep.mubr.bf16.mxu0 %v9528_v25 }
 0x5b0   : > { %9844 = vmatmul.mubr.bf16.gmra.mrb[80].mxu0 %v17652_v29 }
 0x5b1   : > { %v9479_v44 = vadd.f32 %v17468_v8, %v9440_v56  ;;  %v13757_v32 = vpop.f32.mrb[88].mxu1  ;;  %v9510_v40 = vmax.f32 %v9478_v3, 0.0 }
 0x5b2   : > { %v13758_v0 = vpop.f32.mrb[89].mxu1 }
 0x5b3   : > { %v9511_v1 = vmax.f32 %v9479_v44, 0.0  ;;  %v13759_v9 = vadd.f32 %v13758_v0, %v13757_v32  ;;  %v13760_v38 = vpop.f32.mrb[90].mxu1 }
 0x5b4   : > { %v13761_v43 = vpop.f32.mrb[91].mxu1 }
 0x5b5   : > { %v9441_v35 = vadd.f32 %v13759_v9, %v17455_v63  ;;  %v13762_v10 = vadd.f32 %v13761_v43, %v13760_v38  ;;  %v9529_v13 = vpack.c.bf16 %v9511_v1, %v9510_v40 }
 0x5b7   : > { %v9480_v49 = vadd.f32 %v17468_v8, %v9441_v35  ;;  %v9442_v47 = vadd.f32 %v13762_v10, %v17457_v23  ;;  %9851 = vmatprep.mubr.bf16.mxu0 %v9529_v13 }
 0x5b8   : > { %9852 = vmatmul.mubr.bf16.gmra.mrb[84].mxu0 %v17653_v22 }
 0x5b9   : > { %v9481_v57 = vadd.f32 %v17468_v8, %v9442_v47  ;;  %v13763_v61 = vpop.f32.mrb[92].mxu1  ;;  %v9512_v26 = vmax.f32 %v9480_v49, 0.0 }
 0x5ba   : > { %v13764_v58 = vpop.f32.mrb[93].mxu1 }
 0x5bb   : > { %v9513_v24 = vmax.f32 %v9481_v57, 0.0  ;;  %v13765_v36 = vadd.f32 %v13764_v58, %v13763_v61  ;;  %v13766_v45 = vpop.f32.mrb[94].mxu1 }
 0x5bc   : > { %v13767_v42 = vpop.f32.mrb[95].mxu1 }
 0x5bd   : > { %v9443_v63 = vadd.f32 %v13765_v36, %v17461_v15  ;;  %v13768_v54 = vadd.f32 %v13767_v42, %v13766_v45  ;;  %v9530_v2 = vpack.c.bf16 %v9513_v24, %v9512_v26  ;;  %v17554_v15 = vld [vmem:[%s17632_s4] ss:$0 sm:$0xff] }
 0x5bf   : > { %v9482_v6 = vadd.f32 %v17468_v8, %v9443_v63  ;;  %v9444_v23 = vadd.f32 %v13768_v54, %v17463_v34  ;;  %9859 = vmatprep.mubr.bf16.mxu0 %v9530_v2 }
 0x5c0   : > { %9860 = vmatmul.mubr.bf16.gmra.mrb[88].mxu0 %v17654_v28 }
 0x5c1   : > { %v9483_v53 = vadd.f32 %v17468_v8, %v9444_v23  ;;  %v9514_v20 = vmax.f32 %v9482_v6, 0.0 }
 0x5c3   : > { %v9515_v21 = vmax.f32 %v9483_v53, 0.0 }
 0x5c5   : > { %v9531_v27 = vpack.c.bf16 %v9515_v21, %v9514_v20 }
 0x5c7   : > { %9867 = vmatprep.mubr.bf16.mxu0 %v9531_v27 }
 0x5c8   : > { %9868 = vmatmul.mubr.bf16.gmra.mrb[92].mxu0 %v17655_v7 }
 0x623   : > { %v13785_v59 = vpop.f32.mrb[32].mxu0 }
 0x624   : > { %v13786_v11 = vpop.f32.mrb[33].mxu0 }
 0x625   : > { %v13787_v34 = vadd.f32 %v13786_v11, %v13785_v59  ;;  %v13788_v39 = vpop.f32.mrb[34].mxu0 }
 0x626   : > { %v13789_v8 = vpop.f32.mrb[35].mxu0 }
 0x627   : > { %v9750_v55 = vadd.f32 %v13787_v34, %v17554_v15  ;;  %v13790_v46 = vadd.f32 %v13789_v8, %v13788_v39 }
 0x629   : > { %9876 = vst [vmem:[%s17559_s24] sm:$0xff] %v9750_v55  ;;  %v9753_v52 = vadd.f32 %v13790_v46, %v17554_v15 }
 0x62b   : > { %9877 = vst [vmem:[%s17559_s24 + $0x8] sm:$0xff] %v9753_v52  ;;  %v13791_v48 = vpop.f32.mrb[36].mxu0 }
 0x62c   : > { %v13792_v18 = vpop.f32.mrb[37].mxu0 }
 0x62d   : > { %v13793_v4 = vadd.f32 %v13792_v18, %v13791_v48  ;;  %v13794_v62 = vpop.f32.mrb[38].mxu0 }
 0x62e   : > { %v13795_v16 = vpop.f32.mrb[39].mxu0 }
 0x62f   : > { %v9758_v30 = vadd.f32 %v13793_v4, %v17554_v15  ;;  %v13796_v12 = vadd.f32 %v13795_v16, %v13794_v62 }
 0x631   : > { %9878 = vst [vmem:[%s17559_s24 + $0x10] sm:$0xff] %v9758_v30  ;;  %v9761_v33 = vadd.f32 %v13796_v12, %v17554_v15 }
 0x633   : > { %9879 = vst [vmem:[%s17559_s24 + $0x18] sm:$0xff] %v9761_v33  ;;  %v13797_v5 = vpop.f32.mrb[40].mxu0 }
 0x634   : > { %v13798_v19 = vpop.f32.mrb[41].mxu0 }
 0x635   : > { %v13799_v50 = vadd.f32 %v13798_v19, %v13797_v5  ;;  %v13800_v60 = vpop.f32.mrb[42].mxu0 }
 0x636   : > { %v13801_v41 = vpop.f32.mrb[43].mxu0 }
 0x637   : > { %v9766_v37 = vadd.f32 %v13799_v50, %v17554_v15  ;;  %v13802_v31 = vadd.f32 %v13801_v41, %v13800_v60 }
 0x639   : > { %9880 = vst [vmem:[%s17559_s24 + $0x20] sm:$0xff] %v9766_v37  ;;  %v9769_v51 = vadd.f32 %v13802_v31, %v17554_v15 }
 0x63b   : > { %9881 = vst [vmem:[%s17559_s24 + $0x28] sm:$0xff] %v9769_v51  ;;  %v13803_v17 = vpop.f32.mrb[44].mxu0 }
 0x63c   : > { %v13804_v14 = vpop.f32.mrb[45].mxu0 }
 0x63d   : > { %v13805_v25 = vadd.f32 %v13804_v14, %v13803_v17  ;;  %v13806_v3 = vpop.f32.mrb[46].mxu0 }
 0x63e   : > { %v13807_v56 = vpop.f32.mrb[47].mxu0 }
 0x63f   : > { %v9774_v29 = vadd.f32 %v13805_v25, %v17554_v15  ;;  %v13808_v44 = vadd.f32 %v13807_v56, %v13806_v3 }
 0x641   : > { %9882 = vst [vmem:[%s17559_s24 + $0x30] sm:$0xff] %v9774_v29  ;;  %v9777_v32 = vadd.f32 %v13808_v44, %v17554_v15 }
 0x643   : > { %9883 = vst [vmem:[%s17559_s24 + $0x38] sm:$0xff] %v9777_v32  ;;  %v13809_v0 = vpop.f32.mrb[48].mxu0 }
 0x644   : > { %v13810_v40 = vpop.f32.mrb[49].mxu0 }
 0x645   : > { %v13811_v1 = vadd.f32 %v13810_v40, %v13809_v0  ;;  %v13812_v9 = vpop.f32.mrb[50].mxu0 }
 0x646   : > { %v13813_v38 = vpop.f32.mrb[51].mxu0 }
 0x647   : > { %v9782_v43 = vadd.f32 %v13811_v1, %v17554_v15  ;;  %v13814_v35 = vadd.f32 %v13813_v38, %v13812_v9 }
 0x649   : > { %9884 = vst [vmem:[%s17559_s24 + $0x40] sm:$0xff] %v9782_v43  ;;  %v9785_v10 = vadd.f32 %v13814_v35, %v17554_v15 }
 0x64b   : > { %9885 = vst [vmem:[%s17559_s24 + $0x48] sm:$0xff] %v9785_v10  ;;  %v13815_v13 = vpop.f32.mrb[52].mxu0 }
 0x64c   : > { %v13816_v49 = vpop.f32.mrb[53].mxu0 }
 0x64d   : > { %v13817_v47 = vadd.f32 %v13816_v49, %v13815_v13  ;;  %v13818_v22 = vpop.f32.mrb[54].mxu0 }
 0x64e   : > { %v13819_v57 = vpop.f32.mrb[55].mxu0 }
 0x64f   : > { %v9790_v61 = vadd.f32 %v13817_v47, %v17554_v15  ;;  %v13820_v58 = vadd.f32 %v13819_v57, %v13818_v22 }
 0x651   : > { %9886 = vst [vmem:[%s17559_s24 + $0x50] sm:$0xff] %v9790_v61  ;;  %v9793_v26 = vadd.f32 %v13820_v58, %v17554_v15 }
 0x653   : > { %9887 = vst [vmem:[%s17559_s24 + $0x58] sm:$0xff] %v9793_v26  ;;  %v13821_v24 = vpop.f32.mrb[56].mxu0 }
 0x654   : > { %v13822_v36 = vpop.f32.mrb[57].mxu0 }
 0x655   : > { %v13823_v45 = vadd.f32 %v13822_v36, %v13821_v24  ;;  %v13824_v42 = vpop.f32.mrb[58].mxu0 }
 0x656   : > { %v13825_v63 = vpop.f32.mrb[59].mxu0 }
 0x657   : > { %v9798_v54 = vadd.f32 %v13823_v45, %v17554_v15  ;;  %v13826_v2 = vadd.f32 %v13825_v63, %v13824_v42 }
 0x659   : > { %9888 = vst [vmem:[%s17559_s24 + $0x60] sm:$0xff] %v9798_v54  ;;  %v9801_v6 = vadd.f32 %v13826_v2, %v17554_v15 }
 0x65b   : > { %9889 = vst [vmem:[%s17559_s24 + $0x68] sm:$0xff] %v9801_v6  ;;  %v13827_v23 = vpop.f32.mrb[60].mxu0 }
 0x65c   : > { %v13828_v28 = vpop.f32.mrb[61].mxu0 }
 0x65d   : > { %v13829_v53 = vadd.f32 %v13828_v28, %v13827_v23  ;;  %v13830_v20 = vpop.f32.mrb[62].mxu0 }
 0x65e   : > { %v13831_v21 = vpop.f32.mrb[63].mxu0 }
 0x65f   : > { %v9806_v27 = vadd.f32 %v13829_v53, %v17554_v15  ;;  %v13832_v7 = vadd.f32 %v13831_v21, %v13830_v20 }
 0x661   : > { %9890 = vst [vmem:[%s17559_s24 + $0x70] sm:$0xff] %v9806_v27  ;;  %v9809_v59 = vadd.f32 %v13832_v7, %v17554_v15 }
 0x663   : > { %9891 = vst [vmem:[%s17559_s24 + $0x78] sm:$0xff] %v9809_v59  ;;  %v13833_v11 = vpop.f32.mrb[64].mxu0 }
 0x664   : > { %v13834_v34 = vpop.f32.mrb[65].mxu0 }
 0x665   : > { %v13835_v39 = vadd.f32 %v13834_v34, %v13833_v11  ;;  %v13836_v8 = vpop.f32.mrb[66].mxu0 }
 0x666   : > { %v13837_v55 = vpop.f32.mrb[67].mxu0 }
 0x667   : > { %v9814_v46 = vadd.f32 %v13835_v39, %v17554_v15  ;;  %v13838_v52 = vadd.f32 %v13837_v55, %v13836_v8 }
 0x669   : > { %9892 = vst [vmem:[%s17559_s24 + $0x80] sm:$0xff] %v9814_v46  ;;  %v9817_v48 = vadd.f32 %v13838_v52, %v17554_v15 }
 0x66b   : > { %9893 = vst [vmem:[%s17559_s24 + $0x88] sm:$0xff] %v9817_v48  ;;  %v13839_v18 = vpop.f32.mrb[68].mxu0 }
 0x66c   : > { %v13840_v4 = vpop.f32.mrb[69].mxu0 }
 0x66d   : > { %v13841_v62 = vadd.f32 %v13840_v4, %v13839_v18  ;;  %v13842_v16 = vpop.f32.mrb[70].mxu0 }
 0x66e   : > { %v13843_v30 = vpop.f32.mrb[71].mxu0 }
 0x66f   : > { %v9822_v12 = vadd.f32 %v13841_v62, %v17554_v15  ;;  %v13844_v33 = vadd.f32 %v13843_v30, %v13842_v16 }
 0x671   : > { %9894 = vst [vmem:[%s17559_s24 + $0x90] sm:$0xff] %v9822_v12  ;;  %v9825_v5 = vadd.f32 %v13844_v33, %v17554_v15 }
 0x673   : > { %9895 = vst [vmem:[%s17559_s24 + $0x98] sm:$0xff] %v9825_v5  ;;  %v13845_v19 = vpop.f32.mrb[72].mxu0 }
 0x674   : > { %v13846_v50 = vpop.f32.mrb[73].mxu0 }
 0x675   : > { %v13847_v60 = vadd.f32 %v13846_v50, %v13845_v19  ;;  %v13848_v41 = vpop.f32.mrb[74].mxu0 }
 0x676   : > { %v13849_v37 = vpop.f32.mrb[75].mxu0 }
 0x677   : > { %v9830_v31 = vadd.f32 %v13847_v60, %v17554_v15  ;;  %v13850_v51 = vadd.f32 %v13849_v37, %v13848_v41 }
 0x679   : > { %9896 = vst [vmem:[%s17559_s24 + $0xa0] sm:$0xff] %v9830_v31  ;;  %v9833_v17 = vadd.f32 %v13850_v51, %v17554_v15 }
 0x67b   : > { %9897 = vst [vmem:[%s17559_s24 + $0xa8] sm:$0xff] %v9833_v17  ;;  %v13851_v14 = vpop.f32.mrb[76].mxu0 }
 0x67c   : > { %v13852_v25 = vpop.f32.mrb[77].mxu0 }
 0x67d   : > { %v13853_v3 = vadd.f32 %v13852_v25, %v13851_v14  ;;  %v13854_v56 = vpop.f32.mrb[78].mxu0 }
 0x67e   : > { %v13855_v29 = vpop.f32.mrb[79].mxu0 }
 0x67f   : > { %v9838_v44 = vadd.f32 %v13853_v3, %v17554_v15  ;;  %v13856_v32 = vadd.f32 %v13855_v29, %v13854_v56 }
 0x681   : > { %9898 = vst [vmem:[%s17559_s24 + $0xb0] sm:$0xff] %v9838_v44  ;;  %v9841_v0 = vadd.f32 %v13856_v32, %v17554_v15 }
 0x683   : > { %9899 = vst [vmem:[%s17559_s24 + $0xb8] sm:$0xff] %v9841_v0  ;;  %v13857_v40 = vpop.f32.mrb[80].mxu0 }
 0x684   : > { %v13858_v1 = vpop.f32.mrb[81].mxu0 }
 0x685   : > { %v13859_v9 = vadd.f32 %v13858_v1, %v13857_v40  ;;  %v13860_v38 = vpop.f32.mrb[82].mxu0 }
 0x686   : > { %v13861_v43 = vpop.f32.mrb[83].mxu0 }
 0x687   : > { %v9846_v35 = vadd.f32 %v13859_v9, %v17554_v15  ;;  %v13862_v10 = vadd.f32 %v13861_v43, %v13860_v38 }
 0x689   : > { %9900 = vst [vmem:[%s17559_s24 + $0xc0] sm:$0xff] %v9846_v35  ;;  %v9849_v13 = vadd.f32 %v13862_v10, %v17554_v15 }
 0x68b   : > { %9901 = vst [vmem:[%s17559_s24 + $0xc8] sm:$0xff] %v9849_v13  ;;  %v13863_v49 = vpop.f32.mrb[84].mxu0 }
 0x68c   : > { %v13864_v47 = vpop.f32.mrb[85].mxu0 }
 0x68d   : > { %v13865_v22 = vadd.f32 %v13864_v47, %v13863_v49  ;;  %v13866_v57 = vpop.f32.mrb[86].mxu0 }
 0x68e   : > { %v13867_v61 = vpop.f32.mrb[87].mxu0 }
 0x68f   : > { %v9854_v58 = vadd.f32 %v13865_v22, %v17554_v15  ;;  %v13868_v26 = vadd.f32 %v13867_v61, %v13866_v57 }
 0x691   : > { %9902 = vst [vmem:[%s17559_s24 + $0xd0] sm:$0xff] %v9854_v58  ;;  %v9857_v24 = vadd.f32 %v13868_v26, %v17554_v15 }
 0x693   : > { %9903 = vst [vmem:[%s17559_s24 + $0xd8] sm:$0xff] %v9857_v24  ;;  %v13869_v36 = vpop.f32.mrb[88].mxu0 }
 0x694   : > { %v13870_v45 = vpop.f32.mrb[89].mxu0 }
 0x695   : > { %v13871_v42 = vadd.f32 %v13870_v45, %v13869_v36  ;;  %v13872_v63 = vpop.f32.mrb[90].mxu0 }
 0x696   : > { %v13873_v54 = vpop.f32.mrb[91].mxu0 }
 0x697   : > { %v9862_v2 = vadd.f32 %v13871_v42, %v17554_v15  ;;  %v13874_v6 = vadd.f32 %v13873_v54, %v13872_v63 }
 0x699   : > { %9904 = vst [vmem:[%s17559_s24 + $0xe0] sm:$0xff] %v9862_v2  ;;  %v9865_v23 = vadd.f32 %v13874_v6, %v17554_v15 }
 0x69b   : > { %9905 = vst [vmem:[%s17559_s24 + $0xe8] sm:$0xff] %v9865_v23  ;;  %v13875_v28 = vpop.f32.mrb[92].mxu0 }
 0x69c   : > { %v13876_v53 = vpop.f32.mrb[93].mxu0 }
 0x69d   : > { %v13877_v20 = vadd.f32 %v13876_v53, %v13875_v28  ;;  %v13878_v21 = vpop.f32.mrb[94].mxu0 }
 0x69e   : > { %v13879_v27 = vpop.f32.mrb[95].mxu0 }
 0x69f   : > { %v9870_v7 = vadd.f32 %v13877_v20, %v17554_v15  ;;  %v13880_v59 = vadd.f32 %v13879_v27, %v13878_v21 }
 0x6a1   : > { %9906 = vst [vmem:[%s17559_s24 + $0xf0] sm:$0xff] %v9870_v7  ;;  %v9873_v11 = vadd.f32 %v13880_v59, %v17554_v15 }
 0x6a3   : > { %9907 = vst [vmem:[%s17559_s24 + $0xf8] sm:$0xff] %v9873_v11 }
 0x6a4 PF: > { %s15_s18 = sadd.s32 1, %s15025_s18  }
 0x6a5   : > { %p12_p4 = scmp.ge.s32.totalorder %s15_s18, 4  }
 0x6a7   :  { %14 = sbr.rel (!%p12_p4) target bundleno = 1 (0x1), region = 80 }

</bundles_post_ra>
